<compile_context>
chip_gen: v5e
topology: v5e:2x2
jax: 0.10.0
libtpu: 0.0.40
codegen_flags: <defaults>
</compile_context>

<pallas_src>
import jax
import jax.numpy as jnp
from jax import lax
from jax.experimental import pallas as pl
from jax.experimental.pallas import tpu as pltpu

EPS = 1e-5
K = 3            # conv kernel size (3x3, stride 1, SAME padding)
LANES = 128      # TPU lane width


def _round_up(x, m):
    return ((x + m - 1) // m) * m


def _vmem_limit_bytes():
    """Generation-specific VMEM budget: ~3/4 of physical, capped at 100 MiB
    (~96 MiB on v5e/v6e with 128 MiB, ~48 MiB on v7x with 64 MiB)."""
    cap = 64 * 1024 * 1024
    try:
        cap = int(pltpu.get_tpu_info().vmem_capacity_bytes)
    except Exception:
        cap = 64 * 1024 * 1024
    return int(min((cap * 3) // 4, 100 * 1024 * 1024))


def _row_tile(H, W, C, bytes_budget=2 * 1024 * 1024):
    """Largest divisor of H whose f32 (rows, W, C) tile stays under the budget."""
    limit = max(1, bytes_budget // max(1, W * C * 4))
    best = 1
    for d in range(1, H + 1):
        if H % d == 0 and d <= limit:
            best = d
    return best


# --------------------------------------------------------------------------- #
# Pass 1: per image, y2 = conv2(relu(conv1(x) + b1)) + b2 (bf16 output) plus
#         per-image per-channel sum / sum-of-squares of y2 (f32 BN statistics).
# --------------------------------------------------------------------------- #
def _conv_pair_kernel(x_ref, w1_ref, b1_ref, w2_ref, b2_ref,
                      y2_ref, ssum_ref, ssq_ref, pad_ref):
    H, W, C = x_ref.shape            # true (unpadded) channels
    Cp = pad_ref.shape[-1]           # lane-padded channels
    M = H * W

    # Re-zero the shared padded scratch (halo + lane-pad channels) every step:
    # cheap, and keeps the kernel correct when the "parallel" batch axis is
    # split across v7x TensorCores (each core has its own scratch instance).
    pad_ref[...] = jnp.zeros((H + 2, W + 2, Cp), jnp.bfloat16)
    # Stage the true-C interior of x (already bf16 from the wrapper).
    pad_ref[1:H + 1, 1:W + 1, 0:C] = x_ref[...]

    def conv3x3(w_ref):
        # Tap-wise accumulation: 9 (M,Cp)x(Cp,Cp) matmuls, bf16 in / f32 acc.
        # No (M, 9*Cp) im2col slab is ever materialised.
        acc = None
        for kh in range(K):
            for kw in range(K):
                tap = pad_ref[kh:kh + H, kw:kw + W, :].reshape(M, Cp)
                p = jnp.dot(tap, w_ref[kh * K + kw],
                            preferred_element_type=jnp.float32)
                acc = p if acc is None else acc + p
        return acc                                             # (M, Cp) f32

    # ---- conv1 + bias + ReLU --------------------------------------------------
    y1 = jnp.maximum(conv3x3(w1_ref) + b1_ref[...], 0.0)       # (M, Cp) f32
    # Padded output channels of y1 are exactly zero (zero weights + zero bias),
    # so writing the full Cp-wide interior keeps the lane padding zero.
    pad_ref[1:H + 1, 1:W + 1, :] = y1.astype(jnp.bfloat16).reshape(H, W, Cp)

    # ---- conv2 + bias (same padded scratch reused) ------------------------------
    y2 = conv3x3(w2_ref) + b2_ref[...]                         # (M, Cp) f32

    # ---- outputs: unpadded-channel bf16 activation + f32 one-pass BN stats -----
    y2c = y2[:, :C]                                            # (M, C) f32
    y2_ref[...] = y2c.astype(jnp.bfloat16).reshape(H, W, C)
    ssum_ref[...] = jnp.sum(y2c, axis=0, keepdims=True)
    ssq_ref[...] = jnp.sum(y2c * y2c, axis=0, keepdims=True)


# --------------------------------------------------------------------------- #
# Pass 2: out = y2 * scale + shift + x   (pure elementwise, row-tiled)
# --------------------------------------------------------------------------- #
def _bn_residual_kernel(y2_ref, x_ref, scale_ref, shift_ref, out_ref):
    out_ref[...] = (y2_ref[...].astype(jnp.float32) * scale_ref[...]
                    + shift_ref[...]
                    + x_ref[...].astype(jnp.float32))


@jax.jit
def resblock_forward(x_nchw, w1_oihw, b1, w2_oihw, b2, gamma, beta):
    """x: (N, C, H, W) float32 -> (N, C, H, W) float32. Training-mode BatchNorm."""
    N, C, H, W = x_nchw.shape
    Cp = _round_up(C, LANES)

    # NCHW -> NHWC, bf16, channels kept UNPADDED in HBM (lane padding is done in
    # VMEM inside pass 1).  bf16 halves the x read of pass 1 and the residual
    # read of pass 2; the matmul inputs are bf16 anyway.
    x_nhwc = jnp.transpose(x_nchw, (0, 2, 3, 1)).astype(jnp.bfloat16)

    def conv_w_taps(w_oihw):
        # OIHW -> (K*K, Cin_p, Cout_p) bf16, tap-major (kh, kw) order.
        w = jnp.transpose(w_oihw, (2, 3, 1, 0)).astype(jnp.float32)
        w = jnp.pad(w, ((0, 0), (0, 0), (0, Cp - C), (0, Cp - C)))
        return w.reshape(K * K, Cp, Cp).astype(jnp.bfloat16)

    def pad_bias(b):
        return jnp.pad(b.astype(jnp.float32).reshape(1, C), ((0, 0), (0, Cp - C)))

    w1t, w2t = conv_w_taps(w1_oihw), conv_w_taps(w2_oihw)
    b1p, b2p = pad_bias(b1), pad_bias(b2)

    vmem_limit = _vmem_limit_bytes()

    # ---- pass 1: conv -> ReLU -> conv, plus per-image BN partial sums ----------
    # NOTE: for large H this pass should additionally row-tile with a 2-row halo
    # so a single image block also fits v7x's 64 MiB VMEM; unnecessary here.
    y2, ssum, ssq = pl.pallas_call(
        _conv_pair_kernel,
        out_shape=(jax.ShapeDtypeStruct((N, H, W, C), jnp.bfloat16),
                   jax.ShapeDtypeStruct((N, 1, C), jnp.float32),
                   jax.ShapeDtypeStruct((N, 1, C), jnp.float32)),
        grid_spec=pltpu.PrefetchScalarGridSpec(
            num_scalar_prefetch=0,
            grid=(N,),
            in_specs=[
                pl.BlockSpec((None, H, W, C), lambda n: (n, 0, 0, 0)),     # x
                pl.BlockSpec((K * K, Cp, Cp), lambda n: (0, 0, 0)),        # w1 taps
                pl.BlockSpec((1, Cp), lambda n: (0, 0)),                   # b1
                pl.BlockSpec((K * K, Cp, Cp), lambda n: (0, 0, 0)),        # w2 taps
                pl.BlockSpec((1, Cp), lambda n: (0, 0)),                   # b2
            ],
            out_specs=[
                pl.BlockSpec((None, H, W, C), lambda n: (n, 0, 0, 0)),     # y2 bf16
                pl.BlockSpec((None, 1, C), lambda n: (n, 0, 0)),           # sum(y2)
                pl.BlockSpec((None, 1, C), lambda n: (n, 0, 0)),           # sum(y2^2)
            ],
            scratch_shapes=[pltpu.VMEM((H + 2, W + 2, Cp), jnp.bfloat16)],  # shared pad
        ),
        compiler_params=pltpu.CompilerParams(
            dimension_semantics=("parallel",),
            vmem_limit_bytes=vmem_limit),
    )(x_nhwc, w1t, b1p, w2t, b2p)

    # ---- global BatchNorm statistics (tiny (C,) math, done once in XLA) --------
    # One-pass E[y^2]-E[y]^2 in f32; adequate at these sizes (see review note).
    cnt = float(N * H * W)
    mean = jnp.sum(ssum, axis=0) / cnt                                   # (1, C)
    var = jnp.maximum(jnp.sum(ssq, axis=0) / cnt - mean * mean, 0.0)     # biased, as PyTorch BN
    scale = gamma.astype(jnp.float32).reshape(1, C) * lax.rsqrt(var + EPS)
    shift = beta.astype(jnp.float32).reshape(1, C) - mean * scale
    scale = scale.reshape(1, 1, C)
    shift = shift.reshape(1, 1, C)

    # ---- pass 2: normalize + residual, elementwise, row-tiled over (N, H) ------
    TH = _row_tile(H, W, C)
    out_nhwc = pl.pallas_call(
        _bn_residual_kernel,
        out_shape=jax.ShapeDtypeStruct((N, H, W, C), jnp.float32),
        grid_spec=pltpu.PrefetchScalarGridSpec(
            num_scalar_prefetch=0,
            grid=(N, H // TH),
            in_specs=[
                pl.BlockSpec((None, TH, W, C), lambda n, h: (n, h, 0, 0)),  # y2
                pl.BlockSpec((None, TH, W, C), lambda n, h: (n, h, 0, 0)),  # x residual
                pl.BlockSpec((1, 1, C), lambda n, h: (0, 0, 0)),            # scale
                pl.BlockSpec((1, 1, C), lambda n, h: (0, 0, 0)),            # shift
            ],
            out_specs=pl.BlockSpec((None, TH, W, C), lambda n, h: (n, h, 0, 0)),
        ),
        compiler_params=pltpu.CompilerParams(
            dimension_semantics=("parallel", "parallel"),
            vmem_limit_bytes=vmem_limit),
    )(y2, x_nhwc, scale, shift)

    # Epilogue transpose back to NCHW on the true-size (N,H,W,C) array
    # (no Cp-padded f32 slab round-trips through HBM any more).
    return jnp.transpose(out_nhwc, (0, 3, 1, 2))


def resblock_reference(x, w1, b1, w2, b2, gamma, beta):
    """Pure-JAX f32 NCHW reference mirroring the PyTorch module (training-mode BN)."""
    dn = ("NCHW", "OIHW", "NCHW")
    y = lax.conv_general_dilated(x, w1, (1, 1), "SAME", dimension_numbers=dn)
    y = y + b1[None, :, None, None]
    y = jnp.maximum(y, 0.0)
    y = lax.conv_general_dilated(y, w2, (1, 1), "SAME", dimension_numbers=dn)
    y = y + b2[None, :, None, None]
    mean = jnp.mean(y, axis=(0, 2, 3), keepdims=True)
    var = jnp.mean((y - mean) ** 2, axis=(0, 2, 3), keepdims=True)
    y = gamma[None, :, None, None] * (y - mean) * lax.rsqrt(var + EPS) \
        + beta[None, :, None, None]
    return y + x


if __name__ == "__main__":
    N, C, H, W = 2, 4, 16, 16

    key = jax.random.PRNGKey(0)
    kx, kw1, kb1, kw2, kb2 = jax.random.split(key, 5)

    x = jax.random.normal(kx, (N, C, H, W), jnp.float32)
    w1 = 0.1 * jax.random.normal(kw1, (C, C, K, K), jnp.float32)
    b1 = 0.1 * jax.random.normal(kb1, (C,), jnp.float32)
    w2 = 0.1 * jax.random.normal(kw2, (C, C, K, K), jnp.float32)
    b2 = 0.1 * jax.random.normal(kb2, (C,), jnp.float32)
    gamma = jnp.ones((C,), jnp.float32)     # fresh BatchNorm2d init
    beta = jnp.zeros((C,), jnp.float32)

    out = jax.block_until_ready(resblock_forward(x, w1, b1, w2, b2, gamma, beta))
    ref = resblock_reference(x, w1, b1, w2, b2, gamma, beta)

    assert out.shape == (N, C, H, W)
    # Tolerance note: matmul inputs are bf16 (f32 accumulation), x and the y2
    # intermediate are stored as bf16, and BatchNorm multiplies by 1/std
    # (~4-7x here), so worst-case deviation from the pure-f32 reference is a
    # few 1e-2; keep headroom while still catching real (O(1)) bugs.
    err = jnp.abs(out - ref)
    tol = 0.12 + 0.05 * jnp.abs(ref)
    max_err = float(jnp.max(err))
    assert bool(jnp.all(err <= tol)), f"mismatch vs reference (max abs err {max_err:.4f})"

    print("KERNEL_OK")
</pallas_src>

<mosaic_0001>
module attributes {stable_mosaic.version = 11 : i64} {
  func.func @_conv_pair_kernel(%arg0: i32, %arg1: memref<1x16x16x4xbf16, #tpu.memory_space<vmem>>, %arg2: memref<9x128x128xbf16, #tpu.memory_space<vmem>>, %arg3: memref<1x128xf32, #tpu.memory_space<vmem>>, %arg4: memref<9x128x128xbf16, #tpu.memory_space<vmem>>, %arg5: memref<1x128xf32, #tpu.memory_space<vmem>>, %arg6: memref<1x16x16x4xbf16, #tpu.memory_space<vmem>>, %arg7: memref<1x1x4xf32, #tpu.memory_space<vmem>>, %arg8: memref<1x1x4xf32, #tpu.memory_space<vmem>>, %arg9: memref<18x18x128xbf16, #tpu.memory_space<vmem>>) attributes {dimension_semantics = [#tpu.dimension_semantics<parallel>], iteration_bounds = array<i64: 2>, scalar_prefetch = 0 : i64, scratch_operands = 1 : i64, tpu.core_type = #tpu.core_type<tc>, window_params = [{transform_indices = @transform_0, window_bounds = array<i64: 1, 16, 16, 4>}, {pipeline_mode = #tpu.pipeline_mode<synchronous>, transform_indices = @transform_1, window_bounds = array<i64: 9, 128, 128>}, {pipeline_mode = #tpu.pipeline_mode<synchronous>, transform_indices = @transform_2, window_bounds = array<i64: 1, 128>}, {pipeline_mode = #tpu.pipeline_mode<synchronous>, transform_indices = @transform_3, window_bounds = array<i64: 9, 128, 128>}, {pipeline_mode = #tpu.pipeline_mode<synchronous>, transform_indices = @transform_4, window_bounds = array<i64: 1, 128>}, {transform_indices = @transform_5, window_bounds = array<i64: 1, 16, 16, 4>}, {transform_indices = @transform_6, window_bounds = array<i64: 1, 1, 4>}, {transform_indices = @transform_7, window_bounds = array<i64: 1, 1, 4>}]} {
    %cst = arith.constant 0.000000e+00 : bf16
    %0 = vector.broadcast %cst : bf16 to vector<18x18x128xbf16>
    %c0 = arith.constant 0 : index
    %c0_0 = arith.constant 0 : index
    %c0_1 = arith.constant 0 : index
    %1 = vector.load %arg9[%c0, %c0_0, %c0_1] : memref<18x18x128xbf16, #tpu.memory_space<vmem>>, vector<18x18x128xbf16>
    tpu.vector_store %arg9[%c0, %c0_0, %c0_1], %0 {strides = array<i32>} : memref<18x18x128xbf16, #tpu.memory_space<vmem>>, vector<18x18x128xbf16>,
    %c0_2 = arith.constant 0 : index
    %c0_3 = arith.constant 0 : index
    %c0_4 = arith.constant 0 : index
    %c0_5 = arith.constant 0 : index
    %2 = vector.load %arg1[%c0_2, %c0_3, %c0_4, %c0_5] : memref<1x16x16x4xbf16, #tpu.memory_space<vmem>>, vector<1x16x16x4xbf16>
    %3 = vector.shape_cast %2 : vector<1x16x16x4xbf16> to vector<16x16x4xbf16>
    %c1 = arith.constant 1 : index
    %c1_6 = arith.constant 1 : index
    %c0_7 = arith.constant 0 : index
    %4 = vector.load %arg9[%c1, %c1_6, %c0_7] : memref<18x18x128xbf16, #tpu.memory_space<vmem>>, vector<16x16x4xbf16>
    tpu.vector_store %arg9[%c1, %c1_6, %c0_7], %3 {strides = array<i32>} : memref<18x18x128xbf16, #tpu.memory_space<vmem>>, vector<16x16x4xbf16>,
    %c0_8 = arith.constant 0 : index
    %c0_9 = arith.constant 0 : index
    %c0_10 = arith.constant 0 : index
    %5 = vector.load %arg9[%c0_8, %c0_9, %c0_10] : memref<18x18x128xbf16, #tpu.memory_space<vmem>>, vector<16x16x128xbf16>
    %6 = vector.shape_cast %5 : vector<16x16x128xbf16> to vector<256x128xbf16>
    %c0_11 = arith.constant 0 : index
    %c0_12 = arith.constant 0 : index
    %c0_13 = arith.constant 0 : index
    %7 = vector.load %arg2[%c0_11, %c0_12, %c0_13] : memref<9x128x128xbf16, #tpu.memory_space<vmem>>, vector<1x128x128xbf16>
    %8 = vector.shape_cast %7 : vector<1x128x128xbf16> to vector<128x128xbf16>
    %cst_14 = arith.constant dense<0.000000e+00> : vector<256x128xf32>
    %9 = tpu.matmul %6, %8, %cst_14 {dimension_numbers = #tpu.dot_dimension_numbers<[1], [0], [0], [1], [0, 0, 1, 1], [], []>} : vector<256x128xbf16>, vector<128x128xbf16>, vector<256x128xf32> -> vector<256x128xf32>
    %c0_15 = arith.constant 0 : index
    %c1_16 = arith.constant 1 : index
    %c0_17 = arith.constant 0 : index
    %10 = vector.load %arg9[%c0_15, %c1_16, %c0_17] : memref<18x18x128xbf16, #tpu.memory_space<vmem>>, vector<16x16x128xbf16>
    %11 = vector.shape_cast %10 : vector<16x16x128xbf16> to vector<256x128xbf16>
    %c1_18 = arith.constant 1 : index
    %c0_19 = arith.constant 0 : index
    %c0_20 = arith.constant 0 : index
    %12 = vector.load %arg2[%c1_18, %c0_19, %c0_20] : memref<9x128x128xbf16, #tpu.memory_space<vmem>>, vector<1x128x128xbf16>
    %13 = vector.shape_cast %12 : vector<1x128x128xbf16> to vector<128x128xbf16>
    %cst_21 = arith.constant dense<0.000000e+00> : vector<256x128xf32>
    %14 = tpu.matmul %11, %13, %cst_21 {dimension_numbers = #tpu.dot_dimension_numbers<[1], [0], [0], [1], [0, 0, 1, 1], [], []>} : vector<256x128xbf16>, vector<128x128xbf16>, vector<256x128xf32> -> vector<256x128xf32>
    %15 = arith.addf %9, %14 : vector<256x128xf32>
    %c0_22 = arith.constant 0 : index
    %c2 = arith.constant 2 : index
    %c0_23 = arith.constant 0 : index
    %16 = vector.load %arg9[%c0_22, %c2, %c0_23] : memref<18x18x128xbf16, #tpu.memory_space<vmem>>, vector<16x16x128xbf16>
    %17 = vector.shape_cast %16 : vector<16x16x128xbf16> to vector<256x128xbf16>
    %c2_24 = arith.constant 2 : index
    %c0_25 = arith.constant 0 : index
    %c0_26 = arith.constant 0 : index
    %18 = vector.load %arg2[%c2_24, %c0_25, %c0_26] : memref<9x128x128xbf16, #tpu.memory_space<vmem>>, vector<1x128x128xbf16>
    %19 = vector.shape_cast %18 : vector<1x128x128xbf16> to vector<128x128xbf16>
    %cst_27 = arith.constant dense<0.000000e+00> : vector<256x128xf32>
    %20 = tpu.matmul %17, %19, %cst_27 {dimension_numbers = #tpu.dot_dimension_numbers<[1], [0], [0], [1], [0, 0, 1, 1], [], []>} : vector<256x128xbf16>, vector<128x128xbf16>, vector<256x128xf32> -> vector<256x128xf32>
    %21 = arith.addf %15, %20 : vector<256x128xf32>
    %c1_28 = arith.constant 1 : index
    %c0_29 = arith.constant 0 : index
    %c0_30 = arith.constant 0 : index
    %22 = vector.load %arg9[%c1_28, %c0_29, %c0_30] : memref<18x18x128xbf16, #tpu.memory_space<vmem>>, vector<16x16x128xbf16>
    %23 = vector.shape_cast %22 : vector<16x16x128xbf16> to vector<256x128xbf16>
    %c3 = arith.constant 3 : index
    %c0_31 = arith.constant 0 : index
    %c0_32 = arith.constant 0 : index
    %24 = vector.load %arg2[%c3, %c0_31, %c0_32] : memref<9x128x128xbf16, #tpu.memory_space<vmem>>, vector<1x128x128xbf16>
    %25 = vector.shape_cast %24 : vector<1x128x128xbf16> to vector<128x128xbf16>
    %cst_33 = arith.constant dense<0.000000e+00> : vector<256x128xf32>
    %26 = tpu.matmul %23, %25, %cst_33 {dimension_numbers = #tpu.dot_dimension_numbers<[1], [0], [0], [1], [0, 0, 1, 1], [], []>} : vector<256x128xbf16>, vector<128x128xbf16>, vector<256x128xf32> -> vector<256x128xf32>
    %27 = arith.addf %21, %26 : vector<256x128xf32>
    %c1_34 = arith.constant 1 : index
    %c1_35 = arith.constant 1 : index
    %c0_36 = arith.constant 0 : index
    %28 = vector.load %arg9[%c1_34, %c1_35, %c0_36] : memref<18x18x128xbf16, #tpu.memory_space<vmem>>, vector<16x16x128xbf16>
    %29 = vector.shape_cast %28 : vector<16x16x128xbf16> to vector<256x128xbf16>
    %c4 = arith.constant 4 : index
    %c0_37 = arith.constant 0 : index
    %c0_38 = arith.constant 0 : index
    %30 = vector.load %arg2[%c4, %c0_37, %c0_38] : memref<9x128x128xbf16, #tpu.memory_space<vmem>>, vector<1x128x128xbf16>
    %31 = vector.shape_cast %30 : vector<1x128x128xbf16> to vector<128x128xbf16>
    %cst_39 = arith.constant dense<0.000000e+00> : vector<256x128xf32>
    %32 = tpu.matmul %29, %31, %cst_39 {dimension_numbers = #tpu.dot_dimension_numbers<[1], [0], [0], [1], [0, 0, 1, 1], [], []>} : vector<256x128xbf16>, vector<128x128xbf16>, vector<256x128xf32> -> vector<256x128xf32>
    %33 = arith.addf %27, %32 : vector<256x128xf32>
    %c1_40 = arith.constant 1 : index
    %c2_41 = arith.constant 2 : index
    %c0_42 = arith.constant 0 : index
    %34 = vector.load %arg9[%c1_40, %c2_41, %c0_42] : memref<18x18x128xbf16, #tpu.memory_space<vmem>>, vector<16x16x128xbf16>
    %35 = vector.shape_cast %34 : vector<16x16x128xbf16> to vector<256x128xbf16>
    %c5 = arith.constant 5 : index
    %c0_43 = arith.constant 0 : index
    %c0_44 = arith.constant 0 : index
    %36 = vector.load %arg2[%c5, %c0_43, %c0_44] : memref<9x128x128xbf16, #tpu.memory_space<vmem>>, vector<1x128x128xbf16>
    %37 = vector.shape_cast %36 : vector<1x128x128xbf16> to vector<128x128xbf16>
    %cst_45 = arith.constant dense<0.000000e+00> : vector<256x128xf32>
    %38 = tpu.matmul %35, %37, %cst_45 {dimension_numbers = #tpu.dot_dimension_numbers<[1], [0], [0], [1], [0, 0, 1, 1], [], []>} : vector<256x128xbf16>, vector<128x128xbf16>, vector<256x128xf32> -> vector<256x128xf32>
    %39 = arith.addf %33, %38 : vector<256x128xf32>
    %c2_46 = arith.constant 2 : index
    %c0_47 = arith.constant 0 : index
    %c0_48 = arith.constant 0 : index
    %40 = vector.load %arg9[%c2_46, %c0_47, %c0_48] : memref<18x18x128xbf16, #tpu.memory_space<vmem>>, vector<16x16x128xbf16>
    %41 = vector.shape_cast %40 : vector<16x16x128xbf16> to vector<256x128xbf16>
    %c6 = arith.constant 6 : index
    %c0_49 = arith.constant 0 : index
    %c0_50 = arith.constant 0 : index
    %42 = vector.load %arg2[%c6, %c0_49, %c0_50] : memref<9x128x128xbf16, #tpu.memory_space<vmem>>, vector<1x128x128xbf16>
    %43 = vector.shape_cast %42 : vector<1x128x128xbf16> to vector<128x128xbf16>
    %cst_51 = arith.constant dense<0.000000e+00> : vector<256x128xf32>
    %44 = tpu.matmul %41, %43, %cst_51 {dimension_numbers = #tpu.dot_dimension_numbers<[1], [0], [0], [1], [0, 0, 1, 1], [], []>} : vector<256x128xbf16>, vector<128x128xbf16>, vector<256x128xf32> -> vector<256x128xf32>
    %45 = arith.addf %39, %44 : vector<256x128xf32>
    %c2_52 = arith.constant 2 : index
    %c1_53 = arith.constant 1 : index
    %c0_54 = arith.constant 0 : index
    %46 = vector.load %arg9[%c2_52, %c1_53, %c0_54] : memref<18x18x128xbf16, #tpu.memory_space<vmem>>, vector<16x16x128xbf16>
    %47 = vector.shape_cast %46 : vector<16x16x128xbf16> to vector<256x128xbf16>
    %c7 = arith.constant 7 : index
    %c0_55 = arith.constant 0 : index
    %c0_56 = arith.constant 0 : index
    %48 = vector.load %arg2[%c7, %c0_55, %c0_56] : memref<9x128x128xbf16, #tpu.memory_space<vmem>>, vector<1x128x128xbf16>
    %49 = vector.shape_cast %48 : vector<1x128x128xbf16> to vector<128x128xbf16>
    %cst_57 = arith.constant dense<0.000000e+00> : vector<256x128xf32>
    %50 = tpu.matmul %47, %49, %cst_57 {dimension_numbers = #tpu.dot_dimension_numbers<[1], [0], [0], [1], [0, 0, 1, 1], [], []>} : vector<256x128xbf16>, vector<128x128xbf16>, vector<256x128xf32> -> vector<256x128xf32>
    %51 = arith.addf %45, %50 : vector<256x128xf32>
    %c2_58 = arith.constant 2 : index
    %c2_59 = arith.constant 2 : index
    %c0_60 = arith.constant 0 : index
    %52 = vector.load %arg9[%c2_58, %c2_59, %c0_60] : memref<18x18x128xbf16, #tpu.memory_space<vmem>>, vector<16x16x128xbf16>
    %53 = vector.shape_cast %52 : vector<16x16x128xbf16> to vector<256x128xbf16>
    %c8 = arith.constant 8 : index
    %c0_61 = arith.constant 0 : index
    %c0_62 = arith.constant 0 : index
    %54 = vector.load %arg2[%c8, %c0_61, %c0_62] : memref<9x128x128xbf16, #tpu.memory_space<vmem>>, vector<1x128x128xbf16>
    %55 = vector.shape_cast %54 : vector<1x128x128xbf16> to vector<128x128xbf16>
    %cst_63 = arith.constant dense<0.000000e+00> : vector<256x128xf32>
    %56 = tpu.matmul %53, %55, %cst_63 {dimension_numbers = #tpu.dot_dimension_numbers<[1], [0], [0], [1], [0, 0, 1, 1], [], []>} : vector<256x128xbf16>, vector<128x128xbf16>, vector<256x128xf32> -> vector<256x128xf32>
    %57 = arith.addf %51, %56 : vector<256x128xf32>
    %c0_64 = arith.constant 0 : index
    %c0_65 = arith.constant 0 : index
    %58 = vector.load %arg3[%c0_64, %c0_65] : memref<1x128xf32, #tpu.memory_space<vmem>>, vector<1x128xf32>
    %59 = vector.broadcast %58 : vector<1x128xf32> to vector<256x128xf32>
    %60 = arith.addf %57, %59 : vector<256x128xf32>
    %cst_66 = arith.constant 0.000000e+00 : f32
    %61 = vector.broadcast %cst_66 : f32 to vector<256x128xf32>
    %62 = arith.maximumf %60, %61 : vector<256x128xf32>
    %63 = arith.truncf %62 : vector<256x128xf32> to vector<256x128xbf16>
    %64 = vector.shape_cast %63 : vector<256x128xbf16> to vector<16x16x128xbf16>
    %c1_67 = arith.constant 1 : index
    %c1_68 = arith.constant 1 : index
    %c0_69 = arith.constant 0 : index
    %65 = vector.load %arg9[%c1_67, %c1_68, %c0_69] : memref<18x18x128xbf16, #tpu.memory_space<vmem>>, vector<16x16x128xbf16>
    tpu.vector_store %arg9[%c1_67, %c1_68, %c0_69], %64 {strides = array<i32>} : memref<18x18x128xbf16, #tpu.memory_space<vmem>>, vector<16x16x128xbf16>,
    %c0_70 = arith.constant 0 : index
    %c0_71 = arith.constant 0 : index
    %c0_72 = arith.constant 0 : index
    %66 = vector.load %arg9[%c0_70, %c0_71, %c0_72] : memref<18x18x128xbf16, #tpu.memory_space<vmem>>, vector<16x16x128xbf16>
    %67 = vector.shape_cast %66 : vector<16x16x128xbf16> to vector<256x128xbf16>
    %c0_73 = arith.constant 0 : index
    %c0_74 = arith.constant 0 : index
    %c0_75 = arith.constant 0 : index
    %68 = vector.load %arg4[%c0_73, %c0_74, %c0_75] : memref<9x128x128xbf16, #tpu.memory_space<vmem>>, vector<1x128x128xbf16>
    %69 = vector.shape_cast %68 : vector<1x128x128xbf16> to vector<128x128xbf16>
    %cst_76 = arith.constant dense<0.000000e+00> : vector<256x128xf32>
    %70 = tpu.matmul %67, %69, %cst_76 {dimension_numbers = #tpu.dot_dimension_numbers<[1], [0], [0], [1], [0, 0, 1, 1], [], []>} : vector<256x128xbf16>, vector<128x128xbf16>, vector<256x128xf32> -> vector<256x128xf32>
    %c0_77 = arith.constant 0 : index
    %c1_78 = arith.constant 1 : index
    %c0_79 = arith.constant 0 : index
    %71 = vector.load %arg9[%c0_77, %c1_78, %c0_79] : memref<18x18x128xbf16, #tpu.memory_space<vmem>>, vector<16x16x128xbf16>
    %72 = vector.shape_cast %71 : vector<16x16x128xbf16> to vector<256x128xbf16>
    %c1_80 = arith.constant 1 : index
    %c0_81 = arith.constant 0 : index
    %c0_82 = arith.constant 0 : index
    %73 = vector.load %arg4[%c1_80, %c0_81, %c0_82] : memref<9x128x128xbf16, #tpu.memory_space<vmem>>, vector<1x128x128xbf16>
    %74 = vector.shape_cast %73 : vector<1x128x128xbf16> to vector<128x128xbf16>
    %cst_83 = arith.constant dense<0.000000e+00> : vector<256x128xf32>
    %75 = tpu.matmul %72, %74, %cst_83 {dimension_numbers = #tpu.dot_dimension_numbers<[1], [0], [0], [1], [0, 0, 1, 1], [], []>} : vector<256x128xbf16>, vector<128x128xbf16>, vector<256x128xf32> -> vector<256x128xf32>
    %76 = arith.addf %70, %75 : vector<256x128xf32>
    %c0_84 = arith.constant 0 : index
    %c2_85 = arith.constant 2 : index
    %c0_86 = arith.constant 0 : index
    %77 = vector.load %arg9[%c0_84, %c2_85, %c0_86] : memref<18x18x128xbf16, #tpu.memory_space<vmem>>, vector<16x16x128xbf16>
    %78 = vector.shape_cast %77 : vector<16x16x128xbf16> to vector<256x128xbf16>
    %c2_87 = arith.constant 2 : index
    %c0_88 = arith.constant 0 : index
    %c0_89 = arith.constant 0 : index
    %79 = vector.load %arg4[%c2_87, %c0_88, %c0_89] : memref<9x128x128xbf16, #tpu.memory_space<vmem>>, vector<1x128x128xbf16>
    %80 = vector.shape_cast %79 : vector<1x128x128xbf16> to vector<128x128xbf16>
    %cst_90 = arith.constant dense<0.000000e+00> : vector<256x128xf32>
    %81 = tpu.matmul %78, %80, %cst_90 {dimension_numbers = #tpu.dot_dimension_numbers<[1], [0], [0], [1], [0, 0, 1, 1], [], []>} : vector<256x128xbf16>, vector<128x128xbf16>, vector<256x128xf32> -> vector<256x128xf32>
    %82 = arith.addf %76, %81 : vector<256x128xf32>
    %c1_91 = arith.constant 1 : index
    %c0_92 = arith.constant 0 : index
    %c0_93 = arith.constant 0 : index
    %83 = vector.load %arg9[%c1_91, %c0_92, %c0_93] : memref<18x18x128xbf16, #tpu.memory_space<vmem>>, vector<16x16x128xbf16>
    %84 = vector.shape_cast %83 : vector<16x16x128xbf16> to vector<256x128xbf16>
    %c3_94 = arith.constant 3 : index
    %c0_95 = arith.constant 0 : index
    %c0_96 = arith.constant 0 : index
    %85 = vector.load %arg4[%c3_94, %c0_95, %c0_96] : memref<9x128x128xbf16, #tpu.memory_space<vmem>>, vector<1x128x128xbf16>
    %86 = vector.shape_cast %85 : vector<1x128x128xbf16> to vector<128x128xbf16>
    %cst_97 = arith.constant dense<0.000000e+00> : vector<256x128xf32>
    %87 = tpu.matmul %84, %86, %cst_97 {dimension_numbers = #tpu.dot_dimension_numbers<[1], [0], [0], [1], [0, 0, 1, 1], [], []>} : vector<256x128xbf16>, vector<128x128xbf16>, vector<256x128xf32> -> vector<256x128xf32>
    %88 = arith.addf %82, %87 : vector<256x128xf32>
    %c1_98 = arith.constant 1 : index
    %c1_99 = arith.constant 1 : index
    %c0_100 = arith.constant 0 : index
    %89 = vector.load %arg9[%c1_98, %c1_99, %c0_100] : memref<18x18x128xbf16, #tpu.memory_space<vmem>>, vector<16x16x128xbf16>
    %90 = vector.shape_cast %89 : vector<16x16x128xbf16> to vector<256x128xbf16>
    %c4_101 = arith.constant 4 : index
    %c0_102 = arith.constant 0 : index
    %c0_103 = arith.constant 0 : index
    %91 = vector.load %arg4[%c4_101, %c0_102, %c0_103] : memref<9x128x128xbf16, #tpu.memory_space<vmem>>, vector<1x128x128xbf16>
    %92 = vector.shape_cast %91 : vector<1x128x128xbf16> to vector<128x128xbf16>
    %cst_104 = arith.constant dense<0.000000e+00> : vector<256x128xf32>
    %93 = tpu.matmul %90, %92, %cst_104 {dimension_numbers = #tpu.dot_dimension_numbers<[1], [0], [0], [1], [0, 0, 1, 1], [], []>} : vector<256x128xbf16>, vector<128x128xbf16>, vector<256x128xf32> -> vector<256x128xf32>
    %94 = arith.addf %88, %93 : vector<256x128xf32>
    %c1_105 = arith.constant 1 : index
    %c2_106 = arith.constant 2 : index
    %c0_107 = arith.constant 0 : index
    %95 = vector.load %arg9[%c1_105, %c2_106, %c0_107] : memref<18x18x128xbf16, #tpu.memory_space<vmem>>, vector<16x16x128xbf16>
    %96 = vector.shape_cast %95 : vector<16x16x128xbf16> to vector<256x128xbf16>
    %c5_108 = arith.constant 5 : index
    %c0_109 = arith.constant 0 : index
    %c0_110 = arith.constant 0 : index
    %97 = vector.load %arg4[%c5_108, %c0_109, %c0_110] : memref<9x128x128xbf16, #tpu.memory_space<vmem>>, vector<1x128x128xbf16>
    %98 = vector.shape_cast %97 : vector<1x128x128xbf16> to vector<128x128xbf16>
    %cst_111 = arith.constant dense<0.000000e+00> : vector<256x128xf32>
    %99 = tpu.matmul %96, %98, %cst_111 {dimension_numbers = #tpu.dot_dimension_numbers<[1], [0], [0], [1], [0, 0, 1, 1], [], []>} : vector<256x128xbf16>, vector<128x128xbf16>, vector<256x128xf32> -> vector<256x128xf32>
    %100 = arith.addf %94, %99 : vector<256x128xf32>
    %c2_112 = arith.constant 2 : index
    %c0_113 = arith.constant 0 : index
    %c0_114 = arith.constant 0 : index
    %101 = vector.load %arg9[%c2_112, %c0_113, %c0_114] : memref<18x18x128xbf16, #tpu.memory_space<vmem>>, vector<16x16x128xbf16>
    %102 = vector.shape_cast %101 : vector<16x16x128xbf16> to vector<256x128xbf16>
    %c6_115 = arith.constant 6 : index
    %c0_116 = arith.constant 0 : index
    %c0_117 = arith.constant 0 : index
    %103 = vector.load %arg4[%c6_115, %c0_116, %c0_117] : memref<9x128x128xbf16, #tpu.memory_space<vmem>>, vector<1x128x128xbf16>
    %104 = vector.shape_cast %103 : vector<1x128x128xbf16> to vector<128x128xbf16>
    %cst_118 = arith.constant dense<0.000000e+00> : vector<256x128xf32>
    %105 = tpu.matmul %102, %104, %cst_118 {dimension_numbers = #tpu.dot_dimension_numbers<[1], [0], [0], [1], [0, 0, 1, 1], [], []>} : vector<256x128xbf16>, vector<128x128xbf16>, vector<256x128xf32> -> vector<256x128xf32>
    %106 = arith.addf %100, %105 : vector<256x128xf32>
    %c2_119 = arith.constant 2 : index
    %c1_120 = arith.constant 1 : index
    %c0_121 = arith.constant 0 : index
    %107 = vector.load %arg9[%c2_119, %c1_120, %c0_121] : memref<18x18x128xbf16, #tpu.memory_space<vmem>>, vector<16x16x128xbf16>
    %108 = vector.shape_cast %107 : vector<16x16x128xbf16> to vector<256x128xbf16>
    %c7_122 = arith.constant 7 : index
    %c0_123 = arith.constant 0 : index
    %c0_124 = arith.constant 0 : index
    %109 = vector.load %arg4[%c7_122, %c0_123, %c0_124] : memref<9x128x128xbf16, #tpu.memory_space<vmem>>, vector<1x128x128xbf16>
    %110 = vector.shape_cast %109 : vector<1x128x128xbf16> to vector<128x128xbf16>
    %cst_125 = arith.constant dense<0.000000e+00> : vector<256x128xf32>
    %111 = tpu.matmul %108, %110, %cst_125 {dimension_numbers = #tpu.dot_dimension_numbers<[1], [0], [0], [1], [0, 0, 1, 1], [], []>} : vector<256x128xbf16>, vector<128x128xbf16>, vector<256x128xf32> -> vector<256x128xf32>
    %112 = arith.addf %106, %111 : vector<256x128xf32>
    %c2_126 = arith.constant 2 : index
    %c2_127 = arith.constant 2 : index
    %c0_128 = arith.constant 0 : index
    %113 = vector.load %arg9[%c2_126, %c2_127, %c0_128] : memref<18x18x128xbf16, #tpu.memory_space<vmem>>, vector<16x16x128xbf16>
    %114 = vector.shape_cast %113 : vector<16x16x128xbf16> to vector<256x128xbf16>
    %c8_129 = arith.constant 8 : index
    %c0_130 = arith.constant 0 : index
    %c0_131 = arith.constant 0 : index
    %115 = vector.load %arg4[%c8_129, %c0_130, %c0_131] : memref<9x128x128xbf16, #tpu.memory_space<vmem>>, vector<1x128x128xbf16>
    %116 = vector.shape_cast %115 : vector<1x128x128xbf16> to vector<128x128xbf16>
    %cst_132 = arith.constant dense<0.000000e+00> : vector<256x128xf32>
    %117 = tpu.matmul %114, %116, %cst_132 {dimension_numbers = #tpu.dot_dimension_numbers<[1], [0], [0], [1], [0, 0, 1, 1], [], []>} : vector<256x128xbf16>, vector<128x128xbf16>, vector<256x128xf32> -> vector<256x128xf32>
    %118 = arith.addf %112, %117 : vector<256x128xf32>
    %c0_133 = arith.constant 0 : index
    %c0_134 = arith.constant 0 : index
    %119 = vector.load %arg5[%c0_133, %c0_134] : memref<1x128xf32, #tpu.memory_space<vmem>>, vector<1x128xf32>
    %120 = vector.broadcast %119 : vector<1x128xf32> to vector<256x128xf32>
    %121 = arith.addf %118, %120 : vector<256x128xf32>
    %122 = vector.extract_strided_slice %121 {offsets = [0, 0], sizes = [256, 4], strides = [1, 1]} : vector<256x128xf32> to vector<256x4xf32>
    %123 = arith.truncf %122 : vector<256x4xf32> to vector<256x4xbf16>
    %124 = vector.shape_cast %123 : vector<256x4xbf16> to vector<16x16x4xbf16>
    %c0_135 = arith.constant 0 : index
    %c0_136 = arith.constant 0 : index
    %c0_137 = arith.constant 0 : index
    %c0_138 = arith.constant 0 : index
    %125 = vector.load %arg6[%c0_135, %c0_136, %c0_137, %c0_138] : memref<1x16x16x4xbf16, #tpu.memory_space<vmem>>, vector<1x16x16x4xbf16>
    %126 = vector.shape_cast %125 : vector<1x16x16x4xbf16> to vector<16x16x4xbf16>
    %127 = vector.shape_cast %124 : vector<16x16x4xbf16> to vector<1x16x16x4xbf16>
    tpu.vector_store %arg6[%c0_135, %c0_136, %c0_137, %c0_138], %127 {strides = array<i32>} : memref<1x16x16x4xbf16, #tpu.memory_space<vmem>>, vector<1x16x16x4xbf16>,
    %cst_139 = arith.constant dense<0.000000e+00> : vector<4xf32>
    %128 = vector.multi_reduction <add>, %122, %cst_139 [0] : vector<256x4xf32> to vector<4xf32>
    %129 = vector.shape_cast %128 : vector<4xf32> to vector<1x4xf32>
    %c0_140 = arith.constant 0 : index
    %c0_141 = arith.constant 0 : index
    %c0_142 = arith.constant 0 : index
    %130 = vector.load %arg7[%c0_140, %c0_141, %c0_142] : memref<1x1x4xf32, #tpu.memory_space<vmem>>, vector<1x1x4xf32>
    %131 = vector.shape_cast %130 : vector<1x1x4xf32> to vector<1x4xf32>
    %132 = vector.shape_cast %129 : vector<1x4xf32> to vector<1x1x4xf32>
    tpu.vector_store %arg7[%c0_140, %c0_141, %c0_142], %132 {strides = array<i32>} : memref<1x1x4xf32, #tpu.memory_space<vmem>>, vector<1x1x4xf32>,
    %133 = arith.mulf %122, %122 : vector<256x4xf32>
    %cst_143 = arith.constant dense<0.000000e+00> : vector<4xf32>
    %134 = vector.multi_reduction <add>, %133, %cst_143 [0] : vector<256x4xf32> to vector<4xf32>
    %135 = vector.shape_cast %134 : vector<4xf32> to vector<1x4xf32>
    %c0_144 = arith.constant 0 : index
    %c0_145 = arith.constant 0 : index
    %c0_146 = arith.constant 0 : index
    %136 = vector.load %arg8[%c0_144, %c0_145, %c0_146] : memref<1x1x4xf32, #tpu.memory_space<vmem>>, vector<1x1x4xf32>
    %137 = vector.shape_cast %136 : vector<1x1x4xf32> to vector<1x4xf32>
    %138 = vector.shape_cast %135 : vector<1x4xf32> to vector<1x1x4xf32>
    tpu.vector_store %arg8[%c0_144, %c0_145, %c0_146], %138 {strides = array<i32>} : memref<1x1x4xf32, #tpu.memory_space<vmem>>, vector<1x1x4xf32>,
    return
  }
  func.func @transform_0(%arg0: i32) -> (i32, i32, i32, i32) {
    %c0_i32 = arith.constant 0 : i32
    %c0_i32_0 = arith.constant 0 : i32
    %c0_i32_1 = arith.constant 0 : i32
    %c0_i32_2 = arith.constant 0 : i32
    return %arg0, %c0_i32, %c0_i32_0, %c0_i32_1 : i32, i32, i32, i32
  }
  func.func @transform_1(%arg0: i32) -> (i32, i32, i32) {
    %c0_i32 = arith.constant 0 : i32
    %c0_i32_0 = arith.constant 0 : i32
    %c0_i32_1 = arith.constant 0 : i32
    %c0_i32_2 = arith.constant 0 : i32
    return %c0_i32, %c0_i32_0, %c0_i32_1 : i32, i32, i32
  }
  func.func @transform_2(%arg0: i32) -> (i32, i32) {
    %c0_i32 = arith.constant 0 : i32
    %c0_i32_0 = arith.constant 0 : i32
    %c0_i32_1 = arith.constant 0 : i32
    return %c0_i32, %c0_i32_0 : i32, i32
  }
  func.func @transform_3(%arg0: i32) -> (i32, i32, i32) {
    %c0_i32 = arith.constant 0 : i32
    %c0_i32_0 = arith.constant 0 : i32
    %c0_i32_1 = arith.constant 0 : i32
    %c0_i32_2 = arith.constant 0 : i32
    return %c0_i32, %c0_i32_0, %c0_i32_1 : i32, i32, i32
  }
  func.func @transform_4(%arg0: i32) -> (i32, i32) {
    %c0_i32 = arith.constant 0 : i32
    %c0_i32_0 = arith.constant 0 : i32
    %c0_i32_1 = arith.constant 0 : i32
    return %c0_i32, %c0_i32_0 : i32, i32
  }
  func.func @transform_5(%arg0: i32) -> (i32, i32, i32, i32) {
    %c0_i32 = arith.constant 0 : i32
    %c0_i32_0 = arith.constant 0 : i32
    %c0_i32_1 = arith.constant 0 : i32
    %c0_i32_2 = arith.constant 0 : i32
    return %arg0, %c0_i32, %c0_i32_0, %c0_i32_1 : i32, i32, i32, i32
  }
  func.func @transform_6(%arg0: i32) -> (i32, i32, i32) {
    %c0_i32 = arith.constant 0 : i32
    %c0_i32_0 = arith.constant 0 : i32
    %c0_i32_1 = arith.constant 0 : i32
    return %arg0, %c0_i32, %c0_i32_0 : i32, i32, i32
  }
  func.func @transform_7(%arg0: i32) -> (i32, i32, i32) {
    %c0_i32 = arith.constant 0 : i32
    %c0_i32_0 = arith.constant 0 : i32
    %c0_i32_1 = arith.constant 0 : i32
    return %arg0, %c0_i32, %c0_i32_0 : i32, i32, i32
  }
}

module attributes {stable_mosaic.version = 11 : i64} {
  func.func @_bn_residual_kernel(%arg0: i32, %arg1: i32, %arg2: memref<1x16x16x4xbf16, #tpu.memory_space<vmem>>, %arg3: memref<1x16x16x4xbf16, #tpu.memory_space<vmem>>, %arg4: memref<1x1x4xf32, #tpu.memory_space<vmem>>, %arg5: memref<1x1x4xf32, #tpu.memory_space<vmem>>, %arg6: memref<1x16x16x4xf32, #tpu.memory_space<vmem>>) attributes {dimension_semantics = [#tpu.dimension_semantics<parallel>, #tpu.dimension_semantics<parallel>], iteration_bounds = array<i64: 2, 1>, scalar_prefetch = 0 : i64, scratch_operands = 0 : i64, tpu.core_type = #tpu.core_type<tc>, window_params = [{transform_indices = @transform_0, window_bounds = array<i64: 1, 16, 16, 4>}, {transform_indices = @transform_1, window_bounds = array<i64: 1, 16, 16, 4>}, {pipeline_mode = #tpu.pipeline_mode<synchronous>, transform_indices = @transform_2, window_bounds = array<i64: 1, 1, 4>}, {pipeline_mode = #tpu.pipeline_mode<synchronous>, transform_indices = @transform_3, window_bounds = array<i64: 1, 1, 4>}, {transform_indices = @transform_4, window_bounds = array<i64: 1, 16, 16, 4>}]} {
    %c0 = arith.constant 0 : index
    %c0_0 = arith.constant 0 : index
    %c0_1 = arith.constant 0 : index
    %c0_2 = arith.constant 0 : index
    %0 = vector.load %arg2[%c0, %c0_0, %c0_1, %c0_2] : memref<1x16x16x4xbf16, #tpu.memory_space<vmem>>, vector<1x16x16x4xbf16>
    %1 = vector.shape_cast %0 : vector<1x16x16x4xbf16> to vector<16x16x4xbf16>
    %2 = arith.extf %1 : vector<16x16x4xbf16> to vector<16x16x4xf32>
    %c0_3 = arith.constant 0 : index
    %c0_4 = arith.constant 0 : index
    %c0_5 = arith.constant 0 : index
    %3 = vector.load %arg4[%c0_3, %c0_4, %c0_5] : memref<1x1x4xf32, #tpu.memory_space<vmem>>, vector<1x1x4xf32>
    %4 = vector.broadcast %3 : vector<1x1x4xf32> to vector<16x16x4xf32>
    %5 = arith.mulf %2, %4 : vector<16x16x4xf32>
    %c0_6 = arith.constant 0 : index
    %c0_7 = arith.constant 0 : index
    %c0_8 = arith.constant 0 : index
    %6 = vector.load %arg5[%c0_6, %c0_7, %c0_8] : memref<1x1x4xf32, #tpu.memory_space<vmem>>, vector<1x1x4xf32>
    %7 = vector.broadcast %6 : vector<1x1x4xf32> to vector<16x16x4xf32>
    %8 = arith.addf %5, %7 : vector<16x16x4xf32>
    %c0_9 = arith.constant 0 : index
    %c0_10 = arith.constant 0 : index
    %c0_11 = arith.constant 0 : index
    %c0_12 = arith.constant 0 : index
    %9 = vector.load %arg3[%c0_9, %c0_10, %c0_11, %c0_12] : memref<1x16x16x4xbf16, #tpu.memory_space<vmem>>, vector<1x16x16x4xbf16>
    %10 = vector.shape_cast %9 : vector<1x16x16x4xbf16> to vector<16x16x4xbf16>
    %11 = arith.extf %10 : vector<16x16x4xbf16> to vector<16x16x4xf32>
    %12 = arith.addf %8, %11 : vector<16x16x4xf32>
    %c0_13 = arith.constant 0 : index
    %c0_14 = arith.constant 0 : index
    %c0_15 = arith.constant 0 : index
    %c0_16 = arith.constant 0 : index
    %13 = vector.load %arg6[%c0_13, %c0_14, %c0_15, %c0_16] : memref<1x16x16x4xf32, #tpu.memory_space<vmem>>, vector<1x16x16x4xf32>
    %14 = vector.shape_cast %13 : vector<1x16x16x4xf32> to vector<16x16x4xf32>
    %15 = vector.shape_cast %12 : vector<16x16x4xf32> to vector<1x16x16x4xf32>
    tpu.vector_store %arg6[%c0_13, %c0_14, %c0_15, %c0_16], %15 {strides = array<i32>} : memref<1x16x16x4xf32, #tpu.memory_space<vmem>>, vector<1x16x16x4xf32>,
    return
  }
  func.func @transform_0(%arg0: i32, %arg1: i32) -> (i32, i32, i32, i32) {
    %c0_i32 = arith.constant 0 : i32
    %c0_i32_0 = arith.constant 0 : i32
    %c0_i32_1 = arith.constant 0 : i32
    return %arg0, %arg1, %c0_i32, %c0_i32_0 : i32, i32, i32, i32
  }
  func.func @transform_1(%arg0: i32, %arg1: i32) -> (i32, i32, i32, i32) {
    %c0_i32 = arith.constant 0 : i32
    %c0_i32_0 = arith.constant 0 : i32
    %c0_i32_1 = arith.constant 0 : i32
    return %arg0, %arg1, %c0_i32, %c0_i32_0 : i32, i32, i32, i32
  }
  func.func @transform_2(%arg0: i32, %arg1: i32) -> (i32, i32, i32) {
    %c0_i32 = arith.constant 0 : i32
    %c0_i32_0 = arith.constant 0 : i32
    %c0_i32_1 = arith.constant 0 : i32
    %c0_i32_2 = arith.constant 0 : i32
    return %c0_i32, %c0_i32_0, %c0_i32_1 : i32, i32, i32
  }
  func.func @transform_3(%arg0: i32, %arg1: i32) -> (i32, i32, i32) {
    %c0_i32 = arith.constant 0 : i32
    %c0_i32_0 = arith.constant 0 : i32
    %c0_i32_1 = arith.constant 0 : i32
    %c0_i32_2 = arith.constant 0 : i32
    return %c0_i32, %c0_i32_0, %c0_i32_1 : i32, i32, i32
  }
  func.func @transform_4(%arg0: i32, %arg1: i32) -> (i32, i32, i32, i32) {
    %c0_i32 = arith.constant 0 : i32
    %c0_i32_0 = arith.constant 0 : i32
    %c0_i32_1 = arith.constant 0 : i32
    return %arg0, %arg1, %c0_i32, %c0_i32_0 : i32, i32, i32, i32
  }
}

</mosaic_0001>

<bundles_post_ra>
// kernel: resblock_forward.3
= control target key start
LH: loop header
LB: loop body
LE: loop exit
PB: predicated region body
PF: predicated region fallthrough
CT: control target
= control target key end

     0   :  { %s912_s15 = smov 0   ;;  %s914_s16 = smov 0   ;;  %s1128_s0 = inlined_call_operand.vmem [shape: bf16[2,16,16,4], index: 0, kind: input, shape index: {}]   ;;  %s1129_s1 = inlined_call_operand.vmem [shape: bf16[2,16,16,4], index: 1, kind: input, shape index: {}]   ;;  %s1130_s2 = inlined_call_operand.vmem [shape: f32[1,1,4], index: 2, kind: input, shape index: {}]   ;;  %s1131_s3 = inlined_call_operand.vmem [shape: f32[1,1,4], index: 3, kind: input, shape index: {}]   ;;  %s1132_s4 = inlined_call_operand.vmem [shape: f32[2,16,16,4], index: 4, kind: output, shape index: {}]  }
   0x1   :  { %s916_s17 = smov 0  }
   0x2 LB: > { %s26_s18 = sadd.s32 1, %s881_s16  ;;  %p667_p0 = scmp.ge.s32.totalorder %s885_s17, 1  ;;  %s885_s17 = sphi %s916_s17, %s14_s17   ;;  %s881_s16 = sphi %s914_s16, %s1134_s16   ;;  %s877_s15 = sphi %s912_s15, %s1133_s15  }
   0x3   : > { %p28_p1 = scmp.ge.s32.totalorder %s26_s18, 2  ;;  %p202_p2 = scmp.lt.s32.totalorder %s885_s17, 3 }
   0x5   : > { %s1136_s18 = smov (%p28_p1, %s26_s18), 0  ;;  %p203_p3 = pnand %p667_p0, %p202_p2 }
   0x6   : > { %p249_p4 = scmp.lt.s32.totalorder (!%p203_p3), %s877_s15, 1 }
   0x7   : > { %206 = sbr.rel (%p203_p3) target bundleno = 62 (0x3e), region = 36 }
   0xc   : > { %s1138_s15 = smov (!%p249_p4, %s877_s15), 1  ;;  %v946_v0 = vld [vmem:[%s1130_s2] ss:$0 sm:$0xff]  ;;  %vm513_vm0 = vcmask 31744  }
   0xd   : > { %s676_s19 = sshll.u32 %s1138_s15, 7  ;;  %v951_v1 = vld [vmem:[%s1131_s3] ss:$0 sm:$0xff]  ;;  %s678_s30 = sshll.u32 %s1138_s15, 8 }
   0xe   : > { %s936_s22 = scalar_lea.vmem %s1128_s0, %s676_s19  ;;  %s941_s25 = scalar_lea.vmem %s1129_s1, %s676_s19 }
   0xf   : > { %v680_v2 = vld [vmem:[%s936_s22] sm:$0xff]   ;;  %v807_v4 = vld [vmem:[%s936_s22 + $0x8] sm:$0xff]   ;;  %v808_v10 = vld [vmem:[%s936_s22 + $0x10] sm:$0xff]   ;;  %s972_s7 = scalar_lea.vmem %s1132_s4, %s678_s30 }
  0x10   : > { %v744_v3 = vld [vmem:[%s941_s25] sm:$0xff]   ;;  %v681_v5 = vunpack.c.l.bf16 %v680_v2  ;;  %v682_v7 = vunpack.c.h.bf16 %v680_v2  ;;  %v822_v9 = vld [vmem:[%s941_s25 + $0x8] sm:$0xff]   ;;  %v823_v11 = vld [vmem:[%s941_s25 + $0x10] sm:$0xff]   ;;  %v685_v12 = vunpack.c.l.bf16 %v807_v4  ;;  %v686_v14 = vunpack.c.h.bf16 %v807_v4 }
  0x11   : > { %v745_v6 = vunpack.c.l.bf16 %v744_v3  ;;  %v746_v8 = vunpack.c.h.bf16 %v744_v3  ;;  %v749_v13 = vunpack.c.l.bf16 %v822_v9  ;;  %v750_v15 = vunpack.c.h.bf16 %v822_v9  ;;  %v809_v16 = vld [vmem:[%s936_s22 + $0x18] sm:$0xff]   ;;  %v810_v34 = vld [vmem:[%s936_s22 + $0x20] sm:$0xff]   ;;  %v811_v44 = vld [vmem:[%s936_s22 + $0x28] sm:$0xff]  }
  0x12   : > { %v349_v17 = vmul.f32 %v946_v0, %v681_v5  ;;  %v350_v18 = vmul.f32 %v946_v0, %v682_v7  ;;  %v689_v19 = vunpack.c.l.bf16 %v808_v10  ;;  %v753_v20 = vunpack.c.l.bf16 %v823_v11  ;;  %v824_v21 = vld [vmem:[%s941_s25 + $0x18] sm:$0xff]   ;;  %v825_v39 = vld [vmem:[%s941_s25 + $0x20] sm:$0xff]   ;;  %v826_v49 = vld [vmem:[%s941_s25 + $0x28] sm:$0xff]  }
  0x13   : > { %v351_v22 = vmul.f32 %v946_v0, %v685_v12  ;;  %v352_v23 = vmul.f32 %v946_v0, %v686_v14  ;;  %v690_v24 = vunpack.c.h.bf16 %v808_v10  ;;  %v754_v25 = vunpack.c.h.bf16 %v823_v11  ;;  %v812_v54 = vld [vmem:[%s936_s22 + $0x30] sm:$0xff]   ;;  %v828_v11 = vld [vmem:[%s941_s25 + $0x38] sm:$0xff]  }
  0x14   : > { %v385_v26 = vadd.f32 %v951_v1, %v349_v17  ;;  %v386_v27 = vadd.f32 %v951_v1, %v350_v18  ;;  %v353_v28 = vmul.f32 %v946_v0, %v689_v19  ;;  %v693_v29 = vunpack.c.l.bf16 %v809_v16  ;;  %v827_v59 = vld [vmem:[%s941_s25 + $0x30] sm:$0xff]  }
  0x15   : > { %v387_v30 = vadd.f32 %v951_v1, %v351_v22  ;;  %v388_v31 = vadd.f32 %v951_v1, %v352_v23  ;;  %v354_v32 = vmul.f32 %v946_v0, %v690_v24  ;;  %v757_v33 = vunpack.c.l.bf16 %v824_v21 }
  0x16   : > { %v481_v35 = vadd.f32 %v745_v6, %v385_v26  ;;  %v482_v36 = vadd.f32 %v746_v8, %v386_v27  ;;  %v389_v37 = vadd.f32 %v951_v1, %v353_v28  ;;  %v355_v38 = vmul.f32 %v946_v0, %v693_v29  ;;  %v813_v6 = vld [vmem:[%s936_s22 + $0x38] sm:$0xff]  }
  0x17   : > { %v483_v40 = vadd.f32 %v749_v13, %v387_v30  ;;  %v484_v41 = vadd.f32 %v750_v15, %v388_v31  ;;  %v390_v42 = vadd.f32 %v951_v1, %v354_v32  ;;  %v694_v43 = vunpack.c.h.bf16 %v809_v16  ;;  %v815_v30 = vld [vmem:[%s936_s22 + $0x48] sm:$0xff]  }
  0x18   : > { %514 = vst.msk [vmem:[%s972_s7] sm:$0xff] %vm513_vm0, %v481_v35  ;;  %v485_v45 = vadd.f32 %v753_v20, %v389_v37  ;;  %v391_v46 = vadd.f32 %v951_v1, %v355_v38  ;;  %v758_v47 = vunpack.c.h.bf16 %v824_v21  ;;  %v697_v48 = vunpack.c.l.bf16 %v810_v34  ;;  %v814_v20 = vld [vmem:[%s936_s22 + $0x40] sm:$0xff]   ;;  %v830_v31 = vld [vmem:[%s941_s25 + $0x48] sm:$0xff]  }
  0x19   : > { %515 = vst.msk [vmem:[%s972_s7 + $0x8] sm:$0xff] %vm513_vm0, %v482_v36  ;;  %v486_v50 = vadd.f32 %v754_v25, %v390_v42  ;;  %v356_v51 = vmul.f32 %v946_v0, %v694_v43  ;;  %v761_v52 = vunpack.c.l.bf16 %v825_v39  ;;  %v698_v53 = vunpack.c.h.bf16 %v810_v34  ;;  %v829_v21 = vld [vmem:[%s941_s25 + $0x40] sm:$0xff]  }
  0x1a   : > { %516 = vst.msk [vmem:[%s972_s7 + $0x10] sm:$0xff] %vm513_vm0, %v483_v40  ;;  %v487_v55 = vadd.f32 %v757_v33, %v391_v46  ;;  %v357_v56 = vmul.f32 %v946_v0, %v697_v48  ;;  %v762_v57 = vunpack.c.h.bf16 %v825_v39  ;;  %v701_v58 = vunpack.c.l.bf16 %v811_v44  ;;  %v816_v40 = vld [vmem:[%s936_s22 + $0x50] sm:$0xff]  }
  0x1b   : > { %517 = vst.msk [vmem:[%s972_s7 + $0x18] sm:$0xff] %vm513_vm0, %v484_v41  ;;  %v392_v60 = vadd.f32 %v951_v1, %v356_v51  ;;  %v358_v61 = vmul.f32 %v946_v0, %v698_v53  ;;  %v765_v62 = vunpack.c.l.bf16 %v826_v49  ;;  %v702_v63 = vunpack.c.h.bf16 %v811_v44 }
  0x1c   : > { %518 = vst.msk [vmem:[%s972_s7 + $0x20] sm:$0xff] %vm513_vm0, %v485_v45  ;;  %v393_v2 = vadd.f32 %v951_v1, %v357_v56  ;;  %v359_v3 = vmul.f32 %v946_v0, %v701_v58  ;;  %v766_v4 = vunpack.c.h.bf16 %v826_v49  ;;  %v705_v5 = vunpack.c.l.bf16 %v812_v54  ;;  %v831_v45 = vld [vmem:[%s941_s25 + $0x50] sm:$0xff]  }
  0x1d   : > { %519 = vst.msk [vmem:[%s972_s7 + $0x28] sm:$0xff] %vm513_vm0, %v486_v50  ;;  %v488_v7 = vadd.f32 %v758_v47, %v392_v60  ;;  %v394_v8 = vadd.f32 %v951_v1, %v358_v61  ;;  %v360_v9 = vmul.f32 %v946_v0, %v702_v63  ;;  %v769_v10 = vunpack.c.l.bf16 %v827_v59 }
  0x1e   : > { %520 = vst.msk [vmem:[%s972_s7 + $0x30] sm:$0xff] %vm513_vm0, %v487_v55  ;;  %v489_v12 = vadd.f32 %v761_v52, %v393_v2  ;;  %v395_v13 = vadd.f32 %v951_v1, %v359_v3  ;;  %v361_v14 = vmul.f32 %v946_v0, %v705_v5  ;;  %v706_v15 = vunpack.c.h.bf16 %v812_v54  ;;  %v817_v54 = vld [vmem:[%s936_s22 + $0x58] sm:$0xff]  }
  0x1f   : > { %521 = vst.msk [vmem:[%s972_s7 + $0x38] sm:$0xff] %vm513_vm0, %v488_v7  ;;  %v490_v16 = vadd.f32 %v762_v57, %v394_v8  ;;  %v396_v17 = vadd.f32 %v951_v1, %v360_v9  ;;  %v770_v18 = vunpack.c.h.bf16 %v827_v59  ;;  %v709_v19 = vunpack.c.l.bf16 %v813_v6  ;;  %v832_v59 = vld [vmem:[%s941_s25 + $0x58] sm:$0xff]   ;;  %v833_v7 = vld [vmem:[%s941_s25 + $0x60] sm:$0xff]  }
  0x20   : > { %522 = vst.msk [vmem:[%s972_s7 + $0x40] sm:$0xff] %vm513_vm0, %v489_v12  ;;  %v491_v22 = vadd.f32 %v765_v62, %v395_v13  ;;  %v397_v23 = vadd.f32 %v951_v1, %v361_v14  ;;  %v362_v24 = vmul.f32 %v946_v0, %v706_v15  ;;  %v773_v25 = vunpack.c.l.bf16 %v828_v11 }
  0x21   : > { %523 = vst.msk [vmem:[%s972_s7 + $0x48] sm:$0xff] %vm513_vm0, %v490_v16  ;;  %v492_v26 = vadd.f32 %v766_v4, %v396_v17  ;;  %v363_v27 = vmul.f32 %v946_v0, %v709_v19  ;;  %v710_v28 = vunpack.c.h.bf16 %v813_v6  ;;  %v774_v29 = vunpack.c.h.bf16 %v828_v11  ;;  %v818_v6 = vld [vmem:[%s936_s22 + $0x60] sm:$0xff]   ;;  %v819_v16 = vld [vmem:[%s936_s22 + $0x68] sm:$0xff]  }
  0x22   : > { %524 = vst.msk [vmem:[%s972_s7 + $0x50] sm:$0xff] %vm513_vm0, %v491_v22  ;;  %v493_v32 = vadd.f32 %v769_v10, %v397_v23  ;;  %v398_v33 = vadd.f32 %v951_v1, %v362_v24  ;;  %v713_v34 = vunpack.c.l.bf16 %v814_v20  ;;  %v777_v35 = vunpack.c.l.bf16 %v829_v21  ;;  %v834_v17 = vld [vmem:[%s941_s25 + $0x68] sm:$0xff]  }
  0x23   : > { %525 = vst.msk [vmem:[%s972_s7 + $0x58] sm:$0xff] %vm513_vm0, %v492_v26  ;;  %v399_v36 = vadd.f32 %v951_v1, %v363_v27  ;;  %v364_v37 = vmul.f32 %v946_v0, %v710_v28  ;;  %v714_v38 = vunpack.c.h.bf16 %v814_v20  ;;  %v778_v39 = vunpack.c.h.bf16 %v829_v21  ;;  %v820_v26 = vld [vmem:[%s936_s22 + $0x70] sm:$0xff]  }
  0x24   : > { %526 = vst.msk [vmem:[%s972_s7 + $0x60] sm:$0xff] %vm513_vm0, %v493_v32  ;;  %v494_v41 = vadd.f32 %v770_v18, %v398_v33  ;;  %v365_v42 = vmul.f32 %v946_v0, %v713_v34  ;;  %v717_v43 = vunpack.c.l.bf16 %v815_v30  ;;  %v781_v44 = vunpack.c.l.bf16 %v830_v31 }
  0x25   : > { %v495_v46 = vadd.f32 %v773_v25, %v399_v36  ;;  %v400_v47 = vadd.f32 %v951_v1, %v364_v37  ;;  %v366_v48 = vmul.f32 %v946_v0, %v714_v38  ;;  %v718_v49 = vunpack.c.h.bf16 %v815_v30 }
  0x26   : > { %527 = vst.msk [vmem:[%s972_s7 + $0x68] sm:$0xff] %vm513_vm0, %v494_v41  ;;  %v401_v50 = vadd.f32 %v951_v1, %v365_v42  ;;  %v367_v51 = vmul.f32 %v946_v0, %v717_v43  ;;  %v782_v52 = vunpack.c.h.bf16 %v830_v31  ;;  %v721_v53 = vunpack.c.l.bf16 %v816_v40  ;;  %v835_v31 = vld [vmem:[%s941_s25 + $0x70] sm:$0xff]  }
  0x27   : > { %528 = vst.msk [vmem:[%s972_s7 + $0x70] sm:$0xff] %vm513_vm0, %v495_v46  ;;  %v496_v55 = vadd.f32 %v774_v29, %v400_v47  ;;  %v402_v56 = vadd.f32 %v951_v1, %v366_v48  ;;  %v368_v57 = vmul.f32 %v946_v0, %v718_v49  ;;  %v785_v58 = vunpack.c.l.bf16 %v831_v45  ;;  %v836_v49 = vld [vmem:[%s941_s25 + $0x78] sm:$0xff]  }
  0x28   : > { %v497_v60 = vadd.f32 %v777_v35, %v401_v50  ;;  %v403_v61 = vadd.f32 %v951_v1, %v367_v51  ;;  %v369_v62 = vmul.f32 %v946_v0, %v721_v53  ;;  %v722_v63 = vunpack.c.h.bf16 %v816_v40  ;;  %v821_v40 = vld [vmem:[%s936_s22 + $0x78] sm:$0xff]  }
  0x29   : > { %529 = vst.msk [vmem:[%s972_s7 + $0x78] sm:$0xff] %vm513_vm0, %v496_v55  ;;  %v498_v2 = vadd.f32 %v778_v39, %v402_v56  ;;  %v404_v3 = vadd.f32 %v951_v1, %v368_v57  ;;  %v786_v4 = vunpack.c.h.bf16 %v831_v45  ;;  %v725_v5 = vunpack.c.l.bf16 %v817_v54 }
  0x2a   : > { %530 = vst.msk [vmem:[%s972_s7 + $0x80] sm:$0xff] %vm513_vm0, %v497_v60  ;;  %v499_v8 = vadd.f32 %v781_v44, %v403_v61  ;;  %v405_v9 = vadd.f32 %v951_v1, %v369_v62  ;;  %v370_v10 = vmul.f32 %v946_v0, %v722_v63  ;;  %v789_v11 = vunpack.c.l.bf16 %v832_v59 }
  0x2b   : > { %531 = vst.msk [vmem:[%s972_s7 + $0x88] sm:$0xff] %vm513_vm0, %v498_v2  ;;  %v500_v12 = vadd.f32 %v782_v52, %v404_v3  ;;  %v371_v13 = vmul.f32 %v946_v0, %v725_v5  ;;  %v726_v14 = vunpack.c.h.bf16 %v817_v54  ;;  %v790_v15 = vunpack.c.h.bf16 %v832_v59 }
  0x2c   : > { %532 = vst.msk [vmem:[%s972_s7 + $0x90] sm:$0xff] %vm513_vm0, %v499_v8  ;;  %v501_v18 = vadd.f32 %v785_v58, %v405_v9  ;;  %v406_v19 = vadd.f32 %v951_v1, %v370_v10  ;;  %v729_v20 = vunpack.c.l.bf16 %v818_v6  ;;  %v793_v21 = vunpack.c.l.bf16 %v833_v7 }
  0x2d   : > { %533 = vst.msk [vmem:[%s972_s7 + $0x98] sm:$0xff] %vm513_vm0, %v500_v12  ;;  %v407_v22 = vadd.f32 %v951_v1, %v371_v13  ;;  %v372_v23 = vmul.f32 %v946_v0, %v726_v14  ;;  %v730_v24 = vunpack.c.h.bf16 %v818_v6  ;;  %v794_v25 = vunpack.c.h.bf16 %v833_v7 }
  0x2e   : > { %534 = vst.msk [vmem:[%s972_s7 + $0xa0] sm:$0xff] %vm513_vm0, %v501_v18  ;;  %v502_v27 = vadd.f32 %v786_v4, %v406_v19  ;;  %v373_v28 = vmul.f32 %v946_v0, %v729_v20  ;;  %v733_v29 = vunpack.c.l.bf16 %v819_v16  ;;  %v797_v30 = vunpack.c.l.bf16 %v834_v17 }
  0x2f   : > { %v503_v32 = vadd.f32 %v789_v11, %v407_v22  ;;  %v408_v33 = vadd.f32 %v951_v1, %v372_v23  ;;  %v374_v34 = vmul.f32 %v946_v0, %v730_v24  ;;  %v734_v35 = vunpack.c.h.bf16 %v819_v16 }
  0x30   : > { %535 = vst.msk [vmem:[%s972_s7 + $0xa8] sm:$0xff] %vm513_vm0, %v502_v27  ;;  %v409_v36 = vadd.f32 %v951_v1, %v373_v28  ;;  %v375_v37 = vmul.f32 %v946_v0, %v733_v29  ;;  %v798_v38 = vunpack.c.h.bf16 %v834_v17  ;;  %v737_v39 = vunpack.c.l.bf16 %v820_v26 }
  0x31   : > { %536 = vst.msk [vmem:[%s972_s7 + $0xb0] sm:$0xff] %vm513_vm0, %v503_v32  ;;  %v504_v41 = vadd.f32 %v790_v15, %v408_v33  ;;  %v410_v42 = vadd.f32 %v951_v1, %v374_v34  ;;  %v376_v43 = vmul.f32 %v946_v0, %v734_v35  ;;  %v801_v44 = vunpack.c.l.bf16 %v835_v31 }
  0x32   : > { %v505_v45 = vadd.f32 %v793_v21, %v409_v36  ;;  %v411_v46 = vadd.f32 %v951_v1, %v375_v37  ;;  %v377_v47 = vmul.f32 %v946_v0, %v737_v39  ;;  %v738_v48 = vunpack.c.h.bf16 %v820_v26 }
  0x33   : > { %537 = vst.msk [vmem:[%s972_s7 + $0xb8] sm:$0xff] %vm513_vm0, %v504_v41  ;;  %v506_v50 = vadd.f32 %v794_v25, %v410_v42  ;;  %v412_v51 = vadd.f32 %v951_v1, %v376_v43  ;;  %v741_v52 = vunpack.c.l.bf16 %v821_v40  ;;  %v802_v56 = vunpack.c.h.bf16 %v835_v31 }
  0x34   : > { %538 = vst.msk [vmem:[%s972_s7 + $0xc0] sm:$0xff] %vm513_vm0, %v505_v45  ;;  %v507_v53 = vadd.f32 %v797_v30, %v411_v46  ;;  %v413_v54 = vadd.f32 %v951_v1, %v377_v47  ;;  %v378_v55 = vmul.f32 %v946_v0, %v738_v48  ;;  %v805_v59 = vunpack.c.l.bf16 %v836_v49 }
  0x35   : > { %539 = vst.msk [vmem:[%s972_s7 + $0xc8] sm:$0xff] %vm513_vm0, %v506_v50  ;;  %v508_v57 = vadd.f32 %v798_v38, %v412_v51  ;;  %v379_v58 = vmul.f32 %v946_v0, %v741_v52  ;;  %v742_v60 = vunpack.c.h.bf16 %v821_v40  ;;  %v806_v3 = vunpack.c.h.bf16 %v836_v49 }
  0x36   : > { %540 = vst.msk [vmem:[%s972_s7 + $0xd0] sm:$0xff] %vm513_vm0, %v507_v53  ;;  %v509_v61 = vadd.f32 %v801_v44, %v413_v54  ;;  %v414_v62 = vadd.f32 %v951_v1, %v378_v55 }
  0x37   : > { %541 = vst.msk [vmem:[%s972_s7 + $0xd8] sm:$0xff] %vm513_vm0, %v508_v57  ;;  %v415_v63 = vadd.f32 %v951_v1, %v379_v58  ;;  %v380_v2 = vmul.f32 %v946_v0, %v742_v60 }
  0x38   : > { %542 = vst.msk [vmem:[%s972_s7 + $0xe0] sm:$0xff] %vm513_vm0, %v509_v61  ;;  %v510_v4 = vadd.f32 %v802_v56, %v414_v62 }
  0x39   : > { %v511_v5 = vadd.f32 %v805_v59, %v415_v63  ;;  %v416_v6 = vadd.f32 %v951_v1, %v380_v2 }
  0x3a   : > { %543 = vst.msk [vmem:[%s972_s7 + $0xe8] sm:$0xff] %vm513_vm0, %v510_v4 }
  0x3b   : > { %544 = vst.msk [vmem:[%s972_s7 + $0xf0] sm:$0xff] %vm513_vm0, %v511_v5  ;;  %v512_v7 = vadd.f32 %v806_v3, %v416_v6 }
  0x3d   : > { %545 = vst.msk [vmem:[%s972_s7 + $0xf8] sm:$0xff] %vm513_vm0, %v512_v7 }
  0x3e PF: > { %s14_s17 = sadd.s32 1, %s885_s17   ;;  %s1133_s15 = smov %s881_s16 }
  0x3f   : > { %p11_p5 = scmp.ge.s32.totalorder %s14_s17, 4   ;;  %s1134_s16 = smov %s1136_s18 }
  0x41   :  { %13 = sbr.rel (!%p11_p5) target bundleno = 2 (0x2), region = 69 }

// kernel: resblock_forward.2
= control target key start
LH: loop header
LB: loop body
LE: loop exit
PB: predicated region body
PF: predicated region fallthrough
CT: control target
= control target key end

     0   :  { %s11730_s24 = smov 0   ;;  %s15830_s0 = inlined_call_operand.vmem [shape: bf16[2,16,16,4], index: 0, kind: input, shape index: {}]   ;;  %s15831_s1 = inlined_call_operand.vmem [shape: bf16[9,128,128], index: 1, kind: input, shape index: {}]   ;;  %s15832_s2 = inlined_call_operand.vmem [shape: f32[1,128], index: 2, kind: input, shape index: {}]   ;;  %s15833_s3 = inlined_call_operand.vmem [shape: bf16[9,128,128], index: 3, kind: input, shape index: {}]   ;;  %s15834_s4 = inlined_call_operand.vmem [shape: f32[1,128], index: 4, kind: input, shape index: {}]   ;;  %s15835_s5 = inlined_call_operand.vmem [shape: bf16[2,16,16,4], index: 5, kind: output, shape index: {0}]   ;;  %s15836_s6 = inlined_call_operand.vmem [shape: f32[2,1,4], index: 6, kind: output, shape index: {1}]   ;;  %s15837_s7 = inlined_call_operand.vmem [shape: f32[2,1,4], index: 7, kind: output, shape index: {2}]  }
   0x1 LB: > { %s10052_s25 = sadd.s32 4294967295, %s11687_s24   ;;  %p10056_p0 = scmp.ge.s32.totalorder %s11687_s24, 1  ;;  %s11687_s24 = sphi %s11730_s24, %s18_s24  }
   0x2   : > { %p242_p1 = scmp.lt.s32.totalorder %s11687_s24, 3 }
   0x4   : > { %p243_p2 = pnand %p10056_p0, %p242_p1 }
   0x6   : > { %246 = sbr.rel (%p243_p2) target bundleno = 1548 (0x60c), region = 40 }
   0xb   : > { %v11408_v0 = vld [vmem:[%s15831_s1 + $0x78] sm:$0xff]  ;;  %v11689_v2 = vmov 0   ;;  %v11407_v3 = vld [vmem:[%s15831_s1 + $0x70] sm:$0xff]  ;;  %v11406_v5 = vld [vmem:[%s15831_s1 + $0x68] sm:$0xff]  ;;  %vm889_vm0 = vsmask.f32 3328 }
   0xc   : > { %v11400_v1 = vld [vmem:[%s15831_s1 + $0x38] sm:$0xff]  ;;  %297 = vst [vmem:[#allocation2] sm:$0xf] %v11689_v2  ;;  %1405 = vmatpush.bf16.msra.mxu0 %v11408_v0  ;;  %v11399_v4 = vld [vmem:[%s15831_s1 + $0x30] sm:$0xff]  ;;  %11617 = vmatpush.bf16.msra.mxu2 %v11408_v0  ;;  %v11398_v6 = vld [vmem:[%s15831_s1 + $0x28] sm:$0xff]  ;;  %p280_p3 = scmp.lt.s32.totalorder %s10052_s25, 1 }
   0xd   : > { %11625 = vmatpush.bf16.msra.mxu3 %v11400_v1  ;;  %298 = vst [vmem:[#allocation2 + $0x4] sm:$0xf] %v11689_v2  ;;  %1638 = vmatpush.bf16.msra.mxu1 %v11400_v1  ;;  %v11405_v11 = vld [vmem:[%s15831_s1 + $0x60] sm:$0xff]  ;;  %v11404_v20 = vld [vmem:[%s15831_s1 + $0x58] sm:$0xff]  ;;  %vm890_vm1 = vsmask.f32 7440 }
   0xe   : > { %299 = vst [vmem:[#allocation2 + $0x8] sm:$0x1] %v11689_v2  ;;  %v11397_v12 = vld [vmem:[%s15831_s1 + $0x20] sm:$0xff]  ;;  %v11396_v21 = vld [vmem:[%s15831_s1 + $0x18] sm:$0xff]  ;;  %v11403_v25 = vld [vmem:[%s15831_s1 + $0x50] sm:$0xff]  ;;  %s16092_s25 = smov (!%p280_p3, %s10052_s25), 1 }
   0xf   : > { %300 = vst [vmem:[#allocation2 + $0xc] sm:$0xf] %v11689_v2  ;;  %v11395_v26 = vld [vmem:[%s15831_s1 + $0x10] sm:$0xff]  ;;  %vm11791_vm2 = vmor %vm889_vm0, %vm890_vm1  ;;  %v11402_v31 = vld [vmem:[%s15831_s1 + $0x48] sm:$0xff]  ;;  %s11375_s14 = sshll.u32 %s16092_s25, 7  ;;  %vm707_vm5 = vcmask 27648   ;;  %s292_s10 = scalar_lea.vmem %s15836_s6, %s16092_s25 }
  0x10   : > { %1406 = vmatpush.bf16.msra.mxu0 %v11407_v3  ;;  %301 = vst [vmem:[#allocation2 + $0x10] sm:$0xf] %v11689_v2  ;;  %11618 = vmatpush.bf16.msra.mxu2 %v11407_v3  ;;  %v11394_v32 = vld [vmem:[%s15831_s1 + $0x8] sm:$0xff]  ;;  %v11401_v37 = vld [vmem:[%s15831_s1 + $0x40] sm:$0xff]  ;;  %s11835_s17 = scalar_lea.vmem %s15830_s0, %s11375_s14  ;;  %vm383_vm3 = vsmask.f32 256  ;;  %s15519_s8 = scalar_lea.vmem %s15835_s5, %s11375_s14 }
  0x11   : > { %11626 = vmatpush.bf16.msra.mxu3 %v11399_v4  ;;  %1639 = vmatpush.bf16.msra.mxu1 %v11399_v4  ;;  %302 = vst [vmem:[#allocation2 + $0x14] sm:$0x1] %v11689_v2  ;;  %v11393_v38 = vld [vmem:[%s15831_s1] sm:$0xff]  ;;  %v365_v40 = vld [vmem:[%s11835_s17 + $0x38] sm:$0xf]  ;;  %vm715_vm7 = vcmask 24576   ;;  %s295_s12 = scalar_lea.vmem %s15837_s7, %s16092_s25 }
  0x12   : > { %303 = vst [vmem:[#allocation2 + $0x18] sm:$0xf] %v11689_v2  ;;  %v366_v41 = vld [vmem:[%s11835_s17 + $0x3c] sm:$0xf]  ;;  %v506_v42 = vshrl.u32 %v365_v40, 16  ;;  %v509_v51 = vshll.u32 %v365_v40, 16  ;;  %vm11898_vm10 = vmand %vm715_vm7, %vm383_vm3 }
  0x13   : > { %v825_v7 = vld [vmem:[#allocation2] sm:$0xf]  ;;  %304 = vst [vmem:[#allocation2 + $0x1c] sm:$0xf] %v11689_v2  ;;  %v514_v43 = vshrl.u32 %v366_v41, 16  ;;  %v517_v46 = vshll.u32 %v366_v41, 16 }
  0x14   : > { %v826_v8 = vld [vmem:[#allocation2 + $0x4] sm:$0xf]  ;;  %v893_v9 = vshrl.u32 %v825_v7, 16  ;;  %v896_v10 = vshll.u32 %v825_v7, 16  ;;  %1407 = vmatpush.bf16.msra.mxu0 %v11406_v5  ;;  %305 = vst [vmem:[#allocation2 + $0x20] sm:$0x1] %v11689_v2  ;;  %11619 = vmatpush.bf16.msra.mxu2 %v11406_v5 }
  0x15   : > { %11627 = vmatpush.bf16.msra.mxu3 %v11398_v6  ;;  %v902_v13 = vshll.u32 %v826_v8, 16  ;;  %v906_v14 = vshrl.u32 %v826_v8, 16  ;;  %1640 = vmatpush.bf16.msra.mxu1 %v11398_v6  ;;  %v873_v15 = vld [vmem:[#allocation2 + $0x8] sm:$0x1]  ;;  %306 = vst [vmem:[#allocation2 + $0x24] sm:$0xf] %v11689_v2 }
  0x16   : > { %v895_v16 = vrot.slane %v893_v9, 4  ;;  %v898_v17 = vrot.slane %v896_v10, 5  ;;  %307 = vst [vmem:[#allocation2 + $0x28] sm:$0xf] %v11689_v2  ;;  %v912_v24 = vshll.u32 %v873_v15, 16  ;;  %v508_v44 = vrot.slane %v506_v42, 7 }
  0x17   : > { %v904_v18 = vrot.slane %v902_v13, 5  ;;  %v908_v19 = vrot.slane %v906_v14, 4  ;;  %308 = vst [vmem:[#allocation2 + $0x2c] sm:$0x1] %v11689_v2  ;;  %v351_v45 = vld [vmem:[%s11835_s17] sm:$0xf] }
  0x18   : > { %1408 = vmatpush.bf16.msra.mxu0 %v11405_v11  ;;  %v899_v22 = vor.u32 %v898_v17, %v895_v16  ;;  %309 = vst [vmem:[#allocation2 + $0x30] sm:$0xf] %v11689_v2  ;;  %11620 = vmatpush.bf16.msra.mxu2 %v11405_v11  ;;  %v914_v29 = vrot.slane %v912_v24, 5  ;;  %vm384_vm4 = vsmask.f32 4368  ;;  %v516_v48 = vrot.slane %v514_v43, 7 }
  0x19   : > { %11628 = vmatpush.bf16.msra.mxu3 %v11397_v12  ;;  %v909_v23 = vor.u32 %v908_v19, %v904_v18  ;;  %1641 = vmatpush.bf16.msra.mxu1 %v11397_v12  ;;  %310 = vst [vmem:[#allocation2 + $0x34] sm:$0xf] %v11689_v2  ;;  %v352_v47 = vld [vmem:[%s11835_s17 + $0x4] sm:$0xf]  ;;  %v387_v49 = vshrl.u32 %v351_v45, 16  ;;  %v512_v52 = vrot.slane %v508_v44, 4  ;;  %vm11877_vm8 = vmor %vm383_vm3, %vm384_vm4  ;;  %v511_v5 = vor.u32 %v509_v51, %v508_v44 }
  0x1a   : > { %311 = vst [vmem:[#allocation2 + $0x38] sm:$0x1] %v11689_v2  ;;  %v900_v27 = vrot.slane %v899_v22, 4  ;;  %v367_v50 = vld [vmem:[%s11835_s17 + $0x40] sm:$0xf]  ;;  %v395_v53 = vshrl.u32 %v352_v47, 16  ;;  %v519_v59 = vor.u32 %v517_v46, %v516_v48 }
  0x1b   : > { %312 = vst [vmem:[#allocation2 + $0x3c] sm:$0xf] %v11689_v2  ;;  %v910_v28 = vrot.slane %v909_v23, 4  ;;  %vm708_vm6 = vsmask.f32 7938  ;;  %v11416_v55 = vld [vmem:[%s15831_s1 + $0xb8] sm:$0xff] }
  0x1c   : > { %1409 = vmatpush.bf16.msra.mxu0 %v11404_v20  ;;  %313 = vst [vmem:[#allocation2 + $0x40] sm:$0xf] %v11689_v2  ;;  %11621 = vmatpush.bf16.msra.mxu2 %v11404_v20  ;;  %v905_v33 = vsel %vm11791_vm2, %v900_v27, %v904_v18  ;;  %v11858_v54 = vld [vmem:[%s11835_s17 + $0x44] sm:$0xf]  ;;  %v11440_v57 = vld [vmem:[%s15831_s1 + $0xf8] sm:$0xff]  ;;  %v523_v58 = vshrl.u32 %v367_v50, 16  ;;  %vm11888_vm9 = vmand %vm707_vm5, %vm708_vm6  ;;  %v520_v15 = vsel %vm11877_vm8, %v512_v52, %v519_v59 }
  0x1d   : > { %11629 = vmatpush.bf16.msra.mxu3 %v11396_v21  ;;  %1642 = vmatpush.bf16.msra.mxu1 %v11396_v21  ;;  %314 = vst [vmem:[#allocation2 + $0x44] sm:$0x1] %v11689_v2  ;;  %v915_v34 = vsel %vm11791_vm2, %v910_v28, %v914_v29  ;;  %v1293_v35 = vunpack.c.l.b16 %v905_v33  ;;  %v11377_v56 = vld [vmem:[#allocation2] sm:$0xff]  ;;  %v11448_v60 = vld [vmem:[%s15831_s1 + $0x138] sm:$0xff]  ;;  %v389_v61 = vrot.slane %v387_v49, 7  ;;  %v390_v1 = vshll.u32 %v351_v45, 16 }
  0x1e   : > { %315 = vst [vmem:[#allocation2 + $0x48] sm:$0xf] %v11689_v2  ;;  %v1294_v36 = vunpack.c.l.b16 %v915_v34  ;;  %v11872_v62 = vld [vmem:[%s11835_s17 + $0x8] sm:$0xf]  ;;  %v531_v3 = vshrl.u32 %v11858_v54, 16  ;;  %v397_v7 = vrot.slane %v395_v53, 7 }
  0x1f   : > { %316 = vst [vmem:[#allocation2 + $0x4c] sm:$0xf] %v11689_v2  ;;  %v354_v4 = vld [vmem:[%s11835_s17 + $0xc] sm:$0xf]  ;;  %v398_v8 = vshll.u32 %v352_v47, 16  ;;  %v521_v10 = vrot.slane %v516_v48, 4  ;;  %v392_v19 = vor.u32 %v390_v1, %v389_v61 }
  0x20   : > { %1410 = vmatpush.bf16.msra.mxu0 %v11403_v25  ;;  %317 = vst [vmem:[#allocation2 + $0x50] sm:$0x1] %v11689_v2  ;;  %11622 = vmatpush.bf16.msra.mxu2 %v11403_v25  ;;  %v1325_v39 = vpack.c.b16 %v1294_v36, %v1293_v35  ;;  %v369_v9 = vld [vmem:[%s11835_s17 + $0x48] sm:$0xf]  ;;  %v525_v12 = vrot.slane %v523_v58, 7  ;;  %v526_v13 = vshll.u32 %v367_v50, 16 }
  0x21   : > { %11630 = vmatpush.bf16.msra.mxu3 %v11395_v26  ;;  %1643 = vmatpush.bf16.msra.mxu1 %v11395_v26  ;;  %318 = vst [vmem:[#allocation2 + $0x54] sm:$0xf] %v11689_v2  ;;  %v404_v14 = vshrl.u32 %v11872_v62, 16  ;;  %v412_v17 = vshrl.u32 %v354_v4, 16  ;;  %v370_v18 = vld [vmem:[%s11835_s17 + $0x4c] sm:$0xf]  ;;  %v400_v25 = vor.u32 %v398_v8, %v397_v7 }
  0x22   : > { %319 = vst [vmem:[#allocation2 + $0x58] sm:$0xf] %v11689_v2  ;;  %v533_v20 = vrot.slane %v531_v3, 7  ;;  %v534_v21 = vshll.u32 %v11858_v54, 16  ;;  %v540_v22 = vshrl.u32 %v369_v9, 16  ;;  %v393_v24 = vrot.slane %v389_v61, 4 }
  0x23   : > { %320 = vst [vmem:[#allocation2 + $0x5c] sm:$0x1] %v11689_v2  ;;  %v710_v26 = vld [vmem:[#allocation2 + $0xc] sm:$0xf]  ;;  %v548_v27 = vshrl.u32 %v370_v18, 16  ;;  %v402_v29 = vrot.slane %v397_v7, 4 }
  0x24   : > { %1411 = vmatpush.bf16.msra.mxu0 %v11402_v31  ;;  %321 = vst [vmem:[#allocation2 + $0x60] sm:$0xf] %v11689_v2  ;;  %11623 = vmatpush.bf16.msra.mxu2 %v11402_v31  ;;  %v717_v31 = vld [vmem:[#allocation2 + $0x14] sm:$0x1]  ;;  %v406_v33 = vrot.slane %v404_v14, 7  ;;  %v529_v34 = vrot.slane %v525_v12, 4  ;;  %v401_v43 = vsel %vm11877_vm8, %v393_v24, %v400_v25 }
  0x25   : > { %11631 = vmatpush.bf16.msra.mxu3 %v11394_v32  ;;  %1644 = vmatpush.bf16.msra.mxu1 %v11394_v32  ;;  %322 = vst [vmem:[#allocation2 + $0x64] sm:$0xf] %v11689_v2  ;;  %v528_v32 = vor.u32 %v526_v13, %v525_v12  ;;  %v407_v35 = vshll.u32 %v11872_v62, 16  ;;  %v414_v36 = vrot.slane %v412_v17, 7  ;;  %v542_v41 = vrot.slane %v540_v22, 7  ;;  %v11439_v1 = vld [vmem:[%s15831_s1 + $0xf0] sm:$0xff] }
  0x26   : > { %323 = vst [vmem:[#allocation2 + $0x68] sm:$0x1] %v11689_v2  ;;  %v543_v42 = vshll.u32 %v369_v9, 16  ;;  %v550_v44 = vrot.slane %v548_v27, 7  ;;  %v718_v45 = vsel %vm11898_vm10, %v402_v29, %v717_v31  ;;  %v538_v46 = vrot.slane %v533_v20, 4  ;;  %v11447_v3 = vld [vmem:[%s15831_s1 + $0x130] sm:$0xff] }
  0x27   : > { %324 = vst [vmem:[#allocation2 + $0x6c] sm:$0xf] %v11689_v2  ;;  %v410_v48 = vrot.slane %v406_v33, 4  ;;  %v11922_v50 = vor.u32 %v407_v35, %v406_v33  ;;  %v11924_v52 = vld [vmem:[#allocation2 + $0x18] sm:$0xf]  ;;  %v546_v58 = vrot.slane %v542_v41, 4 }
  0x28   : > { %1412 = vmatpush.bf16.msra.mxu0 %v11401_v37  ;;  %325 = vst [vmem:[#allocation2 + $0x70] sm:$0xf] %v11689_v2  ;;  %11624 = vmatpush.bf16.msra.mxu2 %v11401_v37  ;;  %v415_v37 = vshll.u32 %v354_v4, 16  ;;  %v11952_v7 = vld [vmem:[%s11835_s17 + $0x10] sm:$0xf]  ;;  %vm1775_vm11 = vcmask 1042432  }
  0x29   : > { %11632 = vmatpush.bf16.msra.mxu3 %v11393_v38  ;;  %326 = vst [vmem:[#allocation2 + $0x74] sm:$0x1] %v11689_v2  ;;  %1645 = vmatpush.bf16.msra.mxu1 %v11393_v38  ;;  %v711_v38 = vsel %vm11888_vm9, %v392_v19, %v710_v26  ;;  %v421_v25 = vshrl.u32 %v11952_v7, 16  ;;  %vm1776_vm12 = vcmask 1046532   ;;  %vm5405_vm14 = vcmask 1043456  }
  0x2a   : > { %327 = vst [vmem:[#allocation2 + $0x78] sm:$0xf] %v11689_v2  ;;  %v417_v51 = vor.u32 %v415_v37, %v414_v36  ;;  %vm12248_vm13 = vmor %vm1775_vm11, %vm1776_vm12  ;;  %vm5410_vm15 = vcmask 1040384  }
  0x2b   : > { %1413 = vmatmul.bf16.vlgmr.msra.gmra.mxu0 %v1325_v39  ;;  %328 = vst [vmem:[#allocation2 + $0x7c] sm:$0xf] %v11689_v2  ;;  %v762_v0 = vld [vmem:[#allocation2 + $0x60] sm:$0xf]  ;;  %v536_v39 = vor.u32 %v534_v21, %v533_v20  ;;  %vm13196_vm0 = vmand %vm5405_vm14, %vm708_vm6 }
  0x2c   : > { %329 = vst [vmem:[#allocation2 + $0x80] sm:$0x1] %v11689_v2  ;;  %2019 = vmatpush.bf16.msrb.mxu2 %v11416_v55  ;;  %1646 = vmatmul.bf16.vlgmr.msra.gmra.mxu1 %v11377_v56  ;;  %v763_v23 = vsel %vm11888_vm9, %v511_v5, %v762_v0  ;;  %v419_v55 = vrot.slane %v414_v36, 4  ;;  %v724_v56 = vld [vmem:[#allocation2 + $0x20] sm:$0x1]  ;;  %v11415_v0 = vld [vmem:[%s15831_s1 + $0xb0] sm:$0xff]  ;;  %v418_v5 = vsel %vm11877_vm8, %v410_v48, %v417_v51  ;;  %vm13232_vm1 = vmand %vm5410_vm15, %vm383_vm3 }
  0x2d   : > { %330 = vst [vmem:[#allocation2 + $0x84] sm:$0xf] %v11689_v2  ;;  %v766_v6 = vld [vmem:[#allocation2 + $0x68] sm:$0x1]  ;;  %2333 = vmatpush.bf16.msrb.mxu3 %v11440_v57  ;;  %3015 = vmatpush.bf16.msrb.mxu0 %v11448_v60  ;;  %v537_v54 = vsel %vm11877_vm8, %v529_v34, %v536_v39  ;;  %v11931_v57 = vor.u32 %v543_v42, %v542_v41  ;;  %v555_v60 = vrot.slane %v550_v44, 4 }
  0x2e   : > { %331 = vst [vmem:[#allocation2 + $0x88] sm:$0xf] %v11689_v2  ;;  %v767_v28 = vsel %vm11898_vm10, %v521_v10, %v766_v6  ;;  %v769_v40 = vld [vmem:[#allocation2 + $0x6c] sm:$0xf]  ;;  %v721_v6 = vsel %vm11888_vm9, %v11922_v50, %v11924_v52  ;;  %v725_v13 = vsel %vm11898_vm10, %v419_v55, %v724_v56 }
  0x2f   : > { %332 = vst [vmem:[#allocation2 + $0x8c] sm:$0x1] %v11689_v2  ;;  %v770_v49 = vsel %vm11888_vm9, %v528_v32, %v769_v40 }
  0x30   : > { %333 = vst [vmem:[#allocation2 + $0x90] sm:$0xf] %v11689_v2  ;;  %v773_v47 = vld [vmem:[#allocation2 + $0x74] sm:$0x1]  ;;  %2020 = vmatpush.bf16.msrb.mxu2 %v11415_v0 }
  0x31   : > { %334 = vst [vmem:[#allocation2 + $0x94] sm:$0xf] %v11689_v2  ;;  %v11926_v53 = vld [vmem:[#allocation2 + $0x78] sm:$0xf]  ;;  %v774_v62 = vsel %vm11898_vm10, %v538_v46, %v773_v47  ;;  %2334 = vmatpush.bf16.msrb.mxu3 %v11439_v1  ;;  %3016 = vmatpush.bf16.msrb.mxu0 %v11447_v3  ;;  %v11965_v46 = vrot.slane %v421_v25, 7 }
  0x32   : > { %335 = vst [vmem:[#allocation2 + $0x98] sm:$0x1] %v11689_v2  ;;  %v777_v14 = vsel %vm11888_vm9, %v11931_v57, %v11926_v53 }
  0x33   : > { %336 = vst [vmem:[#allocation2 + $0x9c] sm:$0xf] %v11689_v2  ;;  %v780_v61 = vld [vmem:[#allocation2 + $0x80] sm:$0x1] }
  0x34   : > { %337 = vst [vmem:[#allocation2 + $0xa0] sm:$0xf] %v11689_v2  ;;  %v781_v20 = vsel %vm11898_vm10, %v555_v60, %v780_v61 }
  0x35   : > { %338 = vst [vmem:[#allocation2 + $0xa4] sm:$0x1] %v11689_v2 }
  0x36   : > { %339 = vst [vmem:[#allocation2 + $0xa8] sm:$0xf] %v11689_v2 }
  0x37   : > { %340 = vst [vmem:[#allocation2 + $0xac] sm:$0xf] %v11689_v2 }
  0x38   : > { %341 = vst [vmem:[#allocation2 + $0xb0] sm:$0x1] %v11689_v2 }
  0x39   : > { %342 = vst [vmem:[#allocation2 + $0xb4] sm:$0xf] %v11689_v2 }
  0x3a   : > { %343 = vst [vmem:[#allocation2 + $0xb8] sm:$0xf] %v11689_v2 }
  0x3b   : > { %344 = vst [vmem:[#allocation2 + $0xbc] sm:$0x1] %v11689_v2 }
  0x3c   : > { %345 = vst [vmem:[#allocation2 + $0xc0] sm:$0xf] %v11689_v2 }
  0x3d   : > { %346 = vst [vmem:[#allocation2 + $0xc4] sm:$0xf] %v11689_v2 }
  0x3e   : > { %347 = vst [vmem:[#allocation2 + $0xc8] sm:$0x1] %v11689_v2 }
  0x3f   : > { %348 = vst [vmem:[#allocation2 + $0xcc] sm:$0xf] %v11689_v2 }
  0x40   : > { %349 = vst [vmem:[#allocation2 + $0xd0] sm:$0xf] %v11689_v2 }
  0x41   : > { %350 = vst [vmem:[#allocation2 + $0xd4] sm:$0x1] %v11689_v2  ;;  %v551_v2 = vshll.u32 %v370_v18, 16 }
  0x42   : > { %764 = vst [vmem:[#allocation2 + $0x60] sm:$0xf] %v763_v23 }
  0x43   : > { %765 = vst.msk [vmem:[#allocation2 + $0x64] sm:$0xf] %vm707_vm5, %v520_v15  ;;  %v553_v59 = vor.u32 %v551_v2, %v550_v44 }
  0x44   : > { %768 = vst [vmem:[#allocation2 + $0x68] sm:$0x1] %v767_v28 }
  0x45   : > { %712 = vst [vmem:[#allocation2 + $0xc] sm:$0xf] %v711_v38  ;;  %v554_v19 = vsel %vm11877_vm8, %v546_v58, %v553_v59 }
  0x46   : > { %714 = vst.msk [vmem:[#allocation2 + $0x10] sm:$0xf] %vm707_vm5, %v401_v43 }
  0x47   : > { %719 = vst [vmem:[#allocation2 + $0x14] sm:$0x1] %v718_v45 }
  0x48   : > { %771 = vst [vmem:[#allocation2 + $0x6c] sm:$0xf] %v770_v49 }
  0x49   : > { %v841_v4 = vld [vmem:[#allocation2 + $0x60] sm:$0xf]  ;;  %772 = vst.msk [vmem:[#allocation2 + $0x70] sm:$0xf] %vm707_vm5, %v537_v54 }
  0x4a   : > { %v11385_v8 = vld [vmem:[#allocation2 + $0x60] sm:$0xff]  ;;  %v1085_v10 = vshrl.u32 %v841_v4, 16  ;;  %v1088_v12 = vshll.u32 %v841_v4, 16  ;;  %775 = vst [vmem:[#allocation2 + $0x74] sm:$0x1] %v774_v62 }
  0x4b   : > { %v842_v9 = vld [vmem:[#allocation2 + $0x64] sm:$0xf]  ;;  %v881_v15 = vld [vmem:[#allocation2 + $0x68] sm:$0x1]  ;;  %1686 = vmatmul.bf16.vlgmr.msra.gmra.mxu3 %v11385_v8  ;;  %722 = vst [vmem:[#allocation2 + $0x18] sm:$0xf] %v721_v6 }
  0x4c   : > { %v1094_v17 = vshll.u32 %v842_v9, 16  ;;  %v1098_v18 = vshrl.u32 %v842_v9, 16  ;;  %v1087_v21 = vrot.slane %v1085_v10, 4  ;;  %v1090_v22 = vrot.slane %v1088_v12, 5  ;;  %v827_v24 = vld [vmem:[#allocation2 + $0xc] sm:$0xf] }
  0x4d   : > { %v1104_v23 = vshll.u32 %v881_v15, 16  ;;  %v828_v28 = vld [vmem:[#allocation2 + $0x10] sm:$0xf]  ;;  %v917_v29 = vshrl.u32 %v827_v24, 16  ;;  %v920_v31 = vshll.u32 %v827_v24, 16 }
  0x4e   : > { %v1096_v26 = vrot.slane %v1094_v17, 5  ;;  %v1100_v27 = vrot.slane %v1098_v18, 4  ;;  %v1091_v32 = vor.u32 %v1090_v22, %v1087_v21  ;;  %v874_v34 = vld [vmem:[#allocation2 + $0x14] sm:$0x1]  ;;  %v926_v35 = vshll.u32 %v828_v28, 16  ;;  %v11378_v37 = vld [vmem:[#allocation2 + $0xc] sm:$0xff] }
  0x4f   : > { %v1106_v33 = vrot.slane %v1104_v23, 5  ;;  %v930_v36 = vshrl.u32 %v828_v28, 16  ;;  %v919_v39 = vrot.slane %v917_v29, 4  ;;  %v922_v40 = vrot.slane %v920_v31, 5  ;;  %v843_v42 = vld [vmem:[#allocation2 + $0x6c] sm:$0xf]  ;;  %1651 = vmatmul.bf16.gmra.mxu1 %v11378_v37 }
  0x50   : > { %v1101_v38 = vor.u32 %v1100_v27, %v1096_v26  ;;  %v936_v41 = vshll.u32 %v874_v34, 16  ;;  %v1092_v43 = vrot.slane %v1091_v32, 4  ;;  %v928_v44 = vrot.slane %v926_v35, 5  ;;  %v844_v45 = vld [vmem:[#allocation2 + $0x70] sm:$0xf]  ;;  %v11446_v28 = vld [vmem:[%s15831_s1 + $0x128] sm:$0xff] }
  0x51   : > { %v932_v2 = vrot.slane %v930_v36, 4  ;;  %v923_v48 = vor.u32 %v922_v40, %v919_v39  ;;  %v1109_v50 = vshrl.u32 %v843_v42, 16  ;;  %v882_v53 = vld [vmem:[#allocation2 + $0x74] sm:$0x1]  ;;  %v1112_v54 = vshll.u32 %v843_v42, 16  ;;  %3017 = vmatpush.bf16.msrb.mxu0 %v11446_v28 }
  0x52   : > { %v1102_v47 = vrot.slane %v1101_v38, 4  ;;  %v938_v49 = vrot.slane %v936_v41, 5  ;;  %v1097_v51 = vsel %vm11791_vm2, %v1092_v43, %v1096_v26  ;;  %v1118_v55 = vshll.u32 %v844_v45, 16  ;;  %723 = vst.msk [vmem:[#allocation2 + $0x1c] sm:$0xf] %vm707_vm5, %v418_v5 }
  0x53   : > { %v933_v52 = vor.u32 %v932_v2, %v928_v44  ;;  %v1309_v57 = vunpack.c.l.b16 %v1097_v51  ;;  %v924_v58 = vrot.slane %v923_v48, 4  ;;  %v1111_v59 = vrot.slane %v1109_v50, 4  ;;  %726 = vst [vmem:[#allocation2 + $0x20] sm:$0x1] %v725_v13  ;;  %v11386_v13 = vld [vmem:[#allocation2 + $0x6c] sm:$0xff] }
  0x54   : > { %v1107_v56 = vsel %vm11791_vm2, %v1102_v47, %v1106_v33  ;;  %v1114_v62 = vrot.slane %v1112_v54, 5  ;;  %v1120_v0 = vrot.slane %v1118_v55, 5  ;;  %778 = vst [vmem:[#allocation2 + $0x78] sm:$0xf] %v777_v14  ;;  %v1122_v3 = vshrl.u32 %v844_v45, 16 }
  0x55   : > { %v1310_v60 = vunpack.c.l.b16 %v1107_v56  ;;  %v934_v61 = vrot.slane %v933_v52, 4  ;;  %v929_v1 = vsel %vm11791_vm2, %v924_v58, %v928_v44  ;;  %v1128_v4 = vshll.u32 %v882_v53, 16  ;;  %779 = vst.msk [vmem:[#allocation2 + $0x7c] sm:$0xf] %vm707_vm5, %v554_v19  ;;  %v11979_v14 = vld [vmem:[%s11835_s17 + $0x14] sm:$0xf] }
  0x56   : > { %v424_v5 = vshll.u32 %v11952_v7, 16  ;;  %v1295_v9 = vunpack.c.l.b16 %v929_v1  ;;  %v1115_v10 = vor.u32 %v1114_v62, %v1111_v59  ;;  %782 = vst [vmem:[#allocation2 + $0x80] sm:$0x1] %v781_v20  ;;  %v1124_v15 = vrot.slane %v1122_v3, 4  ;;  %v727_v17 = vld [vmem:[#allocation2 + $0x24] sm:$0xf] }
  0x57   : > { %v1333_v6 = vpack.c.b16 %v1310_v60, %v1309_v57  ;;  %v939_v8 = vsel %vm11791_vm2, %v934_v61, %v938_v49  ;;  %v1130_v21 = vrot.slane %v1128_v4, 5  ;;  %v829_v22 = vld [vmem:[#allocation2 + $0x18] sm:$0xf]  ;;  %v11414_v7 = vld [vmem:[%s15831_s1 + $0xa8] sm:$0xff]  ;;  %v427_v34 = vrot.slane %v11965_v46, 4 }
  0x58   : > { %v1296_v12 = vunpack.c.l.b16 %v939_v8  ;;  %v1116_v18 = vrot.slane %v1115_v10, 4  ;;  %v11438_v19 = vld [vmem:[%s15831_s1 + $0xe8] sm:$0xff]  ;;  %v426_v20 = vor.u32 %v424_v5, %v11965_v46  ;;  %v1125_v24 = vor.u32 %v1124_v15, %v1120_v0  ;;  %2021 = vmatpush.bf16.msrb.mxu2 %v11414_v7  ;;  %v371_v4 = vld [vmem:[%s11835_s17 + $0x50] sm:$0xf]  ;;  %v372_v5 = vld [vmem:[%s11835_s17 + $0x54] sm:$0xf] }
  0x59   : > { %1453 = vmatmul.bf16.vlgmr.msra.gmra.mxu2 %v1333_v6  ;;  %v830_v25 = vld [vmem:[#allocation2 + $0x1c] sm:$0xf]  ;;  %v941_v26 = vshrl.u32 %v829_v22, 16  ;;  %v944_v27 = vshll.u32 %v829_v22, 16  ;;  %2335 = vmatpush.bf16.msrb.mxu3 %v11438_v19  ;;  %v429_v39 = vshrl.u32 %v11979_v14, 16  ;;  %v432_v10 = vshll.u32 %v11979_v14, 16 }
  0x5a   : > { %v1326_v23 = vpack.c.b16 %v1296_v12, %v1295_v9  ;;  %v1121_v29 = vsel %vm11791_vm2, %v1116_v18, %v1120_v0  ;;  %v875_v31 = vld [vmem:[#allocation2 + $0x20] sm:$0x1]  ;;  %v950_v32 = vshll.u32 %v830_v25, 16  ;;  %v954_v33 = vshrl.u32 %v830_v25, 16  ;;  %v11379_v44 = vld [vmem:[#allocation2 + $0x18] sm:$0xff] }
  0x5b   : > { %v1126_v35 = vrot.slane %v1125_v24, 4  ;;  %v943_v36 = vrot.slane %v941_v26, 4  ;;  %v946_v37 = vrot.slane %v944_v27, 5  ;;  %v845_v38 = vld [vmem:[#allocation2 + $0x78] sm:$0xf]  ;;  %1691 = vmatmul.bf16.gmra.mxu3 %v11386_v13  ;;  %v960_v42 = vshll.u32 %v875_v31, 16 }
  0x5c   : > { %1418 = vmatmul.bf16.gmra.mxu0 %v1326_v23  ;;  %v952_v40 = vrot.slane %v950_v32, 5  ;;  %v956_v41 = vrot.slane %v954_v33, 4  ;;  %v846_v43 = vld [vmem:[#allocation2 + $0x7c] sm:$0xf]  ;;  %v728_v2 = vsel %vm11888_vm9, %v426_v20, %v727_v17  ;;  %v1133_v48 = vshrl.u32 %v845_v38, 16 }
  0x5d   : > { %v1131_v45 = vsel %vm11791_vm2, %v1126_v35, %v1130_v21  ;;  %v947_v46 = vor.u32 %v946_v37, %v943_v36  ;;  %v883_v47 = vld [vmem:[#allocation2 + $0x80] sm:$0x1]  ;;  %v1136_v49 = vshll.u32 %v845_v38, 16  ;;  %729 = vst [vmem:[#allocation2 + $0x24] sm:$0xf] %v728_v2  ;;  %v1311_v50 = vunpack.c.l.b16 %v1121_v29  ;;  %v11387_v36 = vld [vmem:[#allocation2 + $0x78] sm:$0xff] }
  0x5e   : > { %v957_v51 = vor.u32 %v956_v41, %v952_v40  ;;  %v962_v52 = vrot.slane %v960_v42, 5  ;;  %v1142_v53 = vshll.u32 %v846_v43, 16  ;;  %v1135_v55 = vrot.slane %v1133_v48, 4  ;;  %v731_v12 = vld [vmem:[#allocation2 + $0x2c] sm:$0x1]  ;;  %v11445_v2 = vld [vmem:[%s15831_s1 + $0x120] sm:$0xff] }
  0x5f   : > { %v948_v54 = vrot.slane %v947_v46, 4  ;;  %v1138_v56 = vrot.slane %v1136_v49, 5  ;;  %v1146_v57 = vshrl.u32 %v846_v43, 16  ;;  %v1312_v58 = vunpack.c.l.b16 %v1131_v45  ;;  %1656 = vmatmul.bf16.gmra.mxu1 %v11379_v44  ;;  %v357_v14 = vld [vmem:[%s11835_s17 + $0x18] sm:$0xf]  ;;  %v11413_v43 = vld [vmem:[%s15831_s1 + $0xa0] sm:$0xff]  ;;  %3018 = vmatpush.bf16.msrb.mxu0 %v11445_v2 }
  0x60   : > { %v958_v59 = vrot.slane %v957_v51, 4  ;;  %v1144_v60 = vrot.slane %v1142_v53, 5  ;;  %v1152_v61 = vshll.u32 %v883_v47, 16  ;;  %v431_v3 = vrot.slane %v429_v39, 7  ;;  %v783_v32 = vld [vmem:[#allocation2 + $0x84] sm:$0xf]  ;;  %2022 = vmatpush.bf16.msrb.mxu2 %v11413_v43 }
  0x61   : > { %v953_v62 = vsel %vm11791_vm2, %v948_v54, %v952_v40  ;;  %v1139_v0 = vor.u32 %v1138_v56, %v1135_v55  ;;  %v1148_v1 = vrot.slane %v1146_v57, 4  ;;  %v1334_v21 = vpack.c.b16 %v1312_v58, %v1311_v50  ;;  %v787_v33 = vld [vmem:[#allocation2 + $0x8c] sm:$0x1]  ;;  %v358_v35 = vld [vmem:[%s11835_s17 + $0x1c] sm:$0xf]  ;;  %v11437_v44 = vld [vmem:[%s15831_s1 + $0xe0] sm:$0xff] }
  0x62   : > { %v963_v6 = vsel %vm11791_vm2, %v958_v59, %v962_v52  ;;  %v1297_v8 = vunpack.c.l.b16 %v953_v62  ;;  %v1154_v9 = vrot.slane %v1152_v61, 5  ;;  %v436_v18 = vrot.slane %v431_v3, 4  ;;  %2336 = vmatpush.bf16.msrb.mxu3 %v11437_v44  ;;  %v373_v54 = vld [vmem:[%s11835_s17 + $0x58] sm:$0xf]  ;;  %v734_v59 = vld [vmem:[#allocation2 + $0x30] sm:$0xf] }
  0x63   : > { %v1298_v13 = vunpack.c.l.b16 %v963_v6  ;;  %v1140_v15 = vrot.slane %v1139_v0, 4  ;;  %v1149_v17 = vor.u32 %v1148_v1, %v1144_v60  ;;  %v434_v22 = vor.u32 %v432_v10, %v431_v3  ;;  %v738_v3 = vld [vmem:[#allocation2 + $0x38] sm:$0x1] }
  0x64   : > { %v831_v7 = vld [vmem:[#allocation2 + $0x24] sm:$0xf]  ;;  %v557_v19 = vshrl.u32 %v371_v4, 16  ;;  %v565_v20 = vshrl.u32 %v372_v5, 16  ;;  %v732_v25 = vsel %vm11898_vm10, %v436_v18, %v731_v12  ;;  %v560_v26 = vshll.u32 %v371_v4, 16 }
  0x65   : > { %v1145_v23 = vsel %vm11791_vm2, %v1140_v15, %v1144_v60  ;;  %v1150_v24 = vrot.slane %v1149_v17, 4  ;;  %v1327_v27 = vpack.c.b16 %v1298_v13, %v1297_v8  ;;  %v435_v28 = vsel %vm11877_vm8, %v427_v34, %v434_v22  ;;  %733 = vst [vmem:[#allocation2 + $0x2c] sm:$0x1] %v732_v25  ;;  %v374_v60 = vld [vmem:[%s11835_s17 + $0x5c] sm:$0xf] }
  0x66   : > { %v965_v29 = vshrl.u32 %v831_v7, 16  ;;  %v968_v31 = vshll.u32 %v831_v7, 16  ;;  %730 = vst.msk [vmem:[#allocation2 + $0x28] sm:$0xf] %vm707_vm5, %v435_v28  ;;  %v559_v38 = vrot.slane %v557_v19, 7  ;;  %v567_v39 = vrot.slane %v565_v20, 7 }
  0x67   : > { %v1155_v37 = vsel %vm11791_vm2, %v1150_v24, %v1154_v9  ;;  %v568_v40 = vshll.u32 %v372_v5, 16  ;;  %v12017_v41 = vunpack.c.l.b16 %v1145_v23  ;;  %v438_v45 = vshrl.u32 %v357_v14, 16  ;;  %v12044_v23 = vld [vmem:[%s11835_s17 + $0x20] sm:$0xf]  ;;  %v794_v43 = vld [vmem:[#allocation2 + $0x98] sm:$0x1] }
  0x68   : > { %v967_v42 = vrot.slane %v965_v29, 4  ;;  %v970_v34 = vrot.slane %v968_v31, 5  ;;  %v562_v46 = vor.u32 %v560_v26, %v559_v38  ;;  %v563_v47 = vrot.slane %v559_v38, 4 }
  0x69   : > { %1458 = vmatmul.bf16.gmra.mxu2 %v1334_v21  ;;  %v570_v48 = vor.u32 %v568_v40, %v567_v39  ;;  %v572_v49 = vrot.slane %v567_v39, 4  ;;  %v12028_v50 = vunpack.c.l.b16 %v1155_v37  ;;  %v440_v52 = vrot.slane %v438_v45, 7 }
  0x6a   : > { %v971_v51 = vor.u32 %v970_v34, %v967_v42  ;;  %v441_v53 = vshll.u32 %v357_v14, 16  ;;  %v784_v56 = vsel %vm11888_vm9, %v562_v46, %v783_v32  ;;  %v446_v58 = vshrl.u32 %v358_v35, 16  ;;  %v790_v34 = vld [vmem:[#allocation2 + $0x90] sm:$0xf] }
  0x6b   : > { %v571_v55 = vsel %vm11877_vm8, %v563_v47, %v570_v48  ;;  %v788_v57 = vsel %vm11898_vm10, %v572_v49, %v787_v33  ;;  %1696 = vmatmul.bf16.gmra.mxu3 %v11387_v36  ;;  %785 = vst [vmem:[#allocation2 + $0x84] sm:$0xf] %v784_v56  ;;  %v444_v0 = vrot.slane %v440_v52, 4  ;;  %v449_v1 = vshll.u32 %v358_v35, 16 }
  0x6c   : > { %1423 = vmatmul.bf16.gmra.mxu0 %v1327_v27  ;;  %v972_v61 = vrot.slane %v971_v51, 4  ;;  %v443_v62 = vor.u32 %v441_v53, %v440_v52  ;;  %v876_v4 = vld [vmem:[#allocation2 + $0x2c] sm:$0x1]  ;;  %786 = vst.msk [vmem:[#allocation2 + $0x88] sm:$0xf] %vm707_vm5, %v571_v55  ;;  %v448_v5 = vrot.slane %v446_v58, 7  ;;  %v1335_v8 = vpack.c.b16 %v12028_v50, %v12017_v41 }
  0x6d   : > { %v574_v6 = vshrl.u32 %v373_v54, 16  ;;  %v832_v9 = vld [vmem:[#allocation2 + $0x28] sm:$0xf]  ;;  %v984_v10 = vshll.u32 %v876_v4, 16  ;;  %789 = vst [vmem:[#allocation2 + $0x8c] sm:$0x1] %v788_v57 }
  0x6e   : > { %v11380_v12 = vld [vmem:[#allocation2 + $0x24] sm:$0xff]  ;;  %v735_v13 = vsel %vm11888_vm9, %v443_v62, %v734_v59  ;;  %v974_v15 = vshll.u32 %v832_v9, 16  ;;  %v978_v17 = vshrl.u32 %v832_v9, 16  ;;  %v451_v18 = vor.u32 %v449_v1, %v448_v5  ;;  %v11412_v62 = vld [vmem:[%s15831_s1 + $0x98] sm:$0xff] }
  0x6f   : > { %v453_v21 = vrot.slane %v448_v5, 4  ;;  %736 = vst [vmem:[#allocation2 + $0x30] sm:$0xf] %v735_v13  ;;  %v986_v22 = vrot.slane %v984_v10, 5  ;;  %1661 = vmatmul.bf16.gmra.mxu1 %v11380_v12  ;;  %v576_v7 = vrot.slane %v574_v6, 7  ;;  %v577_v19 = vshll.u32 %v373_v54, 16  ;;  %2023 = vmatpush.bf16.msrb.mxu2 %v11412_v62 }
  0x70   : > { %v582_v20 = vshrl.u32 %v374_v60, 16  ;;  %v976_v24 = vrot.slane %v974_v15, 5  ;;  %v980_v25 = vrot.slane %v978_v17, 4  ;;  %v452_v26 = vsel %vm11877_vm8, %v444_v0, %v451_v18  ;;  %v11436_v0 = vld [vmem:[%s15831_s1 + $0xd8] sm:$0xff]  ;;  %v360_v9 = vld [vmem:[%s11835_s17 + $0x24] sm:$0xf] }
  0x71   : > { %v739_v14 = vsel %vm11898_vm10, %v453_v21, %v738_v3  ;;  %737 = vst.msk [vmem:[#allocation2 + $0x34] sm:$0xf] %vm707_vm5, %v452_v26  ;;  %v579_v27 = vor.u32 %v577_v19, %v576_v7  ;;  %v580_v28 = vrot.slane %v576_v7, 4  ;;  %v585_v31 = vshll.u32 %v374_v60, 16  ;;  %v11444_v1 = vld [vmem:[%s15831_s1 + $0x118] sm:$0xff]  ;;  %2337 = vmatpush.bf16.msrb.mxu3 %v11436_v0 }
  0x72   : > { %v584_v29 = vrot.slane %v582_v20, 7  ;;  %v977_v32 = vsel %vm11791_vm2, %v972_v61, %v976_v24  ;;  %v981_v33 = vor.u32 %v980_v25, %v976_v24  ;;  %v847_v35 = vld [vmem:[#allocation2 + $0x84] sm:$0xf]  ;;  %740 = vst [vmem:[#allocation2 + $0x38] sm:$0x1] %v739_v14  ;;  %v455_v36 = vshrl.u32 %v12044_v23, 16  ;;  %3019 = vmatpush.bf16.msrb.mxu0 %v11444_v1 }
  0x73   : > { %v458_v37 = vshll.u32 %v12044_v23, 16  ;;  %v1299_v38 = vunpack.c.l.b16 %v977_v32  ;;  %v848_v39 = vld [vmem:[#allocation2 + $0x88] sm:$0xf]  ;;  %v1157_v40 = vshrl.u32 %v847_v35, 16  ;;  %v1160_v41 = vshll.u32 %v847_v35, 16 }
  0x74   : > { %v587_v42 = vor.u32 %v585_v31, %v584_v29  ;;  %v982_v44 = vrot.slane %v981_v33, 4  ;;  %v884_v2 = vld [vmem:[#allocation2 + $0x8c] sm:$0x1]  ;;  %v1166_v45 = vshll.u32 %v848_v39, 16  ;;  %v1170_v46 = vshrl.u32 %v848_v39, 16  ;;  %v11388_v54 = vld [vmem:[#allocation2 + $0x84] sm:$0xff] }
  0x75   : > { %v589_v47 = vrot.slane %v584_v29, 4  ;;  %v1159_v48 = vrot.slane %v1157_v40, 4  ;;  %v1162_v49 = vrot.slane %v1160_v41, 5  ;;  %v1176_v50 = vshll.u32 %v884_v2, 16  ;;  %v741_v31 = vld [vmem:[#allocation2 + $0x3c] sm:$0xf] }
  0x76   : > { %v833_v51 = vld [vmem:[#allocation2 + $0x30] sm:$0xf]  ;;  %v588_v52 = vsel %vm11877_vm8, %v580_v28, %v587_v42  ;;  %v987_v53 = vsel %vm11791_vm2, %v982_v44, %v986_v22  ;;  %v1168_v55 = vrot.slane %v1166_v45, 5  ;;  %v1172_v56 = vrot.slane %v1170_v46, 4  ;;  %v745_v46 = vld [vmem:[#allocation2 + $0x44] sm:$0x1] }
  0x77   : > { %v989_v57 = vshrl.u32 %v833_v51, 16  ;;  %793 = vst.msk [vmem:[#allocation2 + $0x94] sm:$0xf] %vm707_vm5, %v588_v52  ;;  %v1300_v58 = vunpack.c.l.b16 %v987_v53  ;;  %v1163_v59 = vor.u32 %v1162_v49, %v1159_v48  ;;  %v1178_v60 = vrot.slane %v1176_v50, 5  ;;  %v361_v1 = vld [vmem:[%s11835_s17 + $0x28] sm:$0xf] }
  0x78   : > { %v992_v61 = vshll.u32 %v833_v51, 16  ;;  %v1173_v3 = vor.u32 %v1172_v56, %v1168_v55  ;;  %v834_v4 = vld [vmem:[#allocation2 + $0x34] sm:$0xf]  ;;  %v791_v6 = vsel %vm11888_vm9, %v579_v27, %v790_v34  ;;  %v457_v7 = vrot.slane %v455_v36, 7  ;;  %v375_v34 = vld [vmem:[%s11835_s17 + $0x60] sm:$0xf] }
  0x79   : > { %1463 = vmatmul.bf16.gmra.mxu2 %v1335_v8  ;;  %v991_v5 = vrot.slane %v989_v57, 4  ;;  %v795_v8 = vsel %vm11898_vm10, %v589_v47, %v794_v43  ;;  %v1328_v10 = vpack.c.b16 %v1300_v58, %v1299_v38  ;;  %v1164_v12 = vrot.slane %v1163_v59, 4  ;;  %v877_v13 = vld [vmem:[#allocation2 + $0x38] sm:$0x1]  ;;  %792 = vst [vmem:[#allocation2 + $0x90] sm:$0xf] %v791_v6 }
  0x7a   : > { %v994_v15 = vrot.slane %v992_v61, 5  ;;  %v998_v17 = vshll.u32 %v834_v4, 16  ;;  %v1174_v18 = vrot.slane %v1173_v3, 4  ;;  %v1002_v21 = vshrl.u32 %v834_v4, 16  ;;  %796 = vst [vmem:[#allocation2 + $0x98] sm:$0x1] %v795_v8 }
  0x7b   : > { %v1008_v22 = vshll.u32 %v877_v13, 16  ;;  %1701 = vmatmul.bf16.gmra.mxu3 %v11388_v54  ;;  %v1169_v19 = vsel %vm11791_vm2, %v1164_v12, %v1168_v55  ;;  %v11381_v25 = vld [vmem:[#allocation2 + $0x30] sm:$0xff]  ;;  %v463_v26 = vshrl.u32 %v360_v9, 16  ;;  %v460_v36 = vor.u32 %v458_v37, %v457_v7  ;;  %v376_v59 = vld [vmem:[%s11835_s17 + $0x64] sm:$0xf] }
  0x7c   : > { %1428 = vmatmul.bf16.gmra.mxu0 %v1328_v10  ;;  %v995_v20 = vor.u32 %v994_v15, %v991_v5  ;;  %v1000_v24 = vrot.slane %v998_v17, 5  ;;  %v1179_v14 = vsel %vm11791_vm2, %v1174_v18, %v1178_v60  ;;  %v1315_v27 = vunpack.c.l.b16 %v1169_v19  ;;  %v797_v8 = vld [vmem:[#allocation2 + $0x9c] sm:$0xf] }
  0x7d   : > { %v1004_v28 = vrot.slane %v1002_v21, 4  ;;  %v1010_v29 = vrot.slane %v1008_v22, 5  ;;  %v1316_v32 = vunpack.c.l.b16 %v1179_v14  ;;  %v461_v38 = vrot.slane %v457_v7, 4  ;;  %v362_v21 = vld [vmem:[%s11835_s17 + $0x2c] sm:$0xf] }
  0x7e   : > { %v996_v33 = vrot.slane %v995_v20, 4  ;;  %v850_v35 = vld [vmem:[#allocation2 + $0x94] sm:$0xf]  ;;  %v465_v42 = vrot.slane %v463_v26, 7  ;;  %v466_v2 = vshll.u32 %v360_v9, 16  ;;  %v742_v45 = vsel %vm11888_vm9, %v460_v36, %v741_v31 }
  0x7f   : > { %v1005_v39 = vor.u32 %v1004_v28, %v1000_v24  ;;  %v1190_v40 = vshll.u32 %v850_v35, 16  ;;  %v1194_v41 = vshrl.u32 %v850_v35, 16  ;;  %v1336_v43 = vpack.c.b16 %v1316_v32, %v1315_v27  ;;  %1666 = vmatmul.bf16.gmra.mxu1 %v11381_v25  ;;  %743 = vst [vmem:[#allocation2 + $0x3c] sm:$0xf] %v742_v45  ;;  %v11435_v25 = vld [vmem:[%s15831_s1 + $0xd0] sm:$0xff] }
  0x80   : > { %v1001_v44 = vsel %vm11791_vm2, %v996_v33, %v1000_v24  ;;  %v849_v49 = vld [vmem:[#allocation2 + $0x90] sm:$0xf]  ;;  %v468_v50 = vor.u32 %v466_v2, %v465_v42  ;;  %v470_v51 = vrot.slane %v465_v42, 4  ;;  %v591_v52 = vshrl.u32 %v375_v34, 16  ;;  %v801_v31 = vld [vmem:[#allocation2 + $0xa4] sm:$0x1]  ;;  %2338 = vmatpush.bf16.msrb.mxu3 %v11435_v25 }
  0x81   : > { %v1006_v47 = vrot.slane %v1005_v39, 4  ;;  %v1301_v23 = vunpack.c.l.b16 %v1001_v44  ;;  %v12085_v37 = vrot.slane %v1190_v40, 5  ;;  %v1196_v48 = vrot.slane %v1194_v41, 4  ;;  %v885_v55 = vld [vmem:[#allocation2 + $0x98] sm:$0x1]  ;;  %v11389_v13 = vld [vmem:[#allocation2 + $0x90] sm:$0xff] }
  0x82   : > { %v594_v53 = vshll.u32 %v375_v34, 16  ;;  %v1181_v56 = vshrl.u32 %v849_v49, 16  ;;  %v1184_v57 = vshll.u32 %v849_v49, 16  ;;  %v1200_v61 = vshll.u32 %v885_v55, 16  ;;  %v11411_v24 = vld [vmem:[%s15831_s1 + $0x90] sm:$0xff] }
  0x83   : > { %v1011_v54 = vsel %vm11791_vm2, %v1006_v47, %v1010_v29  ;;  %v1197_v58 = vor.u32 %v1196_v48, %v12085_v37  ;;  %v469_v62 = vsel %vm11877_vm8, %v461_v38, %v468_v50  ;;  %v746_v0 = vsel %vm11898_vm10, %v470_v51, %v745_v46  ;;  %v11443_v32 = vld [vmem:[%s15831_s1 + $0x110] sm:$0xff]  ;;  %2024 = vmatpush.bf16.msrb.mxu2 %v11411_v24  ;;  %v377_v34 = vld [vmem:[%s11835_s17 + $0x68] sm:$0xf]  ;;  %v12121_v51 = vld [vmem:[%s11835_s17 + $0x6c] sm:$0xf] }
  0x84   : > { %v1302_v60 = vunpack.c.l.b16 %v1011_v54  ;;  %v1183_v3 = vrot.slane %v1181_v56, 4  ;;  %v1186_v4 = vrot.slane %v1184_v57, 5  ;;  %744 = vst.msk [vmem:[#allocation2 + $0x40] sm:$0xf] %vm707_vm5, %v469_v62  ;;  %v593_v6 = vrot.slane %v591_v52, 7  ;;  %3020 = vmatpush.bf16.msrb.mxu0 %v11443_v32 }
  0x85   : > { %v1198_v5 = vrot.slane %v1197_v58, 4  ;;  %v1202_v9 = vrot.slane %v1200_v61, 5  ;;  %747 = vst [vmem:[#allocation2 + $0x44] sm:$0x1] %v746_v0  ;;  %v599_v10 = vshrl.u32 %v376_v59, 16  ;;  %v602_v12 = vshll.u32 %v376_v59, 16 }
  0x86   : > { %v1187_v15 = vor.u32 %v1186_v4, %v1183_v3  ;;  %v596_v17 = vor.u32 %v594_v53, %v593_v6  ;;  %v597_v18 = vrot.slane %v593_v6, 4  ;;  %v472_v22 = vshrl.u32 %v361_v1, 16  ;;  %v835_v19 = vld [vmem:[#allocation2 + $0x3c] sm:$0xf]  ;;  %v748_v47 = vld [vmem:[#allocation2 + $0x48] sm:$0xf] }
  0x87   : > { %v1329_v7 = vpack.c.b16 %v1302_v60, %v1301_v23  ;;  %v601_v20 = vrot.slane %v599_v10, 7  ;;  %v475_v26 = vshll.u32 %v361_v1, 16  ;;  %v1203_v27 = vsel %vm11791_vm2, %v1198_v5, %v1202_v9  ;;  %v752_v60 = vld [vmem:[#allocation2 + $0x50] sm:$0x1] }
  0x88   : > { %v1188_v14 = vrot.slane %v1187_v15, 4  ;;  %v1013_v28 = vshrl.u32 %v835_v19, 16  ;;  %v1016_v29 = vshll.u32 %v835_v19, 16  ;;  %v798_v36 = vsel %vm11888_vm9, %v596_v17, %v797_v8 }
  0x89   : > { %1468 = vmatmul.bf16.gmra.mxu2 %v1336_v43  ;;  %v604_v33 = vor.u32 %v602_v12, %v601_v20  ;;  %v606_v35 = vrot.slane %v601_v20, 4  ;;  %v474_v38 = vrot.slane %v472_v22, 7  ;;  %799 = vst [vmem:[#allocation2 + $0x9c] sm:$0xf] %v798_v36  ;;  %v480_v42 = vshrl.u32 %v362_v21, 16 }
  0x8a   : > { %v1193_v39 = vsel %vm11791_vm2, %v1188_v14, %v12085_v37  ;;  %v1015_v40 = vrot.slane %v1013_v28, 4  ;;  %v1018_v41 = vrot.slane %v1016_v29, 5  ;;  %v1318_v23 = vunpack.c.l.b16 %v1203_v27 }
  0x8b   : > { %1706 = vmatmul.bf16.gmra.mxu3 %v11389_v13  ;;  %v836_v43 = vld [vmem:[#allocation2 + $0x40] sm:$0xf]  ;;  %v605_v44 = vsel %vm11877_vm8, %v597_v18, %v604_v33  ;;  %v802_v2 = vsel %vm11898_vm10, %v606_v35, %v801_v31  ;;  %v477_v46 = vor.u32 %v475_v26, %v474_v38  ;;  %v1317_v52 = vunpack.c.l.b16 %v1193_v39  ;;  %v804_v13 = vld [vmem:[#allocation2 + $0xa8] sm:$0xf]  ;;  %v808_v35 = vld [vmem:[#allocation2 + $0xb0] sm:$0x1] }
  0x8c   : > { %1433 = vmatmul.bf16.gmra.mxu0 %v1329_v7  ;;  %v11382_v45 = vld [vmem:[#allocation2 + $0x3c] sm:$0xff]  ;;  %v878_v37 = vld [vmem:[#allocation2 + $0x44] sm:$0x1]  ;;  %v1019_v48 = vor.u32 %v1018_v41, %v1015_v40  ;;  %v1022_v49 = vshll.u32 %v836_v43, 16  ;;  %v1026_v50 = vshrl.u32 %v836_v43, 16  ;;  %v478_v54 = vrot.slane %v474_v38, 4 }
  0x8d   : > { %800 = vst.msk [vmem:[#allocation2 + $0xa0] sm:$0xf] %vm707_vm5, %v605_v44  ;;  %v1032_v53 = vshll.u32 %v878_v37, 16  ;;  %v482_v55 = vrot.slane %v480_v42, 7  ;;  %v483_v59 = vshll.u32 %v362_v21, 16  ;;  %v749_v0 = vsel %vm11888_vm9, %v477_v46, %v748_v47  ;;  %v11410_v46 = vld [vmem:[%s15831_s1 + $0x88] sm:$0xff] }
  0x8e   : > { %803 = vst [vmem:[#allocation2 + $0xa4] sm:$0x1] %v802_v2  ;;  %v1020_v56 = vrot.slane %v1019_v48, 4  ;;  %v1024_v57 = vrot.slane %v1022_v49, 5  ;;  %v1028_v58 = vrot.slane %v1026_v50, 4  ;;  %v608_v1 = vshrl.u32 %v377_v34, 16  ;;  %2025 = vmatpush.bf16.msrb.mxu2 %v11410_v46 }
  0x8f   : > { %v1034_v61 = vrot.slane %v1032_v53, 5  ;;  %1671 = vmatmul.bf16.gmra.mxu1 %v11382_v45  ;;  %v487_v62 = vrot.slane %v482_v55, 4  ;;  %v485_v5 = vor.u32 %v483_v59, %v482_v55  ;;  %750 = vst [vmem:[#allocation2 + $0x48] sm:$0xf] %v749_v0  ;;  %v611_v6 = vshll.u32 %v377_v34, 16  ;;  %v11434_v49 = vld [vmem:[%s15831_s1 + $0xc8] sm:$0xff] }
  0x90   : > { %v1025_v3 = vsel %vm11791_vm2, %v1020_v56, %v1024_v57  ;;  %v1029_v4 = vor.u32 %v1028_v58, %v1024_v57  ;;  %v851_v8 = vld [vmem:[#allocation2 + $0x9c] sm:$0xf]  ;;  %v12129_v10 = vrot.slane %v608_v1, 7  ;;  %v616_v12 = vshrl.u32 %v12121_v51, 16  ;;  %v363_v42 = vld [vmem:[%s11835_s17 + $0x30] sm:$0xf]  ;;  %2339 = vmatpush.bf16.msrb.mxu3 %v11434_v49 }
  0x91   : > { %v753_v9 = vsel %vm11898_vm10, %v487_v62, %v752_v60  ;;  %v1205_v17 = vshrl.u32 %v851_v8, 16  ;;  %v1208_v18 = vshll.u32 %v851_v8, 16  ;;  %v486_v21 = vsel %vm11877_vm8, %v478_v54, %v485_v5  ;;  %v364_v50 = vld [vmem:[%s11835_s17 + $0x34] sm:$0xf]  ;;  %v11442_v54 = vld [vmem:[%s15831_s1 + $0x108] sm:$0xff]  ;;  %v11456_v55 = vld [vmem:[%s15831_s1 + $0x178] sm:$0xff] }
  0x92   : > { %v1030_v15 = vrot.slane %v1029_v4, 4  ;;  %754 = vst [vmem:[#allocation2 + $0x50] sm:$0x1] %v753_v9  ;;  %v1337_v22 = vpack.c.b16 %v1318_v23, %v1317_v52  ;;  %v1303_v7 = vunpack.c.l.b16 %v1025_v3  ;;  %v613_v20 = vor.u32 %v611_v6, %v12129_v10  ;;  %3021 = vmatpush.bf16.msrb.mxu0 %v11442_v54  ;;  %3441 = vmatpush.bf16.msrb.mxu1 %v11456_v55  ;;  %v380_v46 = vld [vmem:[%s11835_s17 + $0x74] sm:$0xf] }
  0x93   : > { %751 = vst.msk [vmem:[#allocation2 + $0x4c] sm:$0xf] %vm707_vm5, %v486_v21  ;;  %v614_v24 = vrot.slane %v12129_v10, 4  ;;  %v1207_v14 = vrot.slane %v1205_v17, 4  ;;  %v1210_v27 = vrot.slane %v1208_v18, 5  ;;  %v618_v33 = vrot.slane %v616_v12, 7 }
  0x94   : > { %v852_v19 = vld [vmem:[#allocation2 + $0xa0] sm:$0xf]  ;;  %v1035_v25 = vsel %vm11791_vm2, %v1030_v15, %v1034_v61  ;;  %v619_v40 = vshll.u32 %v12121_v51, 16  ;;  %v805_v41 = vsel %vm11888_vm9, %v613_v20, %v804_v13  ;;  %v489_v56 = vshrl.u32 %v363_v42, 16  ;;  %v379_v12 = vld [vmem:[%s11835_s17 + $0x70] sm:$0xf] }
  0x95   : > { %v886_v26 = vld [vmem:[#allocation2 + $0xa4] sm:$0x1]  ;;  %v1214_v28 = vshll.u32 %v852_v19, 16  ;;  %v1304_v29 = vunpack.c.l.b16 %v1035_v25  ;;  %v1218_v31 = vshrl.u32 %v852_v19, 16  ;;  %v11390_v36 = vld [vmem:[#allocation2 + $0x9c] sm:$0xff]  ;;  %v1211_v38 = vor.u32 %v1210_v27, %v1207_v14 }
  0x96   : > { %v1224_v32 = vshll.u32 %v886_v26, 16  ;;  %v837_v2 = vld [vmem:[#allocation2 + $0x48] sm:$0xf]  ;;  %v623_v45 = vrot.slane %v618_v33, 4  ;;  %v621_v48 = vor.u32 %v619_v40, %v618_v33  ;;  %806 = vst [vmem:[#allocation2 + $0xa8] sm:$0xf] %v805_v41 }
  0x97   : > { %v1216_v39 = vrot.slane %v1214_v28, 5  ;;  %v1330_v34 = vpack.c.b16 %v1304_v29, %v1303_v7  ;;  %v1220_v43 = vrot.slane %v1218_v31, 4  ;;  %v1212_v47 = vrot.slane %v1211_v38, 4  ;;  %v755_v20 = vld [vmem:[#allocation2 + $0x54] sm:$0xf] }
  0x98   : > { %v1226_v44 = vrot.slane %v1224_v32, 5  ;;  %v1037_v23 = vshrl.u32 %v837_v2, 16  ;;  %v1040_v37 = vshll.u32 %v837_v2, 16  ;;  %v809_v53 = vsel %vm11898_vm10, %v623_v45, %v808_v35  ;;  %v759_v32 = vld [vmem:[#allocation2 + $0x5c] sm:$0x1] }
  0x99   : > { %1473 = vmatmul.bf16.gmra.mxu2 %v1337_v22  ;;  %v1221_v51 = vor.u32 %v1220_v43, %v1216_v39  ;;  %v879_v52 = vld [vmem:[#allocation2 + $0x50] sm:$0x1]  ;;  %v492_v57 = vshll.u32 %v363_v42, 16  ;;  %v1217_v58 = vsel %vm11791_vm2, %v1212_v47, %v1216_v39  ;;  %810 = vst [vmem:[#allocation2 + $0xb0] sm:$0x1] %v809_v53  ;;  %v622_v9 = vsel %vm11877_vm8, %v614_v24, %v621_v48 }
  0x9a   : > { %v838_v59 = vld [vmem:[#allocation2 + $0x4c] sm:$0xf]  ;;  %v1039_v60 = vrot.slane %v1037_v23, 4  ;;  %v1042_v61 = vrot.slane %v1040_v37, 5  ;;  %v1056_v62 = vshll.u32 %v879_v52, 16  ;;  %v1319_v1 = vunpack.c.l.b16 %v1217_v58 }
  0x9b   : > { %1711 = vmatmul.bf16.gmra.mxu3 %v11390_v36  ;;  %v1222_v0 = vrot.slane %v1221_v51, 4  ;;  %v1046_v3 = vshll.u32 %v838_v59, 16  ;;  %v1050_v4 = vshrl.u32 %v838_v59, 16  ;;  %v11383_v5 = vld [vmem:[#allocation2 + $0x48] sm:$0xff]  ;;  %v491_v10 = vrot.slane %v489_v56, 7 }
  0x9c   : > { %1438 = vmatmul.bf16.gmra.mxu0 %v1330_v34  ;;  %v1043_v6 = vor.u32 %v1042_v61, %v1039_v60  ;;  %v1058_v8 = vrot.slane %v1056_v62, 5  ;;  %807 = vst.msk [vmem:[#allocation2 + $0xac] sm:$0xf] %vm707_vm5, %v622_v9  ;;  %v497_v18 = vshrl.u32 %v364_v50, 16  ;;  %v500_v14 = vshll.u32 %v364_v50, 16  ;;  %v11409_v62 = vld [vmem:[%s15831_s1 + $0x80] sm:$0xff] }
  0x9d   : > { %v1227_v13 = vsel %vm11791_vm2, %v1222_v0, %v1226_v44  ;;  %v1048_v15 = vrot.slane %v1046_v3, 5  ;;  %v1052_v17 = vrot.slane %v1050_v4, 4  ;;  %v494_v7 = vor.u32 %v492_v57, %v491_v10  ;;  %v853_v26 = vld [vmem:[#allocation2 + $0xa8] sm:$0xf]  ;;  %v811_v47 = vld [vmem:[#allocation2 + $0xb4] sm:$0xf]  ;;  %2026 = vmatpush.bf16.msrb.mxu2 %v11409_v62 }
  0x9e   : > { %v1320_v21 = vunpack.c.l.b16 %v1227_v13  ;;  %v1044_v22 = vrot.slane %v1043_v6, 4  ;;  %v495_v19 = vrot.slane %v491_v10, 4  ;;  %v499_v24 = vrot.slane %v497_v18, 7  ;;  %v11455_v57 = vld [vmem:[%s15831_s1 + $0x170] sm:$0xff]  ;;  %v11433_v0 = vld [vmem:[%s15831_s1 + $0xc0] sm:$0xff] }
  0x9f   : > { %v1053_v25 = vor.u32 %v1052_v17, %v1048_v15  ;;  %1676 = vmatmul.bf16.gmra.mxu1 %v11383_v5  ;;  %v625_v27 = vshrl.u32 %v379_v12, 16  ;;  %v1229_v29 = vshrl.u32 %v853_v26, 16  ;;  %v1232_v31 = vshll.u32 %v853_v26, 16  ;;  %v11454_v5 = vld [vmem:[%s15831_s1 + $0x168] sm:$0xff]  ;;  %v11441_v6 = vld [vmem:[%s15831_s1 + $0x100] sm:$0xff]  ;;  %2340 = vmatpush.bf16.msrb.mxu3 %v11433_v0 }
  0xa0   : > { %v1049_v28 = vsel %vm11791_vm2, %v1044_v22, %v1048_v15  ;;  %v502_v36 = vor.u32 %v500_v14, %v499_v24  ;;  %v504_v38 = vrot.slane %v499_v24, 4  ;;  %v887_v39 = vld [vmem:[#allocation2 + $0xb0] sm:$0x1]  ;;  %v756_v42 = vsel %vm11888_vm9, %v494_v7, %v755_v20  ;;  %3442 = vmatpush.bf16.msrb.mxu1 %v11455_v57  ;;  %v815_v10 = vld [vmem:[#allocation2 + $0xbc] sm:$0x1]  ;;  %v11453_v17 = vld [vmem:[%s15831_s1 + $0x160] sm:$0xff]  ;;  %3022 = vmatpush.bf16.msrb.mxu0 %v11441_v6 }
  0xa1   : > { %v1054_v33 = vrot.slane %v1053_v25, 4  ;;  %v1305_v35 = vunpack.c.l.b16 %v1049_v28  ;;  %v1231_v40 = vrot.slane %v1229_v29, 4  ;;  %v1234_v41 = vrot.slane %v1232_v31, 5  ;;  %757 = vst [vmem:[#allocation2 + $0x54] sm:$0xf] %v756_v42 }
  0xa2   : > { %v627_v34 = vrot.slane %v625_v27, 7  ;;  %v1338_v43 = vpack.c.b16 %v1320_v21, %v1319_v1  ;;  %v503_v2 = vsel %vm11877_vm8, %v495_v19, %v502_v36  ;;  %v760_v45 = vsel %vm11898_vm10, %v504_v38, %v759_v32  ;;  %v2454_v18 = vld [vmem:[#allocation2 + $0xc] sm:$0xf]  ;;  %v12204_v29 = vld [vmem:[#allocation2 + $0x10] sm:$0xf] }
  0xa3   : > { %v1059_v44 = vsel %vm11791_vm2, %v1054_v33, %v1058_v8  ;;  %v854_v37 = vld [vmem:[#allocation2 + $0xac] sm:$0xf]  ;;  %v1235_v48 = vor.u32 %v1234_v41, %v1231_v40  ;;  %758 = vst.msk [vmem:[#allocation2 + $0x58] sm:$0xf] %vm707_vm5, %v503_v2  ;;  %v628_v49 = vshll.u32 %v379_v12, 16  ;;  %v1248_v52 = vshll.u32 %v887_v39, 16 }
  0xa4   : > { %v1306_v23 = vunpack.c.l.b16 %v1059_v44  ;;  %v1238_v50 = vshll.u32 %v854_v37, 16  ;;  %v1242_v51 = vshrl.u32 %v854_v37, 16  ;;  %761 = vst [vmem:[#allocation2 + $0x5c] sm:$0x1] %v760_v45  ;;  %v11391_v54 = vld [vmem:[#allocation2 + $0xa8] sm:$0xff]  ;;  %v633_v56 = vshrl.u32 %v380_v46, 16  ;;  %3443 = vmatpush.bf16.msrb.mxu1 %v11454_v5 }
  0xa5   : > { %v630_v55 = vor.u32 %v628_v49, %v627_v34  ;;  %v1236_v58 = vrot.slane %v1235_v48, 4  ;;  %v636_v61 = vshll.u32 %v380_v46, 16  ;;  %v631_v1 = vrot.slane %v627_v34, 4  ;;  %v11452_v45 = vld [vmem:[%s15831_s1 + $0x158] sm:$0xff] }
  0xa6   : > { %v1331_v53 = vpack.c.b16 %v1306_v23, %v1305_v35  ;;  %v1240_v59 = vrot.slane %v1238_v50, 5  ;;  %v1244_v60 = vrot.slane %v1242_v51, 4  ;;  %v635_v3 = vrot.slane %v633_v56, 7 }
  0xa7   : > { %v812_v4 = vsel %vm11888_vm9, %v630_v55, %v811_v47  ;;  %v1250_v9 = vrot.slane %v1248_v52, 5  ;;  %v2503_v39 = vshrl.u32 %v2454_v18, 16  ;;  %v2506_v34 = vshll.u32 %v2454_v18, 16 }
  0xa8   : > { %v1245_v8 = vor.u32 %v1244_v60, %v1240_v59  ;;  %813 = vst [vmem:[#allocation2 + $0xb4] sm:$0xf] %v812_v4  ;;  %v839_v12 = vld [vmem:[#allocation2 + $0x54] sm:$0xf]  ;;  %v638_v13 = vor.u32 %v636_v61, %v635_v3  ;;  %v640_v15 = vrot.slane %v635_v3, 4  ;;  %v1241_v21 = vsel %vm11791_vm2, %v1236_v58, %v1240_v59  ;;  %3444 = vmatpush.bf16.msrb.mxu1 %v11453_v17 }
  0xa9   : > { %1478 = vmatmul.bf16.gmra.mxu2 %v1338_v43  ;;  %v1061_v19 = vshrl.u32 %v839_v12, 16  ;;  %v1064_v20 = vshll.u32 %v839_v12, 16  ;;  %v1321_v40 = vunpack.c.l.b16 %v1241_v21  ;;  %v2512_v46 = vshll.u32 %v12204_v29, 16  ;;  %v2456_v59 = vld [vmem:[#allocation2 + $0x14] sm:$0x1]  ;;  %v1647_v17 = vpop.f32.mrf.mxu1  ;;  %v11480_v21 = vld [vmem:[%s15831_s1 + $0x1b8] sm:$0xff] }
  0xaa   : > { %v1246_v22 = vrot.slane %v1245_v8, 4  ;;  %v840_v7 = vld [vmem:[#allocation2 + $0x58] sm:$0xf]  ;;  %v639_v27 = vsel %vm11877_vm8, %v631_v1, %v638_v13  ;;  %v816_v28 = vsel %vm11898_vm10, %v640_v15, %v815_v10  ;;  %v2516_v47 = vshrl.u32 %v12204_v29, 16  ;;  %v11451_v8 = vld [vmem:[%s15831_s1 + $0x150] sm:$0xff]  ;;  %v1414_v15 = vpop.f32.mrf.mxu0  ;;  %3756 = vmatpush.bf16.msra.mxu2 %v11480_v21 }
  0xab   : > { %1716 = vmatmul.bf16.gmra.mxu3 %v11391_v54  ;;  %v11384_v25 = vld [vmem:[#allocation2 + $0x54] sm:$0xff]  ;;  %v880_v26 = vld [vmem:[#allocation2 + $0x5c] sm:$0x1]  ;;  %v1070_v24 = vshll.u32 %v840_v7, 16  ;;  %v1074_v14 = vshrl.u32 %v840_v7, 16  ;;  %v1063_v32 = vrot.slane %v1061_v19, 4  ;;  %v12229_v19 = vadd.f32 %v1647_v17, %v1414_v15 }
  0xac   : > { %1443 = vmatmul.bf16.gmra.mxu0 %v1331_v53  ;;  %v1251_v31 = vsel %vm11791_vm2, %v1246_v22, %v1250_v9  ;;  %v1066_v33 = vrot.slane %v1064_v20, 5  ;;  %v1080_v35 = vshll.u32 %v880_v26, 16  ;;  %814 = vst.msk [vmem:[#allocation2 + $0xb8] sm:$0xf] %vm707_vm5, %v639_v27  ;;  %v2505_v50 = vrot.slane %v2503_v39, 4  ;;  %3445 = vmatpush.bf16.msrb.mxu1 %v11452_v45  ;;  %v11488_v22 = vld [vmem:[%s15831_s1 + $0x1f8] sm:$0xff] }
  0xad   : > { %v1072_v36 = vrot.slane %v1070_v24, 5  ;;  %v1076_v38 = vrot.slane %v1074_v14, 4  ;;  %817 = vst [vmem:[#allocation2 + $0xbc] sm:$0x1] %v816_v28  ;;  %v1322_v41 = vunpack.c.l.b16 %v1251_v31  ;;  %v2508_v51 = vrot.slane %v2506_v34, 5  ;;  %4438 = vmatpush.bf16.msra.mxu3 %v11488_v22  ;;  %v11450_v14 = vld [vmem:[%s15831_s1 + $0x148] sm:$0xff] }
  0xae   : > { %v1067_v42 = vor.u32 %v1066_v33, %v1063_v32  ;;  %v1082_v44 = vrot.slane %v1080_v35, 5  ;;  %v12218_v60 = vrot.slane %v2512_v46, 5  ;;  %v2518_v61 = vrot.slane %v2516_v47, 4  ;;  %v2457_v27 = vld [vmem:[#allocation2 + $0x18] sm:$0xf]  ;;  %v11449_v39 = vld [vmem:[%s15831_s1 + $0x140] sm:$0xff] }
  0xaf   : > { %1681 = vmatmul.bf16.gmra.mxu1 %v11384_v25  ;;  %v1077_v43 = vor.u32 %v1076_v38, %v1072_v36  ;;  %v855_v2 = vld [vmem:[#allocation2 + $0xb4] sm:$0xf]  ;;  %v1339_v52 = vpack.c.b16 %v1322_v41, %v1321_v40  ;;  %v2509_v6 = vor.u32 %v2508_v51, %v2505_v50  ;;  %v2522_v18 = vshll.u32 %v2456_v59, 16  ;;  %v11496_v32 = vld [vmem:[%s15831_s1 + $0x238] sm:$0xff]  ;;  %v3136_v33 = vld [vmem:[#allocation2 + $0xc] sm:$0xe] }
  0xb0   : > { %v1068_v23 = vrot.slane %v1067_v42, 4  ;;  %v1253_v37 = vshrl.u32 %v855_v2, 16  ;;  %v1256_v48 = vshll.u32 %v855_v2, 16  ;;  %v2519_v20 = vor.u32 %v2518_v61, %v12218_v60  ;;  %3446 = vmatpush.bf16.msrb.mxu1 %v11451_v8  ;;  %4864 = vmatpush.bf16.msra.mxu0 %v11496_v32  ;;  %v2458_v45 = vld [vmem:[#allocation2 + $0x1c] sm:$0xf] }
  0xb1   : > { %v1078_v49 = vrot.slane %v1077_v43, 4  ;;  %v2510_v24 = vrot.slane %v2509_v6, 4  ;;  %v2524_v31 = vrot.slane %v2522_v18, 5  ;;  %v3202_v35 = vrot.slane %v12204_v29, 5  ;;  %v11645_v8 = vld [vmem:[#allocation2 + $0x8] sm:$0x1] }
  0xb2   : > { %v1073_v53 = vsel %vm11791_vm2, %v1068_v23, %v1072_v36  ;;  %v1255_v54 = vrot.slane %v1253_v37, 4  ;;  %v1258_v55 = vrot.slane %v1256_v48, 5  ;;  %v2520_v38 = vrot.slane %v2519_v20, 4 }
  0xb3   : > { %v1083_v56 = vsel %vm11791_vm2, %v1078_v49, %v1082_v44  ;;  %v1307_v57 = vunpack.c.l.b16 %v1073_v53  ;;  %v856_v58 = vld [vmem:[#allocation2 + $0xb8] sm:$0xf]  ;;  %v10429_v40 = vrot.slane %v3136_v33, 9  ;;  %v3205_v41 = vrot.slane %v2456_v59, 5 }
  0xb4   : > { %v1308_v62 = vunpack.c.l.b16 %v1083_v56  ;;  %v888_v0 = vld [vmem:[#allocation2 + $0xbc] sm:$0x1]  ;;  %v1259_v1 = vor.u32 %v1258_v55, %v1255_v54  ;;  %v1262_v3 = vshll.u32 %v856_v58, 16  ;;  %v1266_v4 = vshrl.u32 %v856_v58, 16  ;;  %v11392_v10 = vld [vmem:[#allocation2 + $0xb4] sm:$0xff]  ;;  %3447 = vmatpush.bf16.msrb.mxu1 %v11450_v14  ;;  %v12261_v58 = vpop.f32.mrf.mxu1 }
  0xb5   : > { %v1272_v5 = vshll.u32 %v888_v0, 16  ;;  %v3204_v29 = vrot.slane %v3202_v35, 4  ;;  %v2527_v43 = vshrl.u32 %v2457_v27, 16  ;;  %v2515_v44 = vsel %vm11791_vm2, %v2510_v24, %v12218_v60  ;;  %v11644_v56 = vld [vmem:[#allocation2 + $0x4] sm:$0xf] }
  0xb6   : > { %v1332_v9 = vpack.c.b16 %v1308_v62, %v1307_v57  ;;  %v1264_v12 = vrot.slane %v1262_v3, 5  ;;  %v1268_v13 = vrot.slane %v1266_v4, 4  ;;  %v1260_v7 = vrot.slane %v1259_v1, 4  ;;  %v1727_v62 = vld [vmem:[#allocation2] sm:$0xe] }
  0xb7   : > { %v1274_v26 = vrot.slane %v1272_v5, 5  ;;  %v3203_v2 = vsel %vm12248_vm13, %v10429_v40, %v3202_v35  ;;  %v2530_v46 = vshll.u32 %v2457_v27, 16  ;;  %v3206_v37 = vsel %vm12248_vm13, %v3204_v29, %v3205_v41  ;;  %v2459_v3 = vld [vmem:[#allocation2 + $0x20] sm:$0x1]  ;;  %v12267_v24 = vld [vmem:[#allocation2 + $0x28] sm:$0xf]  ;;  %v12269_v35 = vpop.f32.mrf.mxu0 }
  0xb8   : > { %v1269_v25 = vor.u32 %v1268_v13, %v1264_v12  ;;  %v1265_v36 = vsel %vm11791_vm2, %v1260_v7, %v1264_v12  ;;  %v3329_v48 = vunpack.c.l.b16 %v3203_v2  ;;  %v2525_v49 = vsel %vm11791_vm2, %v2520_v38, %v2524_v31  ;;  %3448 = vmatpush.bf16.msrb.mxu1 %v11449_v39  ;;  %v2460_v7 = vld [vmem:[#allocation2 + $0x24] sm:$0xf] }
  0xb9   : > { %1483 = vmatmul.bf16.gmra.mxu2 %v1339_v52  ;;  %v1323_v47 = vunpack.c.l.b16 %v1265_v36  ;;  %v3330_v50 = vunpack.c.l.b16 %v3206_v37  ;;  %v2529_v51 = vrot.slane %v2527_v43, 4  ;;  %v2532_v52 = vrot.slane %v2530_v46, 5 }
  0xba   : > { %v1270_v28 = vrot.slane %v1269_v25, 4  ;;  %v2536_v53 = vshll.u32 %v2458_v45, 16  ;;  %v2540_v54 = vshrl.u32 %v2458_v45, 16  ;;  %v2903_v55 = vunpack.c.l.b16 %v2515_v44 }
  0xbb   : > { %1721 = vmatmul.bf16.gmra.mxu3 %v11392_v10  ;;  %v1780_v57 = vrot.slane %v11644_v56, 5  ;;  %v3361_v59 = vpack.c.b16 %v3330_v50, %v3329_v48  ;;  %v2904_v61 = vunpack.c.l.b16 %v2525_v49  ;;  %v2533_v4 = vor.u32 %v2532_v52, %v2529_v51  ;;  %v11417_v10 = vld [vmem:[#allocation2 + $0xc] sm:$0xff] }
  0xbc   : > { %1448 = vmatmul.bf16.gmra.mxu0 %v1332_v9  ;;  %v1275_v42 = vsel %vm11791_vm2, %v1270_v28, %v1274_v26  ;;  %v2538_v0 = vrot.slane %v2536_v53, 5  ;;  %v2542_v1 = vrot.slane %v2540_v54, 4  ;;  %v10205_v5 = vrot.slane %v1727_v62, 9  ;;  %v3137_v26 = vld [vmem:[#allocation2 + $0x18] sm:$0xe] }
  0xbd   : > { %v1324_v23 = vunpack.c.l.b16 %v1275_v42  ;;  %v1782_v6 = vrot.slane %v1780_v57, 4  ;;  %v1783_v9 = vrot.slane %v11645_v8, 5  ;;  %v2935_v12 = vpack.c.b16 %v2904_v61, %v2903_v55  ;;  %v11646_v48 = vld [vmem:[#allocation2 + $0x10] sm:$0xf]  ;;  %v1728_v50 = vld [vmem:[#allocation2 + $0xc] sm:$0xe] }
  0xbe   : > { %v2543_v13 = vor.u32 %v2542_v1, %v2538_v0  ;;  %v2546_v15 = vshll.u32 %v2459_v3, 16  ;;  %v2534_v17 = vrot.slane %v2533_v4, 4  ;;  %v1781_v18 = vsel %vm12248_vm13, %v10205_v5, %v1780_v57  ;;  %v2462_v56 = vld [vmem:[#allocation2 + $0x2c] sm:$0x1]  ;;  %v11647_v61 = vld [vmem:[#allocation2 + $0x14] sm:$0x1] }
  0xbf   : > { %v1340_v60 = vpack.c.b16 %v1324_v23, %v1323_v47  ;;  %3449 = vmatmul.bf16.vlgmr.msrb.gmra.mxu1 %v3361_v59  ;;  %v1784_v21 = vsel %vm12248_vm13, %v1782_v6, %v1783_v9  ;;  %v3209_v22 = vrot.slane %v2458_v45, 5  ;;  %v10430_v27 = vrot.slane %v3137_v26, 9  ;;  %v11418_v1 = vld [vmem:[#allocation2 + $0x18] sm:$0xff]  ;;  %v11479_v8 = vld [vmem:[%s15831_s1 + $0x1b0] sm:$0xff] }
  0xc0   : > { %v2544_v20 = vrot.slane %v2543_v13, 4  ;;  %v2548_v25 = vrot.slane %v2546_v15, 5  ;;  %v3212_v31 = vrot.slane %v2459_v3, 5  ;;  %v1907_v32 = vunpack.c.l.b16 %v1781_v18  ;;  %v11487_v9 = vld [vmem:[%s15831_s1 + $0x1f0] sm:$0xff]  ;;  %3757 = vmatpush.bf16.msra.mxu2 %v11479_v8  ;;  %v11649_v8 = vld [vmem:[#allocation2 + $0x20] sm:$0x1] }
  0xc1   : > { %v3211_v28 = vrot.slane %v3209_v22, 4  ;;  %v1908_v33 = vunpack.c.l.b16 %v1784_v21  ;;  %v2539_v36 = vsel %vm11791_vm2, %v2534_v17, %v2538_v0  ;;  %v2551_v38 = vshrl.u32 %v2460_v7, 16  ;;  %4439 = vmatpush.bf16.msra.mxu3 %v11487_v9  ;;  %v12297_v21 = vld [vmem:[#allocation2 + $0x34] sm:$0xf] }
  0xc2   : > { %v3210_v40 = vsel %vm12248_vm13, %v10430_v27, %v3209_v22  ;;  %v2554_v42 = vshll.u32 %v2460_v7, 16  ;;  %v2560_v29 = vshll.u32 %v12267_v24, 16  ;;  %v2549_v43 = vsel %vm11791_vm2, %v2544_v20, %v2548_v25  ;;  %v11495_v26 = vld [vmem:[%s15831_s1 + $0x230] sm:$0xff] }
  0xc3   : > { %v3213_v41 = vsel %vm12248_vm13, %v3211_v28, %v3212_v31  ;;  %v3331_v44 = vunpack.c.l.b16 %v3210_v40  ;;  %v2564_v45 = vshrl.u32 %v12267_v24, 16  ;;  %v1939_v47 = vpack.c.b16 %v1908_v33, %v1907_v32  ;;  %4865 = vmatpush.bf16.msra.mxu0 %v11495_v26 }
  0xc4   : > { %v3332_v2 = vunpack.c.l.b16 %v3213_v41  ;;  %v2905_v23 = vunpack.c.l.b16 %v2539_v36  ;;  %v2906_v37 = vunpack.c.l.b16 %v2549_v43  ;;  %v1787_v49 = vrot.slane %v11646_v48, 5 }
  0xc5   : > { %v2553_v51 = vrot.slane %v2551_v38, 4  ;;  %v2556_v52 = vrot.slane %v2554_v42, 5  ;;  %v12281_v53 = vrot.slane %v2560_v29, 5  ;;  %v2566_v54 = vrot.slane %v2564_v45, 4 }
  0xc6   : > { %v3362_v46 = vpack.c.b16 %v3332_v2, %v3331_v44  ;;  %v10206_v59 = vrot.slane %v1728_v50, 9  ;;  %v1790_v62 = vrot.slane %v11647_v61, 5  ;;  %v2936_v3 = vpack.c.b16 %v2906_v37, %v2905_v23 }
  0xc7   : > { %v2557_v4 = vor.u32 %v2556_v52, %v2553_v51  ;;  %v2567_v5 = vor.u32 %v2566_v54, %v12281_v53  ;;  %v2570_v6 = vshll.u32 %v2462_v56, 16  ;;  %v3216_v18 = vrot.slane %v12267_v24, 5  ;;  %v11648_v52 = vld [vmem:[#allocation2 + $0x1c] sm:$0xf] }
  0xc8   : > { %v1788_v15 = vsel %vm12248_vm13, %v10206_v59, %v1787_v49  ;;  %v3219_v32 = vrot.slane %v2462_v56, 5  ;;  %v2584_v36 = vshll.u32 %v12297_v21, 16  ;;  %v2588_v38 = vshrl.u32 %v12297_v21, 16  ;;  %v2465_v56 = vld [vmem:[#allocation2 + $0x38] sm:$0x1] }
  0xc9   : > { %1488 = vmatmul.bf16.gmra.mxu2 %v1340_v60  ;;  %v1789_v60 = vrot.slane %v1787_v49, 4  ;;  %v2558_v7 = vrot.slane %v2557_v4, 4  ;;  %v2568_v20 = vrot.slane %v2567_v5, 4  ;;  %v2572_v25 = vrot.slane %v2570_v6, 5 }
  0xca   : > { %v3218_v31 = vrot.slane %v3216_v18, 4  ;;  %v1909_v42 = vunpack.c.l.b16 %v1788_v15  ;;  %v2586_v49 = vrot.slane %v2584_v36, 5  ;;  %v2590_v50 = vrot.slane %v2588_v38, 4  ;;  %v12328_v38 = vld [vmem:[#allocation2 + $0x40] sm:$0xf] }
  0xcb   : > { %2341 = vmatmul.bf16.vlgmr.msrb.gmra.mxu3 %v11417_v10  ;;  %v1791_v17 = vsel %vm12248_vm13, %v1789_v60, %v1790_v62  ;;  %v1794_v54 = vrot.slane %v11648_v52, 5  ;;  %v1729_v62 = vld [vmem:[#allocation2 + $0x18] sm:$0xe]  ;;  %v1797_v9 = vrot.slane %v11649_v8, 5  ;;  %v3226_v36 = vrot.slane %v2465_v56, 5 }
  0xcc   : > { %3023 = vmatmul.bf16.vlgmr.msrb.gmra.mxu0 %v2935_v12  ;;  %v1652_v14 = vpop.f32.mrf.mxu1  ;;  %v2463_v12 = vld [vmem:[#allocation2 + $0x30] sm:$0xf]  ;;  %v3220_v41 = vsel %vm12248_vm13, %v3218_v31, %v3219_v32  ;;  %v1910_v29 = vunpack.c.l.b16 %v1791_v17  ;;  %v10207_v5 = vrot.slane %v1729_v62, 9  ;;  %v2466_v32 = vld [vmem:[#allocation2 + $0x3c] sm:$0xf] }
  0xcd   : > { %v2575_v33 = vshrl.u32 %v2463_v12, 16  ;;  %v2578_v24 = vshll.u32 %v2463_v12, 16  ;;  %v3334_v2 = vunpack.c.l.b16 %v3220_v41  ;;  %v1796_v6 = vrot.slane %v1794_v54, 4  ;;  %v3139_v31 = vld [vmem:[#allocation2 + $0x30] sm:$0xe] }
  0xce   : > { %v1687_v39 = vpop.f32.mrf.mxu3  ;;  %v2468_v8 = vld [vmem:[#allocation2 + $0x44] sm:$0x1] }
  0xcf   : > { %3454 = vmatmul.bf16.gmra.mxu1 %v3362_v46  ;;  %v2563_v46 = vsel %vm11791_vm2, %v2558_v7, %v12281_v53  ;;  %v2577_v23 = vrot.slane %v2575_v33, 4  ;;  %v2580_v48 = vrot.slane %v2578_v24, 5  ;;  %v1798_v26 = vsel %vm12248_vm13, %v1796_v6, %v1797_v9 }
  0xd0   : > { %v2907_v60 = vunpack.c.l.b16 %v2563_v46  ;;  %v10432_v33 = vrot.slane %v3139_v31, 9  ;;  %v1912_v41 = vunpack.c.l.b16 %v1798_v26 }
  0xd1   : > { %v2581_v53 = vor.u32 %v2580_v48, %v2577_v23  ;;  %v2612_v48 = vshrl.u32 %v12328_v38, 16 }
  0xd3   : > { %v2582_v17 = vrot.slane %v2581_v53, 4  ;;  %v1730_v53 = vld [vmem:[#allocation2 + $0x24] sm:$0xe] }
  0xd4   : > { %v1654_v55 = vpop.f32.mrf.mxu1  ;;  %v10208_v9 = vrot.slane %v1730_v53, 9 }
  0xd6   : > { %v1689_v57 = vpop.f32.mrf.mxu3 }
  0xd9   : > { %2027 = vmatmul.bf16.vlgmr.msrb.gmra.mxu2 %v1939_v47  ;;  %v1419_v0 = vpop.f32.mrf.mxu0  ;;  %v2573_v47 = vsel %vm11791_vm2, %v2568_v20, %v2572_v25  ;;  %v1795_v25 = vsel %vm12248_vm13, %v10207_v5, %v1794_v54  ;;  %v2614_v5 = vrot.slane %v2612_v48, 4 }
  0xda   : > { %v12290_v10 = vadd.f32 %v1652_v14, %v1419_v0  ;;  %v3138_v14 = vld [vmem:[#allocation2 + $0x24] sm:$0xe]  ;;  %v2908_v61 = vunpack.c.l.b16 %v2573_v47 }
  0xdb   : > { %2346 = vmatmul.bf16.gmra.mxu3 %v11418_v1  ;;  %v10431_v28 = vrot.slane %v3138_v14, 9  ;;  %v2591_v1 = vor.u32 %v2590_v50, %v2586_v49  ;;  %v3223_v14 = vrot.slane %v12297_v21, 5 }
  0xdc   : > { %v1454_v13 = vpop.f32.mrf.mxu2  ;;  %3028 = vmatmul.bf16.gmra.mxu0 %v2936_v3  ;;  %v1657_v27 = vpop.f32.mrf.mxu1  ;;  %v2594_v3 = vshll.u32 %v2465_v56, 16  ;;  %v2937_v15 = vpack.c.b16 %v2908_v61, %v2907_v60 }
  0xdd   : > { %v12299_v22 = vadd.f32 %v1687_v39, %v1454_v13  ;;  %v3217_v40 = vsel %vm12248_vm13, %v10431_v28, %v3216_v18  ;;  %v11419_v13 = vld [vmem:[#allocation2 + $0x24] sm:$0xff]  ;;  %v2592_v18 = vrot.slane %v2591_v1, 4  ;;  %v3225_v24 = vrot.slane %v3223_v14, 4 }
  0xde   : > { %v1692_v39 = vpop.f32.mrf.mxu3  ;;  %v3333_v44 = vunpack.c.l.b16 %v3217_v40  ;;  %v2596_v7 = vrot.slane %v2594_v3, 5  ;;  %v1911_v40 = vunpack.c.l.b16 %v1795_v25  ;;  %v11486_v25 = vld [vmem:[%s15831_s1 + $0x1e8] sm:$0xff] }
  0xdf   : > { %4440 = vmatpush.bf16.msra.mxu3 %v11486_v25 }
  0xe0   : > { %v3363_v37 = vpack.c.b16 %v3334_v2, %v3333_v44  ;;  %v2597_v21 = vsel %vm11791_vm2, %v2592_v18, %v2596_v7  ;;  %v2599_v44 = vshrl.u32 %v2466_v32, 16  ;;  %v2602_v2 = vshll.u32 %v2466_v32, 16 }
  0xe1   : > { %v1421_v43 = vpop.f32.mrf.mxu0  ;;  %v1941_v50 = vpack.c.b16 %v1912_v41, %v1911_v40  ;;  %v2910_v56 = vunpack.c.l.b16 %v2597_v21 }
  0xe2   : > { %v12310_v45 = vadd.f32 %v1654_v55, %v1421_v43  ;;  %v1940_v55 = vpack.c.b16 %v1910_v29, %v1909_v42  ;;  %3459 = vmatmul.bf16.gmra.mxu1 %v3363_v37  ;;  %v2587_v42 = vsel %vm11791_vm2, %v2582_v17, %v2586_v49  ;;  %v3224_v29 = vsel %vm12248_vm13, %v10432_v33, %v3223_v14  ;;  %v11651_v17 = vld [vmem:[#allocation2 + $0x2c] sm:$0x1] }
  0xe3   : > { %v3227_v43 = vsel %vm12248_vm13, %v3225_v24, %v3226_v36  ;;  %v3335_v47 = vunpack.c.l.b16 %v3224_v29  ;;  %v2608_v37 = vshll.u32 %v12328_v38, 16  ;;  %v2909_v54 = vunpack.c.l.b16 %v2587_v42  ;;  %v2469_v36 = vld [vmem:[#allocation2 + $0x48] sm:$0xf]  ;;  %v3140_v29 = vld [vmem:[#allocation2 + $0x3c] sm:$0xe] }
  0xe4   : > { %v1456_v51 = vpop.f32.mrf.mxu2  ;;  %v1659_v0 = vpop.f32.mrf.mxu1  ;;  %v3336_v23 = vunpack.c.l.b16 %v3227_v43  ;;  %v2601_v61 = vrot.slane %v2599_v44, 4  ;;  %v2604_v1 = vrot.slane %v2602_v2, 5  ;;  %v1804_v18 = vrot.slane %v11651_v17, 5 }
  0xe5   : > { %v12317_v59 = vadd.f32 %v1689_v57, %v1456_v51  ;;  %v12344_v3 = vrot.slane %v2608_v37, 5  ;;  %v2618_v14 = vshll.u32 %v2468_v8, 16  ;;  %v3230_v24 = vrot.slane %v12328_v38, 5 }
  0xe6   : > { %v1694_v4 = vpop.f32.mrf.mxu3  ;;  %v3364_v51 = vpack.c.b16 %v3336_v23, %v3335_v47  ;;  %v2605_v7 = vor.u32 %v2604_v1, %v2601_v61  ;;  %v10433_v2 = vrot.slane %v3140_v29, 9  ;;  %v3233_v38 = vrot.slane %v2468_v8, 5 }
  0xe7   : > { %v2620_v44 = vrot.slane %v2618_v14, 5  ;;  %v2623_v47 = vshrl.u32 %v2469_v36, 16  ;;  %v2626_v23 = vshll.u32 %v2469_v36, 16 }
  0xe8   : > { %v2606_v42 = vrot.slane %v2605_v7, 4  ;;  %v3231_v48 = vsel %vm12248_vm13, %v10433_v2, %v3230_v24 }
  0xe9   : > { %2032 = vmatmul.bf16.gmra.mxu2 %v1940_v55  ;;  %v1424_v12 = vpop.f32.mrf.mxu0  ;;  %v11650_v55 = vld [vmem:[#allocation2 + $0x28] sm:$0xf] }
  0xea   : > { %v12319_v57 = vadd.f32 %v1657_v27, %v1424_v12  ;;  %v1801_v60 = vrot.slane %v11650_v55, 5 }
  0xeb   : > { %2351 = vmatmul.bf16.gmra.mxu3 %v11419_v13  ;;  %v11420_v13 = vld [vmem:[#allocation2 + $0x30] sm:$0xff] }
  0xec   : > { %v1459_v20 = vpop.f32.mrf.mxu2  ;;  %3033 = vmatmul.bf16.gmra.mxu0 %v2937_v15  ;;  %v1662_v27 = vpop.f32.mrf.mxu1  ;;  %v1803_v12 = vrot.slane %v1801_v60, 4  ;;  %v2938_v15 = vpack.c.b16 %v2910_v56, %v2909_v54  ;;  %v1802_v33 = vsel %vm12248_vm13, %v10208_v9, %v1801_v60  ;;  %v3337_v54 = vunpack.c.l.b16 %v3231_v48 }
  0xed   : > { %v12326_v28 = vadd.f32 %v1692_v39, %v1459_v20  ;;  %v11478_v20 = vld [vmem:[%s15831_s1 + $0x1a8] sm:$0xff]  ;;  %v2611_v60 = vsel %vm11791_vm2, %v2606_v42, %v12344_v3  ;;  %v2625_v9 = vrot.slane %v2623_v47, 4 }
  0xee   : > { %v1697_v39 = vpop.f32.mrf.mxu3  ;;  %3758 = vmatpush.bf16.msra.mxu2 %v11478_v20  ;;  %v1805_v41 = vsel %vm12248_vm13, %v1803_v12, %v1804_v18  ;;  %v2628_v12 = vrot.slane %v2626_v23, 5  ;;  %v1731_v20 = vld [vmem:[#allocation2 + $0x30] sm:$0xe] }
  0xf1   : > { %v1426_v46 = vpop.f32.mrf.mxu0 }
  0xf2   : > { %v12340_v49 = vadd.f32 %v1659_v0, %v1426_v46  ;;  %3464 = vmatmul.bf16.gmra.mxu1 %v3364_v51  ;;  %v3232_v46 = vrot.slane %v3230_v24, 4  ;;  %v1913_v51 = vunpack.c.l.b16 %v1802_v33  ;;  %v2629_v33 = vor.u32 %v2628_v12, %v2625_v9 }
  0xf3   : > { %v10209_v24 = vrot.slane %v1731_v20, 9 }
  0xf4   : > { %v1461_v52 = vpop.f32.mrf.mxu2  ;;  %v1664_v6 = vpop.f32.mrf.mxu1 }
  0xf5   : > { %v12342_v62 = vadd.f32 %v1694_v4, %v1461_v52  ;;  %v2615_v4 = vor.u32 %v2614_v5, %v12344_v3  ;;  %v1914_v52 = vunpack.c.l.b16 %v1805_v41  ;;  %v11653_v41 = vld [vmem:[#allocation2 + $0x38] sm:$0x1] }
  0xf6   : > { %v1699_v0 = vpop.f32.mrf.mxu3  ;;  %v1811_v42 = vrot.slane %v11653_v41, 5  ;;  %v11654_v41 = vld [vmem:[#allocation2 + $0x40] sm:$0xf] }
  0xf7   : > { %v2616_v21 = vrot.slane %v2615_v4, 4  ;;  %v1942_v7 = vpack.c.b16 %v1914_v52, %v1913_v51  ;;  %v2911_v4 = vunpack.c.l.b16 %v2611_v60  ;;  %v3141_v52 = vld [vmem:[#allocation2 + $0x48] sm:$0xe] }
  0xf9   : > { %2037 = vmatmul.bf16.gmra.mxu2 %v1941_v50  ;;  %v1429_v26 = vpop.f32.mrf.mxu0  ;;  %v3234_v50 = vsel %vm12248_vm13, %v3232_v46, %v3233_v38  ;;  %v2621_v61 = vsel %vm11791_vm2, %v2616_v21, %v2620_v44  ;;  %v11421_v21 = vld [vmem:[#allocation2 + $0x3c] sm:$0xff]  ;;  %v2630_v46 = vrot.slane %v2629_v33, 4 }
  0xfa   : > { %v12353_v31 = vadd.f32 %v1662_v27, %v1429_v26  ;;  %v11494_v27 = vld [vmem:[%s15831_s1 + $0x228] sm:$0xff]  ;;  %v3338_v56 = vunpack.c.l.b16 %v3234_v50  ;;  %v2912_v3 = vunpack.c.l.b16 %v2621_v61  ;;  %v2471_v26 = vld [vmem:[#allocation2 + $0x50] sm:$0x1] }
  0xfb   : > { %2356 = vmatmul.bf16.gmra.mxu3 %v11420_v13  ;;  %4866 = vmatpush.bf16.msra.mxu0 %v11494_v27  ;;  %v3240_v61 = vrot.slane %v2471_v26, 5 }
  0xfc   : > { %v1464_v32 = vpop.f32.mrf.mxu2  ;;  %3038 = vmatmul.bf16.gmra.mxu0 %v2938_v15  ;;  %v1667_v43 = vpop.f32.mrf.mxu1  ;;  %v3365_v8 = vpack.c.b16 %v3338_v56, %v3337_v54  ;;  %v11652_v15 = vld [vmem:[#allocation2 + $0x34] sm:$0xf]  ;;  %v2939_v27 = vpack.c.b16 %v2912_v3, %v2911_v4 }
  0xfd   : > { %v12358_v40 = vadd.f32 %v1697_v39, %v1464_v32  ;;  %v12365_v39 = vld [vmem:[#allocation2 + $0x4c] sm:$0xf]  ;;  %v1808_v17 = vrot.slane %v11652_v15, 5  ;;  %v2472_v54 = vld [vmem:[#allocation2 + $0x54] sm:$0xf] }
  0xfe   : > { %v1702_v37 = vpop.f32.mrf.mxu3  ;;  %v2632_v53 = vshll.u32 %v12365_v39, 16  ;;  %v2636_v1 = vshrl.u32 %v12365_v39, 16  ;;  %v3237_v48 = vrot.slane %v12365_v39, 5  ;;  %v2650_v15 = vshll.u32 %v2472_v54, 16 }
  0xff   : > { %v1810_v36 = vrot.slane %v1808_v17, 4  ;;  %v1809_v47 = vsel %vm12248_vm13, %v10209_v24, %v1808_v17 }
 0x100   : > { %v2634_v14 = vrot.slane %v2632_v53, 5  ;;  %v2638_v32 = vrot.slane %v2636_v1, 4  ;;  %v3239_v60 = vrot.slane %v3237_v48, 4  ;;  %v12391_v53 = vld [vmem:[#allocation2 + $0x58] sm:$0xf]  ;;  %v1915_v1 = vunpack.c.l.b16 %v1809_v47 }
 0x101   : > { %v1431_v55 = vpop.f32.mrf.mxu0  ;;  %v1812_v23 = vsel %vm12248_vm13, %v1810_v36, %v1811_v42  ;;  %v2656_v4 = vshll.u32 %v12391_v53, 16  ;;  %v2660_v3 = vshrl.u32 %v12391_v53, 16  ;;  %v1815_v42 = vrot.slane %v11654_v41, 5 }
 0x102   : > { %v12378_v5 = vadd.f32 %v1664_v6, %v1431_v55  ;;  %3469 = vmatmul.bf16.gmra.mxu1 %v3365_v8  ;;  %v2639_v44 = vor.u32 %v2638_v32, %v2634_v14  ;;  %v10434_v55 = vrot.slane %v3141_v52, 9  ;;  %v1916_v8 = vunpack.c.l.b16 %v1812_v23  ;;  %v2474_v23 = vld [vmem:[#allocation2 + $0x5c] sm:$0x1]  ;;  %v11655_v52 = vld [vmem:[#allocation2 + $0x44] sm:$0x1] }
 0x103   : > { %v2635_v9 = vsel %vm11791_vm2, %v2630_v46, %v2634_v14  ;;  %v3241_v12 = vsel %vm12248_vm13, %v3239_v60, %v3240_v61  ;;  %v2658_v46 = vrot.slane %v2656_v4, 5  ;;  %v3247_v41 = vrot.slane %v2474_v23, 5 }
 0x104   : > { %v1466_v13 = vpop.f32.mrf.mxu2  ;;  %v1669_v25 = vpop.f32.mrf.mxu1  ;;  %v1943_v14 = vpack.c.b16 %v1916_v8, %v1915_v1  ;;  %v2913_v36 = vunpack.c.l.b16 %v2635_v9  ;;  %v11485_v1 = vld [vmem:[%s15831_s1 + $0x1e0] sm:$0xff]  ;;  %v2666_v9 = vshll.u32 %v2474_v23, 16 }
 0x105   : > { %v12380_v18 = vadd.f32 %v1699_v0, %v1466_v13  ;;  %v2642_v0 = vshll.u32 %v2471_v26, 16  ;;  %v2647_v13 = vshrl.u32 %v2472_v54, 16  ;;  %v1818_v54 = vrot.slane %v11655_v52, 5  ;;  %4441 = vmatpush.bf16.msra.mxu3 %v11485_v1 }
 0x106   : > { %v1704_v6 = vpop.f32.mrf.mxu3 }
 0x107   : > { %v2644_v51 = vrot.slane %v2642_v0, 5 }
 0x109   : > { %2042 = vmatmul.bf16.gmra.mxu2 %v1942_v7  ;;  %v1434_v29 = vpop.f32.mrf.mxu0  ;;  %v3340_v7 = vunpack.c.l.b16 %v3241_v12 }
 0x10a   : > { %v12382_v2 = vadd.f32 %v1667_v43, %v1434_v29  ;;  %v2640_v43 = vrot.slane %v2639_v44, 4  ;;  %v1732_v44 = vld [vmem:[#allocation2 + $0x3c] sm:$0xe] }
 0x10b   : > { %2361 = vmatmul.bf16.gmra.mxu3 %v11421_v21  ;;  %v2649_v21 = vrot.slane %v2647_v13, 4 }
 0x10c   : > { %v1469_v38 = vpop.f32.mrf.mxu2  ;;  %3043 = vmatmul.bf16.gmra.mxu0 %v2939_v27  ;;  %v1672_v56 = vpop.f32.mrf.mxu1  ;;  %v2645_v26 = vsel %vm11791_vm2, %v2640_v43, %v2644_v51  ;;  %v2652_v27 = vrot.slane %v2650_v15, 5  ;;  %v10210_v51 = vrot.slane %v1732_v44, 9 }
 0x10d   : > { %v12389_v50 = vadd.f32 %v1702_v37, %v1469_v38  ;;  %v3238_v37 = vsel %vm12248_vm13, %v10434_v55, %v3237_v48  ;;  %v2914_v29 = vunpack.c.l.b16 %v2645_v26  ;;  %v2662_v38 = vrot.slane %v2660_v3, 4  ;;  %v11422_v55 = vld [vmem:[#allocation2 + $0x48] sm:$0xff]  ;;  %v2475_v26 = vld [vmem:[#allocation2 + $0x60] sm:$0xf] }
 0x10e   : > { %v1707_v39 = vpop.f32.mrf.mxu3  ;;  %v3339_v17 = vunpack.c.l.b16 %v3238_v37  ;;  %v2653_v43 = vor.u32 %v2652_v27, %v2649_v21  ;;  %v1816_v13 = vsel %vm12248_vm13, %v10210_v51, %v1815_v42  ;;  %v2671_v44 = vshrl.u32 %v2475_v26, 16 }
 0x10f   : > { %15849 = vst [vmem:[#allocation3_spill] sm:$0xff] %v12389_v50  ;;  %v2940_v60 = vpack.c.b16 %v2914_v29, %v2913_v36  ;;  %v2663_v61 = vor.u32 %v2662_v38, %v2658_v46  ;;  %v2674_v38 = vshll.u32 %v2475_v26, 16 }
 0x110   : > { %v3366_v33 = vpack.c.b16 %v3340_v7, %v3339_v17  ;;  %v2654_v17 = vrot.slane %v2653_v43, 4  ;;  %v3244_v7 = vrot.slane %v12391_v53, 5  ;;  %v12425_v53 = vld [vmem:[#allocation2 + $0x64] sm:$0xf] }
 0x111   : > { %v1436_v20 = vpop.f32.mrf.mxu0  ;;  %v2664_v3 = vrot.slane %v2663_v61, 4  ;;  %v2680_v43 = vshll.u32 %v12425_v53, 16 }
 0x112   : > { %v12403_v32 = vadd.f32 %v1669_v25, %v1436_v20  ;;  %3474 = vmatmul.bf16.gmra.mxu1 %v3366_v33  ;;  %v1817_v25 = vrot.slane %v1815_v42, 4  ;;  %v3142_v20 = vld [vmem:[#allocation2 + $0x54] sm:$0xe]  ;;  %v2668_v33 = vrot.slane %v2666_v9, 5  ;;  %v3246_v36 = vrot.slane %v3244_v7, 4 }
 0x113   : > { %v1917_v42 = vunpack.c.l.b16 %v1816_v13  ;;  %v2659_v23 = vsel %vm11791_vm2, %v2654_v17, %v2658_v46  ;;  %v2676_v9 = vrot.slane %v2674_v38, 5  ;;  %v11656_v46 = vld [vmem:[#allocation2 + $0x4c] sm:$0xf] }
 0x114   : > { %v1471_v24 = vpop.f32.mrf.mxu2  ;;  %v1674_v47 = vpop.f32.mrf.mxu1  ;;  %v1819_v15 = vsel %vm12248_vm13, %v1817_v25, %v1818_v54  ;;  %v3248_v29 = vsel %vm12248_vm13, %v3246_v36, %v3247_v41  ;;  %v2669_v54 = vsel %vm11791_vm2, %v2664_v3, %v2668_v33  ;;  %v2915_v13 = vunpack.c.l.b16 %v2659_v23  ;;  %v2477_v3 = vld [vmem:[#allocation2 + $0x68] sm:$0x1]  ;;  %v11423_v36 = vld [vmem:[#allocation2 + $0x54] sm:$0xff] }
 0x115   : > { %v12405_v0 = vadd.f32 %v1704_v6, %v1471_v24  ;;  %v11477_v6 = vld [vmem:[%s15831_s1 + $0x1a0] sm:$0xff]  ;;  %v10435_v24 = vrot.slane %v3142_v20, 9  ;;  %v1918_v21 = vunpack.c.l.b16 %v1819_v15  ;;  %v3342_v25 = vunpack.c.l.b16 %v3248_v29 }
 0x116   : > { %v1709_v48 = vpop.f32.mrf.mxu3  ;;  %3759 = vmatpush.bf16.msra.mxu2 %v11477_v6  ;;  %v2916_v15 = vunpack.c.l.b16 %v2669_v54  ;;  %v1822_v17 = vrot.slane %v11656_v46, 5  ;;  %v3251_v23 = vrot.slane %v12425_v53, 5  ;;  %v2478_v54 = vld [vmem:[#allocation2 + $0x6c] sm:$0xf] }
 0x117   : > { %15850 = vst [vmem:[#allocation4_spill] sm:$0xff] %v12405_v0  ;;  %v3245_v27 = vsel %vm12248_vm13, %v10435_v24, %v3244_v7  ;;  %v1944_v1 = vpack.c.b16 %v1918_v21, %v1917_v42  ;;  %v1733_v7 = vld [vmem:[#allocation2 + $0x48] sm:$0xe]  ;;  %v11657_v21 = vld [vmem:[#allocation2 + $0x50] sm:$0x1]  ;;  %v2698_v46 = vshll.u32 %v2478_v54, 16 }
 0x118   : > { %v3341_v51 = vunpack.c.l.b16 %v3245_v27  ;;  %v2941_v41 = vpack.c.b16 %v2916_v15, %v2915_v13  ;;  %v1824_v42 = vrot.slane %v1822_v17, 4  ;;  %v2690_v27 = vshll.u32 %v2477_v3, 16  ;;  %v12450_v13 = vld [vmem:[#allocation2 + $0x70] sm:$0xf] }
 0x119   : > { %2047 = vmatmul.bf16.gmra.mxu2 %v1943_v14  ;;  %v1439_v8 = vpop.f32.mrf.mxu0 }
 0x11a   : > { %v12413_v37 = vadd.f32 %v1672_v56, %v1439_v8  ;;  %v11493_v56 = vld [vmem:[%s15831_s1 + $0x220] sm:$0xff]  ;;  %v3367_v61 = vpack.c.b16 %v3342_v25, %v3341_v51  ;;  %v2673_v8 = vrot.slane %v2671_v44, 4 }
 0x11b   : > { %2366 = vmatmul.bf16.gmra.mxu3 %v11422_v55  ;;  %4867 = vmatpush.bf16.msra.mxu0 %v11493_v56  ;;  %v2684_v55 = vshrl.u32 %v12425_v53, 16  ;;  %v2682_v56 = vrot.slane %v2680_v43, 5 }
 0x11c   : > { %v1474_v12 = vpop.f32.mrf.mxu2  ;;  %3048 = vmatmul.bf16.gmra.mxu0 %v2940_v60  ;;  %v1677_v14 = vpop.f32.mrf.mxu1  ;;  %v2677_v24 = vor.u32 %v2676_v9, %v2673_v8  ;;  %v3253_v8 = vrot.slane %v3251_v23, 4  ;;  %v3254_v9 = vrot.slane %v2477_v3, 5  ;;  %v2704_v3 = vshll.u32 %v12450_v13, 16 }
 0x11d   : > { %v12420_v4 = vadd.f32 %v1707_v39, %v1474_v12  ;;  %v2686_v20 = vrot.slane %v2684_v55, 4 }
 0x11e   : > { %v1712_v39 = vpop.f32.mrf.mxu3 }
 0x11f   : > { %15851 = vst [vmem:[#allocation5_spill] sm:$0xff] %v12420_v4  ;;  %v2687_v44 = vor.u32 %v2686_v20, %v2682_v56 }
 0x121   : > { %v1441_v52 = vpop.f32.mrf.mxu0 }
 0x122   : > { %v12437_v60 = vadd.f32 %v1674_v47, %v1441_v52  ;;  %3479 = vmatmul.bf16.gmra.mxu1 %v3367_v61  ;;  %v10211_v47 = vrot.slane %v1733_v7, 9  ;;  %v2678_v52 = vrot.slane %v2677_v24, 4  ;;  %v2692_v61 = vrot.slane %v2690_v27, 5 }
 0x123   : > { %v2695_v7 = vshrl.u32 %v2478_v54, 16 }
 0x124   : > { %v1476_v6 = vpop.f32.mrf.mxu2  ;;  %v1679_v26 = vpop.f32.mrf.mxu1  ;;  %v1823_v25 = vsel %vm12248_vm13, %v10211_v47, %v1822_v17  ;;  %v3255_v47 = vsel %vm12248_vm13, %v3253_v8, %v3254_v9  ;;  %v2706_v8 = vrot.slane %v2704_v3, 5 }
 0x125   : > { %v12439_v12 = vadd.f32 %v1709_v48, %v1476_v6  ;;  %v1825_v48 = vrot.slane %v11657_v21, 5  ;;  %v3143_v6 = vld [vmem:[#allocation2 + $0x60] sm:$0xe]  ;;  %v1919_v15 = vunpack.c.l.b16 %v1823_v25 }
 0x126   : > { %v1714_v33 = vpop.f32.mrf.mxu3 }
 0x127   : > { %15852 = vst [vmem:[#allocation6_spill] sm:$0xff] %v12439_v12  ;;  %v1826_v55 = vsel %vm12248_vm13, %v1824_v42, %v1825_v48  ;;  %v2708_v42 = vshrl.u32 %v12450_v13, 16 }
 0x128   : > { %v1920_v53 = vunpack.c.l.b16 %v1826_v55 }
 0x129   : > { %2052 = vmatmul.bf16.gmra.mxu2 %v1944_v1  ;;  %v1444_v29 = vpop.f32.mrf.mxu0  ;;  %v2688_v1 = vrot.slane %v2687_v44, 4  ;;  %v2700_v44 = vrot.slane %v2698_v46, 5  ;;  %v2710_v9 = vrot.slane %v2708_v42, 4  ;;  %v11424_v46 = vld [vmem:[#allocation2 + $0x60] sm:$0xff] }
 0x12a   : > { %v12441_v38 = vadd.f32 %v1677_v14, %v1444_v29  ;;  %v10436_v14 = vrot.slane %v3143_v6, 9  ;;  %v2697_v29 = vrot.slane %v2695_v7, 4  ;;  %v1945_v25 = vpack.c.b16 %v1920_v53, %v1919_v15 }
 0x12b   : > { %2371 = vmatmul.bf16.gmra.mxu3 %v11423_v36  ;;  %v2693_v48 = vsel %vm11791_vm2, %v2688_v1, %v2692_v61  ;;  %v2711_v53 = vor.u32 %v2710_v9, %v2706_v8 }
 0x12c   : > { %v1479_v51 = vpop.f32.mrf.mxu2  ;;  %3053 = vmatmul.bf16.gmra.mxu0 %v2941_v41  ;;  %v3252_v20 = vsel %vm12248_vm13, %v10436_v14, %v3251_v23  ;;  %v1682_v24 = vpop.f32.mrf.mxu1  ;;  %v3344_v41 = vunpack.c.l.b16 %v3255_v47  ;;  %v11658_v23 = vld [vmem:[#allocation2 + $0x58] sm:$0xf]  ;;  %v2918_v6 = vunpack.c.l.b16 %v2693_v48  ;;  %v1734_v14 = vld [vmem:[#allocation2 + $0x54] sm:$0xe]  ;;  %v2701_v47 = vor.u32 %v2700_v44, %v2697_v29 }
 0x12d   : > { %v12446_v43 = vadd.f32 %v1712_v39, %v1479_v51  ;;  %v2683_v39 = vsel %vm11791_vm2, %v2678_v52, %v2682_v56  ;;  %v3343_v36 = vunpack.c.l.b16 %v3252_v20  ;;  %v1829_v54 = vrot.slane %v11658_v23, 5  ;;  %v2480_v20 = vld [vmem:[#allocation2 + $0x74] sm:$0x1]  ;;  %v2481_v23 = vld [vmem:[#allocation2 + $0x78] sm:$0xf] }
 0x12e   : > { %v1717_v17 = vpop.f32.mrf.mxu3  ;;  %v2917_v52 = vunpack.c.l.b16 %v2683_v39  ;;  %v11484_v39 = vld [vmem:[%s15831_s1 + $0x1d8] sm:$0xff]  ;;  %v2714_v3 = vshll.u32 %v2480_v20, 16  ;;  %v2702_v48 = vrot.slane %v2701_v47, 4  ;;  %v3261_v47 = vrot.slane %v2480_v20, 5 }
 0x12f   : > { %15853 = vst [vmem:[#allocation7_spill] sm:$0xff] %v12446_v43  ;;  %v3368_v56 = vpack.c.b16 %v3344_v41, %v3343_v36  ;;  %v1831_v1 = vrot.slane %v1829_v54, 4  ;;  %v11659_v36 = vld [vmem:[#allocation2 + $0x5c] sm:$0x1]  ;;  %4442 = vmatpush.bf16.msra.mxu3 %v11484_v39 }
 0x130   : > { %v1832_v7 = vrot.slane %v11659_v36, 5  ;;  %v2942_v15 = vpack.c.b16 %v2918_v6, %v2917_v52  ;;  %v2712_v52 = vrot.slane %v2711_v53, 4  ;;  %v2716_v6 = vrot.slane %v2714_v3, 5  ;;  %v12481_v36 = vld [vmem:[#allocation2 + $0x7c] sm:$0xf] }
 0x131   : > { %v1446_v21 = vpop.f32.mrf.mxu0  ;;  %v2728_v20 = vshll.u32 %v12481_v36, 16  ;;  %v2732_v39 = vshrl.u32 %v12481_v36, 16 }
 0x132   : > { %v12462_v27 = vadd.f32 %v1679_v26, %v1446_v21  ;;  %3484 = vmatmul.bf16.gmra.mxu1 %v3368_v56  ;;  %v10212_v26 = vrot.slane %v1734_v14, 9  ;;  %v1833_v44 = vsel %vm12248_vm13, %v1831_v1, %v1832_v7  ;;  %v2719_v7 = vshrl.u32 %v2481_v23, 16 }
 0x133   : > { %v2717_v3 = vsel %vm11791_vm2, %v2712_v52, %v2716_v6  ;;  %v1735_v52 = vld [vmem:[#allocation2 + $0x60] sm:$0xe]  ;;  %v2734_v6 = vrot.slane %v2732_v39, 4 }
 0x134   : > { %v1481_v51 = vpop.f32.mrf.mxu2  ;;  %v1684_v21 = vpop.f32.mrf.mxu1  ;;  %v1830_v29 = vsel %vm12248_vm13, %v10212_v26, %v1829_v54  ;;  %v1922_v54 = vunpack.c.l.b16 %v1833_v44  ;;  %v2707_v26 = vsel %vm11791_vm2, %v2702_v48, %v2706_v8 }
 0x135   : > { %v12464_v55 = vadd.f32 %v1714_v33, %v1481_v51  ;;  %v11476_v33 = vld [vmem:[%s15831_s1 + $0x198] sm:$0xff]  ;;  %v3258_v51 = vrot.slane %v12450_v13, 5 }
 0x136   : > { %v1719_v61 = vpop.f32.mrf.mxu3  ;;  %3760 = vmatpush.bf16.msra.mxu2 %v11476_v33  ;;  %v1921_v33 = vunpack.c.l.b16 %v1830_v29  ;;  %v11492_v29 = vld [vmem:[%s15831_s1 + $0x218] sm:$0xff] }
 0x137   : > { %15854 = vst [vmem:[#allocation8_spill] sm:$0xff] %v12464_v55  ;;  %v3260_v9 = vrot.slane %v3258_v51, 4  ;;  %4868 = vmatpush.bf16.msra.mxu0 %v11492_v29  ;;  %v11661_v55 = vld [vmem:[#allocation2 + $0x68] sm:$0x1] }
 0x138   : > { %v1946_v8 = vpack.c.b16 %v1922_v54, %v1921_v33  ;;  %v2483_v33 = vld [vmem:[#allocation2 + $0x80] sm:$0x1] }
 0x139   : > { %2057 = vmatmul.bf16.gmra.mxu2 %v1945_v25  ;;  %v1449_v41 = vpop.f32.mrf.mxu0 }
 0x13a   : > { %v12472_v42 = vadd.f32 %v1682_v24, %v1449_v41  ;;  %v3144_v24 = vld [vmem:[#allocation2 + $0x6c] sm:$0xe] }
 0x13b   : > { %2376 = vmatmul.bf16.gmra.mxu3 %v11424_v46  ;;  %v10437_v14 = vrot.slane %v3144_v24, 9  ;;  %v2722_v46 = vshll.u32 %v2481_v23, 16  ;;  %v2919_v24 = vunpack.c.l.b16 %v2707_v26  ;;  %v11660_v23 = vld [vmem:[#allocation2 + $0x64] sm:$0xf] }
 0x13c   : > { %v1484_v56 = vpop.f32.mrf.mxu2  ;;  %3058 = vmatmul.bf16.gmra.mxu0 %v2942_v15 }
 0x13d   : > { %v12479_v25 = vadd.f32 %v1717_v17, %v1484_v56  ;;  %v3259_v13 = vsel %vm12248_vm13, %v10437_v14, %v3258_v51  ;;  %v3262_v17 = vsel %vm12248_vm13, %v3260_v9, %v3261_v47  ;;  %v12495_v56 = vpop.f32.mrf.mxu1  ;;  %v1836_v14 = vrot.slane %v11660_v23, 5 }
 0x13e   : > { %v1722_v1 = vpop.f32.mrf.mxu3  ;;  %v3345_v15 = vunpack.c.l.b16 %v3259_v13  ;;  %v3346_v53 = vunpack.c.l.b16 %v3262_v17  ;;  %v2721_v9 = vrot.slane %v2719_v7, 4  ;;  %v2724_v47 = vrot.slane %v2722_v46, 5 }
 0x13f   : > { %15855 = vst [vmem:[#allocation9_spill] sm:$0xff] %v12479_v25  ;;  %v2920_v17 = vunpack.c.l.b16 %v2717_v3  ;;  %v1838_v26 = vrot.slane %v1836_v14, 4  ;;  %v1839_v23 = vrot.slane %v11661_v55, 5 }
 0x140   : > { %v3369_v44 = vpack.c.b16 %v3346_v53, %v3345_v15  ;;  %v2725_v25 = vor.u32 %v2724_v47, %v2721_v9  ;;  %v11425_v15 = vld [vmem:[#allocation2 + $0x6c] sm:$0xff]  ;;  %v3145_v9 = vld [vmem:[#allocation2 + $0x78] sm:$0xe] }
 0x141   : > { %v1451_v41 = vpop.f32.mrf.mxu0  ;;  %v2943_v53 = vpack.c.b16 %v2920_v17, %v2919_v24  ;;  %v1840_v55 = vsel %vm12248_vm13, %v1838_v26, %v1839_v23  ;;  %v10438_v17 = vrot.slane %v3145_v9, 9 }
 0x142   : > { %v12493_v48 = vadd.f32 %v1684_v21, %v1451_v41  ;;  %v2730_v21 = vrot.slane %v2728_v20, 5  ;;  %3489 = vmatmul.bf16.gmra.mxu1 %v3369_v44  ;;  %v10213_v41 = vrot.slane %v1735_v52, 9  ;;  %v2726_v39 = vrot.slane %v2725_v25, 4 }
 0x143   : > { %v3265_v44 = vrot.slane %v12481_v36, 5  ;;  %v1924_v36 = vunpack.c.l.b16 %v1840_v55 }
 0x144   : > { %v1486_v51 = vpop.f32.mrf.mxu2  ;;  %v2735_v7 = vor.u32 %v2734_v6, %v2730_v21  ;;  %v1837_v20 = vsel %vm12248_vm13, %v10213_v41, %v1836_v14  ;;  %v3268_v6 = vrot.slane %v2483_v33, 5 }
 0x145   : > { %v12500_v13 = vadd.f32 %v1719_v61, %v1486_v51  ;;  %v2738_v61 = vshll.u32 %v2483_v33, 16  ;;  %v12504_v3 = vpop.f32.mrf.mxu1  ;;  %v2484_v51 = vld [vmem:[#allocation2 + $0x84] sm:$0xf]  ;;  %v3267_v52 = vrot.slane %v3265_v44, 4  ;;  %v1923_v14 = vunpack.c.l.b16 %v1837_v20  ;;  %v1736_v20 = vld [vmem:[#allocation2 + $0x6c] sm:$0xe] }
 0x146   : > { %v1724_v54 = vpop.f32.mrf.mxu3  ;;  %v2736_v24 = vrot.slane %v2735_v7, 4  ;;  %v2743_v25 = vshrl.u32 %v2484_v51, 16  ;;  %v2746_v41 = vshll.u32 %v2484_v51, 16  ;;  %v10214_v4 = vrot.slane %v1736_v20, 9 }
 0x147   : > { %15856 = vst [vmem:[#allocation10_spill] sm:$0xff] %v12500_v13  ;;  %v2740_v47 = vrot.slane %v2738_v61, 5  ;;  %v12513_v13 = vld [vmem:[#allocation2 + $0x88] sm:$0xf]  ;;  %v1947_v9 = vpack.c.b16 %v1924_v36, %v1923_v14  ;;  %v11426_v14 = vld [vmem:[#allocation2 + $0x78] sm:$0xff] }
 0x148   : > { %v2752_v33 = vshll.u32 %v12513_v13, 16  ;;  %v2756_v7 = vshrl.u32 %v12513_v13, 16 }
 0x149   : > { %2062 = vmatmul.bf16.gmra.mxu2 %v1946_v8  ;;  %v12502_v46 = vpop.f32.mrf.mxu0 }
 0x14a   : > { %v2758_v12 = vrot.slane %v2756_v7, 4 }
 0x14b   : > { %2381 = vmatmul.bf16.gmra.mxu3 %v11425_v15  ;;  %v3266_v15 = vsel %vm12248_vm13, %v10438_v17, %v3265_v44  ;;  %v2748_v44 = vrot.slane %v2746_v41, 5 }
 0x14c   : > { %v1489_v29 = vpop.f32.mrf.mxu2  ;;  %3063 = vmatmul.bf16.gmra.mxu0 %v2943_v53  ;;  %v3269_v53 = vsel %vm12248_vm13, %v3267_v52, %v3268_v6  ;;  %v3347_v26 = vunpack.c.l.b16 %v3266_v15  ;;  %v11662_v52 = vld [vmem:[#allocation2 + $0x70] sm:$0xf] }
 0x14d   : > { %v12509_v8 = vadd.f32 %v1722_v1, %v1489_v29  ;;  %v2731_v1 = vsel %vm11791_vm2, %v2726_v39, %v2730_v21  ;;  %v3348_v23 = vunpack.c.l.b16 %v3269_v53  ;;  %v2741_v29 = vsel %vm11791_vm2, %v2736_v24, %v2740_v47  ;;  %v12527_v51 = vpop.f32.mrf.mxu1  ;;  %v2486_v24 = vld [vmem:[#allocation2 + $0x8c] sm:$0x1] }
 0x14e   : > { %v2342_v43 = vpop.f32.mrf.mxu3  ;;  %v2745_v39 = vrot.slane %v2743_v25, 4  ;;  %v2921_v17 = vunpack.c.l.b16 %v2731_v1  ;;  %v1843_v6 = vrot.slane %v11662_v52, 5  ;;  %v2922_v53 = vunpack.c.l.b16 %v2741_v29  ;;  %v11663_v25 = vld [vmem:[#allocation2 + $0x74] sm:$0x1]  ;;  %v3146_v52 = vld [vmem:[#allocation2 + $0x84] sm:$0xe] }
 0x14f   : > { %15857 = vst [vmem:[#allocation11_spill] sm:$0xff] %v12509_v8  ;;  %v3370_v21 = vpack.c.b16 %v3348_v23, %v3347_v26  ;;  %v12531_v8 = vrot.slane %v2752_v33, 5  ;;  %v1846_v41 = vrot.slane %v11663_v25, 5  ;;  %v2762_v7 = vshll.u32 %v2486_v24, 16 }
 0x150   : > { %v2749_v47 = vor.u32 %v2748_v44, %v2745_v39  ;;  %v1845_v26 = vrot.slane %v1843_v6, 4  ;;  %v2944_v36 = vpack.c.b16 %v2922_v53, %v2921_v17  ;;  %v1844_v33 = vsel %vm12248_vm13, %v10214_v4, %v1843_v6  ;;  %v12552_v6 = vld [vmem:[#allocation2 + $0x94] sm:$0xf] }
 0x151   : > { %v12523_v61 = vpop.f32.mrf.mxu0  ;;  %v2759_v1 = vor.u32 %v2758_v12, %v12531_v8  ;;  %v3272_v44 = vrot.slane %v12513_v13, 5  ;;  %v1925_v4 = vunpack.c.l.b16 %v1844_v33  ;;  %v2764_v53 = vrot.slane %v2762_v7, 5 }
 0x152   : > { %3494 = vmatmul.bf16.gmra.mxu1 %v3370_v21  ;;  %v2750_v29 = vrot.slane %v2749_v47, 4  ;;  %v11483_v21 = vld [vmem:[%s15831_s1 + $0x1d0] sm:$0xff]  ;;  %v1847_v12 = vsel %vm12248_vm13, %v1845_v26, %v1846_v41  ;;  %v10439_v47 = vrot.slane %v3146_v52, 9  ;;  %v2780_v7 = vshrl.u32 %v12552_v6, 16 }
 0x153   : > { %v2760_v17 = vrot.slane %v2759_v1, 4  ;;  %4443 = vmatpush.bf16.msra.mxu3 %v11483_v21  ;;  %v3274_v25 = vrot.slane %v3272_v44, 4  ;;  %v1926_v50 = vunpack.c.l.b16 %v1847_v12 }
 0x154   : > { %v1491_v55 = vpop.f32.mrf.mxu2  ;;  %v2755_v13 = vsel %vm11791_vm2, %v2750_v29, %v12531_v8 }
 0x155   : > { %v12529_v15 = vadd.f32 %v1724_v54, %v1491_v55  ;;  %v11475_v54 = vld [vmem:[%s15831_s1 + $0x190] sm:$0xff]  ;;  %v12543_v20 = vpop.f32.mrf.mxu1  ;;  %v2765_v21 = vsel %vm11791_vm2, %v2760_v17, %v2764_v53 }
 0x156   : > { %v12533_v0 = vpop.f32.mrf.mxu3  ;;  %3761 = vmatpush.bf16.msra.mxu2 %v11475_v54  ;;  %v2487_v55 = vld [vmem:[#allocation2 + $0x90] sm:$0xf]  ;;  %v3275_v54 = vrot.slane %v2486_v24, 5 }
 0x157   : > { %15858 = vst [vmem:[#allocation12_spill] sm:$0xff] %v12529_v15  ;;  %v2767_v26 = vshrl.u32 %v2487_v55, 16  ;;  %v2770_v24 = vshll.u32 %v2487_v55, 16  ;;  %v1737_v55 = vld [vmem:[#allocation2 + $0x78] sm:$0xe] }
 0x159   : > { %2067 = vmatmul.bf16.gmra.mxu2 %v1947_v9  ;;  %v12539_v23 = vpop.f32.mrf.mxu0  ;;  %v2769_v17 = vrot.slane %v2767_v26, 4  ;;  %v2772_v53 = vrot.slane %v2770_v24, 5  ;;  %v11427_v24 = vld [vmem:[#allocation2 + $0x84] sm:$0xff] }
 0x15b   : > { %2386 = vmatmul.bf16.gmra.mxu3 %v11426_v14  ;;  %v3273_v14 = vsel %vm12248_vm13, %v10439_v47, %v3272_v44  ;;  %v1948_v44 = vpack.c.b16 %v1926_v50, %v1925_v4  ;;  %v2923_v47 = vunpack.c.l.b16 %v2755_v13  ;;  %v10215_v50 = vrot.slane %v1737_v55, 9 }
 0x15c   : > { %v2028_v39 = vpop.f32.mrf.mxu2  ;;  %3068 = vmatmul.bf16.gmra.mxu0 %v2944_v36  ;;  %v3276_v36 = vsel %vm12248_vm13, %v3274_v25, %v3275_v54  ;;  %v3349_v8 = vunpack.c.l.b16 %v3273_v14  ;;  %v11664_v25 = vld [vmem:[#allocation2 + $0x7c] sm:$0xf]  ;;  %v2489_v14 = vld [vmem:[#allocation2 + $0x98] sm:$0x1]  ;;  %v2773_v13 = vor.u32 %v2772_v53, %v2769_v17  ;;  %v3147_v53 = vld [vmem:[#allocation2 + $0x90] sm:$0xe] }
 0x15d   : > { %v2108_v9 = vadd.f32 %v2028_v39, %v12229_v19  ;;  %v11528_v19 = vld [vmem:[%s15833_s3 + $0x78] sm:$0xff]  ;;  %v3350_v33 = vunpack.c.l.b16 %v3276_v36  ;;  %v1650_v39 = vadd.f32 %v12261_v58, %v12269_v35  ;;  %v1850_v54 = vrot.slane %v11664_v25, 5 }
 0x15e   : > { %v12560_v41 = vpop.f32.mrf.mxu3  ;;  %6097 = vmatpush.bf16.msra.mxu1 %v11528_v19  ;;  %v2924_v58 = vunpack.c.l.b16 %v2765_v21 }
 0x15f   : > { %v2422_v15 = vadd.f32 %v2342_v43, %v2108_v9  ;;  %v2776_v43 = vshll.u32 %v12552_v6, 16  ;;  %v12578_v9 = vpop.f32.mrf.mxu1 }
 0x161   : > { %v3104_v1 = vadd.f32 %v12502_v46, %v2422_v15  ;;  %v12569_v29 = vpop.f32.mrf.mxu0  ;;  %v11491_v46 = vld [vmem:[%s15831_s1 + $0x210] sm:$0xff]  ;;  %v3371_v15 = vpack.c.b16 %v3350_v33, %v3349_v8  ;;  %v2778_v35 = vrot.slane %v2776_v43, 5  ;;  %v11665_v8 = vld [vmem:[#allocation2 + $0x80] sm:$0x1]  ;;  %v1851_v43 = vsel %vm12248_vm13, %v10215_v50, %v1850_v54 }
 0x162   : > { %4869 = vmatpush.bf16.msra.mxu0 %v11491_v46  ;;  %v1853_v33 = vrot.slane %v11665_v8, 5  ;;  %v1927_v17 = vunpack.c.l.b16 %v1851_v43  ;;  %v3282_v50 = vrot.slane %v2489_v14, 5 }
 0x163   : > { %v12576_v12 = vadd.f32 %v12495_v56, %v3104_v1  ;;  %v2782_v56 = vrot.slane %v2780_v7, 4  ;;  %3499 = vmatmul.bf16.gmra.mxu1 %v3371_v15  ;;  %v1852_v1 = vrot.slane %v1850_v54, 4  ;;  %v2786_v7 = vshll.u32 %v2489_v14, 16 }
 0x164   : > { %v2030_v52 = vpop.f32.mrf.mxu2 }
 0x165   : > { %v2109_v19 = vadd.f32 %v2030_v52, %v1650_v39  ;;  %v2945_v39 = vpack.c.b16 %v2924_v58, %v2923_v47  ;;  %v2783_v21 = vor.u32 %v2782_v56, %v2778_v35  ;;  %v2774_v52 = vrot.slane %v2773_v13, 4  ;;  %v2490_v47 = vld [vmem:[#allocation2 + $0x9c] sm:$0xf] }
 0x166   : > { %v12584_v36 = vpop.f32.mrf.mxu3  ;;  %v10440_v58 = vrot.slane %v3147_v53, 9  ;;  %v2791_v8 = vshrl.u32 %v2490_v47, 16 }
 0x167   : > { %v2423_v4 = vadd.f32 %v12533_v0, %v2109_v19  ;;  %v12594_v55 = vpop.f32.mrf.mxu1  ;;  %v2784_v54 = vrot.slane %v2783_v21, 4  ;;  %v12600_v19 = vld [vmem:[#allocation2 + $0xa0] sm:$0xf] }
 0x168   : > { %v2804_v21 = vshrl.u32 %v12600_v19, 16 }
 0x169   : > { %2072 = vmatmul.bf16.gmra.mxu2 %v1948_v44  ;;  %v3105_v26 = vadd.f32 %v12523_v61, %v2423_v4  ;;  %v12587_v46 = vpop.f32.mrf.mxu0  ;;  %v1854_v44 = vsel %vm12248_vm13, %v1852_v1, %v1853_v33  ;;  %v3279_v61 = vrot.slane %v12552_v6, 5  ;;  %v2794_v33 = vshll.u32 %v2490_v47, 16 }
 0x16a   : > { %v1928_v1 = vunpack.c.l.b16 %v1854_v44 }
 0x16b   : > { %v12592_v0 = vadd.f32 %v12504_v3, %v3105_v26  ;;  %2391 = vmatmul.bf16.gmra.mxu3 %v11427_v24  ;;  %v2788_v3 = vrot.slane %v2786_v7, 5  ;;  %v3281_v56 = vrot.slane %v3279_v61, 4  ;;  %v3280_v13 = vsel %vm12248_vm13, %v10440_v58, %v3279_v61  ;;  %v11666_v58 = vld [vmem:[#allocation2 + $0x88] sm:$0xf] }
 0x16c   : > { %v2033_v15 = vpop.f32.mrf.mxu2  ;;  %3073 = vmatmul.bf16.gmra.mxu0 %v2945_v39  ;;  %v2800_v24 = vshll.u32 %v12600_v19, 16  ;;  %v3351_v39 = vunpack.c.l.b16 %v3280_v13  ;;  %v2793_v61 = vrot.slane %v2791_v8, 4  ;;  %v2796_v47 = vrot.slane %v2794_v33, 5  ;;  %v11667_v33 = vld [vmem:[#allocation2 + $0x8c] sm:$0x1] }
 0x16d   : > { %v2110_v25 = vadd.f32 %v2033_v15, %v12290_v10  ;;  %v2779_v10 = vsel %vm11791_vm2, %v2774_v52, %v2778_v35  ;;  %v3283_v26 = vsel %vm12248_vm13, %v3281_v56, %v3282_v50  ;;  %v2789_v7 = vsel %vm11791_vm2, %v2784_v54, %v2788_v3  ;;  %v1738_v15 = vld [vmem:[#allocation2 + $0x84] sm:$0xe] }
 0x16e   : > { %v12603_v6 = vpop.f32.mrf.mxu3  ;;  %v2925_v53 = vunpack.c.l.b16 %v2779_v10  ;;  %v1857_v56 = vrot.slane %v11666_v58, 5  ;;  %v12624_v13 = vrot.slane %v2800_v24, 5  ;;  %v2806_v54 = vrot.slane %v2804_v21, 4  ;;  %v11428_v10 = vld [vmem:[#allocation2 + $0x90] sm:$0xff] }
 0x16f   : > { %v2424_v4 = vadd.f32 %v12560_v41, %v2110_v25  ;;  %v3352_v41 = vunpack.c.l.b16 %v3283_v26  ;;  %v12621_v44 = vpop.f32.mrf.mxu1  ;;  %v10216_v3 = vrot.slane %v1738_v15, 9  ;;  %v2492_v26 = vld [vmem:[#allocation2 + $0xa4] sm:$0x1] }
 0x170   : > { %v1859_v8 = vrot.slane %v1857_v56, 4  ;;  %v2807_v24 = vor.u32 %v2806_v54, %v12624_v13 }
 0x171   : > { %v3106_v14 = vadd.f32 %v12539_v23, %v2424_v4  ;;  %v12614_v43 = vpop.f32.mrf.mxu0  ;;  %v3372_v52 = vpack.c.b16 %v3352_v41, %v3351_v39  ;;  %v1949_v23 = vpack.c.b16 %v1928_v1, %v1927_v17  ;;  %v2926_v4 = vunpack.c.l.b16 %v2789_v7  ;;  %v11474_v41 = vld [vmem:[%s15831_s1 + $0x188] sm:$0xff] }
 0x172   : > { %v1860_v17 = vrot.slane %v11667_v33, 5  ;;  %v2810_v7 = vshll.u32 %v2492_v26, 16  ;;  %3762 = vmatpush.bf16.msra.mxu2 %v11474_v41  ;;  %v1739_v41 = vld [vmem:[#allocation2 + $0x90] sm:$0xe] }
 0x173   : > { %v12619_v35 = vadd.f32 %v12527_v51, %v3106_v14  ;;  %3504 = vmatmul.bf16.gmra.mxu1 %v3372_v52  ;;  %v2797_v14 = vor.u32 %v2796_v47, %v2793_v61  ;;  %v11482_v61 = vld [vmem:[%s15831_s1 + $0x1c8] sm:$0xff] }
 0x174   : > { %v2035_v25 = vpop.f32.mrf.mxu2  ;;  %v2812_v54 = vrot.slane %v2810_v7, 5  ;;  %4444 = vmatpush.bf16.msra.mxu3 %v11482_v61 }
 0x175   : > { %v2111_v50 = vadd.f32 %v2035_v25, %v12310_v45  ;;  %v2946_v45 = vpack.c.b16 %v2926_v4, %v2925_v53  ;;  %v2798_v52 = vrot.slane %v2797_v14, 4  ;;  %v1861_v25 = vsel %vm12248_vm13, %v1859_v8, %v1860_v17  ;;  %v2493_v53 = vld [vmem:[#allocation2 + $0xa8] sm:$0xf]  ;;  %v12650_v4 = vld [vmem:[#allocation2 + $0xac] sm:$0xf] }
 0x176   : > { %v12627_v39 = vpop.f32.mrf.mxu3  ;;  %v3289_v14 = vrot.slane %v2492_v26, 5  ;;  %v1930_v8 = vunpack.c.l.b16 %v1861_v25  ;;  %v2815_v17 = vshrl.u32 %v2493_v53, 16  ;;  %v2828_v7 = vshrl.u32 %v12650_v4, 16 }
 0x177   : > { %v2425_v51 = vadd.f32 %v12584_v36, %v2111_v50  ;;  %v1858_v36 = vsel %vm12248_vm13, %v10216_v3, %v1857_v56  ;;  %v2808_v56 = vrot.slane %v2807_v24, 4  ;;  %v3148_v50 = vld [vmem:[#allocation2 + $0x9c] sm:$0xe] }
 0x178   : > { %v10441_v3 = vrot.slane %v3148_v50, 9 }
 0x179   : > { %2077 = vmatmul.bf16.gmra.mxu2 %v1949_v23  ;;  %v3107_v1 = vadd.f32 %v12569_v29, %v2425_v51  ;;  %v12634_v21 = vpop.f32.mrf.mxu0  ;;  %v12641_v29 = vpop.f32.mrf.mxu1  ;;  %v3286_v23 = vrot.slane %v12600_v19, 5  ;;  %v2803_v19 = vsel %vm11791_vm2, %v2798_v52, %v12624_v13  ;;  %v2813_v61 = vsel %vm11791_vm2, %v2808_v56, %v2812_v54 }
 0x17a   : > { %v2928_v54 = vunpack.c.l.b16 %v2813_v61 }
 0x17b   : > { %v12639_v15 = vadd.f32 %v12543_v20, %v3107_v1  ;;  %2396 = vmatmul.bf16.gmra.mxu3 %v11428_v10  ;;  %v1929_v20 = vunpack.c.l.b16 %v1858_v36  ;;  %v3288_v51 = vrot.slane %v3286_v23, 4  ;;  %v3287_v10 = vsel %vm12248_vm13, %v10441_v3, %v3286_v23  ;;  %v11668_v23 = vld [vmem:[#allocation2 + $0x94] sm:$0xf] }
 0x17c   : > { %v2038_v47 = vpop.f32.mrf.mxu2  ;;  %3078 = vmatmul.bf16.gmra.mxu0 %v2946_v45  ;;  %v2818_v45 = vshll.u32 %v2493_v53, 16  ;;  %v3353_v13 = vunpack.c.l.b16 %v3287_v10  ;;  %v1864_v53 = vrot.slane %v11668_v23, 5  ;;  %v381_v23 = vld [vmem:[%s11835_s17 + $0x78] sm:$0xf] }
 0x17d   : > { %v2112_v58 = vadd.f32 %v2038_v47, %v12319_v57  ;;  %v11527_v57 = vld [vmem:[%s15833_s3 + $0x70] sm:$0xff]  ;;  %v3290_v26 = vsel %vm12248_vm13, %v3288_v51, %v3289_v14  ;;  %v1950_v25 = vpack.c.b16 %v1930_v8, %v1929_v20  ;;  %v2927_v51 = vunpack.c.l.b16 %v2803_v19 }
 0x17e   : > { %v12659_v1 = vpop.f32.mrf.mxu3  ;;  %6098 = vmatpush.bf16.msra.mxu1 %v11527_v57  ;;  %v3354_v36 = vunpack.c.l.b16 %v3290_v26  ;;  %v10217_v14 = vrot.slane %v1739_v41, 9  ;;  %v2820_v57 = vrot.slane %v2818_v45, 5  ;;  %v2830_v20 = vrot.slane %v2828_v7, 4  ;;  %v2495_v8 = vld [vmem:[#allocation2 + $0xb0] sm:$0x1]  ;;  %v11429_v45 = vld [vmem:[#allocation2 + $0x9c] sm:$0xff] }
 0x17f   : > { %v2426_v33 = vadd.f32 %v12603_v6, %v2112_v58  ;;  %v2824_v6 = vshll.u32 %v12650_v4, 16  ;;  %v1866_v26 = vrot.slane %v1864_v53, 4  ;;  %v2834_v7 = vshll.u32 %v2495_v8, 16 }
 0x180   : > { %v3373_v50 = vpack.c.b16 %v3354_v36, %v3353_v13  ;;  %v1865_v19 = vsel %vm12248_vm13, %v10217_v14, %v1864_v53  ;;  %v12701_v14 = vld [vmem:[#allocation2 + $0xb8] sm:$0xf] }
 0x181   : > { %v3108_v24 = vadd.f32 %v12587_v46, %v2426_v33  ;;  %v12668_v52 = vpop.f32.mrf.mxu0  ;;  %v12675_v58 = vpop.f32.mrf.mxu1  ;;  %v11490_v46 = vld [vmem:[%s15831_s1 + $0x208] sm:$0xff]  ;;  %v2817_v33 = vrot.slane %v2815_v17, 4 }
 0x182   : > { %4870 = vmatpush.bf16.msra.mxu0 %v11490_v46 }
 0x183   : > { %v12673_v47 = vadd.f32 %v12578_v9, %v3108_v24  ;;  %v12681_v9 = vrot.slane %v2824_v6, 5  ;;  %3509 = vmatmul.bf16.gmra.mxu1 %v3373_v50  ;;  %v11669_v24 = vld [vmem:[#allocation2 + $0x98] sm:$0x1]  ;;  %v2821_v17 = vor.u32 %v2820_v57, %v2817_v33  ;;  %v2947_v6 = vpack.c.b16 %v2928_v54, %v2927_v51  ;;  %v3149_v54 = vld [vmem:[#allocation2 + $0xa8] sm:$0xe] }
 0x184   : > { %v2040_v3 = vpop.f32.mrf.mxu2  ;;  %v1867_v13 = vrot.slane %v11669_v24, 5  ;;  %v3293_v51 = vrot.slane %v12650_v4, 5  ;;  %v642_v33 = vshrl.u32 %v381_v23, 16  ;;  %v3296_v24 = vrot.slane %v2495_v8, 5 }
 0x185   : > { %v2113_v56 = vadd.f32 %v2040_v3, %v12340_v49  ;;  %v2831_v41 = vor.u32 %v2830_v20, %v12681_v9  ;;  %v1931_v3 = vunpack.c.l.b16 %v1865_v19  ;;  %v2848_v4 = vshll.u32 %v12701_v14, 16 }
 0x186   : > { %v12684_v36 = vpop.f32.mrf.mxu3  ;;  %v1868_v50 = vsel %vm12248_vm13, %v1866_v26, %v1867_v13  ;;  %v3295_v26 = vrot.slane %v3293_v51, 4 }
 0x187   : > { %v2427_v10 = vadd.f32 %v12627_v39, %v2113_v56  ;;  %v2496_v39 = vld [vmem:[#allocation2 + $0xb4] sm:$0xf]  ;;  %v2832_v56 = vrot.slane %v2831_v41, 4  ;;  %v645_v41 = vshll.u32 %v381_v23, 16 }
 0x188   : > { %v2839_v20 = vshrl.u32 %v2496_v39, 16  ;;  %v2842_v13 = vshll.u32 %v2496_v39, 16 }
 0x189   : > { %2082 = vmatmul.bf16.gmra.mxu2 %v1950_v25  ;;  %v3109_v49 = vadd.f32 %v12614_v43, %v2427_v10  ;;  %v12690_v61 = vpop.f32.mrf.mxu0  ;;  %v12698_v53 = vpop.f32.mrf.mxu1  ;;  %v2822_v43 = vrot.slane %v2821_v17, 4  ;;  %v10442_v10 = vrot.slane %v3149_v54, 9  ;;  %v1932_v17 = vunpack.c.l.b16 %v1868_v50  ;;  %v1740_v54 = vld [vmem:[#allocation2 + $0x9c] sm:$0xe] }
 0x18a   : > { %15860 = vst [vmem:[#allocation14_spill] sm:$0xff] %v12698_v53 }
 0x18b   : > { %v12694_v46 = vadd.f32 %v12594_v55, %v3109_v49  ;;  %2401 = vmatmul.bf16.gmra.mxu3 %v11429_v45  ;;  %v2836_v55 = vrot.slane %v2834_v7, 5  ;;  %v2852_v49 = vshrl.u32 %v12701_v14, 16  ;;  %v3297_v45 = vsel %vm12248_vm13, %v3295_v26, %v3296_v24 }
 0x18c   : > { %v2043_v25 = vpop.f32.mrf.mxu2  ;;  %3083 = vmatmul.bf16.gmra.mxu0 %v2947_v6  ;;  %v12713_v6 = vrot.slane %v642_v33, 7  ;;  %v3356_v50 = vunpack.c.l.b16 %v3297_v45  ;;  %v2841_v33 = vrot.slane %v2839_v20, 4  ;;  %v12728_v24 = vrot.slane %v2848_v4, 5  ;;  %v818_v45 = vld [vmem:[#allocation2 + $0xc0] sm:$0xf] }
 0x18d   : > { %15859 = vst [vmem:[#allocation13_spill] sm:$0xff] %v12694_v46  ;;  %v2114_v57 = vadd.f32 %v2043_v25, %v12353_v31  ;;  %v3294_v31 = vsel %vm12248_vm13, %v10442_v10, %v3293_v51  ;;  %v2837_v51 = vsel %vm11791_vm2, %v2832_v56, %v2836_v55  ;;  %v2844_v10 = vrot.slane %v2842_v13, 5  ;;  %v2498_v13 = vld [vmem:[#allocation2 + $0xbc] sm:$0x1] }
 0x18e   : > { %v12707_v53 = vpop.f32.mrf.mxu3  ;;  %v3355_v39 = vunpack.c.l.b16 %v3294_v31  ;;  %v382_v31 = vld [vmem:[%s11835_s17 + $0x7c] sm:$0xf]  ;;  %v1951_v46 = vpack.c.b16 %v1932_v17, %v1931_v3  ;;  %v2930_v55 = vunpack.c.l.b16 %v2837_v51  ;;  %v10218_v20 = vrot.slane %v1740_v54, 9 }
 0x18f   : > { %v2428_v19 = vadd.f32 %v12659_v1, %v2114_v57  ;;  %v11670_v1 = vld [vmem:[#allocation2 + $0xa0] sm:$0xf]  ;;  %v2827_v57 = vsel %vm11791_vm2, %v2822_v43, %v12681_v9  ;;  %v647_v9 = vor.u32 %v645_v41, %v12713_v6  ;;  %v2845_v3 = vor.u32 %v2844_v10, %v2841_v33 }
 0x190   : > { %v1871_v7 = vrot.slane %v11670_v1, 5  ;;  %v3374_v26 = vpack.c.b16 %v3356_v50, %v3355_v39  ;;  %v2929_v56 = vunpack.c.l.b16 %v2827_v57  ;;  %v11671_v39 = vld [vmem:[#allocation2 + $0xa4] sm:$0x1]  ;;  %v2858_v41 = vshll.u32 %v2498_v13, 16 }
 0x191   : > { %v3110_v8 = vadd.f32 %v12634_v21, %v2428_v19  ;;  %v12716_v25 = vpop.f32.mrf.mxu0  ;;  %v12726_v21 = vpop.f32.mrf.mxu1  ;;  %v2854_v19 = vrot.slane %v2852_v49, 4  ;;  %v819_v4 = vsel %vm11888_vm9, %v647_v9, %v818_v45  ;;  %v1874_v50 = vrot.slane %v11671_v39, 5 }
 0x192   : > { %820 = vst [vmem:[#allocation2 + $0xc0] sm:$0xf] %v819_v4  ;;  %v648_v57 = vrot.slane %v12713_v6, 4  ;;  %v2948_v11 = vpack.c.b16 %v2930_v55, %v2929_v56  ;;  %v1872_v10 = vsel %vm12248_vm13, %v10218_v20, %v1871_v7  ;;  %v2860_v55 = vrot.slane %v2858_v41, 5 }
 0x193   : > { %v12724_v23 = vadd.f32 %v12621_v44, %v3110_v8  ;;  %v1873_v44 = vrot.slane %v1871_v7, 4  ;;  %3514 = vmatmul.bf16.gmra.mxu1 %v3374_v26  ;;  %v650_v8 = vshrl.u32 %v382_v31, 16  ;;  %v2855_v17 = vor.u32 %v2854_v19, %v12728_v24  ;;  %v11430_v26 = vld [vmem:[#allocation2 + $0xa8] sm:$0xff] }
 0x194   : > { %v2045_v1 = vpop.f32.mrf.mxu2  ;;  %v3300_v7 = vrot.slane %v12701_v14, 5  ;;  %v1933_v39 = vunpack.c.l.b16 %v1872_v10  ;;  %v1741_v10 = vld [vmem:[#allocation2 + $0xa8] sm:$0xe] }
 0x195   : > { %15861 = vst [vmem:[#allocation15_spill] sm:$0xff] %v12724_v23  ;;  %v2115_v43 = vadd.f32 %v2045_v1, %v12378_v5  ;;  %v653_v23 = vshll.u32 %v382_v31, 16  ;;  %v652_v51 = vrot.slane %v650_v8, 7  ;;  %v822_v31 = vld [vmem:[#allocation2 + $0xc8] sm:$0x1]  ;;  %v2856_v1 = vrot.slane %v2855_v17, 4 }
 0x196   : > { %v12737_v5 = vpop.f32.mrf.mxu3  ;;  %v3302_v4 = vrot.slane %v3300_v7, 4 }
 0x197   : > { %v2429_v49 = vadd.f32 %v12684_v36, %v2115_v43  ;;  %v11473_v36 = vld [vmem:[%s15831_s1 + $0x180] sm:$0xff]  ;;  %v655_v19 = vor.u32 %v653_v23, %v652_v51  ;;  %v657_v45 = vrot.slane %v652_v51, 4  ;;  %v2861_v41 = vsel %vm11791_vm2, %v2856_v1, %v2860_v55 }
 0x198   : > { %3763 = vmatpush.bf16.msra.mxu2 %v11473_v36  ;;  %v11481_v43 = vld [vmem:[%s15831_s1 + $0x1c0] sm:$0xff]  ;;  %v2932_v1 = vunpack.c.l.b16 %v2861_v41 }
 0x199   : > { %2087 = vmatmul.bf16.gmra.mxu2 %v1951_v46  ;;  %v3111_v54 = vadd.f32 %v12668_v52, %v2429_v49  ;;  %v12744_v33 = vpop.f32.mrf.mxu0  ;;  %v1875_v52 = vsel %vm12248_vm13, %v1873_v44, %v1874_v50  ;;  %v2846_v46 = vrot.slane %v2845_v3, 4  ;;  %v12753_v9 = vpop.f32.mrf.mxu1  ;;  %v823_v23 = vsel %vm11898_vm10, %v657_v45, %v822_v31  ;;  %v3150_v44 = vld [vmem:[#allocation2 + $0xb4] sm:$0xe]  ;;  %4445 = vmatpush.bf16.msra.mxu3 %v11481_v43  ;;  %v2499_v3 = vld [vmem:[#allocation2 + $0xc0] sm:$0xf] }
 0x19a   : > { %v10443_v8 = vrot.slane %v3150_v44, 9  ;;  %v3303_v49 = vrot.slane %v2498_v13, 5  ;;  %824 = vst [vmem:[#allocation2 + $0xc8] sm:$0x1] %v823_v23  ;;  %v1934_v50 = vunpack.c.l.b16 %v1875_v52  ;;  %v11489_v45 = vld [vmem:[%s15831_s1 + $0x200] sm:$0xff]  ;;  %v10219_v44 = vrot.slane %v1741_v10, 9 }
 0x19b   : > { %v12749_v6 = vadd.f32 %v12641_v29, %v3111_v54  ;;  %v656_v29 = vsel %vm11877_vm8, %v648_v57, %v655_v19  ;;  %2406 = vmatmul.bf16.gmra.mxu3 %v11430_v26  ;;  %v2851_v16 = vsel %vm11791_vm2, %v2846_v46, %v12728_v24  ;;  %v2863_v57 = vshrl.u32 %v2499_v3, 16  ;;  %v11672_v43 = vld [vmem:[#allocation2 + $0xac] sm:$0xf]  ;;  %4871 = vmatpush.bf16.msra.mxu0 %v11489_v45  ;;  %v3877_v10 = vld [vmem:[#allocation2 + $0x18] sm:$0xf] }
 0x19c   : > { %v2048_v56 = vpop.f32.mrf.mxu2  ;;  %3088 = vmatmul.bf16.gmra.mxu0 %v2948_v11  ;;  %821 = vst.msk [vmem:[#allocation2 + $0xc4] sm:$0xf] %vm707_vm5, %v656_v29  ;;  %v3301_v13 = vsel %vm12248_vm13, %v10443_v8, %v3300_v7  ;;  %v2866_v26 = vshll.u32 %v2499_v3, 16  ;;  %v1952_v31 = vpack.c.b16 %v1934_v50, %v1933_v39 }
 0x19d   : > { %v2116_v20 = vadd.f32 %v2048_v56, %v12382_v2  ;;  %v11526_v2 = vld [vmem:[%s15833_s3 + $0x68] sm:$0xff]  ;;  %v3357_v24 = vunpack.c.l.b16 %v3301_v13  ;;  %v1878_v56 = vrot.slane %v11672_v43, 5  ;;  %v2865_v7 = vrot.slane %v2863_v57, 4 }
 0x19e   : > { %v12772_v17 = vpop.f32.mrf.mxu3  ;;  %6099 = vmatpush.bf16.msra.mxu1 %v11526_v2 }
 0x19f   : > { %v2430_v14 = vadd.f32 %v12707_v53, %v2116_v20  ;;  %v3304_v53 = vsel %vm12248_vm13, %v3302_v4, %v3303_v49  ;;  %v1880_v50 = vrot.slane %v1878_v56, 4 }
 0x1a0   : > { %v3358_v54 = vunpack.c.l.b16 %v3304_v53 }
 0x1a1   : > { %v3112_v51 = vadd.f32 %v12690_v61, %v2430_v14  ;;  %v12781_v11 = vpop.f32.mrf.mxu0  ;;  %v12786_v19 = vpop.f32.mrf.mxu1  ;;  %v2931_v61 = vunpack.c.l.b16 %v2851_v16  ;;  %v2501_v8 = vld [vmem:[#allocation2 + $0xc8] sm:$0x1]  ;;  %v11673_v16 = vld [vmem:[#allocation2 + $0xb0] sm:$0x1] }
 0x1a2   : > { %v3375_v52 = vpack.c.b16 %v3358_v54, %v3357_v24  ;;  %v1881_v2 = vrot.slane %v11673_v16, 5  ;;  %v2882_v53 = vshll.u32 %v2501_v8, 16 }
 0x1a3   : > { %v12784_v36 = vadd.f32 %v12675_v58, %v3112_v51  ;;  %v2500_v55 = vld [vmem:[#allocation2 + $0xc4] sm:$0xf]  ;;  %v2868_v58 = vrot.slane %v2866_v26, 5  ;;  %v2949_v41 = vpack.c.b16 %v2932_v1, %v2931_v61  ;;  %v1879_v51 = vsel %vm12248_vm13, %v10219_v44, %v1878_v56  ;;  %v3151_v61 = vld [vmem:[#allocation2 + $0xc0] sm:$0xe] }
 0x1a4   : > { %v2050_v46 = vpop.f32.mrf.mxu2  ;;  %v2872_v23 = vshll.u32 %v2500_v55, 16  ;;  %v2876_v20 = vshrl.u32 %v2500_v55, 16  ;;  %3519 = vmatmul.bf16.gmra.mxu1 %v3375_v52  ;;  %v1882_v26 = vsel %vm12248_vm13, %v1880_v50, %v1881_v2  ;;  %v1935_v45 = vunpack.c.l.b16 %v1879_v51  ;;  %v12805_v1 = vld [vmem:[#allocation2 + $0x1c] sm:$0xf] }
 0x1a5   : > { %v2117_v29 = vadd.f32 %v2050_v46, %v12403_v32  ;;  %v11431_v32 = vld [vmem:[#allocation2 + $0xb4] sm:$0xff]  ;;  %v2869_v13 = vor.u32 %v2868_v58, %v2865_v7  ;;  %v2884_v46 = vrot.slane %v2882_v53, 5  ;;  %v10444_v56 = vrot.slane %v3151_v61, 9 }
 0x1a6   : > { %v2874_v49 = vrot.slane %v2872_v23, 5  ;;  %v2878_v14 = vrot.slane %v2876_v20, 4  ;;  %v2369_v39 = vpop.f32.mrf.mxu3  ;;  %v1936_v23 = vunpack.c.l.b16 %v1882_v26  ;;  %v3926_v20 = vshrl.u32 %v3877_v10, 16 }
 0x1a7   : > { %v2431_v4 = vadd.f32 %v12737_v5, %v2117_v29  ;;  %v2870_v52 = vrot.slane %v2869_v13, 4  ;;  %v3310_v29 = vrot.slane %v2501_v8, 5  ;;  %v3939_v50 = vshrl.u32 %v12805_v1, 16 }
 0x1a8   : > { %v2879_v5 = vor.u32 %v2878_v14, %v2874_v49  ;;  %v3935_v14 = vshll.u32 %v12805_v1, 16  ;;  %v1953_v53 = vpack.c.b16 %v1936_v23, %v1935_v45  ;;  %v3928_v26 = vrot.slane %v3926_v20, 4 }
 0x1a9   : > { %2092 = vmatmul.bf16.gmra.mxu2 %v1952_v31  ;;  %v12794_v3 = vadd.f32 %v12716_v25, %v2431_v4  ;;  %v12796_v57 = vpop.f32.mrf.mxu0  ;;  %v12800_v24 = vpop.f32.mrf.mxu1  ;;  %v3307_v31 = vrot.slane %v2500_v55, 5  ;;  %v3929_v55 = vshll.u32 %v3877_v10, 16  ;;  %v3941_v10 = vrot.slane %v3939_v50, 4 }
 0x1aa   : > { %v2880_v43 = vrot.slane %v2879_v5, 4 }
 0x1ab   : > { %2411 = vmatmul.bf16.gmra.mxu3 %v11431_v32  ;;  %v3309_v7 = vrot.slane %v3307_v31, 4 }
 0x1ac   : > { %v2053_v54 = vpop.f32.mrf.mxu2  ;;  %3093 = vmatmul.bf16.gmra.mxu0 %v2949_v41  ;;  %v2885_v41 = vsel %vm11791_vm2, %v2880_v43, %v2884_v46  ;;  %v3879_v46 = vld [vmem:[#allocation2 + $0x20] sm:$0x1] }
 0x1ad   : > { %v2118_v25 = vadd.f32 %v2053_v54, %v12413_v37  ;;  %v3308_v37 = vsel %vm12248_vm13, %v10444_v56, %v3307_v31  ;;  %v3311_v4 = vsel %vm12248_vm13, %v3309_v7, %v3310_v29  ;;  %v3937_v31 = vrot.slane %v3935_v14, 5 }
 0x1ae   : > { %v2372_v44 = vpop.f32.mrf.mxu3  ;;  %v3359_v2 = vunpack.c.l.b16 %v3308_v37  ;;  %v3360_v8 = vunpack.c.l.b16 %v3311_v4  ;;  %v2934_v56 = vunpack.c.l.b16 %v2885_v41  ;;  %v3945_v23 = vshll.u32 %v3879_v46, 16  ;;  %v11675_v4 = vld [vmem:[#allocation2 + $0xbc] sm:$0x1] }
 0x1af   : > { %v2432_v58 = vadd.f32 %v12772_v17, %v2118_v25  ;;  %v2875_v17 = vsel %vm11791_vm2, %v2870_v52, %v2874_v49  ;;  %v1742_v49 = vld [vmem:[#allocation2 + $0xb4] sm:$0xe]  ;;  %v11674_v52 = vld [vmem:[#allocation2 + $0xb8] sm:$0xf]  ;;  %v1888_v14 = vrot.slane %v11675_v4, 5 }
 0x1b0   : > { %v3376_v5 = vpack.c.b16 %v3360_v8, %v3359_v2  ;;  %v2933_v61 = vunpack.c.l.b16 %v2875_v17  ;;  %v1885_v7 = vrot.slane %v11674_v52, 5  ;;  %v10220_v45 = vrot.slane %v1742_v49, 9 }
 0x1b1   : > { %v3114_v16 = vadd.f32 %v12744_v33, %v2432_v58  ;;  %v12815_v32 = vpop.f32.mrf.mxu0  ;;  %v12824_v51 = vpop.f32.mrf.mxu1  ;;  %v3931_v33 = vrot.slane %v3929_v55, 5  ;;  %v3942_v58 = vor.u32 %v3941_v10, %v3937_v31  ;;  %v11432_v55 = vld [vmem:[#allocation2 + $0xc0] sm:$0xff]  ;;  %v4625_v2 = vrot.slane %v12805_v1, 5 }
 0x1b2   : > { %v2950_v37 = vpack.c.b16 %v2934_v56, %v2933_v61  ;;  %v4628_v1 = vrot.slane %v3879_v46, 5  ;;  %v11525_v56 = vld [vmem:[%s15833_s3 + $0x60] sm:$0xff] }
 0x1b3   : > { %v12822_v13 = vadd.f32 %v12726_v21, %v3114_v16  ;;  %v3932_v29 = vor.u32 %v3931_v33, %v3928_v26  ;;  %v4559_v16 = vld [vmem:[#allocation2 + $0x18] sm:$0xe]  ;;  %v3943_v41 = vrot.slane %v3942_v58, 4  ;;  %v4627_v10 = vrot.slane %v4625_v2, 4  ;;  %6100 = vmatpush.bf16.msra.mxu1 %v11525_v56 }
 0x1b4   : > { %v2055_v54 = vpop.f32.mrf.mxu2  ;;  %3524 = vmatmul.bf16.gmra.mxu1 %v3376_v5  ;;  %v3947_v5 = vrot.slane %v3945_v23, 5  ;;  %v10653_v33 = vrot.slane %v4559_v16, 9 }
 0x1b5   : > { %v2119_v25 = vadd.f32 %v2055_v54, %v12437_v60  ;;  %v1887_v60 = vrot.slane %v1885_v7, 4  ;;  %v3933_v17 = vrot.slane %v3932_v29, 4  ;;  %v1886_v54 = vsel %vm12248_vm13, %v10220_v45, %v1885_v7 }
 0x1b6   : > { %v2374_v43 = vpop.f32.mrf.mxu3  ;;  %v1937_v52 = vunpack.c.l.b16 %v1886_v54  ;;  %v3948_v45 = vsel %vm11791_vm2, %v3943_v41, %v3947_v5 }
 0x1b7   : > { %v2433_v21 = vadd.f32 %v2369_v39, %v2119_v25  ;;  %v1889_v26 = vsel %vm12248_vm13, %v1887_v60, %v1888_v14  ;;  %v12840_v25 = vld [vmem:[#allocation2 + $0x28] sm:$0xf]  ;;  %v3938_v7 = vsel %vm11791_vm2, %v3933_v17, %v3937_v31 }
 0x1b8   : > { %v3959_v58 = vshll.u32 %v12840_v25, 16  ;;  %v3963_v23 = vshrl.u32 %v12840_v25, 16  ;;  %v4326_v16 = vunpack.c.l.b16 %v3938_v7 }
 0x1b9   : > { %2097 = vmatmul.bf16.gmra.mxu2 %v1953_v53  ;;  %v12828_v20 = vadd.f32 %v12781_v11, %v2433_v21  ;;  %v12830_v50 = vpop.f32.mrf.mxu0  ;;  %v12833_v39 = vpop.f32.mrf.mxu1  ;;  %v3880_v53 = vld [vmem:[#allocation2 + $0x24] sm:$0xf]  ;;  %v1938_v21 = vunpack.c.l.b16 %v1889_v26  ;;  %v3882_v26 = vld [vmem:[#allocation2 + $0x2c] sm:$0x1] }
 0x1ba   : > { %v3950_v49 = vshrl.u32 %v3880_v53, 16 }
 0x1bb   : > { %2416 = vmatmul.bf16.gmra.mxu3 %v11432_v55 }
 0x1bc   : > { %v2058_v8 = vpop.f32.mrf.mxu2  ;;  %3098 = vmatmul.bf16.gmra.mxu0 %v2950_v37  ;;  %v4629_v37 = vsel %vm12248_vm13, %v4627_v10, %v4628_v1  ;;  %v3952_v60 = vrot.slane %v3950_v49, 4 }
 0x1bd   : > { %v2120_v11 = vadd.f32 %v2058_v8, %v12441_v38  ;;  %v3953_v38 = vshll.u32 %v3880_v53, 16  ;;  %v4327_v8 = vunpack.c.l.b16 %v3948_v45  ;;  %v4753_v5 = vunpack.c.l.b16 %v4629_v37 }
 0x1be   : > { %v2377_v29 = vpop.f32.mrf.mxu3  ;;  %v3961_v53 = vrot.slane %v3959_v58, 5  ;;  %v4635_v37 = vrot.slane %v3882_v26, 5 }
 0x1bf   : > { %v2434_v61 = vadd.f32 %v2372_v44, %v2120_v11  ;;  %v4626_v44 = vsel %vm12248_vm13, %v10653_v33, %v4625_v2  ;;  %v3955_v4 = vrot.slane %v3953_v38, 5  ;;  %v3965_v11 = vrot.slane %v3963_v23, 4 }
 0x1c0   : > { %v4752_v2 = vunpack.c.l.b16 %v4626_v44  ;;  %v4358_v1 = vpack.c.b16 %v4327_v8, %v4326_v16  ;;  %v3969_v38 = vshll.u32 %v3882_v26, 16  ;;  %v12871_v44 = vld [vmem:[#allocation2 + $0x34] sm:$0xf] }
 0x1c1   : > { %v3116_v46 = vadd.f32 %v12796_v57, %v2434_v61  ;;  %v12854_v55 = vpop.f32.mrf.mxu0  ;;  %v1954_v57 = vpack.c.b16 %v1938_v21, %v1937_v52  ;;  %v12861_v17 = vpop.f32.mrf.mxu1  ;;  %v3956_v33 = vor.u32 %v3955_v4, %v3952_v60  ;;  %v3966_v56 = vor.u32 %v3965_v11, %v3961_v53  ;;  %v4560_v21 = vld [vmem:[#allocation2 + $0x24] sm:$0xe] }
 0x1c2   : > { %v4784_v61 = vpack.c.b16 %v4753_v5, %v4752_v2  ;;  %v4632_v52 = vrot.slane %v12840_v25, 5  ;;  %v10654_v58 = vrot.slane %v4560_v21, 9  ;;  %v3987_v8 = vshrl.u32 %v12871_v44, 16 }
 0x1c3   : > { %v12859_v31 = vadd.f32 %v12786_v19, %v3116_v46  ;;  %v3967_v45 = vrot.slane %v3966_v56, 4  ;;  %v3883_v46 = vld [vmem:[#allocation2 + $0x30] sm:$0xf] }
 0x1c4   : > { %v2060_v14 = vpop.f32.mrf.mxu2  ;;  %v4634_v23 = vrot.slane %v4632_v52, 4  ;;  %v3977_v16 = vshll.u32 %v3883_v46, 16 }
 0x1c5   : > { %v2121_v41 = vadd.f32 %v2060_v14, %v12462_v27  ;;  %v3957_v27 = vrot.slane %v3956_v33, 4 }
 0x1c6   : > { %v2379_v10 = vpop.f32.mrf.mxu3 }
 0x1c7   : > { %v2435_v54 = vadd.f32 %v2374_v43, %v2121_v41  ;;  %v3962_v25 = vsel %vm11791_vm2, %v3957_v27, %v3961_v53  ;;  %v4636_v53 = vsel %vm12248_vm13, %v4634_v23, %v4635_v37 }
 0x1c9   : > { %2102 = vmatmul.bf16.gmra.mxu2 %v1954_v57  ;;  %v12865_v19 = vadd.f32 %v12815_v32, %v2435_v54  ;;  %v12867_v49 = vpop.f32.mrf.mxu0  ;;  %v3971_v32 = vrot.slane %v3969_v38, 5  ;;  %v12873_v60 = vpop.f32.mrf.mxu1  ;;  %v3974_v57 = vshrl.u32 %v3883_v46, 16  ;;  %v4328_v54 = vunpack.c.l.b16 %v3962_v25  ;;  %v11457_v38 = vld [vmem:[#allocation2 + $0x18] sm:$0xff] }
 0x1cb   : > { %4446 = vmatmul.bf16.vlgmr.msra.gmra.mxu3 %v4358_v1  ;;  %v3972_v5 = vsel %vm11791_vm2, %v3967_v45, %v3971_v32  ;;  %v3976_v33 = vrot.slane %v3974_v57, 4  ;;  %v3979_v1 = vrot.slane %v3977_v16, 5  ;;  %v4639_v57 = vrot.slane %v12871_v44, 5 }
 0x1cc   : > { %v2063_v7 = vpop.f32.mrf.mxu2  ;;  %4872 = vmatmul.bf16.vlgmr.msra.gmra.mxu0 %v4784_v61  ;;  %v4329_v27 = vunpack.c.l.b16 %v3972_v5 }
 0x1cd   : > { %v2122_v43 = vadd.f32 %v2063_v7, %v12472_v42  ;;  %v3983_v42 = vshll.u32 %v12871_v44, 16  ;;  %v4755_v7 = vunpack.c.l.b16 %v4636_v53  ;;  %v3980_v32 = vor.u32 %v3979_v1, %v3976_v33  ;;  %v11524_v33 = vld [vmem:[%s15833_s3 + $0x58] sm:$0xff] }
 0x1ce   : > { %v2382_v14 = vpop.f32.mrf.mxu3  ;;  %v4359_v37 = vpack.c.b16 %v4329_v27, %v4328_v54  ;;  %v4641_v53 = vrot.slane %v4639_v57, 4  ;;  %6101 = vmatpush.bf16.msra.mxu1 %v11524_v33 }
 0x1cf   : > { %v2436_v4 = vadd.f32 %v2377_v29, %v2122_v43  ;;  %v4633_v29 = vsel %vm12248_vm13, %v10654_v58, %v4632_v52  ;;  %v3985_v61 = vrot.slane %v3983_v42, 5  ;;  %v3885_v43 = vld [vmem:[#allocation2 + $0x38] sm:$0x1]  ;;  %v3981_v42 = vrot.slane %v3980_v32, 4 }
 0x1d0   : > { %v4754_v21 = vunpack.c.l.b16 %v4633_v29  ;;  %v3993_v58 = vshll.u32 %v3885_v43, 16 }
 0x1d1   : > { %v3118_v2 = vadd.f32 %v12830_v50, %v2436_v4  ;;  %v12880_v41 = vpop.f32.mrf.mxu0  ;;  %v3989_v50 = vrot.slane %v3987_v8, 4  ;;  %v12892_v46 = vpop.f32.mrf.mxu1 }
 0x1d2   : > { %v4785_v4 = vpack.c.b16 %v4755_v7, %v4754_v21  ;;  %v3995_v8 = vrot.slane %v3993_v58, 5 }
 0x1d3   : > { %v12889_v11 = vadd.f32 %v12824_v51, %v3118_v2  ;;  %v3990_v51 = vor.u32 %v3989_v50, %v3985_v61  ;;  %v3886_v2 = vld [vmem:[#allocation2 + $0x3c] sm:$0xf] }
 0x1d4   : > { %v2065_v26 = vpop.f32.mrf.mxu2  ;;  %v3998_v44 = vshrl.u32 %v3886_v2, 16  ;;  %v4001_v1 = vshll.u32 %v3886_v2, 16  ;;  %v3888_v2 = vld [vmem:[#allocation2 + $0x44] sm:$0x1] }
 0x1d5   : > { %v2123_v56 = vadd.f32 %v2065_v26, %v12493_v48  ;;  %v4561_v48 = vld [vmem:[#allocation2 + $0x30] sm:$0xe]  ;;  %v12901_v26 = vld [vmem:[#allocation2 + $0x40] sm:$0xf] }
 0x1d6   : > { %v2384_v45 = vpop.f32.mrf.mxu3  ;;  %v10655_v29 = vrot.slane %v4561_v48, 9  ;;  %v4011_v21 = vshrl.u32 %v12901_v26, 16  ;;  %v4000_v32 = vrot.slane %v3998_v44, 4  ;;  %v4017_v44 = vshll.u32 %v3888_v2, 16 }
 0x1d7   : > { %v2437_v52 = vadd.f32 %v2379_v10, %v2123_v56  ;;  %v3991_v10 = vrot.slane %v3990_v51, 4  ;;  %v3986_v56 = vsel %vm11791_vm2, %v3981_v42, %v3985_v61 }
 0x1d8   : > { %v4640_v27 = vsel %vm12248_vm13, %v10655_v29, %v4639_v57  ;;  %v4330_v58 = vunpack.c.l.b16 %v3986_v56  ;;  %v11458_v57 = vld [vmem:[#allocation2 + $0x24] sm:$0xff]  ;;  %v4562_v56 = vld [vmem:[#allocation2 + $0x3c] sm:$0xe] }
 0x1d9   : > { %3764 = vmatmul.bf16.vlgmr.msra.gmra.mxu2 %v11457_v38  ;;  %v12895_v23 = vadd.f32 %v12854_v55, %v2437_v52  ;;  %v12897_v25 = vpop.f32.mrf.mxu0  ;;  %v4642_v55 = vrot.slane %v3885_v43, 5  ;;  %v12919_v52 = vpop.f32.mrf.mxu1 }
 0x1da   : > { %15862 = vst [vmem:[#allocation16_spill] sm:$0xff] %v12919_v52 }
 0x1db   : > { %4451 = vmatmul.bf16.gmra.mxu3 %v4359_v37  ;;  %v4643_v43 = vsel %vm12248_vm13, %v4641_v53, %v4642_v55 }
 0x1dc   : > { %v2068_v16 = vpop.f32.mrf.mxu2  ;;  %4877 = vmatmul.bf16.gmra.mxu0 %v4785_v4  ;;  %v4756_v4 = vunpack.c.l.b16 %v4640_v27 }
 0x1dd   : > { %v2124_v5 = vadd.f32 %v2068_v16, %v12299_v22  ;;  %v3996_v22 = vsel %vm11791_vm2, %v3991_v10, %v3995_v8  ;;  %v4757_v16 = vunpack.c.l.b16 %v4643_v43  ;;  %v4013_v10 = vrot.slane %v4011_v21, 4 }
 0x1de   : > { %v2387_v50 = vpop.f32.mrf.mxu3  ;;  %v4331_v37 = vunpack.c.l.b16 %v3996_v22  ;;  %v4019_v21 = vrot.slane %v4017_v44, 5  ;;  %v10656_v43 = vrot.slane %v4562_v56, 9 }
 0x1df   : > { %v2438_v54 = vadd.f32 %v2382_v14, %v2124_v5  ;;  %v4007_v14 = vshll.u32 %v12901_v26, 16  ;;  %v4786_v55 = vpack.c.b16 %v4757_v16, %v4756_v4 }
 0x1e0   : > { %v4360_v53 = vpack.c.b16 %v4331_v37, %v4330_v58 }
 0x1e1   : > { %v3120_v38 = vadd.f32 %v12867_v49, %v2438_v54  ;;  %v12915_v7 = vpop.f32.mrf.mxu0  ;;  %v4003_v49 = vrot.slane %v4001_v1, 5  ;;  %v4009_v42 = vrot.slane %v4007_v14, 5  ;;  %v12934_v14 = vld [vmem:[#allocation2 + $0x4c] sm:$0xf] }
 0x1e3   : > { %v12922_v61 = vadd.f32 %v12861_v17, %v3120_v38  ;;  %v4004_v5 = vor.u32 %v4003_v49, %v4000_v32  ;;  %v4014_v54 = vor.u32 %v4013_v10, %v4009_v42  ;;  %v12931_v38 = vpop.f32.mrf.mxu1  ;;  %v4649_v49 = vrot.slane %v3888_v2, 5 }
 0x1e4   : > { %v2070_v51 = vpop.f32.mrf.mxu2 }
 0x1e5   : > { %v2125_v48 = vadd.f32 %v2070_v51, %v12317_v59  ;;  %v4646_v59 = vrot.slane %v12901_v26, 5  ;;  %v4005_v1 = vrot.slane %v4004_v5, 4  ;;  %v4015_v27 = vrot.slane %v4014_v54, 4 }
 0x1e6   : > { %v2389_v29 = vpop.f32.mrf.mxu3 }
 0x1e7   : > { %v2439_v8 = vadd.f32 %v2384_v45, %v2125_v48  ;;  %v4648_v32 = vrot.slane %v4646_v59, 4  ;;  %v4010_v26 = vsel %vm11791_vm2, %v4005_v1, %v4009_v42  ;;  %v4031_v48 = vshll.u32 %v12934_v14, 16  ;;  %v11459_v1 = vld [vmem:[#allocation2 + $0x30] sm:$0xff] }
 0x1e8   : > { %v4020_v10 = vsel %vm11791_vm2, %v4015_v27, %v4019_v21  ;;  %v4332_v2 = vunpack.c.l.b16 %v4010_v26  ;;  %v3891_v27 = vld [vmem:[#allocation2 + $0x50] sm:$0x1] }
 0x1e9   : > { %3769 = vmatmul.bf16.gmra.mxu2 %v11458_v57  ;;  %v12926_v17 = vadd.f32 %v12880_v41, %v2439_v8  ;;  %v12928_v33 = vpop.f32.mrf.mxu0  ;;  %v3889_v41 = vld [vmem:[#allocation2 + $0x48] sm:$0xf]  ;;  %v4650_v42 = vsel %vm12248_vm13, %v4648_v32, %v4649_v49  ;;  %v4033_v54 = vrot.slane %v4031_v48, 5  ;;  %v4333_v56 = vunpack.c.l.b16 %v4020_v10 }
 0x1ea   : > { %v4022_v37 = vshrl.u32 %v3889_v41, 16  ;;  %v4025_v4 = vshll.u32 %v3889_v41, 16  ;;  %v4041_v32 = vshll.u32 %v3891_v27, 16 }
 0x1eb   : > { %4456 = vmatmul.bf16.gmra.mxu3 %v4360_v53 }
 0x1ec   : > { %v2073_v22 = vpop.f32.mrf.mxu2  ;;  %4882 = vmatmul.bf16.gmra.mxu0 %v4786_v55  ;;  %v4024_v53 = vrot.slane %v4022_v37, 4  ;;  %v4027_v55 = vrot.slane %v4025_v4, 5  ;;  %v4653_v4 = vrot.slane %v12934_v14, 5  ;;  %v4043_v10 = vrot.slane %v4041_v32, 5 }
 0x1ed   : > { %v2126_v45 = vadd.f32 %v2073_v22, %v12326_v28  ;;  %v4035_v28 = vshrl.u32 %v12934_v14, 16 }
 0x1ee   : > { %v2392_v58 = vpop.f32.mrf.mxu3 }
 0x1ef   : > { %v2440_v51 = vadd.f32 %v2387_v50, %v2126_v45  ;;  %v4647_v50 = vsel %vm12248_vm13, %v10656_v43, %v4646_v59  ;;  %v4759_v45 = vunpack.c.l.b16 %v4650_v42  ;;  %v12953_v59 = vpop.f32.mrf.mxu1  ;;  %v4028_v43 = vor.u32 %v4027_v55, %v4024_v53  ;;  %v12962_v53 = vld [vmem:[#allocation2 + $0x58] sm:$0xf]  ;;  %v11523_v55 = vld [vmem:[%s15833_s3 + $0x50] sm:$0xff] }
 0x1f0   : > { %v4758_v22 = vunpack.c.l.b16 %v4647_v50  ;;  %15863 = vst [vmem:[#allocation17_spill] sm:$0xff] %v12953_v59  ;;  %6102 = vmatpush.bf16.msra.mxu1 %v11523_v55 }
 0x1f1   : > { %v3122_v57 = vadd.f32 %v12897_v25, %v2440_v51  ;;  %v12941_v16 = vpop.f32.mrf.mxu0  ;;  %v4037_v25 = vrot.slane %v4035_v28, 4  ;;  %v4361_v51 = vpack.c.b16 %v4333_v56, %v4332_v2  ;;  %v4029_v28 = vrot.slane %v4028_v43, 4 }
 0x1f2   : > { %v4787_v26 = vpack.c.b16 %v4759_v45, %v4758_v22 }
 0x1f3   : > { %v12950_v8 = vadd.f32 %v12892_v46, %v3122_v57  ;;  %v4038_v46 = vor.u32 %v4037_v25, %v4033_v54  ;;  %v4034_v56 = vsel %vm11791_vm2, %v4029_v28, %v4033_v54 }
 0x1f4   : > { %v2075_v5 = vpop.f32.mrf.mxu2 }
 0x1f5   : > { %v2127_v44 = vadd.f32 %v2075_v5, %v12342_v62  ;;  %v4563_v62 = vld [vmem:[#allocation2 + $0x48] sm:$0xe]  ;;  %v4039_v57 = vrot.slane %v4038_v46, 4  ;;  %v4655_v5 = vrot.slane %v4653_v4, 4 }
 0x1f6   : > { %v2394_v21 = vpop.f32.mrf.mxu3  ;;  %v10657_v42 = vrot.slane %v4563_v62, 9 }
 0x1f7   : > { %v2441_v41 = vadd.f32 %v2389_v29, %v2127_v44  ;;  %v3892_v29 = vld [vmem:[#allocation2 + $0x54] sm:$0xf] }
 0x1f8   : > { %v4046_v14 = vshrl.u32 %v3892_v29, 16  ;;  %v4049_v25 = vshll.u32 %v3892_v29, 16  ;;  %v4654_v45 = vsel %vm12248_vm13, %v10657_v42, %v4653_v4 }
 0x1f9   : > { %3774 = vmatmul.bf16.gmra.mxu2 %v11459_v1  ;;  %v12956_v49 = vadd.f32 %v12915_v7, %v2441_v41  ;;  %v12958_v37 = vpop.f32.mrf.mxu0  ;;  %v4656_v7 = vrot.slane %v3891_v27, 5  ;;  %v3505_v1 = vpop.f32.mrf.mxu1  ;;  %v4059_v27 = vshrl.u32 %v12962_v53, 16  ;;  %v4760_v62 = vunpack.c.l.b16 %v4654_v45  ;;  %v15867_v45 = vld [vmem:[#allocation3_spill] sm:$0xff] }
 0x1fa   : > { %v4048_v46 = vrot.slane %v4046_v14, 4  ;;  %v4051_v32 = vrot.slane %v4049_v25, 5 }
 0x1fb   : > { %4461 = vmatmul.bf16.gmra.mxu3 %v4361_v51  ;;  %v4657_v43 = vsel %vm12248_vm13, %v4655_v5, %v4656_v7 }
 0x1fc   : > { %v2078_v48 = vpop.f32.mrf.mxu2  ;;  %4887 = vmatmul.bf16.gmra.mxu0 %v4787_v26  ;;  %v4761_v28 = vunpack.c.l.b16 %v4657_v43  ;;  %v4052_v42 = vor.u32 %v4051_v32, %v4048_v46  ;;  %v12993_v43 = vld [vmem:[#allocation2 + $0x64] sm:$0xf] }
 0x1fd   : > { %v2128_v50 = vadd.f32 %v2078_v48, %v12358_v40  ;;  %v4044_v40 = vsel %vm11791_vm2, %v4039_v57, %v4043_v10  ;;  %v11460_v48 = vld [vmem:[#allocation2 + $0x3c] sm:$0xff]  ;;  %v4061_v10 = vrot.slane %v4059_v27, 4 }
 0x1fe   : > { %v2397_v44 = vpop.f32.mrf.mxu3  ;;  %v4335_v26 = vunpack.c.l.b16 %v4044_v40  ;;  %v4788_v7 = vpack.c.b16 %v4761_v28, %v4760_v62  ;;  %v4053_v40 = vrot.slane %v4052_v42, 4  ;;  %v4079_v28 = vshll.u32 %v12993_v43, 16 }
 0x1ff   : > { %v2442_v2 = vadd.f32 %v2392_v58, %v2128_v50  ;;  %v4055_v58 = vshll.u32 %v12962_v53, 16  ;;  %v3894_v50 = vld [vmem:[#allocation2 + $0x5c] sm:$0x1] }
 0x201   : > { %v3124_v22 = vadd.f32 %v12928_v33, %v2442_v2  ;;  %v12976_v41 = vpop.f32.mrf.mxu0  ;;  %v4334_v33 = vunpack.c.l.b16 %v4034_v56  ;;  %v4057_v57 = vrot.slane %v4055_v58, 5  ;;  %v12989_v25 = vpop.f32.mrf.mxu1  ;;  %v4660_v56 = vrot.slane %v12962_v53, 5 }
 0x202   : > { %15866 = vst [vmem:[#allocation20_spill] sm:$0xff] %v12989_v25  ;;  %v3897_v25 = vld [vmem:[#allocation2 + $0x68] sm:$0x1] }
 0x203   : > { %v12981_v54 = vadd.f32 %v12931_v38, %v3124_v22  ;;  %v4362_v5 = vpack.c.b16 %v4335_v26, %v4334_v33  ;;  %v4062_v55 = vor.u32 %v4061_v10, %v4057_v57  ;;  %v4564_v22 = vld [vmem:[#allocation2 + $0x54] sm:$0xe]  ;;  %v4663_v33 = vrot.slane %v3894_v50, 5 }
 0x204   : > { %v2080_v51 = vpop.f32.mrf.mxu2  ;;  %v10658_v32 = vrot.slane %v4564_v22, 9  ;;  %v4058_v62 = vsel %vm11791_vm2, %v4053_v40, %v4057_v57  ;;  %v4083_v10 = vshrl.u32 %v12993_v43, 16 }
 0x205   : > { %15864 = vst [vmem:[#allocation18_spill] sm:$0xff] %v12981_v54  ;;  %v2129_v4 = vadd.f32 %v2080_v51, %v12380_v18  ;;  %v4065_v18 = vshll.u32 %v3894_v50, 16  ;;  %v4063_v27 = vrot.slane %v4062_v55, 4  ;;  %v4662_v51 = vrot.slane %v4660_v56, 4 }
 0x206   : > { %v2399_v2 = vpop.f32.mrf.mxu3 }
 0x207   : > { %v2443_v29 = vadd.f32 %v2394_v21, %v2129_v4  ;;  %v4067_v46 = vrot.slane %v4065_v18, 5  ;;  %v4664_v57 = vsel %vm12248_vm13, %v4662_v51, %v4663_v33 }
 0x209   : > { %3779 = vmatmul.bf16.gmra.mxu2 %v11460_v48  ;;  %v12985_v38 = vadd.f32 %v12941_v16, %v2443_v29  ;;  %v12987_v14 = vpop.f32.mrf.mxu0  ;;  %v3895_v16 = vld [vmem:[#allocation2 + $0x60] sm:$0xf]  ;;  %v3510_v18 = vpop.f32.mrf.mxu1 }
 0x20a   : > { %v4070_v4 = vshrl.u32 %v3895_v16, 16  ;;  %v4073_v48 = vshll.u32 %v3895_v16, 16  ;;  %v11461_v16 = vld [vmem:[#allocation2 + $0x48] sm:$0xff] }
 0x20b   : > { %15865 = vst [vmem:[#allocation19_spill] sm:$0xff] %v12985_v38  ;;  %4466 = vmatmul.bf16.gmra.mxu3 %v4362_v5  ;;  %v4068_v5 = vsel %vm11791_vm2, %v4063_v27, %v4067_v46  ;;  %v4763_v46 = vunpack.c.l.b16 %v4664_v57 }
 0x20c   : > { %v2083_v21 = vpop.f32.mrf.mxu2  ;;  %4892 = vmatmul.bf16.gmra.mxu0 %v4788_v7  ;;  %v4336_v7 = vunpack.c.l.b16 %v4058_v62  ;;  %v4072_v40 = vrot.slane %v4070_v4, 4  ;;  %v4075_v22 = vrot.slane %v4073_v48, 5 }
 0x20d   : > { %v2130_v58 = vadd.f32 %v2083_v21, %v15867_v45  ;;  %v4081_v21 = vrot.slane %v4079_v28, 5  ;;  %v15869_v45 = vld [vmem:[#allocation4_spill] sm:$0xff] }
 0x20e   : > { %v2402_v53 = vpop.f32.mrf.mxu3  ;;  %v4076_v59 = vor.u32 %v4075_v22, %v4072_v40  ;;  %v4565_v28 = vld [vmem:[#allocation2 + $0x60] sm:$0xe] }
 0x20f   : > { %v2444_v26 = vadd.f32 %v2397_v44, %v2130_v58  ;;  %v4661_v44 = vsel %vm12248_vm13, %v10658_v32, %v4660_v56  ;;  %v10659_v22 = vrot.slane %v4565_v28, 9 }
 0x210   : > { %v4762_v27 = vunpack.c.l.b16 %v4661_v44 }
 0x211   : > { %v3126_v29 = vadd.f32 %v12958_v37, %v2444_v26  ;;  %v13000_v42 = vpop.f32.mrf.mxu0  ;;  %v4085_v37 = vrot.slane %v4083_v10, 4  ;;  %v4337_v26 = vunpack.c.l.b16 %v4068_v5  ;;  %v4667_v10 = vrot.slane %v12993_v43, 5  ;;  %v11522_v43 = vld [vmem:[%s15833_s3 + $0x48] sm:$0xff] }
 0x212   : > { %v4789_v4 = vpack.c.b16 %v4763_v46, %v4762_v27  ;;  %v4077_v5 = vrot.slane %v4076_v59, 4  ;;  %6103 = vmatpush.bf16.msra.mxu1 %v11522_v43  ;;  %v3900_v43 = vld [vmem:[#allocation2 + $0x74] sm:$0x1] }
 0x213   : > { %v13008_v50 = vadd.f32 %v3505_v1, %v3126_v29  ;;  %v4086_v51 = vor.u32 %v4085_v37, %v4081_v21  ;;  %v4089_v1 = vshll.u32 %v3897_v25, 16  ;;  %v4363_v62 = vpack.c.b16 %v4337_v26, %v4336_v7  ;;  %v13018_v37 = vpop.f32.mrf.mxu1 }
 0x214   : > { %v2085_v55 = vpop.f32.mrf.mxu2  ;;  %v4670_v7 = vrot.slane %v3897_v25, 5  ;;  %v4082_v27 = vsel %vm11791_vm2, %v4077_v5, %v4081_v21  ;;  %v4668_v25 = vsel %vm12248_vm13, %v10659_v22, %v4667_v10 }
 0x215   : > { %15868 = vst [vmem:[#allocation3_spill] sm:$0xff] %v13008_v50  ;;  %v2131_v58 = vadd.f32 %v2085_v55, %v15869_v45  ;;  %v4087_v44 = vrot.slane %v4086_v51, 4  ;;  %v4091_v57 = vrot.slane %v4089_v1, 5  ;;  %v15871_v55 = vld [vmem:[#allocation5_spill] sm:$0xff]  ;;  %v13020_v45 = vld [vmem:[#allocation2 + $0x70] sm:$0xf]  ;;  %v4338_v5 = vunpack.c.l.b16 %v4082_v27 }
 0x216   : > { %v2404_v32 = vpop.f32.mrf.mxu3  ;;  %15872 = vst [vmem:[#allocation5_spill] sm:$0xff] %v13018_v37  ;;  %v4107_v51 = vshrl.u32 %v13020_v45, 16  ;;  %v4113_v27 = vshll.u32 %v3900_v43, 16 }
 0x217   : > { %v2445_v56 = vadd.f32 %v2399_v2, %v2131_v58  ;;  %v3898_v2 = vld [vmem:[#allocation2 + $0x6c] sm:$0xf]  ;;  %v4092_v46 = vsel %vm11791_vm2, %v4087_v44, %v4091_v57  ;;  %v4764_v44 = vunpack.c.l.b16 %v4668_v25  ;;  %v15874_v57 = vld [vmem:[#allocation6_spill] sm:$0xff] }
 0x218   : > { %v4094_v59 = vshrl.u32 %v3898_v2, 16  ;;  %v4109_v22 = vrot.slane %v4107_v51, 4  ;;  %v4566_v25 = vld [vmem:[#allocation2 + $0x6c] sm:$0xe] }
 0x219   : > { %3784 = vmatmul.bf16.gmra.mxu2 %v11461_v16  ;;  %v13012_v33 = vadd.f32 %v12976_v41, %v2445_v56  ;;  %v13014_v48 = vpop.f32.mrf.mxu0  ;;  %v4669_v41 = vrot.slane %v4667_v10, 4  ;;  %v4097_v16 = vshll.u32 %v3898_v2, 16  ;;  %v11462_v2 = vld [vmem:[#allocation2 + $0x54] sm:$0xff] }
 0x21a   : > { %v4096_v21 = vrot.slane %v4094_v59, 4 }
 0x21b   : > { %15870 = vst [vmem:[#allocation4_spill] sm:$0xff] %v13012_v33  ;;  %4471 = vmatmul.bf16.gmra.mxu3 %v4363_v62  ;;  %v4671_v62 = vsel %vm12248_vm13, %v4669_v41, %v4670_v7  ;;  %v4099_v28 = vrot.slane %v4097_v16, 5  ;;  %v3515_v33 = vpop.f32.mrf.mxu1 }
 0x21c   : > { %v2088_v29 = vpop.f32.mrf.mxu2  ;;  %4897 = vmatmul.bf16.gmra.mxu0 %v4789_v4 }
 0x21d   : > { %v2132_v40 = vadd.f32 %v2088_v29, %v15871_v55  ;;  %v4765_v55 = vunpack.c.l.b16 %v4671_v62  ;;  %v4100_v37 = vor.u32 %v4099_v28, %v4096_v21  ;;  %v3901_v21 = vld [vmem:[#allocation2 + $0x78] sm:$0xf]  ;;  %v13048_v28 = vld [vmem:[#allocation2 + $0x7c] sm:$0xf] }
 0x21e   : > { %v2407_v26 = vpop.f32.mrf.mxu3 }
 0x21f   : > { %v2446_v58 = vadd.f32 %v2402_v53, %v2132_v40  ;;  %v4103_v53 = vshll.u32 %v13020_v45, 16  ;;  %v4790_v7 = vpack.c.b16 %v4765_v55, %v4764_v44  ;;  %v4131_v55 = vshrl.u32 %v13048_v28, 16 }
 0x221   : > { %v3128_v56 = vadd.f32 %v12987_v14, %v2446_v58  ;;  %v13034_v1 = vpop.f32.mrf.mxu0  ;;  %v4339_v14 = vunpack.c.l.b16 %v4092_v46  ;;  %v4105_v40 = vrot.slane %v4103_v53, 5  ;;  %v4674_v46 = vrot.slane %v13020_v45, 5 }
 0x223   : > { %v13038_v4 = vadd.f32 %v3510_v18, %v3128_v56  ;;  %v4364_v41 = vpack.c.b16 %v4339_v14, %v4338_v5  ;;  %v4110_v59 = vor.u32 %v4109_v22, %v4105_v40  ;;  %v4101_v56 = vrot.slane %v4100_v37, 4 }
 0x224   : > { %v2090_v29 = vpop.f32.mrf.mxu2  ;;  %v4676_v5 = vrot.slane %v4674_v46, 4  ;;  %v4677_v14 = vrot.slane %v3900_v43, 5  ;;  %v4118_v37 = vshrl.u32 %v3901_v21, 16 }
 0x225   : > { %15873 = vst [vmem:[#allocation21_spill] sm:$0xff] %v13038_v4  ;;  %v2133_v10 = vadd.f32 %v2090_v29, %v15874_v57  ;;  %v4111_v62 = vrot.slane %v4110_v59, 4  ;;  %v10660_v29 = vrot.slane %v4566_v25, 9  ;;  %v4106_v57 = vsel %vm11791_vm2, %v4101_v56, %v4105_v40 }
 0x226   : > { %v2409_v50 = vpop.f32.mrf.mxu3  ;;  %v4678_v40 = vsel %vm12248_vm13, %v4676_v5, %v4677_v14  ;;  %v4340_v59 = vunpack.c.l.b16 %v4106_v57  ;;  %v4120_v56 = vrot.slane %v4118_v37, 4  ;;  %v4681_v37 = vrot.slane %v13048_v28, 5 }
 0x227   : > { %v2447_v58 = vadd.f32 %v2404_v32, %v2133_v10  ;;  %v15876_v32 = vld [vmem:[#allocation7_spill] sm:$0xff]  ;;  %v4121_v10 = vshll.u32 %v3901_v21, 16  ;;  %v11463_v21 = vld [vmem:[#allocation2 + $0x60] sm:$0xff] }
 0x229   : > { %3789 = vmatmul.bf16.gmra.mxu2 %v11462_v2  ;;  %v13042_v18 = vadd.f32 %v13000_v42, %v2447_v58  ;;  %v13044_v16 = vpop.f32.mrf.mxu0  ;;  %v4115_v42 = vrot.slane %v4113_v27, 5  ;;  %v4127_v2 = vshll.u32 %v13048_v28, 16  ;;  %v13055_v58 = vpop.f32.mrf.mxu1  ;;  %v4123_v25 = vrot.slane %v4121_v10, 5 }
 0x22a   : > { %15877 = vst [vmem:[#allocation7_spill] sm:$0xff] %v13055_v58 }
 0x22b   : > { %15875 = vst [vmem:[#allocation6_spill] sm:$0xff] %v13042_v18  ;;  %4476 = vmatmul.bf16.gmra.mxu3 %v4364_v41  ;;  %v4116_v43 = vsel %vm11791_vm2, %v4111_v62, %v4115_v42  ;;  %v4767_v62 = vunpack.c.l.b16 %v4678_v40  ;;  %v3903_v42 = vld [vmem:[#allocation2 + $0x80] sm:$0x1] }
 0x22c   : > { %v2093_v53 = vpop.f32.mrf.mxu2  ;;  %4902 = vmatmul.bf16.gmra.mxu0 %v4790_v7  ;;  %v4137_v5 = vshll.u32 %v3903_v42, 16 }
 0x22d   : > { %v2134_v51 = vadd.f32 %v2093_v53, %v15876_v32  ;;  %v4133_v53 = vrot.slane %v4131_v55, 4  ;;  %v15879_v32 = vld [vmem:[#allocation8_spill] sm:$0xff] }
 0x22e   : > { %v2412_v45 = vpop.f32.mrf.mxu3  ;;  %v3904_v55 = vld [vmem:[#allocation2 + $0x84] sm:$0xf]  ;;  %v4139_v40 = vrot.slane %v4137_v5, 5 }
 0x22f   : > { %v2448_v44 = vadd.f32 %v2407_v26, %v2134_v51  ;;  %v4675_v26 = vsel %vm12248_vm13, %v10660_v29, %v4674_v46  ;;  %v4124_v29 = vor.u32 %v4123_v25, %v4120_v56  ;;  %v4145_v28 = vshll.u32 %v3904_v55, 16 }
 0x230   : > { %v4766_v58 = vunpack.c.l.b16 %v4675_v26 }
 0x231   : > { %v3130_v22 = vadd.f32 %v13014_v48, %v2448_v44  ;;  %v13057_v41 = vpop.f32.mrf.mxu0  ;;  %v4129_v48 = vrot.slane %v4127_v2, 5  ;;  %v4341_v44 = vunpack.c.l.b16 %v4116_v43  ;;  %v4567_v2 = vld [vmem:[#allocation2 + $0x78] sm:$0xe]  ;;  %v3520_v43 = vpop.f32.mrf.mxu1  ;;  %v4125_v26 = vrot.slane %v4124_v29, 4 }
 0x232   : > { %v4791_v57 = vpack.c.b16 %v4767_v62, %v4766_v58  ;;  %v10661_v25 = vrot.slane %v4567_v2, 9  ;;  %v4142_v58 = vshrl.u32 %v3904_v55, 16  ;;  %v3906_v55 = vld [vmem:[#allocation2 + $0x8c] sm:$0x1] }
 0x233   : > { %v13065_v7 = vadd.f32 %v3515_v33, %v3130_v22  ;;  %v4134_v4 = vor.u32 %v4133_v53, %v4129_v48  ;;  %v4365_v14 = vpack.c.b16 %v4341_v44, %v4340_v59  ;;  %v13075_v59 = vld [vmem:[#allocation2 + $0x88] sm:$0xf] }
 0x234   : > { %v2095_v27 = vpop.f32.mrf.mxu2  ;;  %v4155_v44 = vshrl.u32 %v13075_v59, 16  ;;  %v4144_v5 = vrot.slane %v4142_v58, 4 }
 0x235   : > { %15878 = vst [vmem:[#allocation22_spill] sm:$0xff] %v13065_v7  ;;  %v2135_v51 = vadd.f32 %v2095_v27, %v15879_v32  ;;  %v15881_v27 = vld [vmem:[#allocation9_spill] sm:$0xff] }
 0x236   : > { %v2414_v46 = vpop.f32.mrf.mxu3 }
 0x237   : > { %v2449_v18 = vadd.f32 %v2409_v50, %v2135_v51  ;;  %v4135_v50 = vrot.slane %v4134_v4, 4  ;;  %v4130_v51 = vsel %vm11791_vm2, %v4125_v26, %v4129_v48 }
 0x239   : > { %3794 = vmatmul.bf16.gmra.mxu2 %v11463_v21  ;;  %v13069_v33 = vadd.f32 %v13034_v1, %v2449_v18  ;;  %v13072_v10 = vpop.f32.mrf.mxu0  ;;  %v4683_v1 = vrot.slane %v4681_v37, 4  ;;  %v4684_v18 = vrot.slane %v3903_v42, 5  ;;  %v4140_v4 = vsel %vm11791_vm2, %v4135_v50, %v4139_v40 }
 0x23a   : > { %v4151_v21 = vshll.u32 %v13075_v59, 16  ;;  %v4682_v42 = vsel %vm12248_vm13, %v10661_v25, %v4681_v37  ;;  %v4343_v2 = vunpack.c.l.b16 %v4140_v4  ;;  %v13097_v25 = vpop.f32.mrf.mxu1 }
 0x23b   : > { %15880 = vst [vmem:[#allocation8_spill] sm:$0xff] %v13069_v33  ;;  %4481 = vmatmul.bf16.gmra.mxu3 %v4365_v14  ;;  %v4147_v14 = vrot.slane %v4145_v28, 5  ;;  %v4768_v26 = vunpack.c.l.b16 %v4682_v42  ;;  %v5521_v42 = vld [vmem:[#allocation2 + $0x4] sm:$0xf]  ;;  %v5568_v33 = vld [vmem:[#allocation2 + $0x8] sm:$0x1] }
 0x23c   : > { %v2098_v22 = vpop.f32.mrf.mxu2  ;;  %4907 = vmatmul.bf16.gmra.mxu0 %v4791_v57  ;;  %v4342_v57 = vunpack.c.l.b16 %v4130_v51  ;;  %v13094_v40 = vrot.slane %v4151_v21, 5  ;;  %v5520_v21 = vld [vmem:[#allocation2] sm:$0xf]  ;;  %v5604_v7 = vshll.u32 %v5568_v33, 16 }
 0x23d   : > { %v2136_v56 = vadd.f32 %v2098_v22, %v15881_v27  ;;  %v15883_v27 = vld [vmem:[#allocation10_spill] sm:$0xff] }
 0x23e   : > { %v13077_v32 = vpop.f32.mrf.mxu3  ;;  %15884 = vst [vmem:[#allocation10_spill] sm:$0xff] %v13097_v25 }
 0x23f   : > { %v2450_v53 = vadd.f32 %v2412_v45, %v2136_v56  ;;  %v4685_v45 = vsel %vm12248_vm13, %v4683_v1, %v4684_v18  ;;  %v11464_v56 = vld [vmem:[#allocation2 + $0x6c] sm:$0xff]  ;;  %v4148_v1 = vor.u32 %v4147_v14, %v4144_v5  ;;  %v4161_v18 = vshll.u32 %v3906_v55, 16 }
 0x240   : > { %v4769_v50 = vunpack.c.l.b16 %v4685_v45  ;;  %v5585_v45 = vshrl.u32 %v5520_v21, 16  ;;  %v5594_v5 = vshll.u32 %v5521_v42, 16 }
 0x241   : > { %v3132_v62 = vadd.f32 %v13044_v16, %v2450_v53  ;;  %v13090_v29 = vpop.f32.mrf.mxu0  ;;  %v4157_v16 = vrot.slane %v4155_v44, 4  ;;  %v4366_v53 = vpack.c.b16 %v4343_v2, %v4342_v57 }
 0x242   : > { %v4792_v51 = vpack.c.b16 %v4769_v50, %v4768_v26  ;;  %v5587_v57 = vrot.slane %v5585_v45, 4  ;;  %v5596_v26 = vrot.slane %v5594_v5, 5  ;;  %v3907_v50 = vld [vmem:[#allocation2 + $0x90] sm:$0xf]  ;;  %v3525_v5 = vpop.f32.mrf.mxu1 }
 0x243   : > { %v13092_v48 = vadd.f32 %v3520_v43, %v3132_v62  ;;  %v4688_v43 = vrot.slane %v13075_v59, 5  ;;  %v4158_v4 = vor.u32 %v4157_v16, %v13094_v40  ;;  %v4568_v62 = vld [vmem:[#allocation2 + $0x84] sm:$0xe]  ;;  %v4163_v59 = vrot.slane %v4161_v18, 5 }
 0x244   : > { %v2100_v22 = vpop.f32.mrf.mxu2 }
 0x245   : > { %15882 = vst [vmem:[#allocation9_spill] sm:$0xff] %v13092_v48  ;;  %v2137_v37 = vadd.f32 %v2100_v22, %v15883_v27  ;;  %v5588_v22 = vshll.u32 %v5520_v21, 16  ;;  %v5598_v27 = vshrl.u32 %v5521_v42, 16  ;;  %v4159_v25 = vrot.slane %v4158_v4, 4 }
 0x246   : > { %v13100_v28 = vpop.f32.mrf.mxu3  ;;  %v4690_v48 = vrot.slane %v4688_v43, 4  ;;  %v4166_v42 = vshrl.u32 %v3907_v50, 16 }
 0x247   : > { %v2451_v58 = vadd.f32 %v2414_v46, %v2137_v37  ;;  %v4149_v46 = vrot.slane %v4148_v1, 4  ;;  %v10662_v37 = vrot.slane %v4568_v62, 9  ;;  %v5590_v2 = vrot.slane %v5588_v22, 5  ;;  %v13112_v62 = vld [vmem:[#allocation2 + $0x94] sm:$0xf] }
 0x248   : > { %v4169_v22 = vshll.u32 %v3907_v50, 16  ;;  %v4164_v33 = vsel %vm11791_vm2, %v4159_v25, %v4163_v59 }
 0x249   : > { %3799 = vmatmul.bf16.gmra.mxu2 %v11464_v56  ;;  %v13104_v44 = vadd.f32 %v13057_v41, %v2451_v58  ;;  %v13106_v14 = vpop.f32.mrf.mxu0  ;;  %v4691_v56 = vrot.slane %v3906_v55, 5  ;;  %v5600_v41 = vrot.slane %v5598_v27, 4  ;;  %v15886_v58 = vld [vmem:[#allocation11_spill] sm:$0xff]  ;;  %v5591_v21 = vor.u32 %v5590_v2, %v5587_v57 }
 0x24a   : > { %v4154_v1 = vsel %vm11791_vm2, %v4149_v46, %v13094_v40  ;;  %v5606_v55 = vrot.slane %v5604_v7, 5  ;;  %v4689_v40 = vsel %vm12248_vm13, %v10662_v37, %v4688_v43  ;;  %v4179_v57 = vshrl.u32 %v13112_v62, 16 }
 0x24b   : > { %15885 = vst [vmem:[#allocation23_spill] sm:$0xff] %v13104_v44  ;;  %4486 = vmatmul.bf16.gmra.mxu3 %v4366_v53  ;;  %v5601_v18 = vor.u32 %v5600_v41, %v5596_v26  ;;  %v5592_v45 = vrot.slane %v5591_v21, 4  ;;  %v11521_v53 = vld [vmem:[%s15833_s3 + $0x40] sm:$0xff]  ;;  %v4168_v37 = vrot.slane %v4166_v42, 4  ;;  %v4171_v50 = vrot.slane %v4169_v22, 5 }
 0x24c   : > { %v2103_v16 = vpop.f32.mrf.mxu2  ;;  %4912 = vmatmul.bf16.gmra.mxu0 %v4792_v51  ;;  %v4692_v51 = vsel %vm12248_vm13, %v4690_v48, %v4691_v56  ;;  %6104 = vmatpush.bf16.msra.mxu1 %v11521_v53  ;;  %v4345_v56 = vunpack.c.l.b16 %v4164_v33  ;;  %v15888_v21 = vld [vmem:[#allocation12_spill] sm:$0xff]  ;;  %v4181_v38 = vrot.slane %v4179_v57, 4  ;;  %v4695_v22 = vrot.slane %v13112_v62, 5  ;;  %v3910_v57 = vld [vmem:[#allocation2 + $0x9c] sm:$0xf] }
 0x24d   : > { %v2138_v44 = vadd.f32 %v2103_v16, %v15886_v58  ;;  %v5602_v46 = vrot.slane %v5601_v18, 4  ;;  %v5597_v7 = vsel %vm11791_vm2, %v5592_v45, %v5596_v26  ;;  %v4344_v16 = vunpack.c.l.b16 %v4154_v1  ;;  %v3909_v58 = vld [vmem:[#allocation2 + $0x98] sm:$0x1] }
 0x24e   : > { %v4447_v27 = vpop.f32.mrf.mxu3  ;;  %v5985_v43 = vunpack.c.l.b16 %v5597_v7  ;;  %v4770_v26 = vunpack.c.l.b16 %v4689_v40  ;;  %v4771_v41 = vunpack.c.l.b16 %v4692_v51 }
 0x24f   : > { %v2452_v4 = vadd.f32 %v13077_v32, %v2138_v44  ;;  %v4175_v44 = vshll.u32 %v13112_v62, 16  ;;  %v5607_v25 = vsel %vm11791_vm2, %v5602_v46, %v5606_v55  ;;  %v4185_v46 = vshll.u32 %v3909_v58, 16 }
 0x250   : > { %v5986_v48 = vunpack.c.l.b16 %v5607_v25  ;;  %v4367_v33 = vpack.c.b16 %v4345_v56, %v4344_v16  ;;  %v4793_v40 = vpack.c.b16 %v4771_v41, %v4770_v26  ;;  %v13143_v25 = vld [vmem:[#allocation2 + $0xa0] sm:$0xf]  ;;  %v4698_v62 = vrot.slane %v3909_v58, 5 }
 0x251   : > { %v3134_v32 = vadd.f32 %v13072_v10, %v2452_v4  ;;  %v13129_v2 = vpop.f32.mrf.mxu0  ;;  %v11465_v4 = vld [vmem:[#allocation2 + $0x78] sm:$0xff]  ;;  %v4177_v53 = vrot.slane %v4175_v44, 5 }
 0x252   : > { %v6017_v45 = vpack.c.b16 %v5986_v48, %v5985_v43  ;;  %v4187_v43 = vrot.slane %v4185_v46, 5  ;;  %v4190_v48 = vshrl.u32 %v3910_v57, 16 }
 0x253   : > { %v13133_v59 = vadd.f32 %v3525_v5, %v3134_v32  ;;  %v4172_v5 = vor.u32 %v4171_v50, %v4168_v37  ;;  %v4569_v32 = vld [vmem:[#allocation2 + $0x90] sm:$0xe]  ;;  %v4182_v51 = vor.u32 %v4181_v38, %v4177_v53  ;;  %v4193_v37 = vshll.u32 %v3910_v57, 16 }
 0x254   : > { %v2105_v10 = vpop.f32.mrf.mxu2  ;;  %6105 = vmatmul.bf16.vlgmr.msra.gmra.mxu1 %v6017_v45  ;;  %v10663_v44 = vrot.slane %v4569_v32, 9  ;;  %v4192_v56 = vrot.slane %v4190_v48, 4  ;;  %v11536_v45 = vld [vmem:[%s15833_s3 + $0xb8] sm:$0xff] }
 0x255   : > { %15887 = vst [vmem:[#allocation11_spill] sm:$0xff] %v13133_v59  ;;  %v2139_v18 = vadd.f32 %v2105_v10, %v15888_v21  ;;  %v4697_v10 = vrot.slane %v4695_v22, 4  ;;  %v4199_v21 = vshll.u32 %v13143_v25, 16  ;;  %v4183_v38 = vrot.slane %v4182_v51, 4  ;;  %6708 = vmatpush.bf16.msrb.mxu3 %v11536_v45  ;;  %v4570_v48 = vld [vmem:[#allocation2 + $0x9c] sm:$0xe] }
 0x256   : > { %v4449_v42 = vpop.f32.mrf.mxu3  ;;  %v4195_v26 = vrot.slane %v4193_v37, 5  ;;  %v4696_v58 = vsel %vm12248_vm13, %v10663_v44, %v4695_v22 }
 0x257   : > { %v2453_v55 = vadd.f32 %v13100_v28, %v2139_v18  ;;  %v4173_v28 = vrot.slane %v4172_v5, 4  ;;  %v13151_v18 = vld [vmem:[%s15832_s2] ss:$0 sm:$0xff]  ;;  %v4201_v5 = vrot.slane %v4199_v21, 5  ;;  %v4188_v22 = vsel %vm11791_vm2, %v4183_v38, %v4187_v43 }
 0x258   : > { %v10664_v38 = vrot.slane %v4570_v48, 9 }
 0x259   : > { %3804 = vmatmul.bf16.gmra.mxu2 %v11465_v4  ;;  %v13139_v1 = vadd.f32 %v13090_v29, %v2453_v55  ;;  %v13141_v7 = vpop.f32.mrf.mxu0  ;;  %v4203_v29 = vshrl.u32 %v13143_v25, 16  ;;  %v4699_v55 = vsel %vm12248_vm13, %v4697_v10, %v4698_v62 }
 0x25b   : > { %15889 = vst [vmem:[#allocation12_spill] sm:$0xff] %v13139_v1  ;;  %4491 = vmatmul.bf16.gmra.mxu3 %v4367_v33  ;;  %v4205_v46 = vrot.slane %v4203_v29, 4  ;;  %v3912_v33 = vld [vmem:[#allocation2 + $0xa4] sm:$0x1] }
 0x25c   : > { %v3765_v50 = vpop.f32.mrf.mxu2  ;;  %4917 = vmatmul.bf16.gmra.mxu0 %v4793_v40  ;;  %v4196_v40 = vor.u32 %v4195_v26, %v4192_v56  ;;  %v4209_v62 = vshll.u32 %v3912_v33, 16  ;;  %v11466_v29 = vld [vmem:[#allocation2 + $0x84] sm:$0xff] }
 0x25d   : > { %v3845_v16 = vadd.f32 %v3765_v50, %v12576_v12  ;;  %v11520_v12 = vld [vmem:[%s15833_s3 + $0x38] sm:$0xff]  ;;  %v4347_v50 = vunpack.c.l.b16 %v4188_v22  ;;  %v4206_v10 = vor.u32 %v4205_v46, %v4201_v5  ;;  %v4705_v22 = vrot.slane %v3912_v33, 5 }
 0x25e   : > { %v13155_v4 = vpop.f32.mrf.mxu3  ;;  %6330 = vmatpush.bf16.msrb.mxu2 %v11520_v12 }
 0x25f   : > { %v4527_v41 = vadd.f32 %v4447_v27, %v3845_v16  ;;  %v4178_v27 = vsel %vm11791_vm2, %v4173_v28, %v4177_v53  ;;  %v4772_v53 = vunpack.c.l.b16 %v4696_v58  ;;  %v4773_v28 = vunpack.c.l.b16 %v4699_v55 }
 0x260   : > { %v4346_v57 = vunpack.c.l.b16 %v4178_v27  ;;  %v4197_v16 = vrot.slane %v4196_v40, 4  ;;  %v4207_v45 = vrot.slane %v4206_v10, 4  ;;  %v4211_v27 = vrot.slane %v4209_v62, 5 }
 0x261   : > { %v4953_v32 = vadd.f32 %v13106_v14, %v4527_v41  ;;  %v13170_v51 = vpop.f32.mrf.mxu0  ;;  %v4702_v14 = vrot.slane %v13143_v25, 5  ;;  %v4794_v41 = vpack.c.b16 %v4773_v28, %v4772_v53  ;;  %v13189_v53 = vld [vmem:[#allocation2 + $0xac] sm:$0xf] }
 0x262   : > { %v4368_v58 = vpack.c.b16 %v4347_v50, %v4346_v57  ;;  %v4202_v25 = vsel %vm11791_vm2, %v4197_v16, %v4201_v5  ;;  %v3913_v57 = vld [vmem:[#allocation2 + $0xa8] sm:$0xf]  ;;  %v4212_v50 = vsel %vm11791_vm2, %v4207_v45, %v4211_v27  ;;  %v4223_v62 = vshll.u32 %v13189_v53, 16 }
 0x263   : > { %v4989_v44 = vadd.f32 %v13151_v18, %v4953_v32  ;;  %v4704_v55 = vrot.slane %v4702_v14, 4  ;;  %v4214_v48 = vshrl.u32 %v3913_v57, 16  ;;  %v13202_v10 = vunpack.c.l.b16 %v4202_v25 }
 0x264   : > { %v3767_v37 = vpop.f32.mrf.mxu2  ;;  %v4225_v45 = vrot.slane %v4223_v62, 5 }
 0x265   : > { %v5021_v21 = vmax.f32 %v4989_v44, 0.0  ;;  %v3846_v43 = vadd.f32 %v3767_v37, %v12592_v0  ;;  %v11560_v0 = vld [vmem:[%s15833_s3 + $0xf8] sm:$0xff]  ;;  %v13187_v44 = vsel %vm12248_vm13, %v10664_v38, %v4702_v14  ;;  %v4217_v37 = vshll.u32 %v3913_v57, 16  ;;  %v13210_v38 = vld [vmem:[#allocation2 + $0xb0] sm:$0x1] }
 0x266   : > { %v13175_v12 = vpop.f32.mrf.mxu3  ;;  %7022 = vmatpush.bf16.msrb.mxu0 %v11560_v0  ;;  %v4227_v14 = vshrl.u32 %v13189_v53, 16  ;;  %v4706_v16 = vsel %vm12248_vm13, %v4704_v55, %v4705_v22  ;;  %v4774_v55 = vunpack.c.l.b16 %v13187_v44  ;;  %v4571_v57 = vld [vmem:[#allocation2 + $0xa8] sm:$0xe] }
 0x267   : > { %v5053_v56 = vpack.c.bf16 %v5021_v21, %v5021_v21  ;;  %v4528_v26 = vadd.f32 %v4449_v42, %v3846_v43 }
 0x268   : > { %v4229_v27 = vrot.slane %v4227_v14, 4  ;;  %v4775_v14 = vunpack.c.l.b16 %v4706_v16 }
 0x269   : > { %v5086_v46 = vshrl.u32 %v5053_v56, 16  ;;  %v4954_v32 = vadd.f32 %v13129_v2, %v4528_v26  ;;  %3809 = vmatmul.bf16.gmra.mxu2 %v11466_v29  ;;  %v5089_v42 = vshll.u32 %v5053_v56, 16  ;;  %v13183_v40 = vpop.f32.mrf.mxu0  ;;  %v4216_v56 = vrot.slane %v4214_v48, 4 }
 0x26a   : > { %v4219_v26 = vrot.slane %v4217_v37, 5 }
 0x26b   : > { %v13191_v2 = vrot.slane %v5086_v46, 7  ;;  %v4990_v28 = vadd.f32 %v13151_v18, %v4954_v32  ;;  %4496 = vmatmul.bf16.gmra.mxu3 %v4368_v58  ;;  %v11676_v46 = vld [vmem:[#allocation2 + $0xc] sm:$0xf]  ;;  %v11568_v58 = vld [vmem:[%s15833_s3 + $0x138] sm:$0xff] }
 0x26c   : > { %v3770_v33 = vpop.f32.mrf.mxu2  ;;  %4922 = vmatmul.bf16.gmra.mxu0 %v4794_v41  ;;  %v4220_v22 = vor.u32 %v4219_v26, %v4216_v56  ;;  %7704 = vmatpush.bf16.msrb.mxu1 %v11568_v58 }
 0x26d   : > { %v5091_v21 = vor.u32 %v5089_v42, %v13191_v2  ;;  %v5022_v43 = vmax.f32 %v4990_v28, 0.0  ;;  %v3847_v29 = vadd.f32 %v3770_v33, %v12619_v35  ;;  %v4233_v35 = vshll.u32 %v13210_v38, 16 }
 0x26e   : > { %v13216_v41 = vpop.f32.mrf.mxu3  ;;  %v4230_v42 = vor.u32 %v4229_v27, %v4225_v45  ;;  %v4709_v28 = vrot.slane %v13189_v53, 5  ;;  %v5092_v44 = vrot.slane %v13191_v2, 4  ;;  %v5412_v53 = vld [vmem:[#allocation2 + $0x14] sm:$0x1]  ;;  %v4712_v2 = vrot.slane %v13210_v38, 5 }
 0x26f   : > { %v5407_v32 = vsel %vm13196_vm0, %v5091_v21, %v11676_v46  ;;  %v5054_v0 = vpack.c.bf16 %v5022_v43, %v5022_v43  ;;  %v4529_v25 = vadd.f32 %v13155_v4, %v3847_v29  ;;  %v13224_v4 = vunpack.c.l.b16 %v4212_v50 }
 0x270   : > { %5408 = vst [vmem:[#allocation2 + $0xc] sm:$0xf] %v5407_v32  ;;  %v4235_v33 = vrot.slane %v4233_v35, 5  ;;  %v4221_v21 = vrot.slane %v4220_v22, 4  ;;  %v4231_v43 = vrot.slane %v4230_v42, 4  ;;  %v10665_v29 = vrot.slane %v4571_v57, 9 }
 0x271   : > { %v5094_v48 = vshrl.u32 %v5054_v0, 16  ;;  %v4955_v37 = vadd.f32 %v13141_v7, %v4529_v25  ;;  %v13226_v62 = vpop.f32.mrf.mxu0  ;;  %v5097_v26 = vshll.u32 %v5054_v0, 16  ;;  %v4711_v32 = vrot.slane %v4709_v28, 4  ;;  %v11467_v22 = vld [vmem:[#allocation2 + $0x90] sm:$0xff] }
 0x272   : > { %v4226_v16 = vsel %vm11791_vm2, %v4221_v21, %v4225_v45  ;;  %v4236_v46 = vsel %vm11791_vm2, %v4231_v43, %v4235_v33  ;;  %v4369_v42 = vpack.c.b16 %v13224_v4, %v13202_v10  ;;  %v4795_v57 = vpack.c.b16 %v4775_v14, %v4774_v55 }
 0x273   : > { %v5096_v56 = vrot.slane %v5094_v48, 7  ;;  %v4991_v27 = vadd.f32 %v13151_v18, %v4955_v37  ;;  %v4710_v48 = vsel %vm12248_vm13, %v10665_v29, %v4709_v28  ;;  %v13253_v10 = vunpack.c.l.b16 %v4226_v16 }
 0x274   : > { %v3772_v50 = vpop.f32.mrf.mxu2  ;;  %v13255_v55 = vunpack.c.l.b16 %v4236_v46  ;;  %v4713_v29 = vsel %vm12248_vm13, %v4711_v32, %v4712_v2 }
 0x275   : > { %v5099_v0 = vor.u32 %v5097_v26, %v5096_v56  ;;  %v5101_v25 = vrot.slane %v5096_v56, 4  ;;  %v5023_v35 = vmax.f32 %v4991_v27, 0.0  ;;  %v3848_v58 = vadd.f32 %v3772_v50, %v12639_v15  ;;  %v13262_v50 = vld [vmem:[#allocation2 + $0xb8] sm:$0xf] }
 0x276   : > { %v13251_v15 = vpop.f32.mrf.mxu3  ;;  %v4776_v27 = vunpack.c.l.b16 %v4710_v48  ;;  %v4777_v32 = vunpack.c.l.b16 %v4713_v29  ;;  %v4247_v2 = vshll.u32 %v13262_v50, 16 }
 0x277   : > { %v5100_v45 = vsel %vm11877_vm8, %v5092_v44, %v5099_v0  ;;  %v5413_v37 = vsel %vm13232_vm1, %v5101_v25, %v5412_v53  ;;  %v5055_v38 = vpack.c.bf16 %v5023_v35, %v5023_v35  ;;  %v4530_v33 = vadd.f32 %v13175_v12, %v3848_v58  ;;  %v5522_v21 = vld [vmem:[#allocation2 + $0xc] sm:$0xf]  ;;  %v3916_v53 = vld [vmem:[#allocation2 + $0xb4] sm:$0xf]  ;;  %v5415_v35 = vld [vmem:[#allocation2 + $0x18] sm:$0xf] }
 0x278   : > { %5409 = vst [vmem:[#allocation2 + $0x10] sm:$0xf] %v5100_v45  ;;  %v5609_v43 = vshrl.u32 %v5522_v21, 16  ;;  %v5612_v56 = vshll.u32 %v5522_v21, 16  ;;  %v4238_v0 = vshrl.u32 %v3916_v53, 16  ;;  %v4241_v25 = vshll.u32 %v3916_v53, 16 }
 0x279   : > { %5414 = vst [vmem:[#allocation2 + $0x14] sm:$0x1] %v5413_v37  ;;  %v5103_v28 = vshrl.u32 %v5055_v38, 16  ;;  %v5106_v4 = vshll.u32 %v5055_v38, 16  ;;  %v4956_v14 = vadd.f32 %v13170_v51, %v4530_v33  ;;  %3814 = vmatmul.bf16.gmra.mxu2 %v11467_v22  ;;  %v13260_v12 = vpop.f32.mrf.mxu0  ;;  %v4251_v22 = vshrl.u32 %v13262_v50, 16 }
 0x27a   : > { %v5611_v44 = vrot.slane %v5609_v43, 4  ;;  %v5614_v26 = vrot.slane %v5612_v56, 5  ;;  %v4240_v21 = vrot.slane %v4238_v0, 4  ;;  %v4243_v43 = vrot.slane %v4241_v25, 5 }
 0x27b   : > { %v13264_v16 = vrot.slane %v5103_v28, 7  ;;  %v4992_v46 = vadd.f32 %v13151_v18, %v4956_v14  ;;  %4501 = vmatmul.bf16.gmra.mxu3 %v4369_v42  ;;  %v4249_v56 = vrot.slane %v4247_v2, 5  ;;  %v11535_v2 = vld [vmem:[%s15833_s3 + $0xb0] sm:$0xff] }
 0x27c   : > { %v3775_v51 = vpop.f32.mrf.mxu2  ;;  %4927 = vmatmul.bf16.gmra.mxu0 %v4795_v57  ;;  %v5615_v38 = vor.u32 %v5614_v26, %v5611_v44  ;;  %v13287_v26 = vpack.c.b16 %v4777_v32, %v4776_v27  ;;  %6709 = vmatpush.bf16.msrb.mxu3 %v11535_v2 }
 0x27d   : > { %v5108_v48 = vor.u32 %v5106_v4, %v13264_v16  ;;  %v5024_v45 = vmax.f32 %v4992_v46, 0.0  ;;  %v3849_v37 = vadd.f32 %v3775_v51, %v12673_v47  ;;  %v5109_v33 = vrot.slane %v13264_v16, 4  ;;  %v13279_v4 = vld [vmem:[#allocation2 + $0xbc] sm:$0x1]  ;;  %v11519_v51 = vld [vmem:[%s15833_s3 + $0x30] sm:$0xff] }
 0x27e   : > { %v4253_v46 = vrot.slane %v4251_v22, 4  ;;  %v13281_v47 = vpop.f32.mrf.mxu3  ;;  %v4244_v16 = vor.u32 %v4243_v43, %v4240_v21  ;;  %v5616_v25 = vrot.slane %v5615_v38, 4  ;;  %6331 = vmatpush.bf16.msrb.mxu2 %v11519_v51  ;;  %v4257_v38 = vshll.u32 %v13279_v4, 16  ;;  %v5419_v43 = vld [vmem:[#allocation2 + $0x20] sm:$0x1] }
 0x27f   : > { %v5416_v28 = vsel %vm13196_vm0, %v5108_v48, %v5415_v35  ;;  %v5056_v14 = vpack.c.bf16 %v5024_v45, %v5024_v45  ;;  %v4531_v29 = vadd.f32 %v13216_v41, %v3849_v37  ;;  %v13277_v53 = vld [vmem:[#allocation2 + $0x10] sm:$0xf] }
 0x280   : > { %5417 = vst [vmem:[#allocation2 + $0x18] sm:$0xf] %v5416_v28  ;;  %v13283_v42 = vld [vmem:[#allocation2 + $0x14] sm:$0x1]  ;;  %v5618_v57 = vshll.u32 %v13277_v53, 16  ;;  %v5622_v44 = vshrl.u32 %v13277_v53, 16  ;;  %v4254_v45 = vor.u32 %v4253_v46, %v4249_v56 }
 0x281   : > { %v5111_v0 = vshrl.u32 %v5056_v14, 16  ;;  %v4957_v41 = vadd.f32 %v13183_v40, %v4531_v29  ;;  %v5628_v35 = vshll.u32 %v13283_v42, 16  ;;  %v13297_v22 = vpop.f32.mrf.mxu0  ;;  %v4245_v32 = vrot.slane %v4244_v16, 4 }
 0x282   : > { %v5620_v48 = vrot.slane %v5618_v57, 5  ;;  %v5624_v27 = vrot.slane %v5622_v44, 4  ;;  %v5114_v21 = vshll.u32 %v5056_v14, 16  ;;  %v4255_v44 = vrot.slane %v4254_v45, 4  ;;  %v15894_v14 = vld [vmem:[#allocation13_spill] sm:$0xff] }
 0x283   : > { %v5113_v37 = vrot.slane %v5111_v0, 7  ;;  %v4993_v40 = vadd.f32 %v13151_v18, %v4957_v41  ;;  %v4250_v57 = vsel %vm11791_vm2, %v4245_v32, %v4249_v56  ;;  %v11468_v41 = vld [vmem:[#allocation2 + $0x9c] sm:$0xff]  ;;  %v5630_v2 = vrot.slane %v5628_v35, 5  ;;  %v4572_v32 = vld [vmem:[#allocation2 + $0xb4] sm:$0xe] }
 0x284   : > { %v3777_v28 = vpop.f32.mrf.mxu2  ;;  %v5621_v29 = vsel %vm11791_vm2, %v5616_v25, %v5620_v48  ;;  %v5625_v58 = vor.u32 %v5624_v27, %v5620_v48  ;;  %v4259_v54 = vrot.slane %v4257_v38, 5 }
 0x285   : > { %v5116_v16 = vor.u32 %v5114_v21, %v5113_v37  ;;  %v5118_v46 = vrot.slane %v5113_v37, 4  ;;  %v5025_v0 = vmax.f32 %v4993_v40, 0.0  ;;  %v3850_v1 = vadd.f32 %v3777_v28, %v15894_v14 }
 0x286   : > { %v5626_v51 = vrot.slane %v5625_v58, 4  ;;  %v5987_v59 = vunpack.c.l.b16 %v5621_v29  ;;  %v13313_v37 = vpop.f32.mrf.mxu3  ;;  %v13315_v21 = vunpack.c.l.b16 %v4250_v57  ;;  %v10666_v57 = vrot.slane %v4572_v32, 9 }
 0x287   : > { %v5117_v52 = vsel %vm11877_vm8, %v5109_v33, %v5116_v16  ;;  %v5420_v25 = vsel %vm13232_vm1, %v5118_v46, %v5419_v43  ;;  %v5057_v48 = vpack.c.bf16 %v5025_v0, %v5025_v0  ;;  %v4532_v56 = vadd.f32 %v13251_v15, %v3850_v1  ;;  %v5524_v27 = vld [vmem:[#allocation2 + $0x18] sm:$0xf]  ;;  %v11559_v1 = vld [vmem:[%s15833_s3 + $0xf0] sm:$0xff]  ;;  %v3919_v16 = vld [vmem:[#allocation2 + $0xc0] sm:$0xf] }
 0x288   : > { %5418 = vst [vmem:[#allocation2 + $0x1c] sm:$0xf] %v5117_v52  ;;  %v5631_v45 = vsel %vm11791_vm2, %v5626_v51, %v5630_v2  ;;  %v5633_v58 = vshrl.u32 %v5524_v27, 16  ;;  %v5636_v35 = vshll.u32 %v5524_v27, 16  ;;  %v4260_v52 = vsel %vm11791_vm2, %v4255_v44, %v4259_v54  ;;  %7023 = vmatpush.bf16.msrb.mxu0 %v11559_v1 }
 0x289   : > { %5421 = vst [vmem:[#allocation2 + $0x20] sm:$0x1] %v5420_v25  ;;  %v5120_v33 = vshrl.u32 %v5057_v48, 16  ;;  %v4958_v40 = vadd.f32 %v13226_v62, %v4532_v56  ;;  %3819 = vmatmul.bf16.gmra.mxu2 %v11468_v41  ;;  %v5988_v38 = vunpack.c.l.b16 %v5631_v45  ;;  %v5123_v15 = vshll.u32 %v5057_v48, 16  ;;  %v13323_v43 = vpop.f32.mrf.mxu0  ;;  %v5422_v41 = vld [vmem:[#allocation2 + $0x24] sm:$0xf] }
 0x28a   : > { %v5635_v28 = vrot.slane %v5633_v58, 4  ;;  %v5638_v29 = vrot.slane %v5636_v35, 5  ;;  %v4716_v14 = vrot.slane %v13262_v50, 5  ;;  %v13329_v25 = vunpack.c.l.b16 %v4260_v52  ;;  %v15895_v48 = vld [vmem:[#allocation14_spill] sm:$0xff]  ;;  %v15896_v45 = vld [vmem:[#allocation15_spill] sm:$0xff] }
 0x28b   : > { %v13325_v46 = vrot.slane %v5120_v33, 7  ;;  %v4994_v62 = vadd.f32 %v13151_v18, %v4958_v40  ;;  %v6018_v0 = vpack.c.b16 %v5988_v38, %v5987_v59  ;;  %v4719_v54 = vrot.slane %v13279_v4, 5 }
 0x28c   : > { %v3780_v51 = vpop.f32.mrf.mxu2  ;;  %v5639_v2 = vor.u32 %v5638_v29, %v5635_v28  ;;  %v4262_v44 = vshrl.u32 %v3919_v16, 16  ;;  %v13334_v56 = vadd.f32 %v15895_v48, %v12794_v3  ;;  %v15897_v50 = vpack.c.b16 %v13255_v55, %v13253_v10  ;;  %4932 = vmatmul.bf16.gmra.mxu0 %v13287_v26 }
 0x28d   : > { %v5125_v27 = vor.u32 %v5123_v15, %v13325_v46  ;;  %v5026_v32 = vmax.f32 %v4994_v62, 0.0  ;;  %v3851_v59 = vadd.f32 %v3780_v51, %v15896_v45  ;;  %6110 = vmatmul.bf16.gmra.mxu1 %v6018_v0  ;;  %v5126_v58 = vrot.slane %v13325_v46, 4  ;;  %v11567_v62 = vld [vmem:[%s15833_s3 + $0x130] sm:$0xff]  ;;  %v5426_v45 = vld [vmem:[#allocation2 + $0x2c] sm:$0x1] }
 0x28e   : > { %4506 = vmatmul.bf16.gmra.mxu3 %v15897_v50  ;;  %v5640_v4 = vrot.slane %v5639_v2, 4  ;;  %v4717_v35 = vsel %vm12248_vm13, %v10666_v57, %v4716_v14  ;;  %v4718_v3 = vrot.slane %v4716_v14, 4  ;;  %v4264_v52 = vrot.slane %v4262_v44, 4  ;;  %v13350_v10 = vpop.f32.mrf.mxu3  ;;  %v13365_v14 = vld [vmem:[#allocation2 + $0xc4] sm:$0xf]  ;;  %7705 = vmatpush.bf16.msrb.mxu1 %v11567_v62 }
 0x28f   : > { %v5423_v33 = vsel %vm13196_vm0, %v5125_v27, %v5422_v41  ;;  %v5058_v40 = vpack.c.bf16 %v5026_v32, %v5026_v32  ;;  %v4533_v38 = vadd.f32 %v13281_v47, %v3851_v59  ;;  %v13348_v1 = vld [vmem:[#allocation2 + $0x1c] sm:$0xf]  ;;  %v4371_v28 = vpack.c.b16 %v13329_v25, %v13315_v21  ;;  %v11558_v25 = vld [vmem:[%s15833_s3 + $0xe8] sm:$0xff] }
 0x290   : > { %5424 = vst [vmem:[#allocation2 + $0x24] sm:$0xf] %v5423_v33  ;;  %v13352_v55 = vld [vmem:[#allocation2 + $0x20] sm:$0x1]  ;;  %v5642_v26 = vshll.u32 %v13348_v1, 16  ;;  %v5646_v15 = vshrl.u32 %v13348_v1, 16  ;;  %v4720_v29 = vsel %vm12248_vm13, %v4718_v3, %v4719_v54  ;;  %v4778_v0 = vunpack.c.l.b16 %v4717_v35  ;;  %7024 = vmatpush.bf16.msrb.mxu0 %v11558_v25 }
 0x291   : > { %v5128_v57 = vshrl.u32 %v5058_v40, 16  ;;  %v4959_v47 = vadd.f32 %v13260_v12, %v4533_v38  ;;  %v5652_v46 = vshll.u32 %v13352_v55, 16  ;;  %v13367_v41 = vpop.f32.mrf.mxu0  ;;  %v4779_v44 = vunpack.c.l.b16 %v4720_v29  ;;  %v11469_v29 = vld [vmem:[#allocation2 + $0xa8] sm:$0xff]  ;;  %v11470_v25 = vld [vmem:[#allocation2 + $0xb4] sm:$0xff] }
 0x292   : > { %v5644_v51 = vrot.slane %v5642_v26, 5  ;;  %v5648_v2 = vrot.slane %v5646_v15, 4  ;;  %v4265_v48 = vshll.u32 %v3919_v16, 16  ;;  %v5131_v54 = vshll.u32 %v5058_v40, 16 }
 0x293   : > { %v5130_v27 = vrot.slane %v5128_v57, 7  ;;  %v4995_v32 = vadd.f32 %v13151_v18, %v4959_v47  ;;  %v5654_v12 = vrot.slane %v5652_v46, 5  ;;  %v4271_v33 = vshll.u32 %v13365_v14, 16 }
 0x294   : > { %v3782_v59 = vpop.f32.mrf.mxu2  ;;  %v5645_v50 = vsel %vm11791_vm2, %v5640_v4, %v5644_v51  ;;  %v5649_v35 = vor.u32 %v5648_v2, %v5644_v51  ;;  %v4267_v3 = vrot.slane %v4265_v48, 5  ;;  %v4797_v47 = vpack.c.b16 %v4779_v44, %v4778_v0 }
 0x295   : > { %v5133_v38 = vor.u32 %v5131_v54, %v5130_v27  ;;  %v5135_v26 = vrot.slane %v5130_v27, 4  ;;  %v5027_v15 = vmax.f32 %v4995_v32, 0.0  ;;  %v3852_v16 = vadd.f32 %v3782_v59, %v12749_v6  ;;  %v13379_v54 = vld [vmem:[#allocation2 + $0xc8] sm:$0x1] }
 0x296   : > { %v5650_v40 = vrot.slane %v5649_v35, 4  ;;  %v5989_v57 = vunpack.c.l.b16 %v5645_v50  ;;  %v4268_v46 = vor.u32 %v4267_v3, %v4264_v52  ;;  %v13383_v27 = vpop.f32.mrf.mxu3  ;;  %v4273_v59 = vrot.slane %v4271_v33, 5 }
 0x297   : > { %v5134_v62 = vsel %vm11877_vm8, %v5126_v58, %v5133_v38  ;;  %v5427_v4 = vsel %vm13232_vm1, %v5135_v26, %v5426_v45  ;;  %v5059_v51 = vpack.c.bf16 %v5027_v15, %v5027_v15  ;;  %v4534_v2 = vadd.f32 %v13313_v37, %v3852_v16  ;;  %v5526_v48 = vld [vmem:[#allocation2 + $0x24] sm:$0xf]  ;;  %v4573_v37 = vld [vmem:[#allocation2 + $0xc0] sm:$0xe] }
 0x298   : > { %5425 = vst [vmem:[#allocation2 + $0x28] sm:$0xf] %v5134_v62  ;;  %v5655_v6 = vsel %vm11791_vm2, %v5650_v40, %v5654_v12  ;;  %v5657_v0 = vshrl.u32 %v5526_v48, 16  ;;  %v5660_v52 = vshll.u32 %v5526_v48, 16  ;;  %v4269_v44 = vrot.slane %v4268_v46, 4 }
 0x299   : > { %5428 = vst [vmem:[#allocation2 + $0x2c] sm:$0x1] %v5427_v4  ;;  %v5137_v58 = vshrl.u32 %v5059_v51, 16  ;;  %v4960_v32 = vadd.f32 %v13297_v22, %v4534_v2  ;;  %3824 = vmatmul.bf16.gmra.mxu2 %v11469_v29  ;;  %v5990_v45 = vunpack.c.l.b16 %v5655_v6  ;;  %v5140_v50 = vshll.u32 %v5059_v51, 16  ;;  %v13386_v35 = vpop.f32.mrf.mxu0  ;;  %v5429_v46 = vld [vmem:[#allocation2 + $0x30] sm:$0xf] }
 0x29a   : > { %v5659_v3 = vrot.slane %v5657_v0, 4  ;;  %v5662_v38 = vrot.slane %v5660_v52, 5  ;;  %v4275_v12 = vshrl.u32 %v13365_v14, 16  ;;  %v4281_v40 = vshll.u32 %v13379_v54, 16 }
 0x29b   : > { %v13389_v26 = vrot.slane %v5137_v58, 7  ;;  %v4996_v15 = vadd.f32 %v13151_v18, %v4960_v32  ;;  %v6019_v16 = vpack.c.b16 %v5990_v45, %v5989_v57  ;;  %v4274_v33 = vsel %vm11791_vm2, %v4269_v44, %v4273_v59 }
 0x29c   : > { %v3785_v22 = vpop.f32.mrf.mxu2  ;;  %v5663_v29 = vor.u32 %v5662_v38, %v5659_v3  ;;  %v4277_v62 = vrot.slane %v4275_v12, 4  ;;  %v10667_v4 = vrot.slane %v4573_v37, 9  ;;  %4937 = vmatmul.bf16.gmra.mxu0 %v4797_v47  ;;  %v4283_v52 = vrot.slane %v4281_v40, 5 }
 0x29d   : > { %v5142_v51 = vor.u32 %v5140_v50, %v13389_v26  ;;  %v5143_v2 = vrot.slane %v13389_v26, 4  ;;  %v5028_v48 = vmax.f32 %v4996_v15, 0.0  ;;  %v3853_v6 = vadd.f32 %v3785_v22, %v12784_v36  ;;  %6115 = vmatmul.bf16.gmra.mxu1 %v6019_v16  ;;  %v11534_v36 = vld [vmem:[%s15833_s3 + $0xa8] sm:$0xff] }
 0x29e   : > { %4511 = vmatmul.bf16.gmra.mxu3 %v4371_v28  ;;  %v5664_v57 = vrot.slane %v5663_v29, 4  ;;  %v4278_v0 = vor.u32 %v4277_v62, %v4273_v59  ;;  %v4723_v44 = vrot.slane %v13365_v14, 5  ;;  %v4726_v21 = vrot.slane %v13379_v54, 5  ;;  %v13414_v28 = vpop.f32.mrf.mxu3  ;;  %v11518_v26 = vld [vmem:[%s15833_s3 + $0x28] sm:$0xff] }
 0x29f   : > { %v5430_v58 = vsel %vm13196_vm0, %v5142_v51, %v5429_v46  ;;  %v5060_v32 = vpack.c.bf16 %v5028_v48, %v5028_v48  ;;  %v4535_v45 = vadd.f32 %v13350_v10, %v3853_v6  ;;  %v13405_v37 = vld [vmem:[#allocation2 + $0x28] sm:$0xf]  ;;  %v13420_v59 = vunpack.c.l.b16 %v4274_v33  ;;  %6710 = vmatpush.bf16.msrb.mxu3 %v11534_v36  ;;  %6332 = vmatpush.bf16.msrb.mxu2 %v11518_v26  ;;  %v11517_v26 = vld [vmem:[%s15833_s3 + $0x20] sm:$0xff] }
 0x2a0   : > { %5431 = vst [vmem:[#allocation2 + $0x30] sm:$0xf] %v5430_v58  ;;  %v13416_v14 = vld [vmem:[#allocation2 + $0x2c] sm:$0x1]  ;;  %v5666_v47 = vshll.u32 %v13405_v37, 16  ;;  %v5670_v10 = vshrl.u32 %v13405_v37, 16  ;;  %v4724_v50 = vsel %vm12248_vm13, %v10667_v4, %v4723_v44 }
 0x2a1   : > { %v5145_v3 = vshrl.u32 %v5060_v32, 16  ;;  %v5148_v54 = vshll.u32 %v5060_v32, 16  ;;  %v4961_v38 = vadd.f32 %v13323_v43, %v4535_v45  ;;  %v5676_v12 = vshll.u32 %v13416_v14, 16  ;;  %v13429_v15 = vpop.f32.mrf.mxu0  ;;  %v5433_v4 = vld [vmem:[#allocation2 + $0x38] sm:$0x1] }
 0x2a2   : > { %v5668_v16 = vrot.slane %v5666_v47, 5  ;;  %v5672_v40 = vrot.slane %v5670_v10, 4  ;;  %v4279_v46 = vrot.slane %v4278_v0, 4  ;;  %v4725_v22 = vrot.slane %v4723_v44, 4  ;;  %v11533_v47 = vld [vmem:[%s15833_s3 + $0xa0] sm:$0xff] }
 0x2a3   : > { %v5147_v29 = vrot.slane %v5145_v3, 7  ;;  %v4997_v33 = vadd.f32 %v13151_v18, %v4961_v38  ;;  %v5678_v62 = vrot.slane %v5676_v12, 5  ;;  %v4780_v43 = vunpack.c.l.b16 %v4724_v50  ;;  %6711 = vmatpush.bf16.msrb.mxu3 %v11533_v47  ;;  %6333 = vmatpush.bf16.msrb.mxu2 %v11517_v26  ;;  %v11516_v47 = vld [vmem:[%s15833_s3 + $0x18] sm:$0xff] }
 0x2a4   : > { %v3787_v51 = vpop.f32.mrf.mxu2  ;;  %v5669_v48 = vsel %vm11791_vm2, %v5664_v57, %v5668_v16  ;;  %v5673_v6 = vor.u32 %v5672_v40, %v5668_v16  ;;  %v4284_v58 = vsel %vm11791_vm2, %v4279_v46, %v4283_v52  ;;  %v4727_v32 = vsel %vm12248_vm13, %v4725_v22, %v4726_v21  ;;  %v11557_v57 = vld [vmem:[%s15833_s3 + $0xe0] sm:$0xff]  ;;  %v3922_v16 = vld [vmem:[#allocation2 + $0xcc] sm:$0xf] }
 0x2a5   : > { %v5150_v0 = vor.u32 %v5148_v54, %v5147_v29  ;;  %v5152_v44 = vrot.slane %v5147_v29, 4  ;;  %v5029_v45 = vmax.f32 %v4997_v33, 0.0  ;;  %v3854_v36 = vadd.f32 %v3787_v51, %v13334_v56  ;;  %7025 = vmatpush.bf16.msrb.mxu0 %v11557_v57  ;;  %v13458_v33 = vld [vmem:[#allocation2 + $0xd0] sm:$0xf] }
 0x2a6   : > { %v5674_v10 = vrot.slane %v5673_v6, 4  ;;  %v5991_v50 = vunpack.c.l.b16 %v5669_v48  ;;  %v4355_v52 = vunpack.c.l.b16 %v4284_v58  ;;  %v4781_v3 = vunpack.c.l.b16 %v4727_v32  ;;  %v13455_v46 = vpop.f32.mrf.mxu3 }
 0x2a7   : > { %v5151_v21 = vsel %vm11877_vm8, %v5143_v2, %v5150_v0  ;;  %v5434_v54 = vsel %vm13232_vm1, %v5152_v44, %v5433_v4  ;;  %v5061_v56 = vpack.c.bf16 %v5029_v45, %v5029_v45  ;;  %v4536_v38 = vadd.f32 %v13383_v27, %v3854_v36  ;;  %v5528_v12 = vld [vmem:[#allocation2 + $0x30] sm:$0xf]  ;;  %6334 = vmatpush.bf16.msrb.mxu2 %v11516_v47 }
 0x2a8   : > { %5432 = vst [vmem:[#allocation2 + $0x34] sm:$0xf] %v5151_v21  ;;  %v5679_v40 = vsel %vm11791_vm2, %v5674_v10, %v5678_v62  ;;  %v4372_v2 = vpack.c.b16 %v4355_v52, %v13420_v59  ;;  %v4798_v22 = vpack.c.b16 %v4781_v3, %v4780_v43  ;;  %v5681_v29 = vshrl.u32 %v5528_v12, 16  ;;  %v11532_v62 = vld [vmem:[%s15833_s3 + $0x98] sm:$0xff]  ;;  %v13476_v52 = vld [vmem:[#allocation2 + $0xd4] sm:$0x1] }
 0x2a9   : > { %5435 = vst [vmem:[#allocation2 + $0x38] sm:$0x1] %v5434_v54  ;;  %v5154_v27 = vshrl.u32 %v5061_v56, 16  ;;  %v5157_v4 = vshll.u32 %v5061_v56, 16  ;;  %v4962_v51 = vadd.f32 %v13367_v41, %v4536_v38  ;;  %3829 = vmatmul.bf16.gmra.mxu2 %v11470_v25  ;;  %v5992_v48 = vunpack.c.l.b16 %v5679_v40  ;;  %v11556_v59 = vld [vmem:[%s15833_s3 + $0xd8] sm:$0xff]  ;;  %v13467_v43 = vpop.f32.mrf.mxu0  ;;  %6712 = vmatpush.bf16.msrb.mxu3 %v11532_v62 }
 0x2aa   : > { %v5683_v6 = vrot.slane %v5681_v29, 4  ;;  %v5684_v58 = vshll.u32 %v5528_v12, 16  ;;  %v4286_v32 = vshrl.u32 %v3922_v16, 16  ;;  %v4289_v0 = vshll.u32 %v3922_v16, 16  ;;  %v5436_v41 = vld [vmem:[#allocation2 + $0x3c] sm:$0xf]  ;;  %7026 = vmatpush.bf16.msrb.mxu0 %v11556_v59 }
 0x2ab   : > { %v13469_v44 = vrot.slane %v5154_v27, 7  ;;  %v4998_v45 = vadd.f32 %v13151_v18, %v4962_v51  ;;  %v6020_v36 = vpack.c.b16 %v5992_v48, %v5991_v50  ;;  %v4295_v25 = vshll.u32 %v13458_v33, 16  ;;  %v11531_v29 = vld [vmem:[%s15833_s3 + $0x90] sm:$0xff] }
 0x2ac   : > { %v3790_v57 = vpop.f32.mrf.mxu2  ;;  %v5686_v10 = vrot.slane %v5684_v58, 5  ;;  %v4288_v3 = vrot.slane %v4286_v32, 4  ;;  %v4291_v21 = vrot.slane %v4289_v0, 5  ;;  %v4299_v54 = vshrl.u32 %v13458_v33, 16  ;;  %4942 = vmatmul.bf16.gmra.mxu0 %v4798_v22  ;;  %v11555_v27 = vld [vmem:[%s15833_s3 + $0xd0] sm:$0xff] }
 0x2ad   : > { %v5159_v56 = vor.u32 %v5157_v4, %v13469_v44  ;;  %v5030_v38 = vmax.f32 %v4998_v45, 0.0  ;;  %v3855_v50 = vadd.f32 %v3790_v57, %v12822_v13  ;;  %6120 = vmatmul.bf16.gmra.mxu1 %v6020_v36  ;;  %v4297_v16 = vrot.slane %v4295_v25, 5  ;;  %6713 = vmatpush.bf16.msrb.mxu3 %v11531_v29 }
 0x2ae   : > { %4516 = vmatmul.bf16.gmra.mxu3 %v4372_v2  ;;  %v5687_v12 = vor.u32 %v5686_v10, %v5683_v6  ;;  %v4292_v26 = vor.u32 %v4291_v21, %v4288_v3  ;;  %v4301_v40 = vrot.slane %v4299_v54, 4  ;;  %v4305_v51 = vshll.u32 %v13476_v52, 16  ;;  %v13495_v62 = vpop.f32.mrf.mxu3  ;;  %7027 = vmatpush.bf16.msrb.mxu0 %v11555_v27  ;;  %v11554_v3 = vld [vmem:[%s15833_s3 + $0xc8] sm:$0xff] }
 0x2af   : > { %v5437_v4 = vsel %vm13196_vm0, %v5159_v56, %v5436_v41  ;;  %v5062_v13 = vpack.c.bf16 %v5030_v38, %v5030_v38  ;;  %v4537_v2 = vadd.f32 %v13414_v28, %v3855_v50  ;;  %v13490_v22 = vld [vmem:[#allocation2 + $0x34] sm:$0xf]  ;;  %v3541_v48 = vadd.f32 %v12753_v9, %v12828_v20  ;;  %v11566_v9 = vld [vmem:[%s15833_s3 + $0x128] sm:$0xff] }
 0x2b0   : > { %5438 = vst [vmem:[#allocation2 + $0x3c] sm:$0xf] %v5437_v4  ;;  %v13497_v59 = vld [vmem:[#allocation2 + $0x38] sm:$0x1]  ;;  %v13499_v6 = vrot.slane %v5687_v12, 4  ;;  %v5690_v58 = vshll.u32 %v13490_v22, 16  ;;  %v4302_v32 = vor.u32 %v4301_v40, %v4297_v16  ;;  %7706 = vmatpush.bf16.msrb.mxu1 %v11566_v9 }
 0x2b1   : > { %v5162_v28 = vshrl.u32 %v5062_v13, 16  ;;  %v5165_v0 = vshll.u32 %v5062_v13, 16  ;;  %v4963_v41 = vadd.f32 %v13386_v35, %v4537_v2  ;;  %v5694_v45 = vshrl.u32 %v13490_v22, 16  ;;  %v11515_v20 = vld [vmem:[%s15833_s3 + $0x10] sm:$0xff]  ;;  %v13510_v36 = vpop.f32.mrf.mxu0  ;;  %v11530_v35 = vld [vmem:[%s15833_s3 + $0x88] sm:$0xff] }
 0x2b2   : > { %v5692_v25 = vrot.slane %v5690_v58, 5  ;;  %v5700_v47 = vshll.u32 %v13497_v59, 16  ;;  %v4293_v57 = vrot.slane %v4292_v26, 4  ;;  %v4303_v10 = vrot.slane %v4302_v32, 4  ;;  %v4574_v50 = vld [vmem:[#allocation2 + $0xcc] sm:$0xe]  ;;  %6335 = vmatpush.bf16.msrb.mxu2 %v11515_v20  ;;  %6714 = vmatpush.bf16.msrb.mxu3 %v11530_v35 }
 0x2b3   : > { %v5164_v21 = vrot.slane %v5162_v28, 7  ;;  %v4999_v54 = vadd.f32 %v13151_v18, %v4963_v41  ;;  %v5696_v56 = vrot.slane %v5694_v45, 4  ;;  %v4307_v38 = vrot.slane %v4305_v51, 5  ;;  %v5440_v26 = vld [vmem:[#allocation2 + $0x44] sm:$0x1]  ;;  %7028 = vmatpush.bf16.msrb.mxu0 %v11554_v3  ;;  %v11514_v18 = vld [vmem:[%s15833_s3 + $0x8] sm:$0xff] }
 0x2b4   : > { %v5160_v12 = vrot.slane %v13469_v44, 4  ;;  %v3792_v40 = vpop.f32.mrf.mxu2  ;;  %v5693_v29 = vsel %vm11791_vm2, %v13499_v6, %v5692_v25  ;;  %v5702_v27 = vrot.slane %v5700_v47, 5  ;;  %v4298_v4 = vsel %vm11791_vm2, %v4293_v57, %v4297_v16  ;;  %v11471_v58 = vld [vmem:[#allocation2 + $0xc0] sm:$0xff] }
 0x2b5   : > { %v5167_v13 = vor.u32 %v5165_v0, %v5164_v21  ;;  %v5169_v2 = vrot.slane %v5164_v21, 4  ;;  %v5031_v51 = vmax.f32 %v4999_v54, 0.0  ;;  %v3856_v44 = vadd.f32 %v3792_v40, %v3541_v48  ;;  %v11529_v16 = vld [vmem:[%s15833_s3 + $0x80] sm:$0xff] }
 0x2b6   : > { %v5697_v32 = vor.u32 %v5696_v56, %v5692_v25  ;;  %v4308_v28 = vsel %vm11791_vm2, %v4303_v10, %v4307_v38  ;;  %v4356_v6 = vunpack.c.l.b16 %v4298_v4  ;;  %v10668_v41 = vrot.slane %v4574_v50, 9  ;;  %v11553_v45 = vld [vmem:[%s15833_s3 + $0xc0] sm:$0xff]  ;;  %6336 = vmatpush.bf16.msrb.mxu2 %v11514_v18  ;;  %v13546_v57 = vpop.f32.mrf.mxu3  ;;  %6715 = vmatpush.bf16.msrb.mxu3 %v11529_v16 }
 0x2b7   : > { %v5168_v0 = vsel %vm11877_vm8, %v5160_v12, %v5167_v13  ;;  %v5441_v48 = vsel %vm13232_vm1, %v5169_v2, %v5440_v26  ;;  %v5063_v9 = vpack.c.bf16 %v5031_v51, %v5031_v51  ;;  %v4538_v20 = vadd.f32 %v13455_v46, %v3856_v44  ;;  %v5530_v3 = vld [vmem:[#allocation2 + $0x3c] sm:$0xf]  ;;  %7029 = vmatpush.bf16.msrb.mxu0 %v11553_v45  ;;  %v6419_v26 = vld [vmem:[#allocation2] sm:$0xe] }
 0x2b8   : > { %v13544_v25 = vadd.f32 %v12800_v24, %v12865_v19  ;;  %5439 = vst [vmem:[#allocation2 + $0x40] sm:$0xf] %v5168_v0  ;;  %v5698_v47 = vrot.slane %v5697_v32, 4  ;;  %v4357_v10 = vunpack.c.l.b16 %v4308_v28  ;;  %v4730_v35 = vrot.slane %v13458_v33, 5  ;;  %v11513_v24 = vld [vmem:[%s15833_s3] sm:$0xff] }
 0x2b9   : > { %5442 = vst [vmem:[#allocation2 + $0x44] sm:$0x1] %v5441_v48  ;;  %v5171_v21 = vshrl.u32 %v5063_v9, 16  ;;  %v4964_v54 = vadd.f32 %v13429_v15, %v4538_v20  ;;  %3834 = vmatmul.bf16.gmra.mxu2 %v11471_v58  ;;  %v5993_v46 = vunpack.c.l.b16 %v5693_v29  ;;  %v4733_v56 = vrot.slane %v13476_v52, 5  ;;  %v13556_v38 = vpop.f32.mrf.mxu0  ;;  %v13565_v52 = vld [vmem:[%s15832_s2] ss:$0 sm:$0xff] }
 0x2ba   : > { %v5703_v19 = vsel %vm11791_vm2, %v5698_v47, %v5702_v27  ;;  %v4373_v33 = vpack.c.b16 %v4357_v10, %v4356_v6  ;;  %v4731_v50 = vsel %vm12248_vm13, %v10668_v41, %v4730_v35  ;;  %v4732_v12 = vrot.slane %v4730_v35, 4  ;;  %6337 = vmatpush.bf16.msrb.mxu2 %v11513_v24  ;;  %v5443_v27 = vld [vmem:[#allocation2 + $0x48] sm:$0xf]  ;;  %v11678_v10 = vld [vmem:[#allocation2 + $0x4] sm:$0xf] }
 0x2bb   : > { %v13560_v15 = vrot.slane %v5171_v21, 7  ;;  %v5174_v40 = vshll.u32 %v5063_v9, 16  ;;  %v5000_v29 = vadd.f32 %v13565_v52, %v4964_v54  ;;  %v5994_v4 = vunpack.c.l.b16 %v5703_v19 }
 0x2bc   : > { %v3795_v18 = vpop.f32.mrf.mxu2  ;;  %v4734_v13 = vsel %vm12248_vm13, %v4732_v12, %v4733_v56  ;;  %v4782_v2 = vunpack.c.l.b16 %v4731_v50  ;;  %v5705_v51 = vshrl.u32 %v5530_v3, 16  ;;  %v5708_v44 = vshll.u32 %v5530_v3, 16 }
 0x2bd   : > { %v5176_v58 = vor.u32 %v5174_v40, %v13560_v15  ;;  %v5032_v32 = vmax.f32 %v5000_v29, 0.0  ;;  %v3857_v28 = vadd.f32 %v3795_v18, %v12859_v31  ;;  %v10861_v6 = vrot.slane %v6419_v26, 9 }
 0x2be   : > { %4521 = vmatmul.bf16.gmra.mxu3 %v4373_v33  ;;  %v6021_v41 = vpack.c.b16 %v5994_v4, %v5993_v46  ;;  %v4783_v16 = vunpack.c.l.b16 %v4734_v13  ;;  %v5707_v45 = vrot.slane %v5705_v51, 4  ;;  %v5710_v0 = vrot.slane %v5708_v44, 5  ;;  %v13577_v31 = vpop.f32.mrf.mxu3 }
 0x2bf   : > { %v5444_v48 = vsel %vm13196_vm0, %v5176_v58, %v5443_v27  ;;  %v5064_v9 = vpack.c.bf16 %v5032_v32, %v5032_v32  ;;  %v4539_v20 = vadd.f32 %v13495_v62, %v3857_v28  ;;  %v13575_v47 = vld [vmem:[#allocation2 + $0x40] sm:$0xf]  ;;  %v6469_v35 = vrot.slane %v11678_v10, 5  ;;  %v11679_v58 = vld [vmem:[#allocation2 + $0x8] sm:$0x1] }
 0x2c0   : > { %5445 = vst [vmem:[#allocation2 + $0x48] sm:$0xf] %v5444_v48  ;;  %6125 = vmatmul.bf16.gmra.mxu1 %v6021_v41  ;;  %v4799_v3 = vpack.c.b16 %v4783_v16, %v4782_v2  ;;  %v13579_v21 = vld [vmem:[#allocation2 + $0x44] sm:$0x1]  ;;  %v5711_v54 = vor.u32 %v5710_v0, %v5707_v45  ;;  %v5714_v46 = vshll.u32 %v13575_v47, 16  ;;  %v5718_v56 = vshrl.u32 %v13575_v47, 16 }
 0x2c1   : > { %v5177_v24 = vrot.slane %v13560_v15, 4  ;;  %v5179_v19 = vshrl.u32 %v5064_v9, 16  ;;  %v4965_v62 = vadd.f32 %v13467_v43, %v4539_v20  ;;  %v5724_v33 = vshll.u32 %v13579_v21, 16  ;;  %v13586_v12 = vpop.f32.mrf.mxu0  ;;  %v5447_v15 = vld [vmem:[#allocation2 + $0x50] sm:$0x1] }
 0x2c2   : > { %v5182_v50 = vshll.u32 %v5064_v9, 16  ;;  %4947 = vmatmul.bf16.gmra.mxu0 %v4799_v3  ;;  %v5712_v26 = vrot.slane %v5711_v54, 4  ;;  %v5716_v40 = vrot.slane %v5714_v46, 5  ;;  %v5720_v29 = vrot.slane %v5718_v56, 4  ;;  %v11472_v0 = vld [vmem:[#allocation2 + $0xcc] sm:$0xff] }
 0x2c3   : > { %v5181_v4 = vrot.slane %v5179_v19, 7  ;;  %v5001_v27 = vadd.f32 %v13565_v52, %v4965_v62  ;;  %v6470_v18 = vsel %vm12248_vm13, %v10861_v6, %v6469_v35  ;;  %v6471_v13 = vrot.slane %v6469_v35, 4 }
 0x2c4   : > { %v3797_v2 = vpop.f32.mrf.mxu2  ;;  %v5717_v43 = vsel %vm11791_vm2, %v5712_v26, %v5716_v40  ;;  %v5721_v51 = vor.u32 %v5720_v29, %v5716_v40  ;;  %v5726_v44 = vrot.slane %v5724_v33, 5  ;;  %v6472_v32 = vrot.slane %v11679_v58, 5 }
 0x2c5   : > { %v5184_v28 = vor.u32 %v5182_v50, %v5181_v4  ;;  %v5186_v41 = vrot.slane %v5181_v4, 4  ;;  %v5033_v16 = vmax.f32 %v5001_v27, 0.0  ;;  %v3858_v45 = vadd.f32 %v3797_v2, %v13544_v25  ;;  %v6420_v27 = vld [vmem:[#allocation2 + $0xc] sm:$0xe]  ;;  %v6421_v2 = vld [vmem:[#allocation2 + $0x18] sm:$0xe] }
 0x2c6   : > { %v5722_v48 = vrot.slane %v5721_v51, 4  ;;  %v6473_v6 = vsel %vm12248_vm13, %v6471_v13, %v6472_v32  ;;  %v6596_v9 = vunpack.c.l.b16 %v6470_v18  ;;  %v6476_v20 = vrot.slane %v13277_v53, 5  ;;  %v13604_v56 = vpop.f32.mrf.mxu3 }
 0x2c7   : > { %v5185_v10 = vsel %vm11877_vm8, %v5177_v24, %v5184_v28  ;;  %v5448_v35 = vsel %vm13232_vm1, %v5186_v41, %v5447_v15  ;;  %v5065_v3 = vpack.c.bf16 %v5033_v16, %v5033_v16  ;;  %v4540_v54 = vadd.f32 %v13546_v57, %v3858_v45  ;;  %v5532_v46 = vld [vmem:[#allocation2 + $0x48] sm:$0xf] }
 0x2c8   : > { %5446 = vst [vmem:[#allocation2 + $0x4c] sm:$0xf] %v5185_v10  ;;  %v5727_v25 = vsel %vm11791_vm2, %v5722_v48, %v5726_v44  ;;  %v6597_v19 = vunpack.c.l.b16 %v6473_v6  ;;  %v5729_v62 = vshrl.u32 %v5532_v46, 16  ;;  %v5732_v33 = vshll.u32 %v5532_v46, 16  ;;  %v5450_v44 = vld [vmem:[#allocation2 + $0x54] sm:$0xf] }
 0x2c9   : > { %5449 = vst [vmem:[#allocation2 + $0x50] sm:$0x1] %v5448_v35  ;;  %v5188_v53 = vshrl.u32 %v5065_v3, 16  ;;  %v4966_v24 = vadd.f32 %v13510_v36, %v4540_v54  ;;  %3839 = vmatmul.bf16.gmra.mxu2 %v11472_v0  ;;  %v5996_v50 = vunpack.c.l.b16 %v5727_v25  ;;  %v5995_v26 = vunpack.c.l.b16 %v5717_v43  ;;  %v13607_v40 = vpop.f32.mrf.mxu0  ;;  %v11537_v35 = vld [vmem:[#allocation2 + $0xc] sm:$0xff] }
 0x2ca   : > { %v6628_v57 = vpack.c.b16 %v6597_v19, %v6596_v9  ;;  %v5731_v29 = vrot.slane %v5729_v62, 4  ;;  %v5734_v4 = vrot.slane %v5732_v33, 5  ;;  %v5191_v13 = vshll.u32 %v5065_v3, 16 }
 0x2cb   : > { %v13609_v18 = vrot.slane %v5188_v53, 7  ;;  %v5002_v15 = vadd.f32 %v13565_v52, %v4966_v24  ;;  %v3545_v51 = vadd.f32 %v12833_v39, %v12895_v23  ;;  %v6022_v58 = vpack.c.b16 %v5996_v50, %v5995_v26  ;;  %v11565_v53 = vld [vmem:[%s15833_s3 + $0x120] sm:$0xff] }
 0x2cc   : > { %v3800_v36 = vpop.f32.mrf.mxu2  ;;  %v5735_v32 = vor.u32 %v5734_v4, %v5731_v29  ;;  %v6478_v43 = vrot.slane %v6476_v20, 4  ;;  %v10862_v45 = vrot.slane %v6420_v27, 9  ;;  %v6479_v48 = vrot.slane %v13283_v42, 5  ;;  %7707 = vmatpush.bf16.msrb.mxu1 %v11565_v53 }
 0x2cd   : > { %v5193_v28 = vor.u32 %v5191_v13, %v13609_v18  ;;  %v5034_v41 = vmax.f32 %v5002_v15, 0.0  ;;  %v3859_v16 = vadd.f32 %v3800_v36, %v12889_v11  ;;  %v5194_v0 = vrot.slane %v13609_v18, 4  ;;  %v5454_v13 = vld [vmem:[#allocation2 + $0x5c] sm:$0x1] }
 0x2ce   : > { %6716 = vmatmul.bf16.vlgmr.msrb.gmra.mxu3 %v6628_v57  ;;  %v10863_v6 = vrot.slane %v6421_v2, 9  ;;  %v6483_v9 = vrot.slane %v13348_v1, 5  ;;  %v5736_v54 = vrot.slane %v5735_v32, 4  ;;  %v13624_v11 = vpop.f32.mrf.mxu3  ;;  %v6477_v25 = vsel %vm12248_vm13, %v10862_v45, %v6476_v20 }
 0x2cf   : > { %v5451_v39 = vsel %vm13196_vm0, %v5193_v28, %v5450_v44  ;;  %v5066_v23 = vpack.c.bf16 %v5034_v41, %v5034_v41  ;;  %v4541_v10 = vadd.f32 %v13577_v31, %v3859_v16  ;;  %v13622_v3 = vld [vmem:[#allocation2 + $0x4c] sm:$0xf]  ;;  %v6480_v31 = vsel %vm12248_vm13, %v6478_v43, %v6479_v48  ;;  %v11497_v16 = vld [vmem:[#allocation2] sm:$0xff] }
 0x2d0   : > { %5452 = vst [vmem:[#allocation2 + $0x54] sm:$0xf] %v5451_v39  ;;  %6130 = vmatmul.bf16.gmra.mxu1 %v6022_v58  ;;  %v13626_v46 = vld [vmem:[#allocation2 + $0x50] sm:$0x1]  ;;  %v5738_v42 = vshll.u32 %v13622_v3, 16  ;;  %v5742_v1 = vshrl.u32 %v13622_v3, 16  ;;  %v6484_v24 = vsel %vm12248_vm13, %v10863_v6, %v6483_v9  ;;  %v6599_v18 = vunpack.c.l.b16 %v6480_v31 }
 0x2d1   : > { %v5196_v19 = vshrl.u32 %v5066_v23, 16  ;;  %v4967_v62 = vadd.f32 %v13556_v38, %v4541_v10  ;;  %v5748_v33 = vshll.u32 %v13626_v46, 16  ;;  %v13641_v50 = vpop.f32.mrf.mxu0  ;;  %v6485_v57 = vrot.slane %v6483_v9, 4 }
 0x2d2   : > { %7030 = vmatmul.bf16.vlgmr.msrb.gmra.mxu0 %v11537_v35  ;;  %v5740_v26 = vrot.slane %v5738_v42, 5  ;;  %v5744_v20 = vrot.slane %v5742_v1, 4  ;;  %v6486_v29 = vrot.slane %v13352_v55, 5  ;;  %v5199_v27 = vshll.u32 %v5066_v23, 16  ;;  %v6422_v55 = vld [vmem:[#allocation2 + $0x24] sm:$0xe] }
 0x2d3   : > { %v5198_v4 = vrot.slane %v5196_v19, 7  ;;  %v5003_v38 = vadd.f32 %v13565_v52, %v4967_v62  ;;  %v5750_v44 = vrot.slane %v5748_v33, 5  ;;  %v6600_v58 = vunpack.c.l.b16 %v6484_v24  ;;  %v6423_v33 = vld [vmem:[#allocation2 + $0x30] sm:$0xe] }
 0x2d4   : > { %v3802_v15 = vpop.f32.mrf.mxu2  ;;  %v5745_v2 = vor.u32 %v5744_v20, %v5740_v26  ;;  %v6487_v36 = vsel %vm12248_vm13, %v6485_v57, %v6486_v29  ;;  %v5741_v45 = vsel %vm11791_vm2, %v5736_v54, %v5740_v26  ;;  %v6490_v9 = vrot.slane %v13405_v37, 5 }
 0x2d5   : > { %v5201_v32 = vor.u32 %v5199_v27, %v5198_v4  ;;  %v5203_v43 = vrot.slane %v5198_v4, 4  ;;  %v5035_v28 = vmax.f32 %v5003_v38, 0.0  ;;  %v3860_v41 = vadd.f32 %v3802_v15, %v3545_v51  ;;  %v5457_v27 = vld [vmem:[#allocation2 + $0x60] sm:$0xf] }
 0x2d6   : > { %v5746_v48 = vrot.slane %v5745_v2, 4  ;;  %v6601_v6 = vunpack.c.l.b16 %v6487_v36  ;;  %v13657_v42 = vpop.f32.mrf.mxu3  ;;  %v10864_v1 = vrot.slane %v6422_v55, 9  ;;  %v6492_v31 = vrot.slane %v6490_v9, 4  ;;  %v11538_v55 = vld [vmem:[#allocation2 + $0x18] sm:$0xff] }
 0x2d7   : > { %v5202_v39 = vsel %vm11877_vm8, %v5194_v0, %v5201_v32  ;;  %v5455_v23 = vsel %vm13232_vm1, %v5203_v43, %v5454_v13  ;;  %v5067_v10 = vpack.c.bf16 %v5035_v28, %v5035_v28  ;;  %v4542_v35 = vadd.f32 %v13604_v56, %v3860_v41 }
 0x2d8   : > { %5453 = vst [vmem:[#allocation2 + $0x58] sm:$0xf] %v5202_v39  ;;  %v5751_v51 = vsel %vm11791_vm2, %v5746_v48, %v5750_v44  ;;  %v13659_v54 = vpack.c.b16 %v6601_v6, %v6600_v58  ;;  %v6598_v62 = vunpack.c.l.b16 %v6477_v25  ;;  %v5997_v53 = vunpack.c.l.b16 %v5741_v45  ;;  %v5534_v48 = vld [vmem:[#allocation2 + $0x54] sm:$0xf] }
 0x2d9   : > { %5456 = vst [vmem:[#allocation2 + $0x5c] sm:$0x1] %v5455_v23  ;;  %v5205_v37 = vshrl.u32 %v5067_v10, 16  ;;  %v4968_v0 = vadd.f32 %v13586_v12, %v4542_v35  ;;  %6338 = vmatmul.bf16.vlgmr.msrb.gmra.mxu2 %v11497_v16  ;;  %v5998_v19 = vunpack.c.l.b16 %v5751_v51  ;;  %v13662_v56 = vpop.f32.mrf.mxu0  ;;  %v6491_v24 = vsel %vm12248_vm13, %v10864_v1, %v6490_v9 }
 0x2da   : > { %v6493_v26 = vrot.slane %v13416_v14, 5  ;;  %v5208_v57 = vshll.u32 %v5067_v10, 16  ;;  %v6629_v4 = vpack.c.b16 %v6599_v18, %v6598_v62  ;;  %v10865_v13 = vrot.slane %v6423_v33, 9  ;;  %v5461_v33 = vld [vmem:[#allocation2 + $0x68] sm:$0x1] }
 0x2db   : > { %v5207_v20 = vrot.slane %v5205_v37, 7  ;;  %v5004_v29 = vadd.f32 %v13565_v52, %v4968_v0  ;;  %v6023_v12 = vpack.c.b16 %v5998_v19, %v5997_v53  ;;  %v6497_v15 = vrot.slane %v13490_v22, 5 }
 0x2dc   : > { %v3805_v38 = vpop.f32.mrf.mxu2  ;;  %v6494_v25 = vsel %vm12248_vm13, %v6492_v31, %v6493_v26  ;;  %v6602_v14 = vunpack.c.l.b16 %v6491_v24  ;;  %v6500_v43 = vrot.slane %v13497_v59, 5  ;;  %v5753_v10 = vshrl.u32 %v5534_v48, 16 }
 0x2dd   : > { %v5210_v2 = vor.u32 %v5208_v57, %v5207_v20  ;;  %v5036_v44 = vmax.f32 %v5004_v29, 0.0  ;;  %v3861_v36 = vadd.f32 %v3805_v38, %v12922_v61  ;;  %v6603_v58 = vunpack.c.l.b16 %v6494_v25 }
 0x2de   : > { %6721 = vmatmul.bf16.gmra.mxu3 %v6629_v4  ;;  %v6498_v32 = vsel %vm12248_vm13, %v10865_v13, %v6497_v15  ;;  %v6499_v18 = vrot.slane %v6497_v15, 4  ;;  %v5211_v28 = vrot.slane %v5207_v20, 4  ;;  %v3547_v61 = vadd.f32 %v12873_v60, %v12926_v17  ;;  %v13680_v45 = vpop.f32.mrf.mxu3 }
 0x2df   : > { %v5458_v41 = vsel %vm13196_vm0, %v5210_v2, %v5457_v27  ;;  %v5068_v16 = vpack.c.bf16 %v5036_v44, %v5036_v44  ;;  %v4543_v22 = vadd.f32 %v13624_v11, %v3861_v36  ;;  %v13682_v6 = vld [vmem:[#allocation2 + $0x58] sm:$0xf]  ;;  %v13684_v9 = vpack.c.b16 %v6603_v58, %v6602_v14  ;;  %v11498_v36 = vld [vmem:[#allocation2 + $0xc] sm:$0xff] }
 0x2e0   : > { %5459 = vst [vmem:[#allocation2 + $0x60] sm:$0xf] %v5458_v41  ;;  %6135 = vmatmul.bf16.gmra.mxu1 %v6023_v12  ;;  %v6501_v59 = vsel %vm12248_vm13, %v6499_v18, %v6500_v43  ;;  %v13689_v11 = vld [vmem:[#allocation2 + $0x5c] sm:$0x1]  ;;  %v6604_v35 = vunpack.c.l.b16 %v6498_v32  ;;  %v5756_v51 = vshll.u32 %v5534_v48, 16  ;;  %v5762_v1 = vshll.u32 %v13682_v6, 16 }
 0x2e1   : > { %v5213_v39 = vshrl.u32 %v5068_v16, 16  ;;  %v4969_v23 = vadd.f32 %v13607_v40, %v4543_v22  ;;  %v5216_v60 = vshll.u32 %v5068_v16, 16  ;;  %v13691_v17 = vpop.f32.mrf.mxu0  ;;  %v5766_v31 = vshrl.u32 %v13682_v6, 16  ;;  %v6424_v16 = vld [vmem:[#allocation2 + $0x3c] sm:$0xe] }
 0x2e2   : > { %7035 = vmatmul.bf16.gmra.mxu0 %v11538_v55  ;;  %v5755_v19 = vrot.slane %v5753_v10, 4  ;;  %v6605_v62 = vunpack.c.l.b16 %v6501_v59  ;;  %v5758_v53 = vrot.slane %v5756_v51, 5  ;;  %v5764_v24 = vrot.slane %v5762_v1, 5 }
 0x2e3   : > { %v5215_v37 = vrot.slane %v5213_v39, 7  ;;  %v5005_v0 = vadd.f32 %v13565_v52, %v4969_v23  ;;  %v5768_v26 = vrot.slane %v5766_v31, 4  ;;  %v5772_v20 = vshll.u32 %v13689_v11, 16  ;;  %v5464_v39 = vld [vmem:[#allocation2 + $0x6c] sm:$0xf] }
 0x2e4   : > { %v3807_v40 = vpop.f32.mrf.mxu2  ;;  %v5759_v38 = vor.u32 %v5758_v53, %v5755_v19  ;;  %v13697_v25 = vpack.c.b16 %v6605_v62, %v6604_v35  ;;  %v10866_v35 = vrot.slane %v6424_v16, 9  ;;  %v6507_v19 = vrot.slane %v13579_v21, 5  ;;  %v11539_v53 = vld [vmem:[#allocation2 + $0x24] sm:$0xff] }
 0x2e5   : > { %v5218_v57 = vor.u32 %v5216_v60, %v5215_v37  ;;  %v5220_v29 = vrot.slane %v5215_v37, 4  ;;  %v5037_v4 = vmax.f32 %v5005_v0, 0.0  ;;  %v3862_v27 = vadd.f32 %v3807_v40, %v3547_v61 }
 0x2e6   : > { %v5769_v12 = vor.u32 %v5768_v26, %v5764_v24  ;;  %v5760_v14 = vrot.slane %v5759_v38, 4  ;;  %v5774_v32 = vrot.slane %v5772_v20, 5  ;;  %v13704_v18 = vpop.f32.mrf.mxu3  ;;  %v13725_v26 = vpop.f32.mrf.mxu1 }
 0x2e7   : > { %v5219_v13 = vsel %vm11877_vm8, %v5211_v28, %v5218_v57  ;;  %v5462_v15 = vsel %vm13232_vm1, %v5220_v29, %v5461_v33  ;;  %v5069_v2 = vpack.c.bf16 %v5037_v4, %v5037_v4  ;;  %v4544_v44 = vadd.f32 %v13657_v42, %v3862_v27  ;;  %v5536_v20 = vld [vmem:[#allocation2 + $0x60] sm:$0xf] }
 0x2e8   : > { %5460 = vst [vmem:[#allocation2 + $0x64] sm:$0xf] %v5219_v13  ;;  %v5770_v58 = vrot.slane %v5769_v12, 4  ;;  %v5765_v28 = vsel %vm11791_vm2, %v5760_v14, %v5764_v24  ;;  %v15898_v24 = vld [vmem:[#allocation16_spill] sm:$0xff]  ;;  %v5777_v27 = vshrl.u32 %v5536_v20, 16 }
 0x2e9   : > { %5463 = vst [vmem:[#allocation2 + $0x68] sm:$0x1] %v5462_v15  ;;  %v5222_v43 = vshrl.u32 %v5069_v2, 16  ;;  %v4970_v41 = vadd.f32 %v13641_v50, %v4544_v44  ;;  %6343 = vmatmul.bf16.gmra.mxu2 %v11498_v36  ;;  %v13711_v42 = vpop.f32.mrf.mxu0  ;;  %v5225_v61 = vshll.u32 %v5069_v2, 16  ;;  %v5999_v10 = vunpack.c.l.b16 %v5765_v28 }
 0x2ea   : > { %v5775_v22 = vsel %vm11791_vm2, %v5770_v58, %v5774_v32  ;;  %v6504_v50 = vrot.slane %v13575_v47, 5  ;;  %v5780_v15 = vshll.u32 %v5536_v20, 16  ;;  %v5779_v14 = vrot.slane %v5777_v27, 4  ;;  %v5468_v32 = vld [vmem:[#allocation2 + $0x74] sm:$0x1] }
 0x2eb   : > { %v5224_v55 = vrot.slane %v5222_v43, 7  ;;  %v5006_v48 = vadd.f32 %v13565_v52, %v4970_v41  ;;  %v6000_v59 = vunpack.c.l.b16 %v5775_v22 }
 0x2ec   : > { %v3810_v23 = vpop.f32.mrf.mxu2  ;;  %v6505_v37 = vsel %vm12248_vm13, %v10866_v35, %v6504_v50  ;;  %v6506_v0 = vrot.slane %v6504_v50, 4  ;;  %v5782_v41 = vrot.slane %v5780_v15, 5 }
 0x2ed   : > { %v5227_v60 = vor.u32 %v5225_v61, %v5224_v55  ;;  %v5038_v51 = vmax.f32 %v5006_v48, 0.0  ;;  %v3863_v1 = vadd.f32 %v3810_v23, %v12950_v8  ;;  %v6024_v31 = vpack.c.b16 %v6000_v59, %v5999_v10 }
 0x2ee   : > { %6726 = vmatmul.bf16.gmra.mxu3 %v13659_v54  ;;  %v5228_v62 = vrot.slane %v5224_v55, 4  ;;  %v3549_v8 = vadd.f32 %v15898_v24, %v12956_v49  ;;  %v13727_v54 = vpop.f32.mrf.mxu3  ;;  %v6508_v21 = vsel %vm12248_vm13, %v6506_v0, %v6507_v19  ;;  %v11564_v49 = vld [vmem:[%s15833_s3 + $0x118] sm:$0xff]  ;;  %v6606_v38 = vunpack.c.l.b16 %v6505_v37 }
 0x2ef   : > { %v5465_v33 = vsel %vm13196_vm0, %v5227_v60, %v5464_v39  ;;  %v5070_v40 = vpack.c.bf16 %v5038_v51, %v5038_v51  ;;  %v4545_v47 = vadd.f32 %v13680_v45, %v3863_v1  ;;  %v13729_v57 = vld [vmem:[#allocation2 + $0x64] sm:$0xf]  ;;  %7708 = vmatpush.bf16.msrb.mxu1 %v11564_v49  ;;  %v6607_v58 = vunpack.c.l.b16 %v6508_v21  ;;  %v11499_v1 = vld [vmem:[#allocation2 + $0x18] sm:$0xff] }
 0x2f0   : > { %5466 = vst [vmem:[#allocation2 + $0x6c] sm:$0xf] %v5465_v33  ;;  %6140 = vmatmul.bf16.gmra.mxu1 %v6024_v31  ;;  %v13734_v45 = vld [vmem:[#allocation2 + $0x68] sm:$0x1]  ;;  %v5786_v2 = vshll.u32 %v13729_v57, 16  ;;  %v5790_v44 = vshrl.u32 %v13729_v57, 16  ;;  %v5783_v39 = vor.u32 %v5782_v41, %v5779_v14  ;;  %v13752_v31 = vpop.f32.mrf.mxu1 }
 0x2f1   : > { %v5230_v29 = vshrl.u32 %v5070_v40, 16  ;;  %v4971_v4 = vadd.f32 %v13662_v56, %v4545_v47  ;;  %v5233_v12 = vshll.u32 %v5070_v40, 16  ;;  %v13739_v13 = vpop.f32.mrf.mxu0  ;;  %v5796_v22 = vshll.u32 %v13734_v45, 16 }
 0x2f2   : > { %7040 = vmatmul.bf16.gmra.mxu0 %v11539_v53  ;;  %v5788_v16 = vrot.slane %v5786_v2, 5  ;;  %v5792_v28 = vrot.slane %v5790_v44, 4  ;;  %v13745_v10 = vpack.c.b16 %v6607_v58, %v6606_v38  ;;  %v5784_v37 = vrot.slane %v5783_v39, 4  ;;  %v15899_v2 = vld [vmem:[#allocation18_spill] sm:$0xff] }
 0x2f3   : > { %v5232_v36 = vrot.slane %v5230_v29, 7  ;;  %v5007_v56 = vadd.f32 %v13565_v52, %v4971_v4  ;;  %v5798_v19 = vrot.slane %v5796_v22, 5  ;;  %v5471_v4 = vld [vmem:[#allocation2 + $0x78] sm:$0xf]  ;;  %v6514_v58 = vrot.slane %v13626_v46, 5  ;;  %v15901_v22 = vld [vmem:[#allocation17_spill] sm:$0xff] }
 0x2f4   : > { %v3812_v43 = vpop.f32.mrf.mxu2  ;;  %v5793_v23 = vor.u32 %v5792_v28, %v5788_v16  ;;  %v5789_v53 = vsel %vm11791_vm2, %v5784_v37, %v5788_v16  ;;  %v11540_v16 = vld [vmem:[#allocation2 + $0x30] sm:$0xff]  ;;  %v15900_v28 = vld [vmem:[#allocation19_spill] sm:$0xff] }
 0x2f5   : > { %v5235_v55 = vor.u32 %v5233_v12, %v5232_v36  ;;  %v5237_v61 = vrot.slane %v5232_v36, 4  ;;  %v5039_v48 = vmax.f32 %v5007_v56, 0.0  ;;  %v3864_v59 = vadd.f32 %v3812_v43, %v3549_v8 }
 0x2f6   : > { %v5794_v0 = vrot.slane %v5793_v23, 4  ;;  %v13754_v33 = vpop.f32.mrf.mxu3  ;;  %v6001_v49 = vunpack.c.l.b16 %v5789_v53 }
 0x2f7   : > { %v5236_v35 = vsel %vm11877_vm8, %v5228_v62, %v5235_v55  ;;  %v5469_v50 = vsel %vm13232_vm1, %v5237_v61, %v5468_v32  ;;  %v5071_v60 = vpack.c.bf16 %v5039_v48, %v5039_v48  ;;  %v4546_v51 = vadd.f32 %v13704_v18, %v3864_v59  ;;  %v6425_v62 = vld [vmem:[#allocation2 + $0x48] sm:$0xe]  ;;  %v5538_v61 = vld [vmem:[#allocation2 + $0x6c] sm:$0xf] }
 0x2f8   : > { %5467 = vst [vmem:[#allocation2 + $0x70] sm:$0xf] %v5236_v35  ;;  %v5799_v18 = vsel %vm11791_vm2, %v5794_v0, %v5798_v19  ;;  %v10867_v38 = vrot.slane %v6425_v62, 9  ;;  %v3551_v55 = vadd.f32 %v15901_v22, %v15900_v28  ;;  %v5475_v62 = vld [vmem:[#allocation2 + $0x80] sm:$0x1] }
 0x2f9   : > { %5470 = vst [vmem:[#allocation2 + $0x74] sm:$0x1] %v5469_v50  ;;  %v5239_v40 = vshrl.u32 %v5071_v60, 16  ;;  %v4972_v47 = vadd.f32 %v13691_v17, %v4546_v51  ;;  %6348 = vmatmul.bf16.gmra.mxu2 %v11499_v1  ;;  %v13761_v24 = vpop.f32.mrf.mxu0  ;;  %v5242_v20 = vshll.u32 %v5071_v60, 16  ;;  %v6002_v29 = vunpack.c.l.b16 %v5799_v18  ;;  %v13784_v60 = vpop.f32.mrf.mxu1  ;;  %v6426_v28 = vld [vmem:[#allocation2 + $0x54] sm:$0xe] }
 0x2fa   : > { %v6511_v17 = vrot.slane %v13622_v3, 5  ;;  %v5804_v1 = vshll.u32 %v5538_v61, 16 }
 0x2fb   : > { %v5241_v8 = vrot.slane %v5239_v40, 7  ;;  %v5008_v21 = vadd.f32 %v13565_v52, %v4972_v47  ;;  %v6025_v36 = vpack.c.b16 %v6002_v29, %v6001_v49 }
 0x2fc   : > { %v3815_v27 = vpop.f32.mrf.mxu2  ;;  %v6512_v56 = vsel %vm12248_vm13, %v10867_v38, %v6511_v17  ;;  %v6513_v14 = vrot.slane %v6511_v17, 4  ;;  %v5806_v18 = vrot.slane %v5804_v1, 5  ;;  %v6518_v1 = vrot.slane %v13682_v6, 5 }
 0x2fd   : > { %v5244_v12 = vor.u32 %v5242_v20, %v5241_v8  ;;  %v5040_v15 = vmax.f32 %v5008_v21, 0.0  ;;  %v3865_v44 = vadd.f32 %v3815_v27, %v15899_v2  ;;  %v5245_v32 = vrot.slane %v5241_v8, 4 }
 0x2fe   : > { %6731 = vmatmul.bf16.gmra.mxu3 %v13684_v9  ;;  %v13775_v9 = vpop.f32.mrf.mxu3  ;;  %v6515_v46 = vsel %vm12248_vm13, %v6513_v14, %v6514_v58  ;;  %v6608_v35 = vunpack.c.l.b16 %v6512_v56  ;;  %v11500_v56 = vld [vmem:[#allocation2 + $0x24] sm:$0xff] }
 0x2ff   : > { %v5472_v43 = vsel %vm13196_vm0, %v5244_v12, %v5471_v4  ;;  %v5072_v41 = vpack.c.bf16 %v5040_v15, %v5040_v15  ;;  %v4547_v3 = vadd.f32 %v13727_v54, %v3865_v44  ;;  %v13777_v48 = vld [vmem:[#allocation2 + $0x70] sm:$0xf]  ;;  %v5801_v54 = vshrl.u32 %v5538_v61, 16 }
 0x300   : > { %5473 = vst [vmem:[#allocation2 + $0x78] sm:$0xf] %v5472_v43  ;;  %6145 = vmatmul.bf16.gmra.mxu1 %v6025_v36  ;;  %v13782_v23 = vld [vmem:[#allocation2 + $0x74] sm:$0x1]  ;;  %v5810_v37 = vshll.u32 %v13777_v48, 16  ;;  %v5814_v0 = vshrl.u32 %v13777_v48, 16 }
 0x301   : > { %v5247_v59 = vshrl.u32 %v5072_v41, 16  ;;  %v4973_v39 = vadd.f32 %v13711_v42, %v4547_v3  ;;  %v5250_v50 = vshll.u32 %v5072_v41, 16  ;;  %v13786_v51 = vpop.f32.mrf.mxu0  ;;  %v5803_v47 = vrot.slane %v5801_v54, 4  ;;  %v5478_v54 = vld [vmem:[#allocation2 + $0x84] sm:$0xf] }
 0x302   : > { %7045 = vmatmul.bf16.gmra.mxu0 %v11540_v16  ;;  %v6609_v42 = vunpack.c.l.b16 %v6515_v46  ;;  %v5812_v8 = vrot.slane %v5810_v37, 5  ;;  %v5816_v20 = vrot.slane %v5814_v0, 4  ;;  %v5820_v21 = vshll.u32 %v13782_v23, 16 }
 0x303   : > { %v5249_v19 = vrot.slane %v5247_v59, 7  ;;  %v5009_v40 = vadd.f32 %v13565_v52, %v4973_v39  ;;  %v5807_v38 = vor.u32 %v5806_v18, %v5803_v47 }
 0x304   : > { %v3817_v53 = vpop.f32.mrf.mxu2  ;;  %v5817_v17 = vor.u32 %v5816_v20, %v5812_v8  ;;  %v13792_v12 = vpack.c.b16 %v6609_v42, %v6608_v35  ;;  %v5822_v43 = vrot.slane %v5820_v21, 5  ;;  %v11541_v21 = vld [vmem:[#allocation2 + $0x3c] sm:$0xff] }
 0x305   : > { %v5252_v29 = vor.u32 %v5250_v50, %v5249_v19  ;;  %v5254_v4 = vrot.slane %v5249_v19, 4  ;;  %v5041_v27 = vmax.f32 %v5009_v40, 0.0  ;;  %v3866_v49 = vadd.f32 %v3817_v53, %v3551_v55  ;;  %v15902_v19 = vld [vmem:[#allocation3_spill] sm:$0xff] }
 0x306   : > { %v5808_v14 = vrot.slane %v5807_v38, 4  ;;  %v5818_v58 = vrot.slane %v5817_v17, 4  ;;  %v13799_v41 = vpop.f32.mrf.mxu3  ;;  %v10868_v50 = vrot.slane %v6426_v28, 9  ;;  %v6521_v53 = vrot.slane %v13689_v11, 5 }
 0x307   : > { %v5253_v15 = vsel %vm11877_vm8, %v5245_v32, %v5252_v29  ;;  %v5476_v2 = vsel %vm13232_vm1, %v5254_v4, %v5475_v62  ;;  %v5073_v44 = vpack.c.bf16 %v5041_v27, %v5041_v27  ;;  %v4548_v36 = vadd.f32 %v13754_v33, %v3866_v49  ;;  %v15903_v29 = vld [vmem:[#allocation4_spill] sm:$0xff]  ;;  %v5540_v49 = vld [vmem:[#allocation2 + $0x78] sm:$0xf] }
 0x308   : > { %5474 = vst [vmem:[#allocation2 + $0x7c] sm:$0xf] %v5253_v15  ;;  %v5813_v22 = vsel %vm11791_vm2, %v5808_v14, %v5812_v8  ;;  %v5823_v33 = vsel %vm11791_vm2, %v5818_v58, %v5822_v43  ;;  %v6519_v42 = vsel %vm12248_vm13, %v10868_v50, %v6518_v1  ;;  %v6520_v62 = vrot.slane %v6518_v1, 4  ;;  %v15904_v4 = vld [vmem:[#allocation20_spill] sm:$0xff] }
 0x309   : > { %5477 = vst [vmem:[#allocation2 + $0x80] sm:$0x1] %v5476_v2  ;;  %v5256_v3 = vshrl.u32 %v5073_v44, 16  ;;  %v4974_v16 = vadd.f32 %v13739_v13, %v4548_v36  ;;  %6353 = vmatmul.bf16.gmra.mxu2 %v11500_v56  ;;  %v5259_v61 = vshll.u32 %v5073_v44, 16  ;;  %v6004_v59 = vunpack.c.l.b16 %v5823_v33  ;;  %v13811_v39 = vpop.f32.mrf.mxu0  ;;  %v11563_v44 = vld [vmem:[%s15833_s3 + $0x110] sm:$0xff] }
 0x30a   : > { %v13802_v32 = vpop.f32.mrf.mxu1  ;;  %v6003_v35 = vunpack.c.l.b16 %v5813_v22  ;;  %v3553_v27 = vadd.f32 %v15904_v4, %v15903_v29  ;;  %v6522_v11 = vsel %vm12248_vm13, %v6520_v62, %v6521_v53  ;;  %v6610_v36 = vunpack.c.l.b16 %v6519_v42  ;;  %7709 = vmatpush.bf16.msrb.mxu1 %v11563_v44 }
 0x30b   : > { %v13808_v55 = vrot.slane %v5256_v3, 7  ;;  %v5010_v46 = vadd.f32 %v13565_v52, %v4974_v16  ;;  %v5828_v58 = vshll.u32 %v5540_v49, 16  ;;  %v6611_v33 = vunpack.c.l.b16 %v6522_v11 }
 0x30c   : > { %v3820_v13 = vpop.f32.mrf.mxu2  ;;  %v6026_v47 = vpack.c.b16 %v6004_v59, %v6003_v35 }
 0x30d   : > { %v5261_v37 = vor.u32 %v5259_v61, %v13808_v55  ;;  %v5042_v0 = vmax.f32 %v5010_v46, 0.0  ;;  %v3867_v40 = vadd.f32 %v3820_v13, %v15902_v19  ;;  %v5262_v18 = vrot.slane %v13808_v55, 4  ;;  %v5482_v55 = vld [vmem:[#allocation2 + $0x8c] sm:$0x1] }
 0x30e   : > { %6736 = vmatmul.bf16.gmra.mxu3 %v13697_v25  ;;  %v5830_v46 = vrot.slane %v5828_v58, 5 }
 0x30f   : > { %v5479_v8 = vsel %vm13196_vm0, %v5261_v37, %v5478_v54  ;;  %v5074_v6 = vpack.c.bf16 %v5042_v0, %v5042_v0  ;;  %v4549_v20 = vadd.f32 %v13775_v9, %v3867_v40  ;;  %v13828_v38 = vld [vmem:[#allocation2 + $0x7c] sm:$0xf]  ;;  %v5825_v9 = vshrl.u32 %v5540_v49, 16  ;;  %v6427_v49 = vld [vmem:[#allocation2 + $0x60] sm:$0xe] }
 0x310   : > { %5480 = vst [vmem:[#allocation2 + $0x84] sm:$0xf] %v5479_v8  ;;  %6150 = vmatmul.bf16.gmra.mxu1 %v6026_v47  ;;  %v13833_v2 = vld [vmem:[#allocation2 + $0x80] sm:$0x1]  ;;  %v5834_v43 = vshll.u32 %v13828_v38, 16  ;;  %v5838_v3 = vshrl.u32 %v13828_v38, 16  ;;  %v13846_v40 = vpack.c.b16 %v6611_v33, %v6610_v36 }
 0x311   : > { %v13826_v25 = vpop.f32.mrf.mxu3  ;;  %v5264_v17 = vshrl.u32 %v5074_v6, 16  ;;  %v4975_v15 = vadd.f32 %v13761_v24, %v4549_v20  ;;  %v5267_v56 = vshll.u32 %v5074_v6, 16  ;;  %v13843_v28 = vpop.f32.mrf.mxu0  ;;  %v5827_v22 = vrot.slane %v5825_v9, 4  ;;  %v11501_v8 = vld [vmem:[#allocation2 + $0x30] sm:$0xff] }
 0x312   : > { %v13838_v14 = vpop.f32.mrf.mxu1  ;;  %7050 = vmatmul.bf16.gmra.mxu0 %v11541_v21  ;;  %v5836_v59 = vrot.slane %v5834_v43, 5  ;;  %v5840_v54 = vrot.slane %v5838_v3, 4  ;;  %v5844_v13 = vshll.u32 %v13833_v2, 16  ;;  %v10869_v43 = vrot.slane %v6427_v49, 9  ;;  %v13892_v49 = vld [vmem:[%s15832_s2] ss:$0 sm:$0xff] }
 0x313   : > { %v5266_v16 = vrot.slane %v5264_v17, 7  ;;  %v5011_v24 = vadd.f32 %v13565_v52, %v4975_v15  ;;  %v5831_v0 = vor.u32 %v5830_v46, %v5827_v22  ;;  %v6525_v3 = vrot.slane %v13729_v57, 5  ;;  %v15905_v22 = vld [vmem:[#allocation21_spill] sm:$0xff] }
 0x314   : > { %v3822_v61 = vpop.f32.mrf.mxu2  ;;  %v5841_v19 = vor.u32 %v5840_v54, %v5836_v59  ;;  %v5846_v21 = vrot.slane %v5844_v13, 5  ;;  %v6528_v46 = vrot.slane %v13734_v45, 5 }
 0x315   : > { %v5269_v35 = vor.u32 %v5267_v56, %v5266_v16  ;;  %v5271_v50 = vrot.slane %v5266_v16, 4  ;;  %v5043_v1 = vmax.f32 %v5011_v24, 0.0  ;;  %v3868_v37 = vadd.f32 %v3822_v61, %v3553_v27  ;;  %v5485_v56 = vld [vmem:[#allocation2 + $0x90] sm:$0xf] }
 0x316   : > { %v5832_v6 = vrot.slane %v5831_v0, 4  ;;  %v5842_v20 = vrot.slane %v5841_v19, 4  ;;  %v6526_v61 = vsel %vm12248_vm13, %v10869_v43, %v6525_v3 }
 0x317   : > { %v5270_v47 = vsel %vm11877_vm8, %v5262_v18, %v5269_v35  ;;  %v5483_v42 = vsel %vm13232_vm1, %v5271_v50, %v5482_v55  ;;  %v5075_v62 = vpack.c.bf16 %v5043_v1, %v5043_v1  ;;  %v4550_v53 = vadd.f32 %v13799_v41, %v3868_v37  ;;  %v11542_v35 = vld [vmem:[#allocation2 + $0x48] sm:$0xff]  ;;  %v15906_v50 = vld [vmem:[#allocation6_spill] sm:$0xff]  ;;  %v5542_v0 = vld [vmem:[#allocation2 + $0x84] sm:$0xf] }
 0x318   : > { %5481 = vst [vmem:[#allocation2 + $0x88] sm:$0xf] %v5270_v47  ;;  %v5837_v11 = vsel %vm11791_vm2, %v5832_v6, %v5836_v59  ;;  %v5847_v41 = vsel %vm11791_vm2, %v5842_v20, %v5846_v21  ;;  %v15907_v1 = vld [vmem:[#allocation5_spill] sm:$0xff]  ;;  %v5852_v20 = vshll.u32 %v5542_v0, 16 }
 0x319   : > { %v13853_v29 = vpop.f32.mrf.mxu3  ;;  %5484 = vst [vmem:[#allocation2 + $0x8c] sm:$0x1] %v5483_v42  ;;  %v5273_v4 = vshrl.u32 %v5075_v62, 16  ;;  %v4976_v27 = vadd.f32 %v13786_v51, %v4550_v53  ;;  %6358 = vmatmul.bf16.gmra.mxu2 %v11501_v8  ;;  %v5276_v15 = vshll.u32 %v5075_v62, 16  ;;  %v6006_v44 = vunpack.c.l.b16 %v5847_v41  ;;  %v13863_v36 = vpop.f32.mrf.mxu0 }
 0x31a   : > { %v13856_v18 = vpop.f32.mrf.mxu1  ;;  %v6005_v51 = vunpack.c.l.b16 %v5837_v11  ;;  %v3555_v37 = vadd.f32 %v15907_v1, %v15906_v50  ;;  %v6612_v53 = vunpack.c.l.b16 %v6526_v61 }
 0x31b   : > { %v5275_v17 = vrot.slane %v5273_v4, 7  ;;  %v5012_v9 = vadd.f32 %v13565_v52, %v4976_v27  ;;  %v6527_v52 = vrot.slane %v6525_v3, 4 }
 0x31c   : > { %v3825_v58 = vpop.f32.mrf.mxu2  ;;  %v6027_v55 = vpack.c.b16 %v6006_v44, %v6005_v51  ;;  %v5854_v44 = vrot.slane %v5852_v20, 5 }
 0x31d   : > { %v5278_v16 = vor.u32 %v5276_v15, %v5275_v17  ;;  %v5044_v24 = vmax.f32 %v5012_v9, 0.0  ;;  %v3869_v33 = vadd.f32 %v3825_v58, %v15905_v22  ;;  %v5279_v59 = vrot.slane %v5275_v17, 4  ;;  %v5489_v15 = vld [vmem:[#allocation2 + $0x98] sm:$0x1] }
 0x31e   : > { %6741 = vmatmul.bf16.gmra.mxu3 %v13745_v10  ;;  %v6529_v45 = vsel %vm12248_vm13, %v6527_v52, %v6528_v46 }
 0x31f   : > { %v5486_v54 = vsel %vm13196_vm0, %v5278_v16, %v5485_v56  ;;  %v5076_v13 = vpack.c.bf16 %v5044_v24, %v5044_v24  ;;  %v4551_v57 = vadd.f32 %v13826_v25, %v3869_v33  ;;  %v13878_v19 = vld [vmem:[#allocation2 + $0x88] sm:$0xf]  ;;  %v5849_v25 = vshrl.u32 %v5542_v0, 16 }
 0x320   : > { %5487 = vst [vmem:[#allocation2 + $0x90] sm:$0xf] %v5486_v54  ;;  %6155 = vmatmul.bf16.gmra.mxu1 %v6027_v55  ;;  %v13883_v62 = vld [vmem:[#allocation2 + $0x8c] sm:$0x1]  ;;  %v5858_v21 = vshll.u32 %v13878_v19, 16  ;;  %v5862_v4 = vshrl.u32 %v13878_v19, 16  ;;  %v6613_v17 = vunpack.c.l.b16 %v6529_v45 }
 0x321   : > { %v13876_v10 = vpop.f32.mrf.mxu3  ;;  %v5281_v47 = vshrl.u32 %v5076_v13, 16  ;;  %v4977_v42 = vadd.f32 %v13811_v39, %v4551_v57  ;;  %v5284_v8 = vshll.u32 %v5076_v13, 16  ;;  %v13895_v11 = vpop.f32.mrf.mxu0  ;;  %v5851_v41 = vrot.slane %v5849_v25, 4  ;;  %v11502_v13 = vld [vmem:[#allocation2 + $0x3c] sm:$0xff]  ;;  %v6428_v45 = vld [vmem:[#allocation2 + $0x6c] sm:$0xe] }
 0x322   : > { %v13885_v6 = vpop.f32.mrf.mxu1  ;;  %7055 = vmatmul.bf16.gmra.mxu0 %v11542_v35  ;;  %v5860_v56 = vrot.slane %v5858_v21, 5  ;;  %v5864_v58 = vrot.slane %v5862_v4, 4  ;;  %v5868_v51 = vshll.u32 %v13883_v62, 16  ;;  %v13898_v55 = vpack.c.b16 %v6613_v17, %v6612_v53  ;;  %v5492_v21 = vld [vmem:[#allocation2 + $0x9c] sm:$0xf] }
 0x323   : > { %v5283_v27 = vrot.slane %v5281_v47, 7  ;;  %v5013_v39 = vadd.f32 %v13892_v49, %v4977_v42  ;;  %v5855_v22 = vor.u32 %v5854_v44, %v5851_v41 }
 0x324   : > { %v3827_v9 = vpop.f32.mrf.mxu2  ;;  %v5865_v33 = vor.u32 %v5864_v58, %v5860_v56  ;;  %v5870_v50 = vrot.slane %v5868_v51, 5  ;;  %v6535_v51 = vrot.slane %v13782_v23, 5 }
 0x325   : > { %v5286_v43 = vor.u32 %v5284_v8, %v5283_v27  ;;  %v5288_v3 = vrot.slane %v5283_v27, 4  ;;  %v5045_v16 = vmax.f32 %v5013_v39, 0.0  ;;  %v3870_v24 = vadd.f32 %v3827_v9, %v3555_v37 }
 0x326   : > { %v5856_v57 = vrot.slane %v5855_v22, 4  ;;  %v5866_v35 = vrot.slane %v5865_v33, 4  ;;  %v10870_v27 = vrot.slane %v6428_v45, 9  ;;  %v6532_v39 = vrot.slane %v13777_v48, 5  ;;  %v15909_v22 = vld [vmem:[#allocation8_spill] sm:$0xff]  ;;  %v15910_v33 = vld [vmem:[#allocation7_spill] sm:$0xff] }
 0x327   : > { %v5287_v61 = vsel %vm11877_vm8, %v5279_v59, %v5286_v43  ;;  %v5490_v52 = vsel %vm13232_vm1, %v5288_v3, %v5489_v15  ;;  %v5077_v46 = vpack.c.bf16 %v5045_v16, %v5045_v16  ;;  %v4552_v54 = vadd.f32 %v13853_v29, %v3870_v24  ;;  %v15908_v15 = vld [vmem:[#allocation22_spill] sm:$0xff] }
 0x328   : > { %5488 = vst [vmem:[#allocation2 + $0x94] sm:$0xf] %v5287_v61  ;;  %v5861_v47 = vsel %vm11791_vm2, %v5856_v57, %v5860_v56  ;;  %v5871_v29 = vsel %vm11791_vm2, %v5866_v35, %v5870_v50  ;;  %v6533_v56 = vsel %vm12248_vm13, %v10870_v27, %v6532_v39  ;;  %v6534_v58 = vrot.slane %v6532_v39, 4  ;;  %v11543_v24 = vld [vmem:[#allocation2 + $0x54] sm:$0xff]  ;;  %v11562_v35 = vld [vmem:[%s15833_s3 + $0x108] sm:$0xff] }
 0x329   : > { %v13905_v1 = vpop.f32.mrf.mxu3  ;;  %5491 = vst [vmem:[#allocation2 + $0x98] sm:$0x1] %v5490_v52  ;;  %v5290_v37 = vshrl.u32 %v5077_v46, 16  ;;  %v4978_v0 = vadd.f32 %v13843_v28, %v4552_v54  ;;  %6363 = vmatmul.bf16.gmra.mxu2 %v11502_v13  ;;  %v5293_v25 = vshll.u32 %v5077_v46, 16  ;;  %v6008_v8 = vunpack.c.l.b16 %v5871_v29  ;;  %v13917_v20 = vpop.f32.mrf.mxu0  ;;  %v5544_v52 = vld [vmem:[#allocation2 + $0x90] sm:$0xf]  ;;  %7710 = vmatpush.bf16.msrb.mxu1 %v11562_v35 }
 0x32a   : > { %v13908_v59 = vpop.f32.mrf.mxu1  ;;  %v6007_v4 = vunpack.c.l.b16 %v5861_v47  ;;  %v3557_v61 = vadd.f32 %v15910_v33, %v15909_v22  ;;  %v6536_v23 = vsel %vm12248_vm13, %v6534_v58, %v6535_v51  ;;  %v6614_v50 = vunpack.c.l.b16 %v6533_v56  ;;  %v11503_v22 = vld [vmem:[#allocation2 + $0x48] sm:$0xff] }
 0x32b   : > { %v13914_v42 = vrot.slane %v5290_v37, 7  ;;  %v5014_v53 = vadd.f32 %v13892_v49, %v4978_v0  ;;  %v5876_v0 = vshll.u32 %v5544_v52, 16 }
 0x32c   : > { %v3830_v28 = vpop.f32.mrf.mxu2  ;;  %v6028_v44 = vpack.c.b16 %v6008_v8, %v6007_v4  ;;  %v5496_v8 = vld [vmem:[#allocation2 + $0xa4] sm:$0x1] }
 0x32d   : > { %v5295_v41 = vor.u32 %v5293_v25, %v13914_v42  ;;  %v5046_v17 = vmax.f32 %v5014_v53, 0.0  ;;  %v3871_v9 = vadd.f32 %v3830_v28, %v15908_v15  ;;  %v5296_v43 = vrot.slane %v13914_v42, 4 }
 0x32e   : > { %6746 = vmatmul.bf16.gmra.mxu3 %v13792_v12  ;;  %v6615_v53 = vunpack.c.l.b16 %v6536_v23  ;;  %v5878_v28 = vrot.slane %v5876_v0, 5 }
 0x32f   : > { %v5493_v3 = vsel %vm13196_vm0, %v5295_v41, %v5492_v21  ;;  %v5078_v48 = vpack.c.bf16 %v5046_v17, %v5046_v17  ;;  %v4553_v16 = vadd.f32 %v13876_v10, %v3871_v9  ;;  %v13934_v46 = vld [vmem:[#allocation2 + $0x94] sm:$0xf]  ;;  %v5873_v10 = vshrl.u32 %v5544_v52, 16 }
 0x330   : > { %5494 = vst [vmem:[#allocation2 + $0x9c] sm:$0xf] %v5493_v3  ;;  %6160 = vmatmul.bf16.gmra.mxu1 %v6028_v44  ;;  %v13939_v57 = vld [vmem:[#allocation2 + $0x98] sm:$0x1]  ;;  %v5882_v45 = vshll.u32 %v13934_v46, 16  ;;  %v5886_v47 = vshrl.u32 %v13934_v46, 16  ;;  %v13952_v51 = vpack.c.b16 %v6615_v53, %v6614_v50 }
 0x331   : > { %v13932_v12 = vpop.f32.mrf.mxu3  ;;  %v5298_v54 = vshrl.u32 %v5078_v48, 16  ;;  %v4979_v13 = vadd.f32 %v13863_v36, %v4553_v16  ;;  %v5301_v37 = vshll.u32 %v5078_v48, 16  ;;  %v5875_v36 = vrot.slane %v5873_v10, 4  ;;  %v13950_v44 = vpop.f32.mrf.mxu0  ;;  %v6429_v10 = vld [vmem:[#allocation2 + $0x78] sm:$0xe] }
 0x332   : > { %7060 = vmatmul.bf16.gmra.mxu0 %v11543_v24  ;;  %v13947_v25 = vpop.f32.mrf.mxu1  ;;  %v5884_v4 = vrot.slane %v5882_v45, 5  ;;  %v5888_v27 = vrot.slane %v5886_v47, 4  ;;  %v5892_v39 = vshll.u32 %v13939_v57, 16  ;;  %v5499_v45 = vld [vmem:[#allocation2 + $0xa8] sm:$0xf] }
 0x333   : > { %v5300_v29 = vrot.slane %v5298_v54, 7  ;;  %v5015_v42 = vadd.f32 %v13892_v49, %v4979_v13  ;;  %v5879_v56 = vor.u32 %v5878_v28, %v5875_v36  ;;  %v6539_v36 = vrot.slane %v13828_v38, 5 }
 0x334   : > { %v3832_v21 = vpop.f32.mrf.mxu2  ;;  %v5889_v58 = vor.u32 %v5888_v27, %v5884_v4 }
 0x335   : > { %v5303_v41 = vor.u32 %v5301_v37, %v5300_v29  ;;  %v5305_v17 = vrot.slane %v5300_v29, 4  ;;  %v5047_v15 = vmax.f32 %v5015_v42, 0.0  ;;  %v3872_v9 = vadd.f32 %v3832_v21, %v3557_v61  ;;  %v15911_v21 = vld [vmem:[#allocation9_spill] sm:$0xff] }
 0x336   : > { %v5880_v33 = vrot.slane %v5879_v56, 4  ;;  %v5890_v52 = vrot.slane %v5889_v58, 4  ;;  %v5894_v61 = vrot.slane %v5892_v39, 5  ;;  %v10871_v42 = vrot.slane %v6429_v10, 9  ;;  %v11544_v58 = vld [vmem:[#allocation2 + $0x60] sm:$0xff] }
 0x337   : > { %v5304_v3 = vsel %vm11877_vm8, %v5296_v43, %v5303_v41  ;;  %v5497_v48 = vsel %vm13232_vm1, %v5305_v17, %v5496_v8  ;;  %v5079_v16 = vpack.c.bf16 %v5047_v15, %v5047_v15  ;;  %v4554_v24 = vadd.f32 %v13905_v1, %v3872_v9 }
 0x338   : > { %5495 = vst [vmem:[#allocation2 + $0xa0] sm:$0xf] %v5304_v3  ;;  %v5885_v43 = vsel %vm11791_vm2, %v5880_v33, %v5884_v4  ;;  %v5895_v35 = vsel %vm11791_vm2, %v5890_v52, %v5894_v61  ;;  %v6540_v27 = vsel %vm12248_vm13, %v10871_v42, %v6539_v36  ;;  %v6541_v39 = vrot.slane %v6539_v36, 4  ;;  %v15912_v3 = vld [vmem:[#allocation23_spill] sm:$0xff] }
 0x339   : > { %v13959_v23 = vpop.f32.mrf.mxu3  ;;  %5498 = vst [vmem:[#allocation2 + $0xa4] sm:$0x1] %v5497_v48  ;;  %v5307_v54 = vshrl.u32 %v5079_v16, 16  ;;  %v4980_v13 = vadd.f32 %v13895_v11, %v4554_v24  ;;  %6368 = vmatmul.bf16.gmra.mxu2 %v11503_v22  ;;  %v5310_v50 = vshll.u32 %v5079_v16, 16  ;;  %v6010_v0 = vunpack.c.l.b16 %v5895_v35  ;;  %v15913_v48 = vld [vmem:[#allocation10_spill] sm:$0xff] }
 0x33a   : > { %v6009_v29 = vunpack.c.l.b16 %v5885_v43  ;;  %v6542_v41 = vrot.slane %v13833_v2, 5  ;;  %v5546_v24 = vld [vmem:[#allocation2 + $0x9c] sm:$0xf] }
 0x33b   : > { %v5309_v1 = vrot.slane %v5307_v54, 7  ;;  %v5016_v37 = vadd.f32 %v13892_v49, %v4980_v13  ;;  %v5897_v61 = vshrl.u32 %v5546_v24, 16  ;;  %v6616_v54 = vunpack.c.l.b16 %v6540_v27 }
 0x33c   : > { %v3835_v47 = vpop.f32.mrf.mxu2  ;;  %v6029_v4 = vpack.c.b16 %v6010_v0, %v6009_v29  ;;  %v6543_v2 = vsel %vm12248_vm13, %v6541_v39, %v6542_v41  ;;  %v5900_v10 = vshll.u32 %v5546_v24, 16 }
 0x33d   : > { %v5312_v11 = vor.u32 %v5310_v50, %v5309_v1  ;;  %v5048_v53 = vmax.f32 %v5016_v37, 0.0  ;;  %v13968_v8 = vpop.f32.mrf.mxu1  ;;  %v3873_v28 = vadd.f32 %v3835_v47, %v15911_v21  ;;  %v5313_v17 = vrot.slane %v5309_v1, 4 }
 0x33e   : > { %6751 = vmatmul.bf16.gmra.mxu3 %v13846_v40  ;;  %v3559_v40 = vadd.f32 %v15913_v48, %v15912_v3  ;;  %v5899_v37 = vrot.slane %v5897_v61, 4  ;;  %v6617_v0 = vunpack.c.l.b16 %v6543_v2  ;;  %v5902_v29 = vrot.slane %v5900_v10, 5  ;;  %v11504_v3 = vld [vmem:[#allocation2 + $0x54] sm:$0xff] }
 0x33f   : > { %v5500_v15 = vsel %vm13196_vm0, %v5312_v11, %v5499_v45  ;;  %v5080_v38 = vpack.c.bf16 %v5048_v53, %v5048_v53  ;;  %v4555_v9 = vadd.f32 %v13932_v12, %v3873_v28  ;;  %v13978_v56 = vpop.f32.mrf.mxu0  ;;  %v13984_v22 = vld [vmem:[#allocation2 + $0xa0] sm:$0xf]  ;;  %v5503_v45 = vld [vmem:[#allocation2 + $0xb0] sm:$0x1] }
 0x340   : > { %5501 = vst [vmem:[#allocation2 + $0xa8] sm:$0xf] %v5500_v15  ;;  %6165 = vmatmul.bf16.gmra.mxu1 %v6029_v4  ;;  %v13989_v12 = vld [vmem:[#allocation2 + $0xa4] sm:$0x1]  ;;  %v5906_v43 = vshll.u32 %v13984_v22, 16  ;;  %v5910_v35 = vshrl.u32 %v13984_v22, 16  ;;  %v5903_v27 = vor.u32 %v5902_v29, %v5899_v37  ;;  %v13997_v41 = vpack.c.b16 %v6617_v0, %v6616_v54 }
 0x341   : > { %v13982_v16 = vpop.f32.mrf.mxu3  ;;  %v5315_v33 = vshrl.u32 %v5080_v38, 16  ;;  %v4981_v52 = vadd.f32 %v13917_v20, %v4555_v9  ;;  %v5318_v13 = vshll.u32 %v5080_v38, 16  ;;  %v5916_v36 = vshll.u32 %v13989_v12, 16 }
 0x342   : > { %7065 = vmatmul.bf16.gmra.mxu0 %v11544_v58  ;;  %v5908_v20 = vrot.slane %v5906_v43, 5  ;;  %v5912_v42 = vrot.slane %v5910_v35, 4  ;;  %v5904_v24 = vrot.slane %v5903_v27, 4  ;;  %v11561_v43 = vld [vmem:[%s15833_s3 + $0x100] sm:$0xff] }
 0x343   : > { %v5317_v1 = vrot.slane %v5315_v33, 7  ;;  %v5017_v50 = vadd.f32 %v13892_v49, %v4981_v52  ;;  %7711 = vmatpush.bf16.msrb.mxu1 %v11561_v43 }
 0x344   : > { %v3837_v47 = vpop.f32.mrf.mxu2  ;;  %v5913_v39 = vor.u32 %v5912_v42, %v5908_v20  ;;  %v5909_v54 = vsel %vm11791_vm2, %v5904_v24, %v5908_v20  ;;  %v15914_v42 = vld [vmem:[#allocation11_spill] sm:$0xff] }
 0x345   : > { %v5320_v11 = vor.u32 %v5318_v13, %v5317_v1  ;;  %v5322_v53 = vrot.slane %v5317_v1, 4  ;;  %v5049_v21 = vmax.f32 %v5017_v50, 0.0  ;;  %v13995_v28 = vpop.f32.mrf.mxu1  ;;  %v3874_v4 = vadd.f32 %v3837_v47, %v3559_v40 }
 0x346   : > { %v5914_v2 = vrot.slane %v5913_v39, 4  ;;  %v5918_v40 = vrot.slane %v5916_v36, 5 }
 0x347   : > { %v5321_v15 = vsel %vm11877_vm8, %v5313_v17, %v5320_v11  ;;  %v5504_v38 = vsel %vm13232_vm1, %v5322_v53, %v5503_v45  ;;  %v5081_v9 = vpack.c.bf16 %v5049_v21, %v5049_v21  ;;  %v4556_v58 = vadd.f32 %v13959_v23, %v3874_v4  ;;  %v14004_v48 = vpop.f32.mrf.mxu0  ;;  %v5548_v17 = vld [vmem:[#allocation2 + $0xa8] sm:$0xf] }
 0x348   : > { %5502 = vst [vmem:[#allocation2 + $0xac] sm:$0xf] %v5321_v15  ;;  %v5919_v23 = vsel %vm11791_vm2, %v5914_v2, %v5918_v40  ;;  %v5921_v13 = vshrl.u32 %v5548_v17, 16  ;;  %v5924_v10 = vshll.u32 %v5548_v17, 16  ;;  %v6011_v45 = vunpack.c.l.b16 %v5909_v54 }
 0x349   : > { %v14006_v33 = vpop.f32.mrf.mxu3  ;;  %5505 = vst [vmem:[#allocation2 + $0xb0] sm:$0x1] %v5504_v38  ;;  %v5324_v52 = vshrl.u32 %v5081_v9, 16  ;;  %v4982_v61 = vadd.f32 %v13950_v44, %v4556_v58  ;;  %6373 = vmatmul.bf16.gmra.mxu2 %v11504_v3  ;;  %v5327_v1 = vshll.u32 %v5081_v9, 16  ;;  %v6012_v37 = vunpack.c.l.b16 %v5919_v23  ;;  %v5506_v44 = vld [vmem:[#allocation2 + $0xb4] sm:$0xf] }
 0x34a   : > { %v5923_v53 = vrot.slane %v5921_v13, 4  ;;  %v5926_v21 = vrot.slane %v5924_v10, 5  ;;  %v11545_v9 = vld [vmem:[#allocation2 + $0x6c] sm:$0xff] }
 0x34b   : > { %v5326_v35 = vrot.slane %v5324_v52, 7  ;;  %v5018_v50 = vadd.f32 %v13892_v49, %v4982_v61  ;;  %v6030_v11 = vpack.c.b16 %v6012_v37, %v6011_v45  ;;  %v15915_v52 = vld [vmem:[#allocation12_spill] sm:$0xff] }
 0x34c   : > { %v3840_v0 = vpop.f32.mrf.mxu2  ;;  %v3561_v61 = vadd.f32 %v13725_v26, %v15915_v52  ;;  %v5927_v17 = vor.u32 %v5926_v21, %v5923_v53 }
 0x34d   : > { %v5329_v47 = vor.u32 %v5327_v1, %v5326_v35  ;;  %v5050_v29 = vmax.f32 %v5018_v50, 0.0  ;;  %v14017_v20 = vpop.f32.mrf.mxu1  ;;  %v3875_v36 = vadd.f32 %v3840_v0, %v15914_v42  ;;  %v5510_v1 = vld [vmem:[#allocation2 + $0xbc] sm:$0x1] }
 0x34e   : > { %6756 = vmatmul.bf16.gmra.mxu3 %v13898_v55  ;;  %v5928_v42 = vrot.slane %v5927_v17, 4 }
 0x34f   : > { %v5507_v4 = vsel %vm13196_vm0, %v5329_v47, %v5506_v44  ;;  %v5082_v27 = vpack.c.bf16 %v5050_v29, %v5050_v29  ;;  %v4557_v39 = vadd.f32 %v13982_v16, %v3875_v36  ;;  %v14024_v15 = vpop.f32.mrf.mxu0  ;;  %v14026_v38 = vld [vmem:[#allocation2 + $0xac] sm:$0xf]  ;;  %v11576_v16 = vld [vmem:[%s15833_s3 + $0x178] sm:$0xff] }
 0x350   : > { %5508 = vst [vmem:[#allocation2 + $0xb4] sm:$0xf] %v5507_v4  ;;  %6170 = vmatmul.bf16.gmra.mxu1 %v6030_v11  ;;  %v5930_v55 = vshll.u32 %v14026_v38, 16  ;;  %v14032_v2 = vld [vmem:[#allocation2 + $0xb0] sm:$0x1]  ;;  %v5934_v40 = vshrl.u32 %v14026_v38, 16  ;;  %8130 = vmatpush.bf16.msra.mxu2 %v11576_v16 }
 0x351   : > { %v14028_v58 = vpop.f32.mrf.mxu3  ;;  %v5332_v3 = vshrl.u32 %v5082_v27, 16  ;;  %v4983_v24 = vadd.f32 %v13978_v56, %v4557_v39  ;;  %v5335_v13 = vshll.u32 %v5082_v27, 16  ;;  %v5330_v56 = vrot.slane %v5326_v35, 4  ;;  %v11600_v29 = vld [vmem:[%s15833_s3 + $0x1b8] sm:$0xff]  ;;  %v11505_v4 = vld [vmem:[#allocation2 + $0x60] sm:$0xff] }
 0x352   : > { %7070 = vmatmul.bf16.gmra.mxu0 %v11545_v9  ;;  %v5932_v54 = vrot.slane %v5930_v55, 5  ;;  %v5936_v43 = vrot.slane %v5934_v40, 4  ;;  %v5940_v37 = vshll.u32 %v14032_v2, 16  ;;  %8444 = vmatpush.bf16.msra.mxu3 %v11600_v29 }
 0x353   : > { %v5334_v23 = vrot.slane %v5332_v3, 7  ;;  %v5019_v10 = vadd.f32 %v13892_v49, %v4983_v24 }
 0x354   : > { %v3842_v50 = vpop.f32.mrf.mxu2  ;;  %v5937_v36 = vor.u32 %v5936_v43, %v5932_v54  ;;  %v5942_v55 = vrot.slane %v5940_v37, 5  ;;  %v5933_v52 = vsel %vm11791_vm2, %v5928_v42, %v5932_v54  ;;  %v5513_v43 = vld [vmem:[#allocation2 + $0xc0] sm:$0xf] }
 0x355   : > { %v5337_v44 = vor.u32 %v5335_v13, %v5334_v23  ;;  %v5339_v0 = vrot.slane %v5334_v23, 4  ;;  %v5051_v45 = vmax.f32 %v5019_v10, 0.0  ;;  %v14042_v47 = vpop.f32.mrf.mxu1  ;;  %v3876_v26 = vadd.f32 %v3842_v50, %v3561_v61 }
 0x356   : > { %v5938_v9 = vrot.slane %v5937_v36, 4 }
 0x357   : > { %v5338_v11 = vsel %vm11877_vm8, %v5330_v56, %v5337_v44  ;;  %v5511_v35 = vsel %vm13232_vm1, %v5339_v0, %v5510_v1  ;;  %v5083_v53 = vpack.c.bf16 %v5051_v45, %v5051_v45  ;;  %v4558_v21 = vadd.f32 %v14006_v33, %v3876_v26  ;;  %v14052_v27 = vpop.f32.mrf.mxu0  ;;  %v5550_v39 = vld [vmem:[#allocation2 + $0xb4] sm:$0xf]  ;;  %v11608_v45 = vld [vmem:[%s15833_s3 + $0x1f8] sm:$0xff] }
 0x358   : > { %15916 = vst [vmem:[#allocation13_spill] sm:$0xff] %v14052_v27  ;;  %v5945_v24 = vshrl.u32 %v5550_v39, 16  ;;  %v5948_v33 = vshll.u32 %v5550_v39, 16  ;;  %v5943_v61 = vsel %vm11791_vm2, %v5938_v9, %v5942_v55  ;;  %v6013_v1 = vunpack.c.l.b16 %v5933_v52  ;;  %9126 = vmatpush.bf16.msra.mxu0 %v11608_v45  ;;  %v11596_v27 = vld [vmem:[%s15833_s3 + $0x198] sm:$0xff] }
 0x359   : > { %5509 = vst [vmem:[#allocation2 + $0xb8] sm:$0xf] %v5338_v11  ;;  %v14054_v3 = vpop.f32.mrf.mxu3  ;;  %v5341_v40 = vshrl.u32 %v5083_v53, 16  ;;  %v4984_v16 = vadd.f32 %v14004_v48, %v4558_v21  ;;  %6378 = vmatmul.bf16.gmra.mxu2 %v11505_v4  ;;  %v5344_v23 = vshll.u32 %v5083_v53, 16  ;;  %v6014_v10 = vunpack.c.l.b16 %v5943_v61  ;;  %v11546_v11 = vld [vmem:[#allocation2 + $0x78] sm:$0xff] }
 0x35a   : > { %5512 = vst [vmem:[#allocation2 + $0xbc] sm:$0x1] %v5511_v35  ;;  %v5947_v50 = vrot.slane %v5945_v24, 4  ;;  %v5950_v54 = vrot.slane %v5948_v33, 5  ;;  %v5517_v33 = vld [vmem:[#allocation2 + $0xc8] sm:$0x1] }
 0x35b   : > { %v5343_v17 = vrot.slane %v5341_v40, 7  ;;  %v5020_v13 = vadd.f32 %v13892_v49, %v4984_v16  ;;  %v6031_v26 = vpack.c.b16 %v6014_v10, %v6013_v1  ;;  %v14086_v16 = vld [vmem:[#allocation2 + $0x10] sm:$0xf] }
 0x35c   : > { %v6339_v56 = vpop.f32.mrf.mxu2  ;;  %v5951_v4 = vor.u32 %v5950_v54, %v5947_v50  ;;  %v7205_v54 = vshrl.u32 %v14086_v16, 16 }
 0x35d   : > { %v5346_v37 = vor.u32 %v5344_v23, %v5343_v17  ;;  %v5052_v44 = vmax.f32 %v5020_v13, 0.0  ;;  %v14062_v48 = vpop.f32.mrf.mxu1  ;;  %v6340_v0 = vadd.f32 %v6339_v56, %v13752_v31  ;;  %v5347_v52 = vrot.slane %v5343_v17, 4 }
 0x35e   : > { %6761 = vmatmul.bf16.gmra.mxu3 %v13952_v51  ;;  %v5952_v1 = vrot.slane %v5951_v4, 4 }
 0x35f   : > { %v5514_v49 = vsel %vm13196_vm0, %v5346_v37, %v5513_v43  ;;  %v5084_v29 = vpack.c.bf16 %v5052_v44, %v5052_v44  ;;  %v14072_v42 = vadd.f32 %v14028_v58, %v6340_v0  ;;  %v14074_v36 = vpop.f32.mrf.mxu0  ;;  %v11616_v58 = vld [vmem:[%s15833_s3 + $0x238] sm:$0xff]  ;;  %v7143_v44 = vld [vmem:[#allocation2 + $0xc] sm:$0xf]  ;;  %v7201_v0 = vshll.u32 %v14086_v16, 16 }
 0x360   : > { %15917 = vst [vmem:[#allocation14_spill] sm:$0xff] %v14074_v36  ;;  %v14076_v35 = vld [vmem:[#allocation2 + $0xb8] sm:$0xf]  ;;  %6175 = vmatmul.bf16.gmra.mxu1 %v6031_v26  ;;  %v7195_v7 = vshll.u32 %v7143_v44, 16 }
 0x361   : > { %5515 = vst [vmem:[#allocation2 + $0xc0] sm:$0xf] %v5514_v49  ;;  %v6722_v31 = vpop.f32.mrf.mxu3  ;;  %v14078_v51 = vld [vmem:[#allocation2 + $0xbc] sm:$0x1]  ;;  %v5954_v53 = vshll.u32 %v14076_v35, 16  ;;  %v5958_v5 = vshrl.u32 %v14076_v35, 16  ;;  %9552 = vmatpush.bf16.msra.mxu1 %v11616_v58 }
 0x362   : > { %v5349_v21 = vshrl.u32 %v5084_v29, 16  ;;  %7075 = vmatmul.bf16.gmra.mxu0 %v11546_v11  ;;  %v5964_v55 = vshll.u32 %v14078_v51, 16  ;;  %v5352_v40 = vshll.u32 %v5084_v29, 16  ;;  %v11506_v49 = vld [vmem:[#allocation2 + $0x6c] sm:$0xff]  ;;  %v7203_v4 = vrot.slane %v7201_v0, 5 }
 0x363   : > { %v5956_v39 = vrot.slane %v5954_v53, 5  ;;  %v5960_v9 = vrot.slane %v5958_v5, 4  ;;  %v7192_v5 = vshrl.u32 %v7143_v44, 16  ;;  %v7146_v0 = vld [vmem:[#allocation2 + $0x18] sm:$0xf] }
 0x364   : > { %v5351_v24 = vrot.slane %v5349_v21, 7  ;;  %v6341_v61 = vpop.f32.mrf.mxu2  ;;  %v5966_v37 = vrot.slane %v5964_v55, 5  ;;  %v6546_v55 = vrot.slane %v13878_v19, 5 }
 0x365   : > { %v5961_v23 = vor.u32 %v5960_v9, %v5956_v39  ;;  %v14088_v43 = vpop.f32.mrf.mxu1  ;;  %v6342_v56 = vadd.f32 %v6341_v61, %v13784_v60  ;;  %v5957_v60 = vsel %vm11791_vm2, %v5952_v1, %v5956_v39 }
 0x366   : > { %v5354_v13 = vor.u32 %v5352_v40, %v5351_v24  ;;  %v5356_v10 = vrot.slane %v5351_v24, 4  ;;  %v6015_v21 = vunpack.c.l.b16 %v5957_v60  ;;  %v14111_v40 = vld [vmem:[#allocation2 + $0x14] sm:$0x1]  ;;  %v6548_v1 = vrot.slane %v6546_v55, 4 }
 0x367   : > { %v5962_v50 = vrot.slane %v5961_v23, 4  ;;  %v14098_v26 = vadd.f32 %v14054_v3, %v6342_v56  ;;  %v14102_v29 = vpop.f32.mrf.mxu0  ;;  %v7207_v3 = vrot.slane %v7205_v54, 4  ;;  %v7211_v19 = vshll.u32 %v14111_v40, 16 }
 0x368   : > { %v5355_v17 = vsel %vm11877_vm8, %v5347_v52, %v5354_v13  ;;  %v5518_v45 = vsel %vm13232_vm1, %v5356_v10, %v5517_v33  ;;  %15919 = vst [vmem:[#allocation16_spill] sm:$0xff] %v14102_v29  ;;  %v7194_v52 = vrot.slane %v7192_v5, 4  ;;  %v7197_v33 = vrot.slane %v7195_v7, 5  ;;  %v11547_v10 = vld [vmem:[#allocation2 + $0x84] sm:$0xff] }
 0x369   : > { %15918 = vst [vmem:[#allocation15_spill] sm:$0xff] %v14098_v26  ;;  %v5967_v11 = vsel %vm11791_vm2, %v5962_v50, %v5966_v37  ;;  %v6724_v53 = vpop.f32.mrf.mxu3  ;;  %6383 = vmatmul.bf16.gmra.mxu2 %v11506_v49  ;;  %v7208_v61 = vor.u32 %v7207_v3, %v7203_v4  ;;  %v14118_v50 = vld [vmem:[#allocation2 + $0x1c] sm:$0xf]  ;;  %v6430_v37 = vld [vmem:[#allocation2 + $0x84] sm:$0xe]  ;;  %v7213_v49 = vrot.slane %v7211_v19, 5 }
 0x36a   : > { %5516 = vst [vmem:[#allocation2 + $0xc4] sm:$0xf] %v5355_v17  ;;  %v6016_v63 = vunpack.c.l.b16 %v5967_v11  ;;  %v7225_v54 = vshll.u32 %v14118_v50, 16  ;;  %v7229_v17 = vshrl.u32 %v14118_v50, 16  ;;  %v10872_v60 = vrot.slane %v6430_v37, 9 }
 0x36b   : > { %5519 = vst [vmem:[#allocation2 + $0xc8] sm:$0x1] %v5518_v45  ;;  %v7209_v44 = vrot.slane %v7208_v61, 4 }
 0x36c   : > { %v6344_v58 = vpop.f32.mrf.mxu2  ;;  %v6032_v9 = vpack.c.b16 %v6016_v63, %v6015_v21  ;;  %v6547_v3 = vsel %vm12248_vm13, %v10872_v60, %v6546_v55  ;;  %v14146_v55 = vld [vmem:[#allocation2 + $0x20] sm:$0x1] }
 0x36d   : > { %v14107_v39 = vpop.f32.mrf.mxu1  ;;  %v6345_v24 = vadd.f32 %v6344_v58, %v13802_v32  ;;  %v11575_v32 = vld [vmem:[%s15833_s3 + $0x170] sm:$0xff]  ;;  %v7214_v21 = vsel %vm11791_vm2, %v7209_v44, %v7213_v49  ;;  %v7216_v58 = vshrl.u32 %v7146_v0, 16 }
 0x36e   : > { %6766 = vmatmul.bf16.gmra.mxu3 %v13997_v41  ;;  %v7198_v41 = vor.u32 %v7197_v33, %v7194_v52  ;;  %8131 = vmatpush.bf16.msra.mxu2 %v11575_v32  ;;  %v11507_v52 = vld [vmem:[#allocation2 + $0x78] sm:$0xff]  ;;  %v6618_v32 = vunpack.c.l.b16 %v6547_v3 }
 0x36f   : > { %v14113_v23 = vadd.f32 %v6722_v31, %v6345_v24  ;;  %v14115_v13 = vpop.f32.mrf.mxu0  ;;  %v6549_v31 = vrot.slane %v13883_v62, 5  ;;  %v11599_v62 = vld [vmem:[%s15833_s3 + $0x1b0] sm:$0xff] }
 0x370   : > { %15921 = vst [vmem:[#allocation19_spill] sm:$0xff] %v14115_v13  ;;  %6180 = vmatmul.bf16.gmra.mxu1 %v6032_v9  ;;  %v7199_v7 = vrot.slane %v7198_v41, 4  ;;  %v7219_v9 = vshll.u32 %v7146_v0, 16  ;;  %8445 = vmatpush.bf16.msra.mxu3 %v11599_v62  ;;  %v7593_v41 = vunpack.c.l.b16 %v7214_v21  ;;  %v7149_v0 = vld [vmem:[#allocation2 + $0x24] sm:$0xf] }
 0x371   : > { %15920 = vst [vmem:[#allocation18_spill] sm:$0xff] %v14113_v23  ;;  %v6727_v56 = vpop.f32.mrf.mxu3  ;;  %v6550_v11 = vsel %vm12248_vm13, %v6548_v1, %v6549_v31  ;;  %v7240_v62 = vshrl.u32 %v7149_v0, 16  ;;  %v7243_v21 = vshll.u32 %v7149_v0, 16 }
 0x372   : > { %7080 = vmatmul.bf16.gmra.mxu0 %v11547_v10  ;;  %v6619_v61 = vunpack.c.l.b16 %v6550_v11  ;;  %v7231_v10 = vrot.slane %v7229_v17, 4  ;;  %v7204_v1 = vsel %vm11791_vm2, %v7199_v7, %v7203_v4  ;;  %v7221_v44 = vrot.slane %v7219_v9, 5  ;;  %v11607_v11 = vld [vmem:[%s15833_s3 + $0x1f0] sm:$0xff] }
 0x373   : > { %v6553_v17 = vrot.slane %v13934_v46, 5  ;;  %v7235_v4 = vshll.u32 %v14146_v55, 16  ;;  %9127 = vmatpush.bf16.msra.mxu0 %v11607_v11 }
 0x374   : > { %v6346_v45 = vpop.f32.mrf.mxu2  ;;  %v6639_v37 = vpack.c.b16 %v6619_v61, %v6618_v32  ;;  %v11615_v32 = vld [vmem:[%s15833_s3 + $0x230] sm:$0xff] }
 0x375   : > { %v14128_v63 = vpop.f32.mrf.mxu1  ;;  %v6347_v5 = vadd.f32 %v6346_v45, %v13838_v14  ;;  %v14142_v14 = vrot.slane %v7225_v54, 5  ;;  %v7592_v54 = vunpack.c.l.b16 %v7204_v1  ;;  %v6555_v61 = vrot.slane %v6553_v17, 4  ;;  %9553 = vmatpush.bf16.msra.mxu1 %v11615_v32 }
 0x377   : > { %v14138_v24 = vadd.f32 %v6724_v53, %v6347_v5  ;;  %v14140_v33 = vpop.f32.mrf.mxu0  ;;  %v7218_v53 = vrot.slane %v7216_v58, 4  ;;  %v7232_v31 = vor.u32 %v7231_v10, %v14142_v14  ;;  %v14157_v5 = vld [vmem:[#allocation2 + $0x28] sm:$0xf]  ;;  %v7624_v7 = vpack.c.b16 %v7593_v41, %v7592_v54  ;;  %v6431_v41 = vld [vmem:[#allocation2 + $0x90] sm:$0xe] }
 0x378   : > { %15923 = vst [vmem:[#allocation3_spill] sm:$0xff] %v14140_v33  ;;  %v7249_v10 = vshll.u32 %v14157_v5, 16  ;;  %v7253_v1 = vshrl.u32 %v14157_v5, 16  ;;  %v10873_v54 = vrot.slane %v6431_v41, 9  ;;  %v9247_v33 = vld [vmem:[#allocation2 + $0x18] sm:$0xe] }
 0x379   : > { %15922 = vst [vmem:[#allocation17_spill] sm:$0xff] %v14138_v24  ;;  %v6729_v19 = vpop.f32.mrf.mxu3  ;;  %6388 = vmatmul.bf16.gmra.mxu2 %v11507_v52  ;;  %v7222_v46 = vor.u32 %v7221_v44, %v7218_v53  ;;  %v7233_v9 = vrot.slane %v7232_v31, 4  ;;  %v7242_v53 = vrot.slane %v7240_v62, 4  ;;  %v7245_v44 = vrot.slane %v7243_v21, 5 }
 0x37a   : > { %v14175_v11 = vrot.slane %v7249_v10, 5  ;;  %v6554_v21 = vsel %vm12248_vm13, %v10873_v54, %v6553_v17 }
 0x37b   : > { %v7223_v31 = vrot.slane %v7222_v46, 4  ;;  %v7246_v46 = vor.u32 %v7245_v44, %v7242_v53  ;;  %v6620_v17 = vunpack.c.l.b16 %v6554_v21 }
 0x37c   : > { %v6349_v45 = vpop.f32.mrf.mxu2 }
 0x37d   : > { %v14150_v49 = vpop.f32.mrf.mxu1  ;;  %v6350_v60 = vadd.f32 %v6349_v45, %v13856_v18  ;;  %v11548_v18 = vld [vmem:[#allocation2 + $0x90] sm:$0xff]  ;;  %v7228_v62 = vsel %vm11791_vm2, %v7223_v31, %v14142_v14  ;;  %v14195_v53 = vrot.slane %v7246_v46, 4  ;;  %v6560_v46 = vrot.slane %v13984_v22, 5 }
 0x37e   : > { %6771 = vmatmul.bf16.gmra.mxu3 %v6639_v37  ;;  %v6556_v37 = vrot.slane %v13939_v57, 5  ;;  %v14180_v57 = vld [vmem:[#allocation2 + $0x2c] sm:$0x1]  ;;  %v7828_v14 = vld [vmem:[#allocation2 + $0x30] sm:$0xe]  ;;  %v7594_v31 = vunpack.c.l.b16 %v7228_v62 }
 0x37f   : > { %v14159_v3 = vadd.f32 %v6727_v56, %v6350_v60  ;;  %v14161_v58 = vpop.f32.mrf.mxu0  ;;  %v7237_v56 = vrot.slane %v7235_v4, 5 }
 0x380   : > { %15925 = vst [vmem:[#allocation20_spill] sm:$0xff] %v14161_v58  ;;  %7712 = vmatmul.bf16.vlgmr.msrb.gmra.mxu1 %v7624_v7  ;;  %v6557_v60 = vsel %vm12248_vm13, %v6555_v61, %v6556_v37  ;;  %v7255_v7 = vrot.slane %v7253_v1, 4  ;;  %v11508_v61 = vld [vmem:[#allocation2 + $0x84] sm:$0xff]  ;;  %v7259_v37 = vshll.u32 %v14180_v57, 16 }
 0x381   : > { %15924 = vst [vmem:[#allocation4_spill] sm:$0xff] %v14159_v3  ;;  %v14163_v52 = vpop.f32.mrf.mxu3  ;;  %v7238_v0 = vsel %vm11791_vm2, %v7233_v9, %v7237_v56  ;;  %v6621_v32 = vunpack.c.l.b16 %v6557_v60  ;;  %v7152_v56 = vld [vmem:[#allocation2 + $0x30] sm:$0xf]  ;;  %v14238_v3 = vld [vmem:[#allocation2 + $0x2c] sm:$0x1] }
 0x382   : > { %7085 = vmatmul.bf16.gmra.mxu0 %v11548_v18  ;;  %v7595_v1 = vunpack.c.l.b16 %v7238_v0  ;;  %v7264_v44 = vshrl.u32 %v7152_v56, 16  ;;  %v7267_v54 = vshll.u32 %v7152_v56, 16  ;;  %v7261_v21 = vrot.slane %v7259_v37, 5 }
 0x383   : > { %v6640_v60 = vpack.c.b16 %v6621_v32, %v6620_v17  ;;  %v14209_v32 = vld [vmem:[#allocation2 + $0x20] sm:$0x1] }
 0x384   : > { %v6351_v45 = vpop.f32.mrf.mxu2  ;;  %v7625_v0 = vpack.c.b16 %v7595_v1, %v7594_v31  ;;  %v7266_v17 = vrot.slane %v7264_v44, 4  ;;  %v6562_v44 = vrot.slane %v6560_v46, 4 }
 0x385   : > { %v14177_v4 = vpop.f32.mrf.mxu1  ;;  %v6352_v18 = vadd.f32 %v6351_v45, %v13885_v6  ;;  %v7256_v6 = vor.u32 %v7255_v7, %v14175_v11  ;;  %v7153_v45 = vld [vmem:[#allocation2 + $0x34] sm:$0xf] }
 0x386   : > { %v7912_v58 = vrot.slane %v7153_v45, 5  ;;  %v7277_v37 = vshrl.u32 %v7153_v45, 16 }
 0x387   : > { %v14187_v9 = vadd.f32 %v6729_v19, %v6352_v18  ;;  %v14189_v10 = vpop.f32.mrf.mxu0  ;;  %v14197_v19 = vld [vmem:[#allocation2 + $0x38] sm:$0x1]  ;;  %v14199_v18 = vld [vmem:[#allocation2 + $0x1c] sm:$0xf]  ;;  %v7257_v62 = vrot.slane %v7256_v6, 4  ;;  %v7273_v6 = vshll.u32 %v7153_v45, 16 }
 0x388   : > { %15927 = vst [vmem:[#allocation6_spill] sm:$0xff] %v14189_v10  ;;  %v11088_v10 = vrot.slane %v7828_v14, 9  ;;  %v7914_v14 = vrot.slane %v7912_v58, 4  ;;  %v7915_v31 = vrot.slane %v14197_v19, 5 }
 0x389   : > { %15926 = vst [vmem:[#allocation21_spill] sm:$0xff] %v14187_v9  ;;  %v14191_v41 = vpop.f32.mrf.mxu3  ;;  %6393 = vmatmul.bf16.gmra.mxu2 %v11508_v61  ;;  %v7252_v61 = vsel %vm11791_vm2, %v14195_v53, %v14175_v11  ;;  %v7269_v11 = vrot.slane %v7267_v54, 5  ;;  %v14214_v53 = vld [vmem:[#allocation2 + $0x28] sm:$0xf]  ;;  %v7262_v45 = vsel %vm11791_vm2, %v7257_v62, %v7261_v21  ;;  %v14236_v62 = vrot.slane %v7273_v6, 5 }
 0x38a   : > { %v7913_v56 = vsel %vm12248_vm13, %v11088_v10, %v7912_v58  ;;  %v9313_v10 = vrot.slane %v14199_v18, 5  ;;  %v11549_v58 = vld [vmem:[#allocation2 + $0x9c] sm:$0xff]  ;;  %v7279_v21 = vrot.slane %v7277_v37, 4 }
 0x38b   : > { %v8024_v54 = vunpack.c.l.b16 %v7913_v56  ;;  %v7270_v29 = vor.u32 %v7269_v11, %v7266_v17  ;;  %v11598_v17 = vld [vmem:[%s15833_s3 + $0x1a8] sm:$0xff] }
 0x38c   : > { %v6354_v7 = vpop.f32.mrf.mxu2  ;;  %8446 = vmatpush.bf16.msra.mxu3 %v11598_v17 }
 0x38d   : > { %v14206_v9 = vpop.f32.mrf.mxu1  ;;  %v6355_v1 = vadd.f32 %v6354_v7, %v13908_v59  ;;  %v7916_v59 = vsel %vm12248_vm13, %v7914_v14, %v7915_v31  ;;  %v9315_v14 = vrot.slane %v9313_v10, 4  ;;  %v9320_v31 = vrot.slane %v14214_v53, 5 }
 0x38e   : > { %6776 = vmatmul.bf16.gmra.mxu3 %v6640_v60  ;;  %v11309_v60 = vrot.slane %v9247_v33, 9 }
 0x38f   : > { %v14217_v22 = vadd.f32 %v14163_v52, %v6355_v1  ;;  %v14219_v13 = vpop.f32.mrf.mxu0  ;;  %v11574_v52 = vld [vmem:[%s15833_s3 + $0x168] sm:$0xff]  ;;  %v8025_v1 = vunpack.c.l.b16 %v7916_v59  ;;  %v14242_v59 = vunpack.c.l.b16 %v7262_v45  ;;  %v9322_v11 = vrot.slane %v9320_v31, 4 }
 0x390   : > { %15929 = vst [vmem:[#allocation22_spill] sm:$0xff] %v14219_v13  ;;  %7717 = vmatmul.bf16.gmra.mxu1 %v7625_v0  ;;  %v6432_v13 = vld [vmem:[#allocation2 + $0x9c] sm:$0xe]  ;;  %v9314_v33 = vsel %vm12248_vm13, %v11309_v60, %v9313_v10  ;;  %v9316_v0 = vrot.slane %v14209_v32, 5  ;;  %8132 = vmatpush.bf16.msra.mxu2 %v11574_v52  ;;  %v9248_v10 = vld [vmem:[#allocation2 + $0x24] sm:$0xe] }
 0x391   : > { %15928 = vst [vmem:[#allocation5_spill] sm:$0xff] %v14217_v22  ;;  %v14224_v7 = vpop.f32.mrf.mxu3  ;;  %v6563_v22 = vrot.slane %v13989_v12, 5  ;;  %v14240_v56 = vpack.c.b16 %v8025_v1, %v8024_v54  ;;  %v10874_v36 = vrot.slane %v6432_v13, 9  ;;  %v9440_v6 = vunpack.c.l.b16 %v9314_v33 }
 0x392   : > { %7090 = vmatmul.bf16.gmra.mxu0 %v11549_v58  ;;  %v9317_v60 = vsel %vm12248_vm13, %v9315_v14, %v9316_v0  ;;  %v7596_v54 = vunpack.c.l.b16 %v7252_v61  ;;  %v9323_v45 = vrot.slane %v14238_v3, 5  ;;  %v7280_v1 = vor.u32 %v7279_v21, %v14236_v62  ;;  %v7156_v0 = vld [vmem:[#allocation2 + $0x40] sm:$0xf]  ;;  %v7829_v21 = vld [vmem:[#allocation2 + $0x3c] sm:$0xe] }
 0x393   : > { %15930 = vst [vmem:[#allocation8_spill] sm:$0xff] %v14240_v56  ;;  %v6564_v12 = vsel %vm12248_vm13, %v6562_v44, %v6563_v22  ;;  %v9441_v58 = vunpack.c.l.b16 %v9317_v60  ;;  %v6561_v13 = vsel %vm12248_vm13, %v10874_v36, %v6560_v46  ;;  %v7155_v22 = vld [vmem:[#allocation2 + $0x3c] sm:$0xf]  ;;  %v11310_v33 = vrot.slane %v9248_v10, 9 }
 0x394   : > { %v6356_v24 = vpop.f32.mrf.mxu2  ;;  %v7271_v61 = vrot.slane %v7270_v29, 4  ;;  %v9324_v60 = vsel %vm12248_vm13, %v9322_v11, %v9323_v45  ;;  %v7626_v23 = vpack.c.b16 %v14242_v59, %v7596_v54  ;;  %v7283_v46 = vshll.u32 %v14197_v19, 16  ;;  %v14278_v59 = vld [vmem:[#allocation2 + $0x34] sm:$0xf] }
 0x395   : > { %v14248_v37 = vpop.f32.mrf.mxu1  ;;  %v6357_v52 = vadd.f32 %v6356_v24, %v13947_v25  ;;  %v14258_v44 = vpack.c.b16 %v9441_v58, %v9440_v6  ;;  %v11509_v25 = vld [vmem:[#allocation2 + $0x90] sm:$0xff]  ;;  %v6623_v24 = vunpack.c.l.b16 %v6564_v12  ;;  %v9321_v10 = vsel %vm12248_vm13, %v11310_v33, %v9320_v31  ;;  %v14276_v6 = vld [vmem:[#allocation2 + $0x44] sm:$0x1] }
 0x396   : > { %v6622_v12 = vunpack.c.l.b16 %v6561_v13  ;;  %v7276_v29 = vsel %vm11791_vm2, %v7271_v61, %v14236_v62  ;;  %v7288_v58 = vshrl.u32 %v7155_v22, 16  ;;  %v7281_v54 = vrot.slane %v7280_v1, 4  ;;  %v9249_v61 = vld [vmem:[#allocation2 + $0x30] sm:$0xe] }
 0x397   : > { %15931 = vst [vmem:[#allocation7_spill] sm:$0xff] %v14258_v44  ;;  %v14261_v14 = vadd.f32 %v14191_v41, %v6357_v52  ;;  %v14271_v41 = vpop.f32.mrf.mxu0  ;;  %v9443_v52 = vunpack.c.l.b16 %v9324_v60  ;;  %v7291_v19 = vshll.u32 %v7155_v22, 16  ;;  %v7297_v17 = vshll.u32 %v7156_v0, 16  ;;  %v11606_v22 = vld [vmem:[%s15833_s3 + $0x1e8] sm:$0xff] }
 0x398   : > { %15933 = vst [vmem:[#allocation23_spill] sm:$0xff] %v14271_v41  ;;  %v7301_v11 = vshrl.u32 %v7156_v0, 16  ;;  %v6641_v45 = vpack.c.b16 %v6623_v24, %v6622_v12  ;;  %v11089_v31 = vrot.slane %v7829_v21, 9  ;;  %v7919_v33 = vrot.slane %v7156_v0, 5  ;;  %v14297_v12 = vld [vmem:[#allocation2 + $0x38] sm:$0x1]  ;;  %9128 = vmatpush.bf16.msra.mxu0 %v11606_v22 }
 0x399   : > { %15932 = vst [vmem:[#allocation9_spill] sm:$0xff] %v14261_v14  ;;  %v14266_v36 = vpop.f32.mrf.mxu3  ;;  %6398 = vmatmul.bf16.gmra.mxu2 %v11509_v25  ;;  %v9442_v25 = vunpack.c.l.b16 %v9321_v10  ;;  %v7285_v13 = vrot.slane %v7283_v46, 5  ;;  %v6567_v41 = vrot.slane %v14026_v38, 5  ;;  %v7922_v62 = vrot.slane %v14276_v6, 5 }
 0x39a   : > { %v9327_v14 = vrot.slane %v14278_v59, 5  ;;  %v7920_v24 = vsel %vm12248_vm13, %v11089_v31, %v7919_v33  ;;  %v7921_v0 = vrot.slane %v7919_v33, 4  ;;  %v7290_v46 = vrot.slane %v7288_v58, 4  ;;  %v11614_v58 = vld [vmem:[%s15833_s3 + $0x228] sm:$0xff] }
 0x39b   : > { %v14291_v60 = vpack.c.b16 %v9443_v52, %v9442_v25  ;;  %v7286_v38 = vsel %vm11791_vm2, %v7281_v54, %v7285_v13  ;;  %v7293_v21 = vrot.slane %v7291_v19, 5  ;;  %v14295_v10 = vrot.slane %v7297_v17, 5  ;;  %v11550_v52 = vld [vmem:[#allocation2 + $0xa8] sm:$0xff]  ;;  %9554 = vmatpush.bf16.msra.mxu1 %v11614_v58 }
 0x39c   : > { %v6359_v44 = vpop.f32.mrf.mxu2  ;;  %v11311_v31 = vrot.slane %v9249_v61, 9  ;;  %v6569_v54 = vrot.slane %v6567_v41, 4  ;;  %v8026_v19 = vunpack.c.l.b16 %v7920_v24  ;;  %v9329_v25 = vrot.slane %v9327_v14, 4  ;;  %v7158_v61 = vld [vmem:[#allocation2 + $0x48] sm:$0xf] }
 0x39d   : > { %v14283_v56 = vpop.f32.mrf.mxu1  ;;  %v6360_v1 = vadd.f32 %v6359_v44, %v13968_v8  ;;  %15935 = vst [vmem:[#allocation11_spill] sm:$0xff] %v14291_v60  ;;  %v7303_v44 = vrot.slane %v7301_v11, 4  ;;  %v9330_v13 = vrot.slane %v14297_v12, 5 }
 0x39e   : > { %15934 = vst [vmem:[#allocation10_spill] sm:$0xff] %v14283_v56  ;;  %6781 = vmatmul.bf16.gmra.mxu3 %v6641_v45  ;;  %v7923_v45 = vsel %vm12248_vm13, %v7921_v0, %v7922_v62  ;;  %v9328_v11 = vsel %vm12248_vm13, %v11311_v31, %v9327_v14  ;;  %v14312_v62 = vunpack.c.l.b16 %v7276_v29  ;;  %v14321_v0 = vunpack.c.l.b16 %v7286_v38  ;;  %v14324_v31 = vld [vmem:[#allocation2 + $0x4c] sm:$0xf] }
 0x39f   : > { %v14300_v8 = vadd.f32 %v14224_v7, %v6360_v1  ;;  %v8027_v17 = vunpack.c.l.b16 %v7923_v45  ;;  %v6433_v7 = vld [vmem:[#allocation2 + $0xa8] sm:$0xe]  ;;  %v14315_v1 = vld [vmem:[#allocation2 + $0x40] sm:$0xf]  ;;  %v14319_v24 = vpop.f32.mrf.mxu0  ;;  %v7294_v45 = vor.u32 %v7293_v21, %v7290_v46  ;;  %v7304_v14 = vor.u32 %v7303_v44, %v14295_v10  ;;  %v14334_v44 = vld [vmem:[#allocation2 + $0x44] sm:$0x1] }
 0x3a0   : > { %7722 = vmatmul.bf16.gmra.mxu1 %v7626_v23  ;;  %v6570_v23 = vrot.slane %v14032_v2, 5  ;;  %15938 = vst [vmem:[#allocation25_spill] sm:$0xff] %v14319_v24  ;;  %v9331_v29 = vsel %vm12248_vm13, %v9329_v25, %v9330_v13  ;;  %v10875_v2 = vrot.slane %v6433_v7, 9  ;;  %v9444_v60 = vunpack.c.l.b16 %v9328_v11  ;;  %v9250_v13 = vld [vmem:[#allocation2 + $0x3c] sm:$0xe] }
 0x3a1   : > { %15936 = vst [vmem:[#allocation12_spill] sm:$0xff] %v14300_v8  ;;  %v14304_v33 = vpop.f32.mrf.mxu3  ;;  %v14317_v22 = vpack.c.b16 %v8027_v17, %v8026_v19  ;;  %v9445_v19 = vunpack.c.l.b16 %v9331_v29  ;;  %v7307_v46 = vshll.u32 %v14276_v6, 16  ;;  %v7312_v21 = vshrl.u32 %v7158_v61, 16  ;;  %v11510_v8 = vld [vmem:[#allocation2 + $0x9c] sm:$0xff] }
 0x3a2   : > { %7095 = vmatmul.bf16.gmra.mxu0 %v11550_v52  ;;  %v6571_v58 = vsel %vm12248_vm13, %v6569_v54, %v6570_v23  ;;  %v9334_v24 = vrot.slane %v14315_v1, 5  ;;  %v6568_v25 = vsel %vm12248_vm13, %v10875_v2, %v6567_v41  ;;  %v7315_v7 = vshll.u32 %v7158_v61, 16  ;;  %v11597_v29 = vld [vmem:[%s15833_s3 + $0x1a0] sm:$0xff]  ;;  %v7830_v2 = vld [vmem:[#allocation2 + $0x48] sm:$0xe] }
 0x3a3   : > { %15937 = vst [vmem:[#allocation24_spill] sm:$0xff] %v14317_v22  ;;  %v7321_v54 = vshll.u32 %v14324_v31, 16  ;;  %v14340_v11 = vpack.c.b16 %v9445_v19, %v9444_v60  ;;  %v6625_v6 = vunpack.c.l.b16 %v6571_v58  ;;  %v11605_v41 = vld [vmem:[%s15833_s3 + $0x1e0] sm:$0xff]  ;;  %v7325_v61 = vshrl.u32 %v14324_v31, 16  ;;  %8447 = vmatpush.bf16.msra.mxu3 %v11597_v29 }
 0x3a4   : > { %v6361_v52 = vpop.f32.mrf.mxu2  ;;  %v11573_v60 = vld [vmem:[%s15833_s3 + $0x160] sm:$0xff]  ;;  %v9336_v58 = vrot.slane %v9334_v24, 4  ;;  %v9337_v19 = vrot.slane %v14334_v44, 5  ;;  %v7314_v22 = vrot.slane %v7312_v21, 4  ;;  %9129 = vmatpush.bf16.msra.mxu0 %v11605_v41 }
 0x3a5   : > { %v14330_v17 = vpop.f32.mrf.mxu1  ;;  %v6362_v38 = vadd.f32 %v6361_v52, %v13995_v28  ;;  %15940 = vst [vmem:[#allocation27_spill] sm:$0xff] %v14340_v11  ;;  %v7627_v28 = vpack.c.b16 %v14321_v0, %v14312_v62  ;;  %v7295_v62 = vrot.slane %v7294_v45, 4  ;;  %v7305_v0 = vrot.slane %v7304_v14, 4  ;;  %8133 = vmatpush.bf16.msra.mxu2 %v11573_v60  ;;  %v11604_v45 = vld [vmem:[%s15833_s3 + $0x1d8] sm:$0xff] }
 0x3a6   : > { %15939 = vst [vmem:[#allocation26_spill] sm:$0xff] %v14330_v17  ;;  %v7309_v11 = vrot.slane %v7307_v46, 5  ;;  %v11312_v17 = vrot.slane %v9250_v13, 9  ;;  %v7317_v14 = vrot.slane %v7315_v7, 5  ;;  %v14370_v26 = vrot.slane %v7321_v54, 5 }
 0x3a7   : > { %v14343_v23 = vadd.f32 %v14266_v36, %v6362_v38  ;;  %v14357_v36 = vld [vmem:[#allocation2 + $0x18] sm:$0xf]  ;;  %v6624_v38 = vunpack.c.l.b16 %v6568_v25  ;;  %v9338_v46 = vsel %vm12248_vm13, %v9336_v58, %v9337_v19  ;;  %v7327_v25 = vrot.slane %v7325_v61, 4  ;;  %v14387_v61 = vpop.f32.mrf.mxu0  ;;  %8448 = vmatpush.bf16.msra.mxu3 %v11596_v27 }
 0x3a8   : > { %v11090_v13 = vrot.slane %v7830_v2, 9  ;;  %v9335_v29 = vsel %vm12248_vm13, %v11312_v17, %v9334_v24  ;;  %v7300_v60 = vsel %vm11791_vm2, %v7295_v62, %v14295_v10  ;;  %v7310_v7 = vsel %vm11791_vm2, %v7305_v0, %v7309_v11  ;;  %15942 = vst [vmem:[#allocation29_spill] sm:$0xff] %v14387_v61  ;;  %v11572_v24 = vld [vmem:[%s15833_s3 + $0x158] sm:$0xff]  ;;  %9130 = vmatpush.bf16.msra.mxu0 %v11604_v45  ;;  %v11603_v45 = vld [vmem:[%s15833_s3 + $0x1d0] sm:$0xff] }
 0x3a9   : > { %15941 = vst [vmem:[#allocation28_spill] sm:$0xff] %v14343_v23  ;;  %v14359_v52 = vpop.f32.mrf.mxu3  ;;  %6403 = vmatmul.bf16.gmra.mxu2 %v11510_v8  ;;  %v14362_v23 = vld [vmem:[#allocation2 + $0x50] sm:$0x1]  ;;  %v7926_v8 = vrot.slane %v14324_v31, 5  ;;  %v6642_v21 = vpack.c.b16 %v6625_v6, %v6624_v38  ;;  %v6574_v54 = vrot.slane %v14076_v35, 5  ;;  %v8614_v31 = vshrl.u32 %v14357_v36, 16 }
 0x3aa   : > { %v7929_v11 = vrot.slane %v14362_v23, 5  ;;  %v7318_v62 = vor.u32 %v7317_v14, %v7314_v22  ;;  %v8623_v0 = vshll.u32 %v14199_v18, 16  ;;  %v9446_v2 = vunpack.c.l.b16 %v9335_v29  ;;  %v11551_v19 = vld [vmem:[#allocation2 + $0xb4] sm:$0xff]  ;;  %8134 = vmatpush.bf16.msra.mxu2 %v11572_v24  ;;  %v11593_v35 = vld [vmem:[%s15833_s3 + $0x180] sm:$0xff] }
 0x3ab   : > { %v7927_v10 = vsel %vm12248_vm13, %v11090_v13, %v7926_v8  ;;  %v7928_v17 = vrot.slane %v7926_v8, 4  ;;  %v7328_v38 = vor.u32 %v7327_v25, %v14370_v26  ;;  %v6576_v22 = vrot.slane %v6574_v54, 4  ;;  %v6434_v13 = vld [vmem:[#allocation2 + $0xb4] sm:$0xe] }
 0x3ac   : > { %v6364_v41 = vpop.f32.mrf.mxu2  ;;  %v8028_v14 = vunpack.c.l.b16 %v7927_v10  ;;  %v14418_v25 = vunpack.c.l.b16 %v7300_v60  ;;  %v8617_v29 = vshll.u32 %v14357_v36, 16  ;;  %v7331_v24 = vshll.u32 %v14362_v23, 16  ;;  %v11594_v10 = vld [vmem:[%s15833_s3 + $0x188] sm:$0xff]  ;;  %9131 = vmatpush.bf16.msra.mxu0 %v11603_v45 }
 0x3ad   : > { %v14384_v56 = vpop.f32.mrf.mxu1  ;;  %v6365_v6 = vadd.f32 %v6364_v41, %v14017_v20  ;;  %v9447_v20 = vunpack.c.l.b16 %v9338_v46  ;;  %v7930_v8 = vsel %vm12248_vm13, %v7928_v17, %v7929_v11  ;;  %v14421_v41 = vunpack.c.l.b16 %v7310_v7  ;;  %v14428_v17 = vld [vmem:[#allocation2 + $0x4c] sm:$0xf] }
 0x3ae   : > { %6786 = vmatmul.bf16.gmra.mxu3 %v6642_v21  ;;  %v8627_v21 = vshrl.u32 %v14199_v18, 16  ;;  %v11571_v18 = vld [vmem:[%s15833_s3 + $0x150] sm:$0xff]  ;;  %v8029_v46 = vunpack.c.l.b16 %v7930_v8  ;;  %v7319_v60 = vrot.slane %v7318_v62, 4  ;;  %v11602_v36 = vld [vmem:[%s15833_s3 + $0x1c8] sm:$0xff]  ;;  %v14435_v7 = vrot.slane %v8614_v31, 4 }
 0x3af   : > { %v14397_v58 = vadd.f32 %v14304_v33, %v6365_v6  ;;  %v11595_v33 = vld [vmem:[%s15833_s3 + $0x190] sm:$0xff]  ;;  %v6577_v6 = vrot.slane %v14078_v51, 5  ;;  %8135 = vmatpush.bf16.msra.mxu2 %v11571_v18  ;;  %v14437_v51 = vrot.slane %v8623_v0, 5  ;;  %v8633_v23 = vshll.u32 %v14209_v32, 16  ;;  %v11570_v32 = vld [vmem:[%s15833_s3 + $0x148] sm:$0xff] }
 0x3b0   : > { %7727 = vmatmul.bf16.gmra.mxu1 %v7627_v28  ;;  %v14416_v28 = vpack.c.b16 %v9447_v20, %v9446_v2  ;;  %8449 = vmatpush.bf16.msra.mxu3 %v11595_v33  ;;  %v14430_v11 = vpack.c.b16 %v8029_v46, %v8028_v14  ;;  %v10876_v20 = vrot.slane %v6434_v13, 9  ;;  %v7329_v8 = vrot.slane %v7328_v38, 4  ;;  %v14442_v62 = vld [vmem:[#allocation2 + $0x50] sm:$0x1]  ;;  %v7825_v14 = vld [vmem:[#allocation2 + $0xc] sm:$0xe] }
 0x3b1   : > { %15943 = vst [vmem:[#allocation30_spill] sm:$0xff] %v14397_v58  ;;  %v14403_v27 = vpop.f32.mrf.mxu3  ;;  %v8629_v33 = vrot.slane %v8627_v21, 4  ;;  %v7324_v31 = vsel %vm11791_vm2, %v7319_v60, %v14370_v26  ;;  %v8619_v0 = vrot.slane %v8617_v29, 5  ;;  %v11511_v38 = vld [vmem:[#allocation2 + $0xa8] sm:$0xff]  ;;  %v7628_v21 = vpack.c.b16 %v14421_v41, %v14418_v25  ;;  %v14464_v29 = vpop.f32.mrf.mxu0  ;;  %9132 = vmatpush.bf16.msra.mxu0 %v11602_v36 }
 0x3b2   : > { %15944 = vst [vmem:[#allocation31_spill] sm:$0xff] %v14416_v28  ;;  %7100 = vmatmul.bf16.gmra.mxu0 %v11551_v19  ;;  %v6578_v19 = vsel %vm12248_vm13, %v6576_v22, %v6577_v6  ;;  %v9341_v22 = vrot.slane %v14428_v17, 5  ;;  %v7333_v46 = vrot.slane %v7331_v24, 5  ;;  %v7891_v26 = vrot.slane %v14086_v16, 5  ;;  %v9251_v13 = vld [vmem:[#allocation2 + $0x48] sm:$0xe] }
 0x3b3   : > { %15945 = vst [vmem:[#allocation32_spill] sm:$0xff] %v14430_v11  ;;  %v6627_v60 = vunpack.c.l.b16 %v6578_v19  ;;  %8136 = vmatpush.bf16.msra.mxu2 %v11570_v32  ;;  %v11569_v16 = vld [vmem:[%s15833_s3 + $0x140] sm:$0xff]  ;;  %v8630_v36 = vor.u32 %v8629_v33, %v14437_v51  ;;  %v8635_v32 = vrot.slane %v8633_v23, 5  ;;  %v14484_v28 = vld [vmem:[#allocation2 + $0x58] sm:$0xf]  ;;  %v7894_v33 = vrot.slane %v14111_v40, 5 }
 0x3b4   : > { %v6366_v2 = vpop.f32.mrf.mxu2  ;;  %8450 = vmatpush.bf16.msra.mxu3 %v11594_v10  ;;  %15947 = vst [vmem:[#allocation34_spill] sm:$0xff] %v14464_v29  ;;  %v9343_v25 = vrot.slane %v9341_v22, 4  ;;  %v7334_v24 = vsel %vm11791_vm2, %v7329_v8, %v7333_v46  ;;  %v14480_v10 = vunpack.c.l.b16 %v7324_v31  ;;  %v7831_v29 = vld [vmem:[#allocation2 + $0x54] sm:$0xe]  ;;  %v7933_v31 = vrot.slane %v14484_v28, 5 }
 0x3b5   : > { %v14444_v45 = vpop.f32.mrf.mxu1  ;;  %v6367_v18 = vadd.f32 %v6366_v2, %v14042_v47  ;;  %v6575_v47 = vsel %vm12248_vm13, %v10876_v20, %v6574_v54  ;;  %v11601_v54 = vld [vmem:[%s15833_s3 + $0x1c0] sm:$0xff]  ;;  %v11085_v2 = vrot.slane %v7825_v14, 9  ;;  %v11313_v14 = vrot.slane %v9251_v13, 9  ;;  %v14496_v23 = vld [vmem:[#allocation2 + $0x5c] sm:$0x1] }
 0x3b6   : > { %v8568_v20 = vld [vmem:[#allocation2 + $0x24] sm:$0xf]  ;;  %v6626_v19 = vunpack.c.l.b16 %v6575_v47  ;;  %v14494_v47 = vunpack.c.l.b16 %v7334_v24  ;;  %9133 = vmatpush.bf16.msra.mxu0 %v11601_v54  ;;  %v8647_v54 = vshll.u32 %v14214_v53, 16 }
 0x3b7   : > { %v14462_v6 = vadd.f32 %v14359_v52, %v6367_v18  ;;  %v9344_v52 = vrot.slane %v14442_v62, 5  ;;  %v8620_v18 = vor.u32 %v8619_v0, %v14435_v7  ;;  %v14490_v8 = vsel %vm12248_vm13, %v11085_v2, %v7891_v26  ;;  %8137 = vmatpush.bf16.msra.mxu2 %v11569_v16 }
 0x3b8   : > { %8451 = vmatpush.bf16.msra.mxu3 %v11593_v35  ;;  %v7893_v7 = vrot.slane %v7891_v26, 4  ;;  %v8638_v0 = vshrl.u32 %v8568_v20, 16  ;;  %v8631_v35 = vrot.slane %v8630_v36, 4  ;;  %v9342_v2 = vsel %vm12248_vm13, %v11313_v14, %v9341_v22 }
 0x3b9   : > { %15946 = vst [vmem:[#allocation33_spill] sm:$0xff] %v14462_v6  ;;  %v14476_v41 = vpop.f32.mrf.mxu3  ;;  %6408 = vmatmul.bf16.gmra.mxu2 %v11511_v38  ;;  %v9345_v61 = vsel %vm12248_vm13, %v9343_v25, %v9344_v52  ;;  %v6643_v38 = vpack.c.b16 %v6627_v60, %v6626_v19  ;;  %v8641_v25 = vshll.u32 %v8568_v20, 16  ;;  %v11091_v52 = vrot.slane %v7831_v29, 9 }
 0x3ba   : > { %v8621_v60 = vrot.slane %v8620_v18, 4  ;;  %v9449_v16 = vunpack.c.l.b16 %v9345_v61  ;;  %v8651_v26 = vshrl.u32 %v14214_v53, 16  ;;  %v7935_v36 = vrot.slane %v7933_v31, 4  ;;  %v11552_v61 = vld [vmem:[#allocation2 + $0xc0] sm:$0xff] }
 0x3bb   : > { %v7934_v24 = vsel %vm12248_vm13, %v11091_v52, %v7933_v31  ;;  %v7936_v29 = vrot.slane %v14496_v23, 5  ;;  %v7895_v22 = vsel %vm12248_vm13, %v7893_v7, %v7894_v33  ;;  %v9448_v19 = vunpack.c.l.b16 %v9342_v2 }
 0x3bc   : > { %v6369_v46 = vpop.f32.mrf.mxu2  ;;  %v8636_v18 = vsel %vm11791_vm2, %v8631_v35, %v8635_v32  ;;  %v8640_v31 = vrot.slane %v8638_v0, 4  ;;  %v8643_v14 = vrot.slane %v8641_v25, 5  ;;  %v8657_v33 = vshll.u32 %v14238_v3, 16  ;;  %v14533_v25 = vld [vmem:[#allocation2 + $0x24] sm:$0xe] }
 0x3bd   : > { %v14500_v40 = vpop.f32.mrf.mxu1  ;;  %v6370_v13 = vadd.f32 %v6369_v46, %v14062_v48  ;;  %v8626_v48 = vsel %vm11791_vm2, %v8621_v60, %v14437_v51  ;;  %v7937_v51 = vsel %vm12248_vm13, %v7935_v36, %v7936_v29  ;;  %v8030_v7 = vunpack.c.l.b16 %v7934_v24  ;;  %v14538_v60 = vld [vmem:[#allocation2 + $0x58] sm:$0xf] }
 0x3be   : > { %15948 = vst [vmem:[#allocation35_spill] sm:$0xff] %v14500_v40  ;;  %6791 = vmatmul.bf16.gmra.mxu3 %v6643_v38  ;;  %v14525_v38 = vpop.f32.mrf.mxu0  ;;  %v8031_v46 = vunpack.c.l.b16 %v7937_v51  ;;  %v14528_v52 = vpack.c.b16 %v9449_v16, %v9448_v19  ;;  %v8019_v32 = vunpack.c.l.b16 %v7895_v22  ;;  %v14530_v35 = vrot.slane %v8647_v54, 5 }
 0x3bf   : > { %v14509_v20 = vadd.f32 %v14403_v27, %v6370_v13  ;;  %v11613_v27 = vld [vmem:[%s15833_s3 + $0x220] sm:$0xff]  ;;  %15950 = vst [vmem:[#allocation37_spill] sm:$0xff] %v14525_v38  ;;  %v8653_v2 = vrot.slane %v8651_v26, 4  ;;  %v7898_v0 = vrot.slane %v14118_v50, 5  ;;  %v8018_v3 = vunpack.c.l.b16 %v14490_v8  ;;  %v8571_v8 = vld [vmem:[#allocation2 + $0x30] sm:$0xf] }
 0x3c0   : > { %7732 = vmatmul.bf16.gmra.mxu1 %v7628_v21  ;;  %v7826_v21 = vld [vmem:[#allocation2 + $0x18] sm:$0xe]  ;;  %15951 = vst [vmem:[#allocation38_spill] sm:$0xff] %v14528_v52  ;;  %v14540_v24 = vpack.c.b16 %v8031_v46, %v8030_v7  ;;  %v14542_v36 = vunpack.c.l.b16 %v8626_v48  ;;  %v14544_v29 = vunpack.c.l.b16 %v8636_v18  ;;  %v8644_v54 = vor.u32 %v8643_v14, %v8640_v31  ;;  %v7161_v7 = vld [vmem:[#allocation2 + $0x54] sm:$0xf] }
 0x3c1   : > { %15949 = vst [vmem:[#allocation36_spill] sm:$0xff] %v14509_v20  ;;  %v14516_v53 = vpop.f32.mrf.mxu3  ;;  %9555 = vmatpush.bf16.msra.mxu1 %v11613_v27  ;;  %v11086_v26 = vrot.slane %v7826_v21, 9  ;;  %v14549_v19 = vrot.slane %v8657_v33, 5  ;;  %v14553_v51 = vpack.c.b16 %v8019_v32, %v8018_v3  ;;  %v8654_v48 = vor.u32 %v8653_v2, %v14530_v35  ;;  %v14556_v46 = vld [vmem:[#allocation2 + $0x5c] sm:$0x1] }
 0x3c2   : > { %7105 = vmatmul.bf16.gmra.mxu0 %v11552_v61  ;;  %15952 = vst [vmem:[#allocation39_spill] sm:$0xff] %v14540_v24  ;;  %v7901_v61 = vrot.slane %v14146_v55, 5  ;;  %v7900_v18 = vrot.slane %v7898_v0, 4  ;;  %v9348_v31 = vrot.slane %v14538_v60, 5  ;;  %v7345_v33 = vshll.u32 %v14484_v28, 16 }
 0x3c3   : > { %v7349_v55 = vshrl.u32 %v14484_v28, 16  ;;  %v7905_v21 = vrot.slane %v14157_v5, 5  ;;  %v8645_v3 = vrot.slane %v8644_v54, 4  ;;  %v8665_v2 = vshll.u32 %v8571_v8, 16  ;;  %v7832_v28 = vld [vmem:[#allocation2 + $0x60] sm:$0xe] }
 0x3c4   : > { %v6371_v16 = vpop.f32.mrf.mxu2  ;;  %v9350_v27 = vrot.slane %v9348_v31, 4  ;;  %v9046_v13 = vpack.c.b16 %v14544_v29, %v14542_v36  ;;  %v7336_v52 = vshrl.u32 %v7161_v7, 16  ;;  %v9351_v5 = vrot.slane %v14556_v46, 5  ;;  %v11577_v36 = vld [vmem:[#allocation2 + $0x18] sm:$0xff] }
 0x3c5   : > { %v14546_v22 = vpop.f32.mrf.mxu1  ;;  %v6372_v50 = vadd.f32 %v6371_v16, %v14088_v43  ;;  %v11512_v43 = vld [vmem:[#allocation2 + $0xb4] sm:$0xff]  ;;  %v8662_v16 = vshrl.u32 %v8571_v8, 16  ;;  %v7339_v38 = vshll.u32 %v7161_v7, 16  ;;  %v7902_v54 = vsel %vm12248_vm13, %v7900_v18, %v7901_v61 }
 0x3c6   : > { %15953 = vst [vmem:[#allocation40_spill] sm:$0xff] %v14546_v22  ;;  %v14581_v29 = vrot.slane %v7345_v33, 5  ;;  %v7351_v20 = vrot.slane %v7349_v55, 4  ;;  %v9352_v6 = vsel %vm12248_vm13, %v9350_v27, %v9351_v5  ;;  %v8650_v7 = vsel %vm11791_vm2, %v8645_v3, %v14530_v35 }
 0x3c7   : > { %v14560_v14 = vadd.f32 %v14476_v41, %v6372_v50  ;;  %v14571_v41 = vsel %vm12248_vm13, %v11086_v26, %v7898_v0  ;;  %v14573_v50 = vld [vmem:[#allocation2 + $0x64] sm:$0xf]  ;;  %v14583_v0 = vld [vmem:[#allocation2 + $0x68] sm:$0x1]  ;;  %v7907_v26 = vrot.slane %v7905_v21, 4  ;;  %v8671_v61 = vshll.u32 %v14278_v59, 16 }
 0x3c8   : > { %v7940_v8 = vrot.slane %v14573_v50, 5  ;;  %v11092_v18 = vrot.slane %v7832_v28, 9  ;;  %v7338_v24 = vrot.slane %v7336_v52, 4  ;;  %v8021_v11 = vunpack.c.l.b16 %v7902_v54 }
 0x3c9   : > { %15954 = vst [vmem:[#allocation41_spill] sm:$0xff] %v14560_v14  ;;  %v14565_v32 = vpop.f32.mrf.mxu3  ;;  %6413 = vmatmul.bf16.gmra.mxu2 %v11512_v43  ;;  %v8655_v14 = vrot.slane %v8654_v48, 4  ;;  %v14579_v43 = vpop.f32.mrf.mxu0  ;;  %v8675_v48 = vshrl.u32 %v14278_v59, 16  ;;  %v8664_v22 = vrot.slane %v8662_v16, 4  ;;  %v7341_v27 = vrot.slane %v7339_v38, 5 }
 0x3ca   : > { %15955 = vst [vmem:[#allocation42_spill] sm:$0xff] %v14579_v43  ;;  %v9252_v43 = vld [vmem:[#allocation2 + $0x54] sm:$0xe]  ;;  %v7941_v5 = vsel %vm12248_vm13, %v11092_v18, %v7940_v8  ;;  %v7942_v40 = vrot.slane %v7940_v8, 4  ;;  %v7943_v35 = vrot.slane %v14583_v0, 5  ;;  %v7352_v59 = vor.u32 %v7351_v20, %v14581_v29 }
 0x3cb   : > { %v8667_v28 = vrot.slane %v8665_v2, 5  ;;  %v8660_v38 = vsel %vm11791_vm2, %v8655_v14, %v14549_v19  ;;  %v14610_v52 = vrot.slane %v8671_v61, 5  ;;  %v8677_v16 = vrot.slane %v8675_v48, 4  ;;  %v14627_v48 = vld [vmem:[#allocation2 + $0x64] sm:$0xf] }
 0x3cc   : > { %v6374_v58 = vpop.f32.mrf.mxu2  ;;  %v7355_v20 = vshll.u32 %v14496_v23, 16  ;;  %v8032_v2 = vunpack.c.l.b16 %v7941_v5  ;;  %v8020_v8 = vunpack.c.l.b16 %v14571_v41  ;;  %v9451_v19 = vunpack.c.l.b16 %v9352_v6 }
 0x3cd   : > { %v14592_v33 = vpop.f32.mrf.mxu1  ;;  %v6375_v55 = vadd.f32 %v6374_v58, %v14107_v39  ;;  %v15957_v39 = vpack.c.b16 %v14494_v47, %v14480_v10  ;;  %v7342_v47 = vor.u32 %v7341_v27, %v7338_v24  ;;  %v7353_v14 = vrot.slane %v7352_v59, 4 }
 0x3ce   : > { %15956 = vst [vmem:[#allocation43_spill] sm:$0xff] %v14592_v33  ;;  %8452 = vmatmul.bf16.vlgmr.msra.gmra.mxu3 %v11577_v36  ;;  %v11314_v33 = vrot.slane %v9252_v43, 9  ;;  %v7908_v43 = vrot.slane %v14180_v57, 5  ;;  %v14619_v36 = vunpack.c.l.b16 %v8650_v7  ;;  %v15958_v61 = vrot.slane %v14533_v25, 9 }
 0x3cf   : > { %v14599_v3 = vadd.f32 %v14516_v53, %v6375_v55  ;;  %v7944_v53 = vsel %vm12248_vm13, %v7942_v40, %v7943_v35  ;;  %v8574_v40 = vld [vmem:[#allocation2 + $0x3c] sm:$0xf]  ;;  %v14631_v24 = vunpack.c.l.b16 %v8660_v38  ;;  %v8668_v41 = vor.u32 %v8667_v28, %v8664_v22  ;;  %v7164_v55 = vld [vmem:[#allocation2 + $0x60] sm:$0xf]  ;;  %v14645_v22 = vld [vmem:[#allocation2 + $0x68] sm:$0x1] }
 0x3d0   : > { %7737 = vmatmul.bf16.gmra.mxu1 %v15957_v39  ;;  %v8033_v54 = vunpack.c.l.b16 %v7944_v53  ;;  %v9349_v10 = vsel %vm12248_vm13, %v11314_v33, %v9348_v31  ;;  %v14625_v23 = vsel %vm12248_vm13, %v15958_v61, %v7905_v21  ;;  %v14635_v57 = vsel %vm12248_vm13, %v7907_v26, %v7908_v43 }
 0x3d1   : > { %v14605_v58 = vpop.f32.mrf.mxu3  ;;  %v9450_v6 = vunpack.c.l.b16 %v9349_v10  ;;  %v14637_v7 = vpop.f32.mrf.mxu0  ;;  %v7357_v18 = vrot.slane %v7355_v20, 5  ;;  %v14642_v33 = vpack.c.b16 %v8021_v11, %v8020_v8  ;;  %v8678_v27 = vor.u32 %v8677_v16, %v14610_v52 }
 0x3d2   : > { %9134 = vmatmul.bf16.vlgmr.msra.gmra.mxu0 %v9046_v13  ;;  %v14629_v31 = vpack.c.b16 %v8033_v54, %v8032_v2  ;;  %15959 = vst [vmem:[#allocation44_spill] sm:$0xff] %v14637_v7  ;;  %v7343_v5 = vrot.slane %v7342_v47, 4  ;;  %v8686_v35 = vshrl.u32 %v8574_v40, 16  ;;  %v9355_v26 = vrot.slane %v14627_v48, 5  ;;  %v14667_v47 = vld [vmem:[#allocation2 + $0x70] sm:$0xf] }
 0x3d3   : > { %v14647_v59 = vpack.c.b16 %v9451_v19, %v9450_v6  ;;  %v7369_v11 = vshll.u32 %v14573_v50, 16  ;;  %v7373_v39 = vshrl.u32 %v14573_v50, 16  ;;  %v7360_v16 = vshrl.u32 %v7164_v55, 16  ;;  %v7833_v50 = vld [vmem:[#allocation2 + $0x6c] sm:$0xe] }
 0x3d4   : > { %v6376_v13 = vpop.f32.mrf.mxu2  ;;  %v14659_v53 = vrot.slane %v8668_v41, 4  ;;  %v8689_v20 = vshll.u32 %v8574_v40, 16  ;;  %v9357_v2 = vrot.slane %v9355_v26, 4  ;;  %v9047_v54 = vpack.c.b16 %v14631_v24, %v14619_v36 }
 0x3d5   : > { %v14639_v25 = vpop.f32.mrf.mxu1  ;;  %v6377_v21 = vadd.f32 %v6376_v13, %v14128_v63  ;;  %15960 = vst [vmem:[#allocation45_spill] sm:$0xff] %v14647_v59  ;;  %v7358_v63 = vsel %vm11791_vm2, %v7353_v14, %v7357_v18  ;;  %v7363_v10 = vshll.u32 %v7164_v55, 16  ;;  %v9358_v8 = vrot.slane %v14645_v22, 5 }
 0x3d6   : > { %v7605_v43 = vunpack.c.l.b16 %v7358_v63  ;;  %v8679_v19 = vrot.slane %v8678_v27, 4  ;;  %v8681_v14 = vshll.u32 %v14297_v12, 16  ;;  %v7947_v61 = vrot.slane %v14667_v47, 5  ;;  %v9253_v12 = vld [vmem:[#allocation2 + $0x60] sm:$0xe] }
 0x3d7   : > { %v14651_v28 = vadd.f32 %v14565_v32, %v6377_v21  ;;  %v7348_v32 = vsel %vm11791_vm2, %v7343_v5, %v14581_v29  ;;  %v14672_v40 = vrot.slane %v7369_v11, 5  ;;  %v7375_v13 = vrot.slane %v7373_v39, 4  ;;  %v14674_v29 = vld [vmem:[#allocation2 + $0x74] sm:$0x1] }
 0x3d8   : > { %v8688_v41 = vrot.slane %v8686_v35, 4  ;;  %v9359_v36 = vsel %vm12248_vm13, %v9357_v2, %v9358_v8  ;;  %v7604_v6 = vunpack.c.l.b16 %v7348_v32  ;;  %v8695_v21 = vshll.u32 %v14315_v1, 16 }
 0x3d9   : > { %v14657_v38 = vpop.f32.mrf.mxu3  ;;  %8138 = vmatmul.bf16.vlgmr.msra.gmra.mxu2 %v14553_v51  ;;  %v11578_v51 = vld [vmem:[#allocation2 + $0x24] sm:$0xff]  ;;  %v8699_v18 = vshrl.u32 %v14315_v1, 16  ;;  %v11093_v55 = vrot.slane %v7833_v50, 9  ;;  %v7362_v63 = vrot.slane %v7360_v16, 4  ;;  %v7365_v11 = vrot.slane %v7363_v10, 5  ;;  %v14686_v59 = vpop.f32.mrf.mxu0  ;;  %v11612_v10 = vld [vmem:[%s15833_s3 + $0x218] sm:$0xff] }
 0x3da   : > { %v8691_v39 = vrot.slane %v8689_v20, 5  ;;  %v7630_v35 = vpack.c.b16 %v7605_v43, %v7604_v6  ;;  %v7949_v8 = vrot.slane %v7947_v61, 4  ;;  %v7950_v32 = vrot.slane %v14674_v29, 5  ;;  %15961 = vst [vmem:[#allocation46_spill] sm:$0xff] %v14686_v59  ;;  %9556 = vmatpush.bf16.msra.mxu1 %v11612_v10 }
 0x3db   : > { %v7948_v2 = vsel %vm12248_vm13, %v11093_v55, %v7947_v61  ;;  %v7376_v50 = vor.u32 %v7375_v13, %v14672_v40  ;;  %v8683_v7 = vrot.slane %v8681_v14, 5  ;;  %v8674_v20 = vsel %vm11791_vm2, %v14659_v53, %v14610_v52 }
 0x3dc   : > { %v6379_v24 = vpop.f32.mrf.mxu2  ;;  %v14701_v43 = vrot.slane %v8695_v21, 5  ;;  %v7951_v61 = vsel %vm12248_vm13, %v7949_v8, %v7950_v32  ;;  %v7379_v14 = vshll.u32 %v14583_v0, 16  ;;  %v8034_v13 = vunpack.c.l.b16 %v7948_v2 }
 0x3dd   : > { %v14680_v27 = vpop.f32.mrf.mxu1  ;;  %v6380_v5 = vadd.f32 %v6379_v24, %v14150_v49  ;;  %v11315_v49 = vrot.slane %v9253_v12, 9  ;;  %v8035_v24 = vunpack.c.l.b16 %v7951_v61  ;;  %v7366_v52 = vor.u32 %v7365_v11, %v7362_v63 }
 0x3de   : > { %8457 = vmatmul.bf16.gmra.mxu3 %v11578_v51  ;;  %v8577_v51 = vld [vmem:[#allocation2 + $0x48] sm:$0xf]  ;;  %v8684_v53 = vsel %vm11791_vm2, %v8679_v19, %v8683_v7  ;;  %v8692_v21 = vor.u32 %v8691_v39, %v8688_v41  ;;  %v9453_v55 = vunpack.c.l.b16 %v9359_v36  ;;  %v14714_v2 = vunpack.c.l.b16 %v8674_v20  ;;  %v7167_v36 = vld [vmem:[#allocation2 + $0x6c] sm:$0xf] }
 0x3df   : > { %v14689_v1 = vadd.f32 %v14605_v58, %v6380_v5  ;;  %v8701_v58 = vrot.slane %v8699_v18, 4  ;;  %v9356_v6 = vsel %vm12248_vm13, %v11315_v49, %v9355_v26  ;;  %v7377_v18 = vrot.slane %v7376_v50, 4  ;;  %v14725_v49 = vld [vmem:[#allocation2 + $0x70] sm:$0xf] }
 0x3e0   : > { %7742 = vmatmul.bf16.gmra.mxu1 %v7630_v35  ;;  %v14712_v0 = vpack.c.b16 %v8035_v24, %v8034_v13  ;;  %v9452_v63 = vunpack.c.l.b16 %v9356_v6  ;;  %v7381_v19 = vrot.slane %v7379_v14, 5  ;;  %v14720_v41 = vunpack.c.l.b16 %v8684_v53  ;;  %v14746_v53 = vld [vmem:[#allocation2 + $0x7c] sm:$0xf] }
 0x3e1   : > { %v14692_v16 = vpop.f32.mrf.mxu3  ;;  %v8702_v26 = vor.u32 %v8701_v58, %v14701_v43  ;;  %v8713_v39 = vshll.u32 %v8577_v51, 16  ;;  %v7367_v8 = vrot.slane %v7366_v52, 4  ;;  %v14722_v32 = vrot.slane %v8692_v21, 4  ;;  %v14738_v6 = vpop.f32.mrf.mxu0  ;;  %v7834_v21 = vld [vmem:[#allocation2 + $0x78] sm:$0xe] }
 0x3e2   : > { %9139 = vmatmul.bf16.gmra.mxu0 %v9047_v54  ;;  %v8710_v54 = vshrl.u32 %v8577_v51, 16  ;;  %v8705_v50 = vshll.u32 %v14334_v44, 16  ;;  %v14727_v20 = vpack.c.b16 %v9453_v55, %v9452_v63  ;;  %v7393_v58 = vshll.u32 %v14667_v47, 16  ;;  %15964 = vst [vmem:[#allocation49_spill] sm:$0xff] %v14738_v6 }
 0x3e3   : > { %v7397_v61 = vshrl.u32 %v14667_v47, 16  ;;  %v7384_v51 = vshrl.u32 %v7167_v36, 16  ;;  %v7387_v13 = vshll.u32 %v7167_v36, 16  ;;  %v8703_v24 = vrot.slane %v8702_v26, 4 }
 0x3e4   : > { %v6381_v35 = vpop.f32.mrf.mxu2  ;;  %15962 = vst [vmem:[#allocation47_spill] sm:$0xff] %v14727_v20  ;;  %v8712_v44 = vrot.slane %v8710_v54, 4  ;;  %v9048_v52 = vpack.c.b16 %v14720_v41, %v14714_v2  ;;  %v8715_v47 = vrot.slane %v8713_v39, 5  ;;  %v9362_v55 = vrot.slane %v14725_v49, 5  ;;  %v14756_v2 = vld [vmem:[#allocation2 + $0x80] sm:$0x1] }
 0x3e5   : > { %v14717_v11 = vpop.f32.mrf.mxu1  ;;  %v6382_v7 = vadd.f32 %v6381_v35, %v14177_v4  ;;  %v7382_v4 = vsel %vm11791_vm2, %v7377_v18, %v7381_v19  ;;  %v11579_v35 = vld [vmem:[#allocation2 + $0x30] sm:$0xff]  ;;  %v8707_v26 = vrot.slane %v8705_v50, 5  ;;  %v7954_v54 = vrot.slane %v14746_v53, 5 }
 0x3e6   : > { %v7607_v18 = vunpack.c.l.b16 %v7382_v4  ;;  %v7399_v63 = vrot.slane %v7397_v61, 4  ;;  %v8723_v19 = vshrl.u32 %v14428_v17, 16  ;;  %v7386_v39 = vrot.slane %v7384_v51, 4  ;;  %v14760_v4 = vld [vmem:[#allocation2 + $0x74] sm:$0x1] }
 0x3e7   : > { %v14730_v10 = vadd.f32 %v14657_v38, %v6382_v7  ;;  %v7372_v38 = vsel %vm11791_vm2, %v7367_v8, %v14672_v40  ;;  %v14754_v40 = vrot.slane %v7393_v58, 5  ;;  %v8719_v7 = vshll.u32 %v14428_v17, 16 }
 0x3e8   : > { %v7606_v36 = vunpack.c.l.b16 %v7372_v38  ;;  %v7389_v8 = vrot.slane %v7387_v13, 5  ;;  %v11094_v5 = vrot.slane %v7834_v21, 9  ;;  %v8708_v50 = vsel %vm11791_vm2, %v8703_v24, %v8707_v26  ;;  %v9254_v13 = vld [vmem:[#allocation2 + $0x6c] sm:$0xe] }
 0x3e9   : > { %15963 = vst [vmem:[#allocation48_spill] sm:$0xff] %v14730_v10  ;;  %v14736_v14 = vpop.f32.mrf.mxu3  ;;  %8143 = vmatmul.bf16.gmra.mxu2 %v14642_v33  ;;  %v8698_v33 = vsel %vm11791_vm2, %v14722_v32, %v14701_v43  ;;  %v8716_v58 = vor.u32 %v8715_v47, %v8712_v44  ;;  %v9364_v61 = vrot.slane %v9362_v55, 4  ;;  %v7956_v38 = vrot.slane %v7954_v54, 4 }
 0x3ea   : > { %v7631_v12 = vpack.c.b16 %v7607_v18, %v7606_v36  ;;  %v7955_v17 = vsel %vm12248_vm13, %v11094_v5, %v7954_v54  ;;  %v7957_v51 = vrot.slane %v14756_v2, 5  ;;  %v7400_v20 = vor.u32 %v7399_v63, %v14754_v40 }
 0x3eb   : > { %v7390_v44 = vor.u32 %v7389_v8, %v7386_v39  ;;  %v7403_v47 = vshll.u32 %v14674_v29, 16  ;;  %v8725_v5 = vrot.slane %v8723_v19, 4  ;;  %v8036_v26 = vunpack.c.l.b16 %v7955_v17  ;;  %v14790_v39 = vpop.f32.mrf.mxu0 }
 0x3ec   : > { %v6384_v41 = vpop.f32.mrf.mxu2  ;;  %v7958_v18 = vsel %vm12248_vm13, %v7956_v38, %v7957_v51  ;;  %v14788_v36 = vunpack.c.l.b16 %v8698_v33  ;;  %15968 = vst [vmem:[#allocation51_spill] sm:$0xff] %v14790_v39  ;;  %v7401_v29 = vrot.slane %v7400_v20, 4  ;;  %v14792_v19 = vunpack.c.l.b16 %v8708_v50 }
 0x3ed   : > { %v14762_v43 = vpop.f32.mrf.mxu1  ;;  %v6385_v32 = vadd.f32 %v6384_v41, %v14206_v9  ;;  %v14774_v9 = vrot.slane %v8719_v7, 5  ;;  %v8037_v54 = vunpack.c.l.b16 %v7958_v18  ;;  %v15966_v7 = vunpack.c.l.b16 %v14625_v23 }
 0x3ee   : > { %8462 = vmatmul.bf16.gmra.mxu3 %v11579_v35  ;;  %v9365_v35 = vrot.slane %v14760_v4, 5  ;;  %v7421_v23 = vshrl.u32 %v14746_v53, 16  ;;  %v8729_v33 = vshll.u32 %v14442_v62, 16  ;;  %v7391_v50 = vrot.slane %v7390_v44, 4 }
 0x3ef   : > { %v14771_v21 = vadd.f32 %v14692_v16, %v6385_v32  ;;  %v11316_v16 = vrot.slane %v9254_v13, 9  ;;  %v14794_v8 = vpack.c.b16 %v8037_v54, %v8036_v26  ;;  %v7405_v51 = vrot.slane %v7403_v47, 5  ;;  %v14807_v26 = vld [vmem:[#allocation2 + $0x7c] sm:$0xf] }
 0x3f0   : > { %7747 = vmatmul.bf16.gmra.mxu1 %v7631_v12  ;;  %v9366_v63 = vsel %vm12248_vm13, %v9364_v61, %v9365_v35  ;;  %v15967_v12 = vunpack.c.l.b16 %v14635_v57  ;;  %v7170_v61 = vld [vmem:[#allocation2 + $0x78] sm:$0xf]  ;;  %v8717_v57 = vrot.slane %v8716_v58, 4  ;;  %v8726_v13 = vor.u32 %v8725_v5, %v14774_v9  ;;  %v8580_v35 = vld [vmem:[#allocation2 + $0x54] sm:$0xf] }
 0x3f1   : > { %15965 = vst [vmem:[#allocation50_spill] sm:$0xff] %v14771_v21  ;;  %v14777_v24 = vpop.f32.mrf.mxu3  ;;  %v9363_v32 = vsel %vm12248_vm13, %v11316_v16, %v9362_v55  ;;  %v8743_v55 = vshll.u32 %v14538_v60, 16  ;;  %v8747_v18 = vshrl.u32 %v14538_v60, 16  ;;  %v7406_v62 = vsel %vm11791_vm2, %v7401_v29, %v7405_v51  ;;  %v11582_v21 = vld [vmem:[#allocation2 + $0x54] sm:$0xff] }
 0x3f2   : > { %9144 = vmatmul.bf16.gmra.mxu0 %v9048_v52  ;;  %v8052_v41 = vpack.c.b16 %v15967_v12, %v15966_v7  ;;  %v7417_v52 = vshll.u32 %v14746_v53, 16  ;;  %v9454_v54 = vunpack.c.l.b16 %v9363_v32  ;;  %v9455_v53 = vunpack.c.l.b16 %v9366_v63  ;;  %v14825_v12 = vld [vmem:[#allocation2 + $0x88] sm:$0xf] }
 0x3f3   : > { %v7408_v44 = vshrl.u32 %v7170_v61, 16  ;;  %v7411_v5 = vshll.u32 %v7170_v61, 16  ;;  %v7423_v60 = vrot.slane %v7421_v23, 4  ;;  %v8727_v63 = vrot.slane %v8726_v13, 4 }
 0x3f4   : > { %v6386_v17 = vpop.f32.mrf.mxu2  ;;  %v14819_v16 = vrot.slane %v7417_v52, 5  ;;  %v14821_v7 = vpack.c.b16 %v9455_v53, %v9454_v54  ;;  %v9369_v32 = vrot.slane %v14807_v26, 5  ;;  %v7609_v29 = vunpack.c.l.b16 %v7406_v62  ;;  %v14836_v53 = vld [vmem:[#allocation2 + $0x80] sm:$0x1] }
 0x3f5   : > { %v14801_v38 = vpop.f32.mrf.mxu1  ;;  %v6387_v20 = vadd.f32 %v6386_v17, %v14248_v37  ;;  %v7396_v37 = vsel %vm11791_vm2, %v7391_v50, %v14754_v40  ;;  %v8734_v40 = vshrl.u32 %v8580_v35, 16  ;;  %v8722_v17 = vsel %vm11791_vm2, %v8717_v57, %v14774_v9  ;;  %v14839_v9 = vpop.f32.mrf.mxu0 }
 0x3f6   : > { %15970 = vst [vmem:[#allocation53_spill] sm:$0xff] %v14821_v7  ;;  %v8731_v61 = vrot.slane %v8729_v33, 5  ;;  %v8737_v52 = vshll.u32 %v8580_v35, 16  ;;  %v7111_v23 = vadd.f32 %v14024_v15, %v14072_v42  ;;  %v14833_v50 = vrot.slane %v8743_v55, 5  ;;  %v15972_v33 = vld [vmem:[#allocation10_spill] sm:$0xff] }
 0x3f7   : > { %v14810_v58 = vadd.f32 %v14736_v14, %v6387_v20  ;;  %v9049_v14 = vpack.c.b16 %v14792_v19, %v14788_v36  ;;  %v11580_v20 = vld [vmem:[#allocation2 + $0x3c] sm:$0xff]  ;;  %v8749_v36 = vrot.slane %v8747_v18, 4  ;;  %v7410_v51 = vrot.slane %v7408_v44, 4  ;;  %15971 = vst [vmem:[#allocation54_spill] sm:$0xff] %v14839_v9  ;;  %v7835_v55 = vld [vmem:[#allocation2 + $0x84] sm:$0xe] }
 0x3f8   : > { %v7413_v13 = vrot.slane %v7411_v5, 5  ;;  %v7424_v54 = vor.u32 %v7423_v60, %v14819_v16  ;;  %v7961_v62 = vrot.slane %v14825_v12, 5  ;;  %v8732_v15 = vsel %vm11791_vm2, %v8727_v63, %v8731_v61  ;;  %v14849_v60 = vld [vmem:[#allocation2 + $0x8c] sm:$0x1]  ;;  %v9255_v9 = vld [vmem:[#allocation2 + $0x78] sm:$0xe] }
 0x3f9   : > { %15969 = vst [vmem:[#allocation52_spill] sm:$0xff] %v14810_v58  ;;  %v14817_v47 = vpop.f32.mrf.mxu3  ;;  %8148 = vmatmul.bf16.gmra.mxu2 %v8052_v41  ;;  %v7608_v41 = vunpack.c.l.b16 %v7396_v37  ;;  %v14844_v42 = vrot.slane %v8734_v40, 4  ;;  %v9371_v18 = vrot.slane %v9369_v32, 4  ;;  %v7427_v5 = vshll.u32 %v14756_v2, 16  ;;  %v11611_v2 = vld [vmem:[%s15833_s3 + $0x210] sm:$0xff] }
 0x3fa   : > { %v8739_v7 = vrot.slane %v8737_v52, 5  ;;  %v8750_v63 = vor.u32 %v8749_v36, %v14833_v50  ;;  %v9372_v40 = vrot.slane %v14836_v53, 5  ;;  %v8583_v52 = vld [vmem:[#allocation2 + $0x60] sm:$0xf]  ;;  %9557 = vmatpush.bf16.msra.mxu1 %v11611_v2  ;;  %v15976_v2 = vld [vmem:[#allocation26_spill] sm:$0xff] }
 0x3fb   : > { %v7632_v44 = vpack.c.b16 %v7609_v29, %v7608_v41  ;;  %v7425_v29 = vrot.slane %v7424_v54, 4  ;;  %v11095_v41 = vrot.slane %v7835_v55, 9  ;;  %v8758_v55 = vshrl.u32 %v8583_v52, 16 }
 0x3fc   : > { %v6389_v19 = vpop.f32.mrf.mxu2  ;;  %v9373_v36 = vsel %vm12248_vm13, %v9371_v18, %v9372_v40  ;;  %v15975_v18 = vld [vmem:[#allocation13_spill] sm:$0xff] }
 0x3fd   : > { %v7713_v57 = vpop.f32.mrf.mxu1  ;;  %v6390_v35 = vadd.f32 %v6389_v19, %v15972_v33  ;;  %v7963_v19 = vrot.slane %v7961_v62, 4  ;;  %v7429_v33 = vrot.slane %v7427_v5, 5  ;;  %v7962_v54 = vsel %vm12248_vm13, %v11095_v41, %v7961_v62 }
 0x3fe   : > { %8467 = vmatmul.bf16.gmra.mxu3 %v11580_v20  ;;  %v14846_v37 = vadd.f32 %v7713_v57, %v7111_v23  ;;  %v14854_v20 = vunpack.c.l.b16 %v8722_v17  ;;  %v7414_v23 = vor.u32 %v7413_v13, %v7410_v51  ;;  %v7964_v17 = vrot.slane %v14849_v60, 5 }
 0x3ff   : > { %v14852_v58 = vadd.f32 %v14777_v24, %v6390_v35  ;;  %v14863_v24 = vunpack.c.l.b16 %v8732_v15  ;;  %v11317_v57 = vrot.slane %v9255_v9, 9  ;;  %v8740_v51 = vor.u32 %v8739_v7, %v14844_v42 }
 0x400   : > { %7752 = vmatmul.bf16.gmra.mxu1 %v7632_v44  ;;  %v8753_v13 = vshll.u32 %v14556_v46, 16  ;;  %v8751_v35 = vrot.slane %v8750_v63, 4  ;;  %v7965_v15 = vsel %vm12248_vm13, %v7963_v19, %v7964_v17  ;;  %v15974_v44 = vld [vmem:[#allocation15_spill] sm:$0xff]  ;;  %v7415_v40 = vrot.slane %v7414_v23, 4  ;;  %v7173_v63 = vld [vmem:[#allocation2 + $0x84] sm:$0xf] }
 0x401   : > { %15973 = vst [vmem:[#allocation10_spill] sm:$0xff] %v14852_v58  ;;  %v14858_v61 = vpop.f32.mrf.mxu3  ;;  %v9370_v9 = vsel %vm12248_vm13, %v11317_v57, %v9369_v32  ;;  %v7430_v7 = vsel %vm11791_vm2, %v7425_v29, %v7429_v33  ;;  %v8761_v46 = vshll.u32 %v8583_v52, 16  ;;  %v7441_v41 = vshll.u32 %v14825_v12, 16  ;;  %v14882_v58 = vld [vmem:[#allocation2 + $0x88] sm:$0xf] }
 0x402   : > { %9149 = vmatmul.bf16.gmra.mxu0 %v9049_v14  ;;  %v7112_v14 = vadd.f32 %v15975_v18, %v15974_v44  ;;  %v8038_v19 = vunpack.c.l.b16 %v7962_v54  ;;  %v8039_v17 = vunpack.c.l.b16 %v7965_v15  ;;  %v7445_v57 = vshrl.u32 %v14825_v12, 16  ;;  %v14887_v18 = vpop.f32.mrf.mxu0 }
 0x403   : > { %v9456_v44 = vunpack.c.l.b16 %v9370_v9  ;;  %v9457_v23 = vunpack.c.l.b16 %v9373_v36  ;;  %15977 = vst [vmem:[#allocation15_spill] sm:$0xff] %v14887_v18  ;;  %v7420_v52 = vsel %vm11791_vm2, %v7415_v40, %v14819_v16  ;;  %v8755_v33 = vrot.slane %v8753_v13, 5  ;;  %v15980_v36 = vld [vmem:[#allocation8_spill] sm:$0xff] }
 0x404   : > { %v6391_v5 = vpop.f32.mrf.mxu2  ;;  %v7432_v15 = vshrl.u32 %v7173_v63, 16  ;;  %v9376_v12 = vrot.slane %v14882_v58, 5  ;;  %v7611_v9 = vunpack.c.l.b16 %v7430_v7  ;;  %v9256_v13 = vld [vmem:[#allocation2 + $0x84] sm:$0xe]  ;;  %v14907_v40 = vrot.slane %v7441_v41, 5 }
 0x405   : > { %v7715_v42 = vpop.f32.mrf.mxu1  ;;  %v6392_v62 = vadd.f32 %v6391_v5, %v15976_v2  ;;  %v14895_v5 = vpack.c.b16 %v8039_v17, %v8038_v19  ;;  %v8741_v2 = vrot.slane %v8740_v51, 4  ;;  %v8756_v16 = vsel %vm11791_vm2, %v8751_v35, %v8755_v33  ;;  %v15981_v17 = vld [vmem:[#allocation18_spill] sm:$0xff] }
 0x406   : > { %v14884_v32 = vadd.f32 %v7715_v42, %v7112_v14  ;;  %v7435_v14 = vshll.u32 %v7173_v63, 16  ;;  %v14899_v42 = vpack.c.b16 %v9457_v23, %v9456_v44  ;;  %v8760_v19 = vrot.slane %v8758_v55, 4  ;;  %v15982_v44 = vld [vmem:[#allocation14_spill] sm:$0xff] }
 0x407   : > { %v14890_v29 = vadd.f32 %v14817_v47, %v6392_v62  ;;  %v9050_v47 = vpack.c.b16 %v14863_v24, %v14854_v20  ;;  %v7447_v62 = vrot.slane %v7445_v57, 4  ;;  %v8763_v63 = vrot.slane %v8761_v46, 5  ;;  %v14913_v20 = vld [vmem:[#allocation2 + $0x8c] sm:$0x1] }
 0x408   : > { %15979 = vst [vmem:[#allocation26_spill] sm:$0xff] %v14899_v42  ;;  %v7113_v23 = vadd.f32 %v15982_v44, %v15981_v17  ;;  %v7610_v42 = vunpack.c.l.b16 %v7420_v52  ;;  %v8767_v7 = vshll.u32 %v14627_v48, 16  ;;  %v7434_v51 = vrot.slane %v7432_v15, 4 }
 0x409   : > { %15978 = vst [vmem:[#allocation13_spill] sm:$0xff] %v14890_v29  ;;  %v14897_v54 = vpop.f32.mrf.mxu3  ;;  %8153 = vmatmul.bf16.gmra.mxu2 %v15980_v36  ;;  %v11581_v29 = vld [vmem:[#allocation2 + $0x48] sm:$0xff]  ;;  %v8771_v36 = vshrl.u32 %v14627_v48, 16  ;;  %v7437_v35 = vrot.slane %v7435_v14, 5  ;;  %v11318_v33 = vrot.slane %v9256_v13, 9  ;;  %v9378_v41 = vrot.slane %v9376_v12, 4 }
 0x40a   : > { %v7633_v46 = vpack.c.b16 %v7611_v9, %v7610_v42  ;;  %v8746_v57 = vsel %vm11791_vm2, %v8741_v2, %v14833_v50  ;;  %v14919_v52 = vunpack.c.l.b16 %v8756_v16  ;;  %v7448_v48 = vor.u32 %v7447_v62, %v14907_v40  ;;  %v14941_v16 = vpop.f32.mrf.mxu0 }
 0x40b   : > { %v9377_v15 = vsel %vm12248_vm13, %v11318_v33, %v9376_v12  ;;  %v9379_v14 = vrot.slane %v14913_v20, 5  ;;  %v14932_v42 = vrot.slane %v8771_v36, 4  ;;  %v7451_v9 = vshll.u32 %v14849_v60, 16  ;;  %15984 = vst [vmem:[#allocation18_spill] sm:$0xff] %v14941_v16  ;;  %v15986_v33 = vld [vmem:[#allocation17_spill] sm:$0xff] }
 0x40c   : > { %v6394_v24 = vpop.f32.mrf.mxu2  ;;  %v14937_v2 = vunpack.c.l.b16 %v8746_v57  ;;  %v9458_v62 = vunpack.c.l.b16 %v9377_v15 }
 0x40d   : > { %v7718_v18 = vpop.f32.mrf.mxu1  ;;  %v6395_v55 = vadd.f32 %v6394_v24, %v14384_v56  ;;  %v8764_v56 = vor.u32 %v8763_v63, %v8760_v19  ;;  %v9380_v12 = vsel %vm12248_vm13, %v9378_v41, %v9379_v14  ;;  %v7449_v63 = vrot.slane %v7448_v48, 4  ;;  %v15987_v41 = vld [vmem:[#allocation16_spill] sm:$0xff]  ;;  %v14958_v48 = vld [vmem:[#allocation2 + $0x98] sm:$0x1] }
 0x40e   : > { %8472 = vmatmul.bf16.gmra.mxu3 %v11581_v29  ;;  %v14921_v17 = vadd.f32 %v7718_v18, %v7113_v23  ;;  %v14930_v29 = vrot.slane %v8767_v7, 5  ;;  %v7438_v18 = vor.u32 %v7437_v35, %v7434_v51  ;;  %v9459_v19 = vunpack.c.l.b16 %v9380_v12  ;;  %v7177_v23 = vld [vmem:[#allocation2 + $0x94] sm:$0xf]  ;;  %v7836_v7 = vld [vmem:[#allocation2 + $0x90] sm:$0xe] }
 0x40f   : > { %v14928_v13 = vadd.f32 %v14858_v61, %v6395_v55  ;;  %v14943_v61 = vld [vmem:[#allocation2 + $0x6c] sm:$0xf]  ;;  %v14947_v36 = vrot.slane %v8764_v56, 4  ;;  %v14952_v51 = vld [vmem:[#allocation2 + $0x94] sm:$0xf]  ;;  %v7453_v57 = vrot.slane %v7451_v9, 5 }
 0x410   : > { %7757 = vmatmul.bf16.gmra.mxu1 %v7633_v46  ;;  %v14954_v35 = vpack.c.b16 %v9459_v19, %v9458_v62  ;;  %v7439_v46 = vrot.slane %v7438_v18, 4  ;;  %v8782_v15 = vshrl.u32 %v14943_v61, 16  ;;  %v7176_v12 = vld [vmem:[#allocation2 + $0x90] sm:$0xf]  ;;  %v7465_v44 = vshll.u32 %v7177_v23, 16 }
 0x411   : > { %15983 = vst [vmem:[#allocation8_spill] sm:$0xff] %v14928_v13  ;;  %v14934_v50 = vpop.f32.mrf.mxu3  ;;  %v11096_v24 = vrot.slane %v7836_v7, 9  ;;  %v7968_v60 = vrot.slane %v7177_v23, 5  ;;  %v7454_v62 = vsel %vm11791_vm2, %v7449_v63, %v7453_v57  ;;  %v7469_v19 = vshrl.u32 %v7177_v23, 16  ;;  %v9257_v18 = vld [vmem:[#allocation2 + $0x90] sm:$0xe] }
 0x412   : > { %9154 = vmatmul.bf16.gmra.mxu0 %v9050_v47  ;;  %15985 = vst [vmem:[#allocation14_spill] sm:$0xff] %v14954_v35  ;;  %v7114_v47 = vadd.f32 %v15987_v41, %v15986_v33  ;;  %v14966_v33 = vld [vmem:[#allocation2 + $0x98] sm:$0x1]  ;;  %v9383_v9 = vrot.slane %v14952_v51, 5  ;;  %v7971_v7 = vrot.slane %v14958_v48, 5  ;;  %v8785_v23 = vshll.u32 %v14943_v61, 16 }
 0x413   : > { %v8791_v57 = vshll.u32 %v14725_v49, 16  ;;  %v15989_v35 = vld [vmem:[#allocation24_spill] sm:$0xff]  ;;  %v7459_v16 = vshll.u32 %v7176_v12, 16  ;;  %v14988_v61 = vrot.slane %v7465_v44, 5  ;;  %v7471_v6 = vrot.slane %v7469_v19, 4 }
 0x414   : > { %v6396_v55 = vpop.f32.mrf.mxu2 }
 0x415   : > { %v7720_v14 = vpop.f32.mrf.mxu1  ;;  %v6397_v56 = vadd.f32 %v6396_v55, %v14444_v45  ;;  %v7969_v45 = vsel %vm12248_vm13, %v11096_v24, %v7968_v60  ;;  %v7970_v55 = vrot.slane %v7968_v60, 4  ;;  %v11319_v60 = vrot.slane %v9257_v18, 9  ;;  %v15992_v18 = vld [vmem:[#allocation19_spill] sm:$0xff] }
 0x416   : > { %v14962_v13 = vadd.f32 %v7720_v14, %v7114_v47  ;;  %v7444_v47 = vsel %vm11791_vm2, %v7439_v46, %v14907_v40  ;;  %v9385_v14 = vrot.slane %v9383_v9, 4  ;;  %v8040_v39 = vunpack.c.l.b16 %v7969_v45  ;;  %v14986_v46 = vpop.f32.mrf.mxu0 }
 0x417   : > { %v14970_v41 = vadd.f32 %v14897_v54, %v6397_v56  ;;  %v7456_v54 = vshrl.u32 %v7176_v12, 16  ;;  %v7972_v24 = vsel %vm12248_vm13, %v7970_v55, %v7971_v7  ;;  %v9386_v56 = vrot.slane %v14966_v33, 5  ;;  %15990 = vst [vmem:[#allocation16_spill] sm:$0xff] %v14986_v46  ;;  %v15991_v55 = vld [vmem:[#allocation4_spill] sm:$0xff]  ;;  %v15994_v46 = vld [vmem:[#allocation35_spill] sm:$0xff] }
 0x418   : > { %v8041_v40 = vunpack.c.l.b16 %v7972_v24  ;;  %v7115_v7 = vadd.f32 %v15992_v18, %v15991_v55  ;;  %v8795_v12 = vshrl.u32 %v14725_v49, 16  ;;  %v7461_v55 = vrot.slane %v7459_v16, 5 }
 0x419   : > { %15988 = vst [vmem:[#allocation17_spill] sm:$0xff] %v14970_v41  ;;  %v14978_v63 = vpop.f32.mrf.mxu3  ;;  %8158 = vmatmul.bf16.gmra.mxu2 %v15989_v35  ;;  %v7613_v41 = vunpack.c.l.b16 %v7454_v62  ;;  %v9384_v35 = vsel %vm12248_vm13, %v11319_v60, %v9383_v9  ;;  %v9387_v10 = vsel %vm12248_vm13, %v9385_v14, %v9386_v56  ;;  %v7612_v62 = vunpack.c.l.b16 %v7444_v47 }
 0x41a   : > { %v14997_v45 = vpack.c.b16 %v8041_v40, %v8040_v39  ;;  %v7458_v19 = vrot.slane %v7456_v54, 4  ;;  %v8770_v9 = vsel %vm11791_vm2, %v14947_v36, %v14930_v29  ;;  %v9461_v14 = vunpack.c.l.b16 %v9387_v10  ;;  %v11610_v10 = vld [vmem:[%s15833_s3 + $0x208] sm:$0xff] }
 0x41b   : > { %v7634_v56 = vpack.c.b16 %v7613_v41, %v7612_v62  ;;  %v9460_v47 = vunpack.c.l.b16 %v9384_v35  ;;  %v7472_v39 = vor.u32 %v7471_v6, %v14988_v61  ;;  %v8784_v54 = vrot.slane %v8782_v15, 4  ;;  %9558 = vmatpush.bf16.msra.mxu1 %v11610_v10  ;;  %v8589_v35 = vld [vmem:[#allocation2 + $0x78] sm:$0xf]  ;;  %v16000_v62 = vld [vmem:[#allocation21_spill] sm:$0xff] }
 0x41c   : > { %v6399_v59 = vpop.f32.mrf.mxu2  ;;  %15993 = vst [vmem:[#allocation24_spill] sm:$0xff] %v14997_v45  ;;  %v8787_v36 = vrot.slane %v8785_v23, 5  ;;  %v15018_v16 = vrot.slane %v8791_v57, 5  ;;  %v8797_v41 = vrot.slane %v8795_v12, 4  ;;  %v7475_v6 = vshll.u32 %v14958_v48, 16  ;;  %v16001_v12 = vld [vmem:[#allocation3_spill] sm:$0xff] }
 0x41d   : > { %v7723_v24 = vpop.f32.mrf.mxu1  ;;  %v6400_v44 = vadd.f32 %v6399_v59, %v15994_v46  ;;  %v15996_v59 = vor.u32 %v14932_v42, %v14930_v29  ;;  %v15998_v46 = vshll.u32 %v14645_v22, 16  ;;  %v15999_v42 = vpack.c.b16 %v14919_v52, %v14937_v2 }
 0x41e   : > { %8477 = vmatmul.bf16.gmra.mxu3 %v11582_v21  ;;  %v15004_v60 = vadd.f32 %v7723_v24, %v7115_v7  ;;  %v7462_v15 = vor.u32 %v7461_v55, %v7458_v19  ;;  %v7473_v18 = vrot.slane %v7472_v39, 4  ;;  %v15030_v57 = vunpack.c.l.b16 %v8770_v9  ;;  %v7180_v7 = vld [vmem:[#allocation2 + $0xa0] sm:$0xf]  ;;  %v15036_v2 = vpop.f32.mrf.mxu0 }
 0x41f   : > { %v15007_v49 = vadd.f32 %v14934_v50, %v6400_v44  ;;  %v8775_v21 = vrot.slane %v15996_v59, 4  ;;  %v15020_v50 = vpack.c.b16 %v9461_v14, %v9460_v47  ;;  %v8779_v29 = vrot.slane %v15998_v46, 5  ;;  %16002 = vst [vmem:[#allocation35_spill] sm:$0xff] %v15036_v2  ;;  %v16003_v14 = vld [vmem:[#allocation40_spill] sm:$0xff]  ;;  %v7179_v47 = vld [vmem:[#allocation2 + $0x9c] sm:$0xf] }
 0x420   : > { %7762 = vmatmul.bf16.gmra.mxu1 %v7634_v56  ;;  %v7116_v48 = vadd.f32 %v16001_v12, %v16000_v62  ;;  %v8788_v22 = vor.u32 %v8787_v36, %v8784_v54  ;;  %v8798_v44 = vor.u32 %v8797_v41, %v15018_v16  ;;  %v8801_v52 = vshll.u32 %v14760_v4, 16  ;;  %v15041_v46 = vld [vmem:[#allocation2 + $0xa4] sm:$0x1]  ;;  %v7837_v54 = vld [vmem:[#allocation2 + $0x9c] sm:$0xe] }
 0x421   : > { %15995 = vst [vmem:[#allocation4_spill] sm:$0xff] %v15007_v49  ;;  %v15013_v40 = vpop.f32.mrf.mxu3  ;;  %v8780_v23 = vsel %vm11791_vm2, %v8775_v21, %v8779_v29  ;;  %v7477_v55 = vrot.slane %v7475_v6, 5  ;;  %v8806_v39 = vshrl.u32 %v8589_v35, 16  ;;  %v8809_v9 = vshll.u32 %v8589_v35, 16  ;;  %v16005_v12 = vld [vmem:[#allocation32_spill] sm:$0xff]  ;;  %v16008_v49 = vld [vmem:[#allocation43_spill] sm:$0xff] }
 0x422   : > { %15997 = vst [vmem:[#allocation19_spill] sm:$0xff] %v15020_v50  ;;  %9159 = vmatmul.bf16.gmra.mxu0 %v15999_v42  ;;  %v7463_v21 = vrot.slane %v7462_v15, 4  ;;  %v9027_v10 = vunpack.c.l.b16 %v8780_v23  ;;  %v7975_v36 = vrot.slane %v7180_v7, 5  ;;  %v7489_v29 = vshll.u32 %v7180_v7, 16  ;;  %v11583_v50 = vld [vmem:[#allocation2 + $0x60] sm:$0xff] }
 0x423   : > { %v7478_v4 = vsel %vm11791_vm2, %v7473_v18, %v7477_v55  ;;  %v7493_v42 = vshrl.u32 %v7180_v7, 16  ;;  %v8789_v15 = vrot.slane %v8788_v22, 4  ;;  %v8799_v23 = vrot.slane %v8798_v44, 4  ;;  %v15055_v55 = vld [vmem:[#allocation2 + $0xa0] sm:$0xf] }
 0x424   : > { %v6401_v24 = vpop.f32.mrf.mxu2  ;;  %v7468_v6 = vsel %vm11791_vm2, %v7463_v21, %v14988_v61  ;;  %v7977_v62 = vrot.slane %v7975_v36, 4  ;;  %v8803_v18 = vrot.slane %v8801_v52, 5  ;;  %v8811_v7 = vrot.slane %v8809_v9, 5 }
 0x425   : > { %v7725_v19 = vpop.f32.mrf.mxu1  ;;  %v6402_v56 = vadd.f32 %v6401_v24, %v16003_v14  ;;  %v7483_v24 = vshll.u32 %v7179_v47, 16  ;;  %v7615_v14 = vunpack.c.l.b16 %v7478_v4  ;;  %v15057_v61 = vrot.slane %v7489_v29, 5 }
 0x426   : > { %v15039_v59 = vadd.f32 %v7725_v19, %v7116_v48  ;;  %v7480_v48 = vshrl.u32 %v7179_v47, 16  ;;  %v7978_v19 = vrot.slane %v15041_v46, 5  ;;  %v7495_v21 = vrot.slane %v7493_v42, 4  ;;  %v16006_v47 = vld [vmem:[#allocation5_spill] sm:$0xff] }
 0x427   : > { %v15044_v41 = vadd.f32 %v14978_v63, %v6402_v56  ;;  %v11097_v63 = vrot.slane %v7837_v54, 9  ;;  %v8808_v56 = vrot.slane %v8806_v39, 4  ;;  %v16007_v54 = vld [vmem:[#allocation20_spill] sm:$0xff]  ;;  %v7614_v4 = vunpack.c.l.b16 %v7468_v6 }
 0x428   : > { %v7979_v44 = vsel %vm12248_vm13, %v7977_v62, %v7978_v19  ;;  %v8804_v52 = vsel %vm11791_vm2, %v8799_v23, %v8803_v18  ;;  %v7482_v42 = vrot.slane %v7480_v48, 4  ;;  %v7485_v2 = vrot.slane %v7483_v24, 5 }
 0x429   : > { %16004 = vst [vmem:[#allocation21_spill] sm:$0xff] %v15044_v41  ;;  %v15051_v35 = vpop.f32.mrf.mxu3  ;;  %8163 = vmatmul.bf16.gmra.mxu2 %v16005_v12  ;;  %v7976_v22 = vsel %vm12248_vm13, %v11097_v63, %v7975_v36  ;;  %v7117_v12 = vadd.f32 %v16007_v54, %v16006_v47  ;;  %v8043_v39 = vunpack.c.l.b16 %v7979_v44  ;;  %v9390_v36 = vrot.slane %v15055_v55, 5  ;;  %v15072_v47 = vld [vmem:[#allocation2 + $0xa4] sm:$0x1]  ;;  %v15074_v54 = vpop.f32.mrf.mxu0 }
 0x42a   : > { %v7635_v62 = vpack.c.b16 %v7615_v14, %v7614_v4  ;;  %v9052_v19 = vpack.c.b16 %v9027_v10, %v15030_v57  ;;  %v8042_v6 = vunpack.c.l.b16 %v7976_v22  ;;  %16010 = vst [vmem:[#allocation40_spill] sm:$0xff] %v15074_v54  ;;  %v15085_v24 = vunpack.c.l.b16 %v8804_v52  ;;  %v16014_v4 = vld [vmem:[#allocation6_spill] sm:$0xff] }
 0x42b   : > { %v8815_v57 = vshll.u32 %v14807_v26, 16  ;;  %v8819_v10 = vshrl.u32 %v14807_v26, 16  ;;  %v7499_v18 = vshll.u32 %v15041_v46, 16  ;;  %v9392_v22 = vrot.slane %v9390_v36, 4  ;;  %v16013_v26 = vld [vmem:[#allocation9_spill] sm:$0xff] }
 0x42c   : > { %v6404_v41 = vpop.f32.mrf.mxu2  ;;  %v15089_v14 = vpack.c.b16 %v8043_v39, %v8042_v6  ;;  %v9393_v44 = vrot.slane %v15072_v47, 5  ;;  %v7118_v52 = vadd.f32 %v16014_v4, %v16013_v26  ;;  %v7838_v26 = vld [vmem:[#allocation2 + $0xa8] sm:$0xe] }
 0x42d   : > { %v7728_v9 = vpop.f32.mrf.mxu1  ;;  %v6405_v29 = vadd.f32 %v6404_v41, %v16008_v49  ;;  %v7496_v49 = vor.u32 %v7495_v21, %v15057_v61  ;;  %v8812_v41 = vor.u32 %v8811_v7, %v8808_v56  ;;  %v9258_v21 = vld [vmem:[#allocation2 + $0x9c] sm:$0xe]  ;;  %v7183_v56 = vld [vmem:[#allocation2 + $0xac] sm:$0xf]  ;;  %v15101_v39 = vrot.slane %v8815_v57, 5 }
 0x42e   : > { %8482 = vmatmul.bf16.gmra.mxu3 %v11583_v50  ;;  %v15069_v63 = vadd.f32 %v7728_v9, %v7117_v12  ;;  %v8794_v50 = vsel %vm11791_vm2, %v8789_v15, %v15018_v16  ;;  %16012 = vst [vmem:[#allocation5_spill] sm:$0xff] %v15089_v14  ;;  %v9394_v12 = vsel %vm12248_vm13, %v9392_v22, %v9393_v44  ;;  %v8821_v46 = vrot.slane %v8819_v10, 4  ;;  %v15108_v22 = vld [vmem:[#allocation2 + $0xb0] sm:$0x1] }
 0x42f   : > { %v15077_v23 = vadd.f32 %v15013_v40, %v6405_v29  ;;  %v7486_v40 = vor.u32 %v7485_v2, %v7482_v42  ;;  %v7497_v16 = vrot.slane %v7496_v49, 4  ;;  %v15093_v15 = vunpack.c.l.b16 %v8794_v50  ;;  %v7182_v49 = vld [vmem:[#allocation2 + $0xa8] sm:$0xf]  ;;  %v8592_v50 = vld [vmem:[#allocation2 + $0x84] sm:$0xf]  ;;  %v16021_v14 = vld [vmem:[#allocation22_spill] sm:$0xff] }
 0x430   : > { %16009 = vst [vmem:[#allocation3_spill] sm:$0xff] %v15069_v63  ;;  %7767 = vmatmul.bf16.gmra.mxu1 %v7635_v62  ;;  %v15095_v7 = vrot.slane %v8812_v41, 4  ;;  %v11320_v9 = vrot.slane %v9258_v21, 9  ;;  %v7513_v44 = vshll.u32 %v7183_v56, 16  ;;  %v7982_v57 = vrot.slane %v7183_v56, 5 }
 0x431   : > { %16011 = vst [vmem:[#allocation32_spill] sm:$0xff] %v15077_v23  ;;  %v15083_v48 = vpop.f32.mrf.mxu3  ;;  %v7487_v62 = vrot.slane %v7486_v40, 4  ;;  %v7517_v40 = vshrl.u32 %v7183_v56, 16  ;;  %v15123_v23 = vpop.f32.mrf.mxu0 }
 0x432   : > { %9164 = vmatmul.bf16.gmra.mxu0 %v9052_v19  ;;  %v7501_v19 = vrot.slane %v7499_v18, 5  ;;  %v9391_v10 = vsel %vm12248_vm13, %v11320_v9, %v9390_v36  ;;  %v9463_v18 = vunpack.c.l.b16 %v9394_v12  ;;  %v7984_v6 = vrot.slane %v7982_v57, 4  ;;  %16017 = vst [vmem:[#allocation9_spill] sm:$0xff] %v15123_v23  ;;  %v16018_v36 = vld [vmem:[#allocation39_spill] sm:$0xff] }
 0x433   : > { %v7492_v4 = vsel %vm11791_vm2, %v7487_v62, %v15057_v61  ;;  %v11098_v9 = vrot.slane %v7838_v26, 9  ;;  %v9462_v56 = vunpack.c.l.b16 %v9391_v10  ;;  %v8833_v61 = vshll.u32 %v8592_v50, 16  ;;  %v15129_v62 = vld [vmem:[#allocation2 + $0xac] sm:$0xf]  ;;  %v16020_v26 = vld [vmem:[#allocation12_spill] sm:$0xff] }
 0x434   : > { %v6406_v2 = vpop.f32.mrf.mxu2  ;;  %v7119_v10 = vadd.f32 %v16021_v14, %v16020_v26 }
 0x435   : > { %v7730_v29 = vpop.f32.mrf.mxu1  ;;  %v6407_v42 = vadd.f32 %v6406_v2, %v14639_v25  ;;  %v7502_v25 = vsel %vm11791_vm2, %v7497_v16, %v7501_v19  ;;  %v8822_v2 = vor.u32 %v8821_v46, %v15101_v39  ;;  %v7985_v16 = vrot.slane %v15108_v22, 5 }
 0x436   : > { %v15106_v41 = vadd.f32 %v7730_v29, %v7118_v52  ;;  %v8830_v29 = vshrl.u32 %v8592_v50, 16  ;;  %v7617_v12 = vunpack.c.l.b16 %v7502_v25  ;;  %v15127_v19 = vrot.slane %v7513_v44, 5 }
 0x437   : > { %v15113_v21 = vadd.f32 %v15051_v35, %v6407_v42  ;;  %v7504_v35 = vshrl.u32 %v7182_v49, 16  ;;  %v7507_v42 = vshll.u32 %v7182_v49, 16  ;;  %v7519_v46 = vrot.slane %v7517_v40, 4 }
 0x438   : > { %16015 = vst [vmem:[#allocation20_spill] sm:$0xff] %v15106_v41  ;;  %v7983_v54 = vsel %vm12248_vm13, %v11098_v9, %v7982_v57  ;;  %v15135_v23 = vpack.c.b16 %v9463_v18, %v9462_v56  ;;  %v7616_v49 = vunpack.c.l.b16 %v7492_v4  ;;  %v8825_v44 = vshll.u32 %v14836_v53, 16 }
 0x439   : > { %16016 = vst [vmem:[#allocation43_spill] sm:$0xff] %v15113_v21  ;;  %v15120_v52 = vpop.f32.mrf.mxu3  ;;  %8168 = vmatmul.bf16.gmra.mxu2 %v16018_v36  ;;  %v11584_v21 = vld [vmem:[#allocation2 + $0x6c] sm:$0xff]  ;;  %v7986_v36 = vsel %vm12248_vm13, %v7984_v6, %v7985_v16  ;;  %v7506_v40 = vrot.slane %v7504_v35, 4  ;;  %v8823_v45 = vrot.slane %v8822_v2, 4  ;;  %v15838_v57 = vrot.slane %v15129_v62, 5 }
 0x43a   : > { %16019 = vst [vmem:[#allocation6_spill] sm:$0xff] %v15135_v23  ;;  %v8045_v50 = vunpack.c.l.b16 %v7986_v36  ;;  %v7636_v6 = vpack.c.b16 %v7617_v12, %v7616_v49  ;;  %v7509_v18 = vrot.slane %v7507_v42, 5  ;;  %v8044_v16 = vunpack.c.l.b16 %v7983_v54  ;;  %v15148_v36 = vld [vmem:[#allocation2 + $0xb0] sm:$0x1]  ;;  %v11609_v54 = vld [vmem:[%s15833_s3 + $0x200] sm:$0xff] }
 0x43b   : > { %v7520_v4 = vor.u32 %v7519_v46, %v15127_v19  ;;  %v8832_v53 = vrot.slane %v8830_v29, 4  ;;  %v8835_v56 = vrot.slane %v8833_v61, 5  ;;  %v7523_v2 = vshll.u32 %v15108_v22, 16  ;;  %9559 = vmatpush.bf16.msra.mxu1 %v11609_v54  ;;  %v15170_v61 = vpop.f32.mrf.mxu0  ;;  %v15187_v54 = vld [vmem:[#allocation2 + $0xbc] sm:$0x1] }
 0x43c   : > { %v6409_v25 = vpop.f32.mrf.mxu2  ;;  %v8827_v29 = vrot.slane %v8825_v44, 5  ;;  %v9399_v35 = vrot.slane %v15838_v57, 4  ;;  %v16023_v12 = vpack.c.b16 %v15085_v24, %v15093_v15  ;;  %v9400_v42 = vrot.slane %v15148_v36, 5  ;;  %v7185_v24 = vld [vmem:[#allocation2 + $0xb4] sm:$0xf] }
 0x43d   : > { %v7733_v41 = vpop.f32.mrf.mxu1  ;;  %v6410_v63 = vadd.f32 %v6409_v25, %v14680_v27  ;;  %v8836_v26 = vor.u32 %v8835_v56, %v8832_v53  ;;  %v16025_v25 = vld [vmem:[#allocation23_spill] sm:$0xff] }
 0x43e   : > { %8487 = vmatmul.bf16.gmra.mxu3 %v11584_v21  ;;  %v15142_v9 = vadd.f32 %v7733_v41, %v7119_v10  ;;  %v8818_v41 = vsel %vm11791_vm2, %v15095_v7, %v15101_v39  ;;  %v15161_v21 = vpack.c.b16 %v8045_v50, %v8044_v16  ;;  %v7510_v7 = vor.u32 %v7509_v18, %v7506_v40  ;;  %v7186_v39 = vld [vmem:[#allocation2 + $0xb8] sm:$0xf]  ;;  %v16024_v10 = vld [vmem:[#allocation28_spill] sm:$0xff] }
 0x43f   : > { %v15145_v14 = vadd.f32 %v15083_v48, %v6410_v63  ;;  %v8839_v63 = vshll.u32 %v14882_v58, 16  ;;  %v8843_v48 = vshrl.u32 %v14882_v58, 16  ;;  %v7521_v58 = vrot.slane %v7520_v4, 4 }
 0x440   : > { %16022 = vst [vmem:[#allocation39_spill] sm:$0xff] %v15142_v9  ;;  %7772 = vmatmul.bf16.gmra.mxu1 %v7636_v6  ;;  %v8828_v46 = vsel %vm11791_vm2, %v8823_v45, %v8827_v29  ;;  %v15174_v22 = vunpack.c.l.b16 %v8818_v41  ;;  %v7120_v49 = vadd.f32 %v16025_v25, %v16024_v10  ;;  %v15182_v40 = vsel %vm12248_vm13, %v9399_v35, %v9400_v42  ;;  %v7839_v29 = vld [vmem:[#allocation2 + $0xb4] sm:$0xe] }
 0x441   : > { %v15150_v27 = vpop.f32.mrf.mxu3  ;;  %v15178_v15 = vrot.slane %v8839_v63, 5  ;;  %v8845_v50 = vrot.slane %v8843_v48, 4  ;;  %v7525_v16 = vrot.slane %v7523_v2, 5  ;;  %v7537_v45 = vshll.u32 %v7186_v39, 16 }
 0x442   : > { %9169 = vmatmul.bf16.gmra.mxu0 %v16023_v12  ;;  %v7541_v4 = vshrl.u32 %v7186_v39, 16  ;;  %v7511_v53 = vrot.slane %v7510_v7, 4  ;;  %v9031_v56 = vunpack.c.l.b16 %v8828_v46  ;;  %v7989_v63 = vrot.slane %v7186_v39, 5 }
 0x443   : > { %v7526_v35 = vsel %vm11791_vm2, %v7521_v58, %v7525_v16  ;;  %v7528_v12 = vshrl.u32 %v7185_v24, 16  ;;  %v7531_v42 = vshll.u32 %v7185_v24, 16  ;;  %v8837_v7 = vrot.slane %v8836_v26, 4  ;;  %v11585_v26 = vld [vmem:[#allocation2 + $0x78] sm:$0xff] }
 0x444   : > { %v6411_v44 = vpop.f32.mrf.mxu2  ;;  %v7516_v2 = vsel %vm11791_vm2, %v7511_v53, %v15127_v19  ;;  %v8846_v46 = vor.u32 %v8845_v50, %v15178_v15  ;;  %v7991_v25 = vrot.slane %v7989_v63, 4  ;;  %v7543_v39 = vrot.slane %v7541_v4, 4  ;;  %v15208_v16 = vld [vmem:[#allocation2 + $0xb8] sm:$0xf]  ;;  %v16028_v4 = vld [vmem:[#allocation30_spill] sm:$0xff]  ;;  %v16029_v53 = vld [vmem:[#allocation25_spill] sm:$0xff] }
 0x445   : > { %v7735_v6 = vpop.f32.mrf.mxu1  ;;  %v6412_v18 = vadd.f32 %v6411_v44, %v14717_v11  ;;  %v9259_v11 = vld [vmem:[#allocation2 + $0xa8] sm:$0xe]  ;;  %v7992_v58 = vrot.slane %v15187_v54, 5  ;;  %v7619_v44 = vunpack.c.l.b16 %v7526_v35  ;;  %v8842_v24 = vsel %vm11791_vm2, %v8837_v7, %v15178_v15 }
 0x446   : > { %v15185_v41 = vadd.f32 %v7735_v6, %v7120_v49  ;;  %v11099_v49 = vrot.slane %v7839_v29, 9  ;;  %v8849_v19 = vshll.u32 %v14913_v20, 16  ;;  %v11321_v6 = vrot.slane %v9259_v11, 9 }
 0x447   : > { %v15190_v48 = vadd.f32 %v15120_v52, %v6412_v18  ;;  %v15201_v52 = vrot.slane %v7537_v45, 5  ;;  %v7530_v18 = vrot.slane %v7528_v12, 4  ;;  %v7533_v50 = vrot.slane %v7531_v42, 5  ;;  %v15220_v42 = vpop.f32.mrf.mxu0 }
 0x448   : > { %16026 = vst [vmem:[#allocation12_spill] sm:$0xff] %v15185_v41  ;;  %v7993_v45 = vsel %vm12248_vm13, %v7991_v25, %v7992_v58  ;;  %v7121_v29 = vadd.f32 %v16029_v53, %v16028_v4  ;;  %v7618_v57 = vunpack.c.l.b16 %v7516_v2  ;;  %v16030_v20 = vrot.slane %v15129_v62, 5 }
 0x449   : > { %16027 = vst [vmem:[#allocation22_spill] sm:$0xff] %v15190_v48  ;;  %v15197_v10 = vpop.f32.mrf.mxu3  ;;  %8173 = vmatmul.bf16.gmra.mxu2 %v14629_v31  ;;  %v7990_v31 = vsel %vm12248_vm13, %v11099_v49, %v7989_v63  ;;  %v8047_v15 = vunpack.c.l.b16 %v7993_v45  ;;  %v7544_v63 = vor.u32 %v7543_v39, %v15201_v52  ;;  %v15224_v25 = vrot.slane %v8846_v46, 4  ;;  %v15229_v45 = vld [vmem:[#allocation2 + $0x90] sm:$0xf]  ;;  %v9260_v39 = vld [vmem:[#allocation2 + $0xb4] sm:$0xe] }
 0x44a   : > { %v9398_v12 = vsel %vm12248_vm13, %v11321_v6, %v16030_v20  ;;  %v9465_v49 = vunpack.c.l.b16 %v15182_v40  ;;  %v7637_v2 = vpack.c.b16 %v7619_v44, %v7618_v57  ;;  %v8046_v4 = vunpack.c.l.b16 %v7990_v31 }
 0x44b   : > { %v9404_v6 = vrot.slane %v15208_v16, 5  ;;  %v7534_v20 = vor.u32 %v7533_v50, %v7530_v18  ;;  %v9464_v46 = vunpack.c.l.b16 %v9398_v12  ;;  %v9054_v40 = vpack.c.b16 %v9031_v56, %v15174_v22  ;;  %v7189_v22 = vld [vmem:[#allocation2 + $0xc4] sm:$0xf] }
 0x44c   : > { %v6414_v35 = vpop.f32.mrf.mxu2  ;;  %v15241_v57 = vrot.slane %v8849_v19, 5  ;;  %v15243_v44 = vpack.c.b16 %v8047_v15, %v8046_v4  ;;  %v7545_v31 = vrot.slane %v7544_v63, 4  ;;  %v11322_v56 = vrot.slane %v9260_v39, 9  ;;  %v16034_v63 = vld [vmem:[#allocation33_spill] sm:$0xff] }
 0x44d   : > { %v7738_v11 = vpop.f32.mrf.mxu1  ;;  %v6415_v7 = vadd.f32 %v6414_v35, %v14762_v43  ;;  %v7547_v43 = vshll.u32 %v15187_v54, 16  ;;  %v15245_v35 = vunpack.c.l.b16 %v8842_v24  ;;  %v15248_v18 = vpack.c.b16 %v9465_v49, %v9464_v46  ;;  %v16035_v49 = vld [vmem:[#allocation29_spill] sm:$0xff]  ;;  %v7188_v46 = vld [vmem:[#allocation2 + $0xc0] sm:$0xf] }
 0x44e   : > { %8492 = vmatmul.bf16.gmra.mxu3 %v11585_v26  ;;  %v15227_v58 = vadd.f32 %v7738_v11, %v7121_v29  ;;  %v15236_v26 = vld [vmem:[#allocation2 + $0xbc] sm:$0x1]  ;;  %v8852_v54 = vsel %vm11791_vm2, %v15224_v25, %v15241_v57  ;;  %v9406_v50 = vrot.slane %v9404_v6, 4  ;;  %v7535_v15 = vrot.slane %v7534_v20, 4 }
 0x44f   : > { %v15233_v53 = vadd.f32 %v15150_v27, %v6415_v7  ;;  %16033 = vst [vmem:[#allocation30_spill] sm:$0xff] %v15248_v18  ;;  %v9407_v19 = vrot.slane %v15236_v26, 5  ;;  %v7549_v12 = vrot.slane %v7547_v43, 5  ;;  %v8863_v11 = vshll.u32 %v14952_v51, 16  ;;  %v7840_v7 = vld [vmem:[#allocation2 + $0xc0] sm:$0xe] }
 0x450   : > { %16031 = vst [vmem:[#allocation28_spill] sm:$0xff] %v15227_v58  ;;  %7777 = vmatmul.bf16.gmra.mxu1 %v7637_v2  ;;  %v7122_v2 = vadd.f32 %v16035_v49, %v16034_v63  ;;  %v9405_v25 = vsel %vm12248_vm13, %v11322_v56, %v9404_v6  ;;  %v7540_v57 = vsel %vm11791_vm2, %v7535_v15, %v15201_v52  ;;  %v15270_v49 = vld [vmem:[#allocation2 + $0xc8] sm:$0x1]  ;;  %v7561_v24 = vshll.u32 %v7189_v22, 16  ;;  %v15276_v58 = vpop.f32.mrf.mxu0 }
 0x451   : > { %16032 = vst [vmem:[#allocation23_spill] sm:$0xff] %v15233_v53  ;;  %v15239_v29 = vpop.f32.mrf.mxu3  ;;  %v9408_v39 = vsel %vm12248_vm13, %v9406_v50, %v9407_v19  ;;  %v7550_v63 = vsel %vm11791_vm2, %v7545_v31, %v7549_v12  ;;  %v7565_v6 = vshrl.u32 %v7189_v22, 16  ;;  %v11100_v56 = vrot.slane %v7840_v7, 9  ;;  %v9261_v19 = vld [vmem:[#allocation2 + $0xc0] sm:$0xe] }
 0x452   : > { %9174 = vmatmul.bf16.gmra.mxu0 %v9054_v40  ;;  %v8867_v40 = vshrl.u32 %v14952_v51, 16  ;;  %v15272_v51 = vld [vmem:[#allocation2 + $0xc4] sm:$0xf]  ;;  %v7996_v50 = vrot.slane %v7189_v22, 5  ;;  %v7552_v52 = vshrl.u32 %v7188_v46, 16  ;;  %v9466_v15 = vunpack.c.l.b16 %v9405_v25 }
 0x453   : > { %v15281_v31 = vld [vmem:[#allocation2 + $0xc8] sm:$0x1]  ;;  %v9411_v7 = vrot.slane %v15272_v51, 5  ;;  %v7621_v22 = vunpack.c.l.b16 %v7550_v63  ;;  %v7567_v25 = vrot.slane %v7565_v6, 4  ;;  %v7620_v53 = vunpack.c.l.b16 %v7540_v57 }
 0x454   : > { %v6416_v4 = vpop.f32.mrf.mxu2  ;;  %v7997_v12 = vsel %vm12248_vm13, %v11100_v56, %v7996_v50  ;;  %v7998_v18 = vrot.slane %v7996_v50, 4  ;;  %v11586_v56 = vld [vmem:[#allocation2 + $0x84] sm:$0xff]  ;;  %v9033_v6 = vunpack.c.l.b16 %v8852_v54  ;;  %v15299_v48 = vrot.slane %v8863_v11, 5 }
 0x455   : > { %v7740_v20 = vpop.f32.mrf.mxu1  ;;  %v6417_v43 = vadd.f32 %v6416_v4, %v14801_v38  ;;  %v9467_v4 = vunpack.c.l.b16 %v9408_v39  ;;  %v8048_v41 = vunpack.c.l.b16 %v7997_v12  ;;  %v7554_v54 = vrot.slane %v7552_v52, 4 }
 0x456   : > { %v15274_v27 = vadd.f32 %v7740_v20, %v7122_v2  ;;  %v7999_v2 = vrot.slane %v15270_v49, 5  ;;  %v7555_v20 = vshll.u32 %v7188_v46, 16  ;;  %v16038_v46 = vld [vmem:[#allocation36_spill] sm:$0xff] }
 0x457   : > { %v15279_v38 = vadd.f32 %v15197_v10, %v6417_v43  ;;  %v11323_v10 = vrot.slane %v9261_v19, 9  ;;  %v15292_v9 = vpack.c.b16 %v9467_v4, %v9466_v15  ;;  %v8869_v4 = vrot.slane %v8867_v40, 4 }
 0x458   : > { %16036 = vst [vmem:[#allocation25_spill] sm:$0xff] %v15274_v27  ;;  %v15288_v27 = vrot.slane %v7561_v24, 5  ;;  %v8000_v39 = vsel %vm12248_vm13, %v7998_v18, %v7999_v2  ;;  %v16039_v24 = vld [vmem:[#allocation34_spill] sm:$0xff]  ;;  %v7557_v11 = vrot.slane %v7555_v20, 5  ;;  %v8873_v20 = vshll.u32 %v14966_v33, 16 }
 0x459   : > { %16037 = vst [vmem:[#allocation33_spill] sm:$0xff] %v15279_v38  ;;  %8178 = vmatmul.bf16.gmra.mxu2 %v14712_v0  ;;  %v8455_v43 = vpop.f32.mrf.mxu3  ;;  %v8049_v50 = vunpack.c.l.b16 %v8000_v39  ;;  %v9412_v23 = vsel %vm12248_vm13, %v11323_v10, %v9411_v7  ;;  %v9413_v38 = vrot.slane %v9411_v7, 4  ;;  %v9414_v0 = vrot.slane %v15281_v31, 5 }
 0x45a   : > { %v7123_v63 = vadd.f32 %v16039_v24, %v16038_v46  ;;  %v7638_v10 = vpack.c.b16 %v7621_v22, %v7620_v53  ;;  %v9468_v39 = vunpack.c.l.b16 %v9412_v23  ;;  %v7568_v24 = vor.u32 %v7567_v25, %v15288_v27  ;;  %v15319_v23 = vpop.f32.mrf.mxu0  ;;  %v16043_v25 = vld [vmem:[#allocation37_spill] sm:$0xff] }
 0x45b   : > { %v15302_v12 = vpack.c.b16 %v8049_v50, %v8048_v41  ;;  %v9415_v2 = vsel %vm12248_vm13, %v9413_v38, %v9414_v0  ;;  %v16040_v41 = vshrl.u32 %v15229_v45, 16  ;;  %v16041_v38 = vshll.u32 %v15229_v45, 16 }
 0x45c   : > { %v8139_v19 = vpop.f32.mrf.mxu2  ;;  %v9469_v46 = vunpack.c.l.b16 %v9415_v2  ;;  %v7571_v53 = vshll.u32 %v15270_v49, 16  ;;  %v7558_v52 = vor.u32 %v7557_v11, %v7554_v54  ;;  %v7569_v22 = vrot.slane %v7568_v24, 4  ;;  %v8598_v11 = vld [vmem:[#allocation2 + $0x9c] sm:$0xf] }
 0x45d   : > { %v7743_v18 = vpop.f32.mrf.mxu1  ;;  %v8219_v15 = vadd.f32 %v8139_v19, %v14846_v37  ;;  %v9055_v37 = vpack.c.b16 %v9033_v6, %v15245_v35  ;;  %v8856_v40 = vrot.slane %v16040_v41, 4  ;;  %v16042_v35 = vld [vmem:[#allocation41_spill] sm:$0xff]  ;;  %v8875_v33 = vrot.slane %v8873_v20, 5 }
 0x45e   : > { %8497 = vmatmul.bf16.gmra.mxu3 %v11586_v56  ;;  %v15306_v7 = vadd.f32 %v7743_v18, %v7123_v63  ;;  %v8859_v56 = vrot.slane %v16041_v38, 5  ;;  %v15317_v50 = vpack.c.b16 %v9469_v46, %v9468_v39  ;;  %v7124_v0 = vadd.f32 %v16043_v25, %v16042_v35  ;;  %v16044_v38 = vld [vmem:[#allocation42_spill] sm:$0xff] }
 0x45f   : > { %v15309_v57 = vadd.f32 %v15239_v29, %v8219_v15  ;;  %v8870_v29 = vor.u32 %v8869_v4, %v15299_v48  ;;  %v7573_v15 = vrot.slane %v7571_v53, 5  ;;  %v7559_v4 = vrot.slane %v7558_v52, 4 }
 0x460   : > { %7782 = vmatmul.bf16.gmra.mxu1 %v7638_v10  ;;  %v8860_v45 = vor.u32 %v8859_v56, %v8856_v40  ;;  %v8887_v24 = vshll.u32 %v15055_v55, 16  ;;  %v11587_v40 = vld [vmem:[#allocation2 + $0x90] sm:$0xff]  ;;  %v7125_v56 = vadd.f32 %v16044_v38, %v14599_v3  ;;  %v8878_v52 = vshrl.u32 %v8598_v11, 16 }
 0x461   : > { %v8458_v19 = vpop.f32.mrf.mxu3  ;;  %v8871_v2 = vrot.slane %v8870_v29, 4  ;;  %v7574_v39 = vsel %vm11791_vm2, %v7569_v22, %v7573_v15  ;;  %v7564_v54 = vsel %vm11791_vm2, %v7559_v4, %v15288_v27  ;;  %v8897_v4 = vshll.u32 %v15072_v47, 16 }
 0x462   : > { %9179 = vmatmul.bf16.gmra.mxu0 %v9055_v37  ;;  %v8861_v46 = vrot.slane %v8860_v45, 4  ;;  %v7623_v37 = vunpack.c.l.b16 %v7574_v39  ;;  %v15341_v41 = vpop.f32.mrf.mxu0  ;;  %v7622_v53 = vunpack.c.l.b16 %v7564_v54  ;;  %v8889_v35 = vrot.slane %v8887_v24, 5 }
 0x463   : > { %v8911_v38 = vshll.u32 %v15129_v62, 16 }
 0x464   : > { %v8141_v63 = vpop.f32.mrf.mxu2 }
 0x465   : > { %v7745_v6 = vpop.f32.mrf.mxu1  ;;  %v8220_v18 = vadd.f32 %v8141_v63, %v14884_v32  ;;  %v8876_v32 = vsel %vm11791_vm2, %v8871_v2, %v8875_v33  ;;  %v7639_v63 = vpack.c.b16 %v7623_v37, %v7622_v53  ;;  %v8899_v37 = vrot.slane %v8897_v4, 5  ;;  %v16046_v53 = vld [vmem:[#allocation46_spill] sm:$0xff] }
 0x466   : > { %v15327_v10 = vadd.f32 %v7745_v6, %v7124_v0  ;;  %v9035_v29 = vunpack.c.l.b16 %v8876_v32 }
 0x467   : > { %v15329_v49 = vadd.f32 %v8455_v43, %v8220_v18  ;;  %v8891_v43 = vshrl.u32 %v15055_v55, 16  ;;  %v8881_v55 = vshll.u32 %v8598_v11, 16  ;;  %v8880_v18 = vrot.slane %v8878_v52, 4 }
 0x469   : > { %8183 = vmatmul.bf16.gmra.mxu2 %v14794_v8  ;;  %v8866_v8 = vsel %vm11791_vm2, %v8861_v46, %v15299_v48  ;;  %v8893_v25 = vrot.slane %v8891_v43, 4  ;;  %v8460_v45 = vpop.f32.mrf.mxu3  ;;  %v8883_v15 = vrot.slane %v8881_v55, 5 }
 0x46a   : > { %v9034_v6 = vunpack.c.l.b16 %v8866_v8  ;;  %v15356_v46 = vpop.f32.mrf.mxu0  ;;  %v8601_v8 = vld [vmem:[#allocation2 + $0xa8] sm:$0xf] }
 0x46b   : > { %v8894_v2 = vor.u32 %v8893_v25, %v8889_v35  ;;  %v8884_v11 = vor.u32 %v8883_v15, %v8880_v18  ;;  %v8905_v25 = vshll.u32 %v8601_v8, 16 }
 0x46c   : > { %v8144_v27 = vpop.f32.mrf.mxu2  ;;  %v9056_v3 = vpack.c.b16 %v9035_v29, %v9034_v6  ;;  %v7127_v29 = vadd.f32 %v16046_v53, %v14689_v1  ;;  %v8935_v53 = vshll.u32 %v15208_v16, 16 }
 0x46d   : > { %v7748_v22 = vpop.f32.mrf.mxu1  ;;  %v8221_v20 = vadd.f32 %v8144_v27, %v14921_v17  ;;  %v16045_v17 = vld [vmem:[#allocation44_spill] sm:$0xff]  ;;  %v8885_v47 = vrot.slane %v8884_v11, 4 }
 0x46e   : > { %8502 = vmatmul.bf16.gmra.mxu3 %v11587_v40  ;;  %v15349_v0 = vadd.f32 %v7748_v22, %v7125_v56  ;;  %v7126_v39 = vadd.f32 %v16045_v17, %v14651_v28  ;;  %v8915_v56 = vshrl.u32 %v15129_v62, 16 }
 0x46f   : > { %v15351_v48 = vadd.f32 %v8458_v19, %v8221_v20  ;;  %v8895_v19 = vrot.slane %v8894_v2, 4  ;;  %v8890_v27 = vsel %vm11791_vm2, %v8885_v47, %v8889_v35  ;;  %v8902_v20 = vshrl.u32 %v8601_v8, 16  ;;  %v16047_v35 = vld [vmem:[#allocation7_spill] sm:$0xff] }
 0x470   : > { %7787 = vmatmul.bf16.gmra.mxu1 %v7639_v63  ;;  %v8913_v63 = vrot.slane %v8911_v38, 5  ;;  %v9036_v62 = vunpack.c.l.b16 %v8890_v27  ;;  %v8907_v2 = vrot.slane %v8905_v25, 5  ;;  %v8604_v27 = vld [vmem:[#allocation2 + $0xb4] sm:$0xf] }
 0x471   : > { %v8463_v40 = vpop.f32.mrf.mxu3  ;;  %v8900_v28 = vsel %vm11791_vm2, %v8895_v19, %v8899_v37  ;;  %v8904_v15 = vrot.slane %v8902_v20, 4  ;;  %v16052_v20 = vld [vmem:[#allocation51_spill] sm:$0xff] }
 0x472   : > { %9184 = vmatmul.bf16.gmra.mxu0 %v9056_v3  ;;  %v9037_v22 = vunpack.c.l.b16 %v8900_v28  ;;  %v15375_v3 = vpop.f32.mrf.mxu0 }
 0x473   : > { %v8908_v37 = vor.u32 %v8907_v2, %v8904_v15  ;;  %v8929_v2 = vshll.u32 %v8604_v27, 16 }
 0x474   : > { %v8146_v33 = vpop.f32.mrf.mxu2  ;;  %v9057_v1 = vpack.c.b16 %v9037_v22, %v9036_v62  ;;  %v16051_v22 = vld [vmem:[#allocation50_spill] sm:$0xff]  ;;  %v8926_v62 = vshrl.u32 %v8604_v27, 16  ;;  %v16057_v27 = vld [vmem:[#allocation20_spill] sm:$0xff] }
 0x475   : > { %v7750_v54 = vpop.f32.mrf.mxu1  ;;  %v8222_v32 = vadd.f32 %v8146_v33, %v14962_v13  ;;  %v11588_v13 = vld [vmem:[#allocation2 + $0x9c] sm:$0xff]  ;;  %v16049_v33 = vld [vmem:[#allocation49_spill] sm:$0xff] }
 0x476   : > { %v15359_v24 = vadd.f32 %v7750_v54, %v7126_v39  ;;  %v16048_v39 = vld [vmem:[#allocation48_spill] sm:$0xff] }
 0x477   : > { %v15361_v43 = vadd.f32 %v8460_v45, %v8222_v32  ;;  %v8917_v45 = vrot.slane %v8915_v56, 4  ;;  %v7128_v54 = vadd.f32 %v16049_v33, %v16048_v39  ;;  %v16050_v56 = vld [vmem:[#allocation24_spill] sm:$0xff] }
 0x479   : > { %8188 = vmatmul.bf16.gmra.mxu2 %v14895_v5  ;;  %v8918_v4 = vor.u32 %v8917_v45, %v8913_v63  ;;  %v8465_v17 = vpop.f32.mrf.mxu3 }
 0x47a   : > { %v15388_v38 = vpop.f32.mrf.mxu0 }
 0x47c   : > { %v8149_v52 = vpop.f32.mrf.mxu2 }
 0x47d   : > { %v7753_v5 = vpop.f32.mrf.mxu1  ;;  %v8223_v55 = vadd.f32 %v8149_v52, %v15004_v60  ;;  %v8921_v60 = vshll.u32 %v15148_v36, 16 }
 0x47e   : > { %8507 = vmatmul.bf16.gmra.mxu3 %v11588_v13  ;;  %v15373_v6 = vadd.f32 %v7753_v5, %v7127_v29  ;;  %v8909_v13 = vrot.slane %v8908_v37, 4  ;;  %v11589_v29 = vld [vmem:[#allocation2 + $0xa8] sm:$0xff]  ;;  %v7129_v5 = vadd.f32 %v16052_v20, %v16051_v22  ;;  %v8945_v37 = vshll.u32 %v15236_v26, 16 }
 0x47f   : > { %v15377_v18 = vadd.f32 %v8463_v40, %v8223_v55  ;;  %v8919_v40 = vrot.slane %v8918_v4, 4  ;;  %v8923_v8 = vrot.slane %v8921_v60, 5  ;;  %v8937_v4 = vrot.slane %v8935_v53, 5 }
 0x480   : > { %9560 = vmatmul.bf16.vlgmr.msra.gmra.mxu1 %v16047_v35  ;;  %v8914_v52 = vsel %vm11791_vm2, %v8909_v13, %v8913_v63  ;;  %v16054_v63 = vld [vmem:[#allocation11_spill] sm:$0xff] }
 0x481   : > { %v8924_v36 = vsel %vm11791_vm2, %v8919_v40, %v8923_v8  ;;  %v8468_v55 = vpop.f32.mrf.mxu3  ;;  %v16055_v40 = vld [vmem:[#allocation52_spill] sm:$0xff]  ;;  %v16056_v8 = vld [vmem:[#allocation54_spill] sm:$0xff] }
 0x482   : > { %9189 = vmatmul.bf16.gmra.mxu0 %v9057_v1  ;;  %v9039_v45 = vunpack.c.l.b16 %v8924_v36  ;;  %v16053_v1 = vld [vmem:[#allocation3_spill] sm:$0xff] }
 0x484   : > { %v8151_v32 = vpop.f32.mrf.mxu2 }
 0x485   : > { %v7755_v11 = vpop.f32.mrf.mxu1  ;;  %v8224_v19 = vadd.f32 %v8151_v32, %v15039_v59  ;;  %v8939_v59 = vshrl.u32 %v15208_v16, 16  ;;  %v9038_v16 = vunpack.c.l.b16 %v8914_v52  ;;  %v8931_v32 = vrot.slane %v8929_v2, 5  ;;  %v16059_v2 = vld [vmem:[#allocation10_spill] sm:$0xff] }
 0x486   : > { %v15384_v47 = vadd.f32 %v7755_v11, %v7128_v54  ;;  %v8928_v54 = vrot.slane %v8926_v62, 4  ;;  %v8963_v62 = vshrl.u32 %v15272_v51, 16 }
 0x487   : > { %v15386_v28 = vadd.f32 %v8465_v17, %v8224_v19  ;;  %v8941_v17 = vrot.slane %v8939_v59, 4  ;;  %v9058_v33 = vpack.c.b16 %v9039_v45, %v9038_v16  ;;  %v15405_v19 = vpop.f32.mrf.mxu0  ;;  %v8959_v45 = vshll.u32 %v15272_v51, 16 }
 0x488   : > { %v8932_v59 = vor.u32 %v8931_v32, %v8928_v54 }
 0x489   : > { %8193 = vmatmul.bf16.gmra.mxu2 %v16050_v56  ;;  %v8942_v11 = vor.u32 %v8941_v17, %v8937_v4  ;;  %v7130_v56 = vadd.f32 %v16056_v8, %v16055_v40  ;;  %v8470_v22 = vpop.f32.mrf.mxu3  ;;  %v16060_v17 = vld [vmem:[#allocation15_spill] sm:$0xff]  ;;  %v8965_v40 = vrot.slane %v8963_v62, 4 }
 0x48a   : > { %v7131_v16 = vadd.f32 %v16060_v17, %v16059_v2  ;;  %v16064_v2 = vld [vmem:[#allocation8_spill] sm:$0xff] }
 0x48b   : > { %v16065_v17 = vld [vmem:[#allocation16_spill] sm:$0xff] }
 0x48c   : > { %v8154_v25 = vpop.f32.mrf.mxu2 }
 0x48d   : > { %v7758_v35 = vpop.f32.mrf.mxu1  ;;  %v8225_v15 = vadd.f32 %v8154_v25, %v16053_v1  ;;  %v8933_v25 = vrot.slane %v8932_v59, 4  ;;  %v11590_v1 = vld [vmem:[#allocation2 + $0xb4] sm:$0xff]  ;;  %v16062_v59 = vld [vmem:[#allocation13_spill] sm:$0xff] }
 0x48e   : > { %8512 = vmatmul.bf16.gmra.mxu3 %v11589_v29  ;;  %v15400_v60 = vadd.f32 %v7758_v35, %v7129_v5  ;;  %v8943_v29 = vrot.slane %v8942_v11, 4  ;;  %v8947_v5 = vrot.slane %v8945_v37, 5  ;;  %v8607_v35 = vld [vmem:[#allocation2 + $0xc0] sm:$0xf]  ;;  %v8961_v37 = vrot.slane %v8959_v45, 5 }
 0x48f   : > { %v15402_v39 = vadd.f32 %v8468_v55, %v8225_v15  ;;  %v16058_v55 = vld [vmem:[#allocation5_spill] sm:$0xff]  ;;  %v8938_v15 = vsel %vm11791_vm2, %v8933_v25, %v8937_v4  ;;  %v8950_v32 = vshrl.u32 %v8607_v35, 16  ;;  %v8953_v11 = vshll.u32 %v8607_v35, 16 }
 0x490   : > { %9565 = vmatmul.bf16.gmra.mxu1 %v16054_v63  ;;  %v8948_v26 = vsel %vm11791_vm2, %v8943_v29, %v8947_v5  ;;  %v9040_v51 = vunpack.c.l.b16 %v8938_v15  ;;  %v16063_v29 = vld [vmem:[#allocation18_spill] sm:$0xff]  ;;  %v11591_v15 = vld [vmem:[#allocation2 + $0xc0] sm:$0xff] }
 0x491   : > { %v9041_v63 = vunpack.c.l.b16 %v8948_v26  ;;  %v8955_v4 = vrot.slane %v8953_v11, 5 }
 0x492   : > { %9194 = vmatmul.bf16.gmra.mxu0 %v9058_v33  ;;  %v15424_v33 = vpop.f32.mrf.mxu0 }
 0x494   : > { %v8156_v13 = vpop.f32.mrf.mxu2 }
 0x495   : > { %v7760_v36 = vpop.f32.mrf.mxu1  ;;  %v8226_v53 = vadd.f32 %v8156_v13, %v16057_v27  ;;  %v9059_v13 = vpack.c.b16 %v9041_v63, %v9040_v51  ;;  %v8966_v27 = vor.u32 %v8965_v40, %v8961_v37  ;;  %v16066_v40 = vld [vmem:[#allocation31_spill] sm:$0xff] }
 0x496   : > { %v15411_v52 = vadd.f32 %v7760_v36, %v7130_v56  ;;  %v16061_v56 = vld [vmem:[#allocation27_spill] sm:$0xff]  ;;  %v8952_v36 = vrot.slane %v8950_v32, 4 }
 0x497   : > { %v15413_v20 = vadd.f32 %v8470_v22, %v8226_v53  ;;  %v8969_v53 = vshll.u32 %v15281_v31, 16  ;;  %v7132_v22 = vadd.f32 %v16063_v29, %v16062_v59  ;;  %v8967_v25 = vrot.slane %v8966_v27, 4  ;;  %v8610_v27 = vld [vmem:[#allocation2 + $0xcc] sm:$0xf]  ;;  %v15454_v59 = vld [vmem:[#allocation2 + $0xd4] sm:$0x1] }
 0x498   : > { %v8974_v29 = vshrl.u32 %v8610_v27, 16 }
 0x499   : > { %8198 = vmatmul.bf16.gmra.mxu2 %v16058_v55  ;;  %v8956_v55 = vor.u32 %v8955_v4, %v8952_v36  ;;  %v8971_v62 = vrot.slane %v8969_v53, 5  ;;  %v15452_v53 = vld [vmem:[#allocation2 + $0xd0] sm:$0xf] }
 0x49a   : > { %v15434_v45 = vpop.f32.mrf.mxu0 }
 0x49b   : > { %v8957_v35 = vrot.slane %v8956_v55, 4  ;;  %v8987_v55 = vshrl.u32 %v15452_v53, 16 }
 0x49d   : > { %v7763_v54 = vpop.f32.mrf.mxu1  ;;  %v8962_v31 = vsel %vm11791_vm2, %v8957_v35, %v8961_v37  ;;  %v8976_v35 = vrot.slane %v8974_v29, 4 }
 0x49e   : > { %8517 = vmatmul.bf16.gmra.mxu3 %v11590_v1  ;;  %v15426_v8 = vadd.f32 %v7763_v54, %v7131_v16  ;;  %v8972_v1 = vsel %vm11791_vm2, %v8967_v25, %v8971_v62  ;;  %v7133_v16 = vadd.f32 %v16065_v17, %v16064_v2  ;;  %v9042_v11 = vunpack.c.l.b16 %v8962_v31  ;;  %v11592_v62 = vld [vmem:[#allocation2 + $0xcc] sm:$0xff] }
 0x49f   : > { %v9043_v63 = vunpack.c.l.b16 %v8972_v1  ;;  %v8993_v25 = vshll.u32 %v15454_v59, 16  ;;  %v8989_v31 = vrot.slane %v8987_v55, 4  ;;  %v16072_v55 = vld [vmem:[#allocation21_spill] sm:$0xff] }
 0x4a0   : > { %9570 = vmatmul.bf16.gmra.mxu1 %v16061_v56  ;;  %v16067_v56 = vld [vmem:[#allocation17_spill] sm:$0xff] }
 0x4a2   : > { %9199 = vmatmul.bf16.gmra.mxu0 %v9059_v13  ;;  %v15446_v51 = vpop.f32.mrf.mxu0  ;;  %v16068_v13 = vld [vmem:[#allocation35_spill] sm:$0xff] }
 0x4a3   : > { %v7134_v36 = vadd.f32 %v16068_v13, %v16067_v56 }
 0x4a5   : > { %v7765_v5 = vpop.f32.mrf.mxu1 }
 0x4a6   : > { %v15432_v26 = vadd.f32 %v7765_v5, %v7132_v22  ;;  %v8977_v22 = vshll.u32 %v8610_v27, 16  ;;  %v8983_v5 = vshll.u32 %v15452_v53, 16 }
 0x4a8   : > { %v8979_v1 = vrot.slane %v8977_v22, 5 }
 0x4a9   : > { %8203 = vmatmul.bf16.gmra.mxu2 %v15161_v21  ;;  %v9060_v21 = vpack.c.b16 %v9043_v63, %v9042_v11  ;;  %v16070_v63 = vld [vmem:[#allocation40_spill] sm:$0xff] }
 0x4aa   : > { %v15460_v2 = vpop.f32.mrf.mxu0  ;;  %v8980_v17 = vor.u32 %v8979_v1, %v8976_v35  ;;  %v16073_v35 = vld [vmem:[#allocation9_spill] sm:$0xff] }
 0x4ac   : > { %v8981_v56 = vrot.slane %v8980_v17, 4 }
 0x4ad   : > { %v7768_v54 = vpop.f32.mrf.mxu1 }
 0x4ae   : > { %8522 = vmatmul.bf16.gmra.mxu3 %v11591_v15  ;;  %v15443_v32 = vadd.f32 %v7768_v54, %v7133_v16  ;;  %v8985_v15 = vrot.slane %v8983_v5, 5  ;;  %v16069_v16 = vld [vmem:[#allocation4_spill] sm:$0xff] }
 0x4af   : > { %v7135_v54 = vadd.f32 %v16070_v63, %v16069_v16  ;;  %v16075_v63 = vld [vmem:[#allocation45_spill] sm:$0xff] }
 0x4b0   : > { %9575 = vmatmul.bf16.gmra.mxu1 %v16066_v40  ;;  %v8990_v11 = vor.u32 %v8989_v31, %v8985_v15  ;;  %v8995_v40 = vrot.slane %v8993_v25, 5  ;;  %v7136_v25 = vadd.f32 %v16073_v35, %v16072_v55  ;;  %v16080_v35 = vld [vmem:[#allocation53_spill] sm:$0xff] }
 0x4b2   : > { %9204 = vmatmul.bf16.gmra.mxu0 %v9060_v21  ;;  %v15473_v1 = vpop.f32.mrf.mxu0 }
 0x4b5   : > { %v7770_v4 = vpop.f32.mrf.mxu1 }
 0x4b6   : > { %v15450_v37 = vadd.f32 %v7770_v4, %v7134_v36  ;;  %v8991_v36 = vrot.slane %v8990_v11, 4  ;;  %v16071_v4 = vld [vmem:[#allocation38_spill] sm:$0xff] }
 0x4b8   : > { %v8996_v27 = vsel %vm11791_vm2, %v8991_v36, %v8995_v40 }
 0x4b9   : > { %8208 = vmatmul.bf16.gmra.mxu2 %v15243_v44  ;;  %v8986_v44 = vsel %vm11791_vm2, %v8981_v56, %v8985_v15  ;;  %v9045_v22 = vunpack.c.l.b16 %v8996_v27  ;;  %v16074_v15 = vld [vmem:[#allocation32_spill] sm:$0xff]  ;;  %v7139_v56 = vadd.f32 %v15276_v58, %v15145_v14  ;;  %v16081_v14 = vld [vmem:[#allocation33_spill] sm:$0xff]  ;;  %vm9773_vm2 = vcmask 31744  }
 0x4ba   : > { %v9044_v29 = vunpack.c.l.b16 %v8986_v44  ;;  %v7137_v17 = vadd.f32 %v15170_v61, %v16074_v15  ;;  %v16078_v61 = vld [vmem:[#allocation22_spill] sm:$0xff]  ;;  %v7142_v58 = vadd.f32 %v15356_v46, %v16081_v14  ;;  %v15510_v15 = vld [vmem:[%s15834_s4] ss:$0 sm:$0xff] }
 0x4bc   : > { %v9061_v5 = vpack.c.b16 %v9045_v22, %v9044_v29  ;;  %v16079_v22 = vld [vmem:[#allocation23_spill] sm:$0xff] }
 0x4bd   : > { %v7773_v21 = vpop.f32.mrf.mxu1 }
 0x4be   : > { %8527 = vmatmul.bf16.gmra.mxu3 %v11592_v62  ;;  %v15464_v13 = vadd.f32 %v7773_v21, %v7135_v54  ;;  %v16076_v54 = vld [vmem:[#allocation43_spill] sm:$0xff] }
 0x4bf   : > { %v7138_v11 = vadd.f32 %v15220_v42, %v16076_v54  ;;  %v7141_v42 = vadd.f32 %v15341_v41, %v16079_v22 }
 0x4c0   : > { %9580 = vmatmul.bf16.gmra.mxu1 %v16071_v4  ;;  %v7140_v4 = vadd.f32 %v15319_v23, %v16078_v61  ;;  %v9215_v23 = vadd.f32 %v15375_v3, %v15309_v57  ;;  %v15521_v57 = vpop.f32.mrf.mxu2  ;;  %v9216_v3 = vadd.f32 %v15388_v38, %v15329_v49 }
 0x4c2   : > { %9209 = vmatmul.bf16.gmra.mxu0 %v9061_v5 }
 0x4c5   : > { %v7775_v62 = vpop.f32.mrf.mxu1 }
 0x4c6   : > { %v15475_v31 = vadd.f32 %v7775_v62, %v7136_v25 }
 0x4c9   : > { %8213 = vmatmul.bf16.gmra.mxu2 %v15302_v12  ;;  %v16077_v12 = vld [vmem:[#allocation47_spill] sm:$0xff] }
 0x4cd   : > { %v7778_v16 = vpop.f32.mrf.mxu1 }
 0x4ce   : > { %v15480_v30 = vadd.f32 %v7778_v16, %v7137_v17 }
 0x4d0   : > { %9585 = vmatmul.bf16.gmra.mxu1 %v16075_v63  ;;  %v16082_v63 = vld [vmem:[#allocation26_spill] sm:$0xff] }
 0x4d5   : > { %v7780_v40 = vpop.f32.mrf.mxu1 }
 0x4d6   : > { %v15485_v21 = vadd.f32 %v7780_v40, %v7138_v11 }
 0x4dd   : > { %v7783_v36 = vpop.f32.mrf.mxu1 }
 0x4de   : > { %v15489_v44 = vadd.f32 %v7783_v36, %v7139_v56  ;;  %v15528_v36 = vpop.f32.mrf.mxu3 }
 0x4e0   : > { %9590 = vmatmul.bf16.gmra.mxu1 %v16077_v12 }
 0x4e5   : > { %v7785_v27 = vpop.f32.mrf.mxu1 }
 0x4e6   : > { %v15494_v29 = vadd.f32 %v7785_v27, %v7140_v4 }
 0x4ed   : > { %v7788_v5 = vpop.f32.mrf.mxu1 }
 0x4ee   : > { %v15498_v55 = vadd.f32 %v7788_v5, %v7141_v42  ;;  %v15532_v42 = vpop.f32.mrf.mxu0  ;;  %v9217_v5 = vadd.f32 %v15405_v19, %v15351_v48  ;;  %v9218_v19 = vadd.f32 %v15424_v33, %v15361_v43  ;;  %v9219_v43 = vadd.f32 %v15434_v45, %v15377_v18 }
 0x4ef   : > { %v9220_v45 = vadd.f32 %v15446_v51, %v15386_v28  ;;  %v9221_v51 = vadd.f32 %v15460_v2, %v15402_v39  ;;  %v9222_v2 = vadd.f32 %v15473_v1, %v15413_v20 }
 0x4f0   : > { %9595 = vmatmul.bf16.gmra.mxu1 %v16080_v35  ;;  %v15540_v35 = vpop.f32.mrf.mxu2 }
 0x4f5   : > { %v7790_v25 = vpop.f32.mrf.mxu1 }
 0x4f6   : > { %v15503_v62 = vadd.f32 %v7790_v25, %v7142_v58 }
 0x4fd   : > { %v9561_v41 = vpop.f32.mrf.mxu1 }
 0x4fe   : > { %v9641_v17 = vadd.f32 %v9561_v41, %v9215_v23  ;;  %v16083_v41 = vld [vmem:[#allocation14_spill] sm:$0xff] }
 0x500   : > { %v9677_v16 = vadd.f32 %v15510_v15, %v9641_v17  ;;  %9600 = vmatmul.bf16.gmra.mxu1 %v16082_v63 }
 0x502   : > { %v9709_v46 = vpack.c.bf16 %v9677_v16, %v9677_v16  ;;  %v9845_v40 = vmul.f32 %v9677_v16, %v9677_v16  ;;  %v9774_v12 = vsel %vm9773_vm2, %v9677_v16, 0.0 }
 0x504   : > { %9741 = vst.msk [vmem:[%s15519_s8] sm:$0xf] %vm707_vm5, %v9709_v46  ;;  %v9877_v49 = vsel %vm9773_vm2, %v9845_v40, 0.0  ;;  %v15545_v46 = vpop.f32.mrf.mxu3  ;;  %v15552_v40 = vpop.f32.mrf.mxu0 }
 0x505   : > { %v9563_v54 = vpop.f32.mrf.mxu1 }
 0x506   : > { %v9642_v11 = vadd.f32 %v9563_v54, %v9216_v3 }
 0x508   : > { %v9678_v56 = vadd.f32 %v15510_v15, %v9642_v11 }
 0x50a   : > { %v9710_v61 = vpack.c.bf16 %v9678_v56, %v9678_v56  ;;  %v9775_v4 = vsel %vm9773_vm2, %v9678_v56, 0.0  ;;  %v9846_v27 = vmul.f32 %v9678_v56, %v9678_v56 }
 0x50b   : > { %v9776_v22 = vadd.f32 %v9775_v4, %v9774_v12  ;;  %v15554_v12 = vpop.f32.mrf.mxu2 }
 0x50c   : > { %9742 = vst.msk [vmem:[%s15519_s8 + $0x4] sm:$0xf] %vm707_vm5, %v9710_v61  ;;  %v9878_v38 = vsel %vm9773_vm2, %v9846_v27, 0.0  ;;  %v15563_v33 = vpop.f32.mrf.mxu3 }
 0x50d   : > { %v9879_v14 = vadd.f32 %v9878_v38, %v9877_v49  ;;  %v9566_v58 = vpop.f32.mrf.mxu1 }
 0x50e   : > { %v9643_v25 = vadd.f32 %v9566_v58, %v9217_v5 }
 0x510   : > { %v9679_v23 = vadd.f32 %v15510_v15, %v9643_v25  ;;  %9605 = vmatmul.bf16.gmra.mxu1 %v16083_v41  ;;  %v15565_v25 = vpop.f32.mrf.mxu0  ;;  %v16084_v41 = vld [vmem:[#allocation19_spill] sm:$0xff] }
 0x512   : > { %v9711_v17 = vpack.c.bf16 %v9679_v23, %v9679_v23  ;;  %v9777_v16 = vsel %vm9773_vm2, %v9679_v23, 0.0  ;;  %v9847_v63 = vmul.f32 %v9679_v23, %v9679_v23 }
 0x513   : > { %v9778_v3 = vadd.f32 %v9777_v16, %v9776_v22 }
 0x514   : > { %9743 = vst.msk [vmem:[%s15519_s8 + $0x8] sm:$0xf] %vm707_vm5, %v9711_v17  ;;  %v9880_v48 = vsel %vm9773_vm2, %v9847_v63, 0.0  ;;  %v15569_v17 = vpop.f32.mrf.mxu2 }
 0x515   : > { %v9881_v54 = vadd.f32 %v9880_v48, %v9879_v14  ;;  %v9568_v11 = vpop.f32.mrf.mxu1 }
 0x516   : > { %v9644_v56 = vadd.f32 %v9568_v11, %v9218_v19 }
 0x518   : > { %v9680_v61 = vadd.f32 %v15510_v15, %v9644_v56  ;;  %v15577_v56 = vpop.f32.mrf.mxu3 }
 0x51a   : > { %v9712_v4 = vpack.c.bf16 %v9680_v61, %v9680_v61  ;;  %v9779_v27 = vsel %vm9773_vm2, %v9680_v61, 0.0  ;;  %v9848_v22 = vmul.f32 %v9680_v61, %v9680_v61 }
 0x51b   : > { %v9780_v49 = vadd.f32 %v9779_v27, %v9778_v3 }
 0x51c   : > { %9744 = vst.msk [vmem:[%s15519_s8 + $0xc] sm:$0xf] %vm707_vm5, %v9712_v4  ;;  %v9882_v38 = vsel %vm9773_vm2, %v9848_v22, 0.0  ;;  %v15580_v4 = vpop.f32.mrf.mxu0 }
 0x51d   : > { %v9883_v5 = vadd.f32 %v9882_v38, %v9881_v54  ;;  %v9571_v14 = vpop.f32.mrf.mxu1  ;;  %v15583_v38 = vpop.f32.mrf.mxu2 }
 0x51e   : > { %v9645_v58 = vadd.f32 %v9571_v14, %v9219_v43 }
 0x520   : > { %v9681_v23 = vadd.f32 %v15510_v15, %v9645_v58  ;;  %9610 = vmatmul.bf16.gmra.mxu1 %v16084_v41  ;;  %v16085_v41 = vld [vmem:[#allocation6_spill] sm:$0xff] }
 0x522   : > { %v9713_v16 = vpack.c.bf16 %v9681_v23, %v9681_v23  ;;  %v9781_v63 = vsel %vm9773_vm2, %v9681_v23, 0.0  ;;  %v9849_v3 = vmul.f32 %v9681_v23, %v9681_v23 }
 0x523   : > { %v9782_v48 = vadd.f32 %v9781_v63, %v9780_v49 }
 0x524   : > { %9745 = vst.msk [vmem:[%s15519_s8 + $0x10] sm:$0xf] %vm707_vm5, %v9713_v16  ;;  %v9884_v18 = vsel %vm9773_vm2, %v9849_v3, 0.0  ;;  %v15592_v16 = vpop.f32.mrf.mxu3 }
 0x525   : > { %v9885_v19 = vadd.f32 %v9884_v18, %v9883_v5  ;;  %v9573_v54 = vpop.f32.mrf.mxu1 }
 0x526   : > { %v9646_v11 = vadd.f32 %v9573_v54, %v9220_v45  ;;  %v16086_v45 = vld [vmem:[#allocation39_spill] sm:$0xff] }
 0x527   : > { %v8227_v54 = vadd.f32 %v15521_v57, %v16086_v45 }
 0x528   : > { %v9682_v61 = vadd.f32 %v15510_v15, %v9646_v11  ;;  %v15597_v11 = vpop.f32.mrf.mxu0 }
 0x52a   : > { %v9714_v27 = vpack.c.bf16 %v9682_v61, %v9682_v61  ;;  %v9783_v22 = vsel %vm9773_vm2, %v9682_v61, 0.0  ;;  %v9850_v49 = vmul.f32 %v9682_v61, %v9682_v61 }
 0x52b   : > { %v9784_v43 = vadd.f32 %v9783_v22, %v9782_v48 }
 0x52c   : > { %9746 = vst.msk [vmem:[%s15519_s8 + $0x14] sm:$0xf] %vm707_vm5, %v9714_v27  ;;  %v9886_v28 = vsel %vm9773_vm2, %v9850_v49, 0.0  ;;  %v8541_v49 = vadd.f32 %v15528_v36, %v8227_v54  ;;  %v16088_v54 = vld [vmem:[#allocation30_spill] sm:$0xff] }
 0x52d   : > { %v9887_v5 = vadd.f32 %v9886_v28, %v9885_v19  ;;  %v9576_v14 = vpop.f32.mrf.mxu1  ;;  %v15604_v19 = vpop.f32.mrf.mxu2 }
 0x52e   : > { %v9647_v58 = vadd.f32 %v9576_v14, %v9221_v51  ;;  %v15609_v14 = vpop.f32.mrf.mxu3  ;;  %v9223_v1 = vadd.f32 %v15532_v42, %v8541_v49 }
 0x530   : > { %v9683_v23 = vadd.f32 %v15510_v15, %v9647_v58  ;;  %9615 = vmatmul.bf16.gmra.mxu1 %v16085_v41 }
 0x532   : > { %v9715_v63 = vpack.c.bf16 %v9683_v23, %v9683_v23  ;;  %v9785_v3 = vsel %vm9773_vm2, %v9683_v23, 0.0  ;;  %v9851_v48 = vmul.f32 %v9683_v23, %v9683_v23  ;;  %v16087_v23 = vld [vmem:[#allocation12_spill] sm:$0xff] }
 0x533   : > { %v9786_v18 = vadd.f32 %v9785_v3, %v9784_v43  ;;  %v8228_v41 = vadd.f32 %v15540_v35, %v16087_v23 }
 0x534   : > { %9747 = vst.msk [vmem:[%s15519_s8 + $0x18] sm:$0xf] %vm707_vm5, %v9715_v63  ;;  %v9888_v39 = vsel %vm9773_vm2, %v9851_v48, 0.0  ;;  %v15617_v63 = vpop.f32.mrf.mxu0 }
 0x535   : > { %v9889_v61 = vadd.f32 %v9888_v39, %v9887_v5  ;;  %v9578_v27 = vpop.f32.mrf.mxu1  ;;  %v15619_v48 = vpop.f32.mrf.mxu2  ;;  %v8542_v45 = vadd.f32 %v15545_v46, %v8228_v41 }
 0x536   : > { %v9648_v22 = vadd.f32 %v9578_v27, %v9222_v2  ;;  %v15631_v46 = vpop.f32.mrf.mxu3 }
 0x537   : > { %v9224_v49 = vadd.f32 %v15552_v40, %v8542_v45 }
 0x538   : > { %v9684_v43 = vadd.f32 %v15510_v15, %v9648_v22  ;;  %v16089_v22 = vld [vmem:[#allocation28_spill] sm:$0xff] }
 0x539   : > { %v8229_v42 = vadd.f32 %v15554_v12, %v16089_v22 }
 0x53a   : > { %v9716_v57 = vpack.c.bf16 %v9684_v43, %v9684_v43  ;;  %v9787_v28 = vsel %vm9773_vm2, %v9684_v43, 0.0  ;;  %v9852_v51 = vmul.f32 %v9684_v43, %v9684_v43 }
 0x53b   : > { %v9788_v58 = vadd.f32 %v9787_v28, %v9786_v18 }
 0x53c   : > { %9748 = vst.msk [vmem:[%s15519_s8 + $0x1c] sm:$0xf] %vm707_vm5, %v9716_v57  ;;  %v9890_v20 = vsel %vm9773_vm2, %v9852_v51, 0.0  ;;  %v8543_v51 = vadd.f32 %v15563_v33, %v8229_v42  ;;  %v15634_v23 = vpop.f32.mrf.mxu0 }
 0x53d   : > { %v9891_v36 = vadd.f32 %v9890_v20, %v9889_v61  ;;  %v9581_v5 = vpop.f32.mrf.mxu1  ;;  %v15637_v41 = vpop.f32.mrf.mxu2 }
 0x53e   : > { %v9649_v3 = vadd.f32 %v9581_v5, %v9223_v1  ;;  %v9225_v33 = vadd.f32 %v15565_v25, %v8543_v51 }
 0x540   : > { %v9685_v18 = vadd.f32 %v15510_v15, %v9649_v3  ;;  %9620 = vmatmul.bf16.gmra.mxu1 %v16088_v54  ;;  %v16090_v3 = vld [vmem:[#allocation25_spill] sm:$0xff] }
 0x541   : > { %v8230_v40 = vadd.f32 %v15569_v17, %v16090_v3 }
 0x542   : > { %v9717_v35 = vpack.c.bf16 %v9685_v18, %v9685_v18  ;;  %v9789_v39 = vsel %vm9773_vm2, %v9685_v18, 0.0  ;;  %v9853_v2 = vmul.f32 %v9685_v18, %v9685_v18 }
 0x543   : > { %v9790_v27 = vadd.f32 %v9789_v39, %v9788_v58  ;;  %v8544_v39 = vadd.f32 %v15577_v56, %v8230_v40 }
 0x544   : > { %9749 = vst.msk [vmem:[%s15519_s8 + $0x20] sm:$0xf] %vm707_vm5, %v9717_v35  ;;  %v9892_v61 = vsel %vm9773_vm2, %v9853_v2, 0.0  ;;  %v15646_v35 = vpop.f32.mrf.mxu3 }
 0x545   : > { %v9893_v43 = vadd.f32 %v9892_v61, %v9891_v36  ;;  %v9583_v57 = vpop.f32.mrf.mxu1  ;;  %v15654_v61 = vpop.f32.mrf.mxu2 }
 0x546   : > { %v9650_v28 = vadd.f32 %v9583_v57, %v9224_v49  ;;  %v8231_v49 = vadd.f32 %v15583_v38, %v15306_v7 }
 0x548   : > { %v9686_v58 = vadd.f32 %v15510_v15, %v9650_v28  ;;  %v8545_v51 = vadd.f32 %v15592_v16, %v8231_v49 }
 0x54a   : > { %v9718_v12 = vpack.c.bf16 %v9686_v58, %v9686_v58  ;;  %v9791_v20 = vsel %vm9773_vm2, %v9686_v58, 0.0  ;;  %v9854_v1 = vmul.f32 %v9686_v58, %v9686_v58  ;;  %v9227_v16 = vadd.f32 %v15597_v11, %v8545_v51 }
 0x54b   : > { %v9792_v5 = vadd.f32 %v9791_v20, %v9790_v27  ;;  %v15651_v27 = vpop.f32.mrf.mxu0 }
 0x54c   : > { %9750 = vst.msk [vmem:[%s15519_s8 + $0x24] sm:$0xf] %vm707_vm5, %v9718_v12  ;;  %v9894_v36 = vsel %vm9773_vm2, %v9854_v1, 0.0  ;;  %v15664_v12 = vpop.f32.mrf.mxu3 }
 0x54d   : > { %v9895_v45 = vadd.f32 %v9894_v36, %v9893_v43  ;;  %v9586_v18 = vpop.f32.mrf.mxu1  ;;  %v9226_v43 = vadd.f32 %v15580_v4, %v8544_v39  ;;  %v15675_v40 = vpop.f32.mrf.mxu2 }
 0x54e   : > { %v9651_v54 = vadd.f32 %v9586_v18, %v9225_v33 }
 0x550   : > { %v9687_v2 = vadd.f32 %v15510_v15, %v9651_v54  ;;  %9625 = vmatmul.bf16.gmra.mxu1 %v15292_v9  ;;  %v9262_v54 = vld [vmem:[#allocation2 + $0xcc] sm:$0xe] }
 0x552   : > { %v9719_v17 = vpack.c.bf16 %v9687_v2, %v9687_v2  ;;  %v9793_v22 = vsel %vm9773_vm2, %v9687_v2, 0.0  ;;  %v9855_v42 = vmul.f32 %v9687_v2, %v9687_v2 }
 0x553   : > { %v9794_v25 = vadd.f32 %v9793_v22, %v9792_v5  ;;  %v8232_v5 = vadd.f32 %v15604_v19, %v15327_v10  ;;  %v15669_v3 = vpop.f32.mrf.mxu0  ;;  %v11324_v19 = vrot.slane %v9262_v54, 9 }
 0x554   : > { %9751 = vst.msk [vmem:[%s15519_s8 + $0x28] sm:$0xf] %vm707_vm5, %v9719_v17  ;;  %v9896_v56 = vsel %vm9773_vm2, %v9855_v42, 0.0  ;;  %v9421_v17 = vrot.slane %v15454_v59, 5 }
 0x555   : > { %v9897_v9 = vadd.f32 %v9896_v56, %v9895_v45  ;;  %v9588_v57 = vpop.f32.mrf.mxu1  ;;  %v9418_v45 = vrot.slane %v15452_v53, 5  ;;  %v8546_v39 = vadd.f32 %v15609_v14, %v8232_v5  ;;  %v8233_v53 = vadd.f32 %v15619_v48, %v15349_v0  ;;  %v8184_v51 = vpop.f32.mrf.mxu2 }
 0x556   : > { %v9652_v28 = vadd.f32 %v9588_v57, %v9226_v43  ;;  %v8234_v5 = vadd.f32 %v15637_v41, %v15359_v24 }
 0x557   : > { %v9420_v2 = vrot.slane %v9418_v45, 4  ;;  %v9228_v56 = vadd.f32 %v15617_v63, %v8546_v39  ;;  %v9419_v59 = vsel %vm12248_vm13, %v11324_v19, %v9418_v45  ;;  %v8547_v0 = vadd.f32 %v15631_v46, %v8233_v53 }
 0x558   : > { %v9688_v58 = vadd.f32 %v15510_v15, %v9652_v28 }
 0x55a   : > { %v9720_v20 = vpack.c.bf16 %v9688_v58, %v9688_v58  ;;  %v9795_v1 = vsel %vm9773_vm2, %v9688_v58, 0.0  ;;  %v9856_v7 = vmul.f32 %v9688_v58, %v9688_v58  ;;  %v9470_v58 = vunpack.c.l.b16 %v9419_v59 }
 0x55b   : > { %v9796_v38 = vadd.f32 %v9795_v1, %v9794_v25  ;;  %v8495_v25 = vpop.f32.mrf.mxu3  ;;  %v15693_v57 = vpop.f32.mrf.mxu0 }
 0x55c   : > { %9752 = vst.msk [vmem:[%s15519_s8 + $0x2c] sm:$0xf] %vm707_vm5, %v9720_v20  ;;  %v9898_v4 = vsel %vm9773_vm2, %v9856_v7, 0.0 }
 0x55d   : > { %v9899_v36 = vadd.f32 %v9898_v4, %v9897_v9  ;;  %v9591_v33 = vpop.f32.mrf.mxu1  ;;  %v9422_v9 = vsel %vm12248_vm13, %v9420_v2, %v9421_v17  ;;  %v9229_v4 = vadd.f32 %v15634_v23, %v8547_v0  ;;  %v8235_v23 = vadd.f32 %v15654_v61, %v15373_v6 }
 0x55e   : > { %v9653_v18 = vadd.f32 %v9591_v33, %v9227_v16  ;;  %v9471_v20 = vunpack.c.l.b16 %v9422_v9  ;;  %v8236_v9 = vadd.f32 %v15675_v40, %v15384_v47  ;;  %v8237_v47 = vadd.f32 %v8184_v51, %v15400_v60 }
 0x55f   : > { %v8549_v53 = vadd.f32 %v15664_v12, %v8235_v23 }
 0x560   : > { %v9689_v10 = vadd.f32 %v15510_v15, %v9653_v18  ;;  %9630 = vmatmul.bf16.gmra.mxu1 %v15317_v50  ;;  %v9487_v46 = vpack.c.b16 %v9471_v20, %v9470_v58  ;;  %v8548_v18 = vadd.f32 %v15646_v35, %v8234_v5  ;;  %v8550_v58 = vadd.f32 %v8495_v25, %v8236_v9 }
 0x562   : > { %v9721_v11 = vpack.c.bf16 %v9689_v10, %v9689_v10  ;;  %v9797_v22 = vsel %vm9773_vm2, %v9689_v10, 0.0  ;;  %v9857_v42 = vmul.f32 %v9689_v10, %v9689_v10  ;;  %v8186_v10 = vpop.f32.mrf.mxu2  ;;  %v9230_v35 = vadd.f32 %v15651_v27, %v8548_v18 }
 0x563   : > { %v9798_v49 = vadd.f32 %v9797_v22, %v9796_v38  ;;  %v8498_v16 = vpop.f32.mrf.mxu3  ;;  %v9180_v54 = vpop.f32.mrf.mxu0 }
 0x564   : > { %9753 = vst.msk [vmem:[%s15519_s8 + $0x30] sm:$0xf] %vm707_vm5, %v9721_v11  ;;  %v9900_v14 = vsel %vm9773_vm2, %v9857_v42, 0.0 }
 0x565   : > { %v9901_v50 = vadd.f32 %v9900_v14, %v9899_v36  ;;  %v9593_v43 = vpop.f32.mrf.mxu1 }
 0x566   : > { %v9654_v28 = vadd.f32 %v9593_v43, %v9228_v56 }
 0x568   : > { %v9690_v48 = vadd.f32 %v15510_v15, %v9654_v28  ;;  %v9231_v28 = vadd.f32 %v15669_v3, %v8549_v53 }
 0x56a   : > { %v9722_v63 = vpack.c.bf16 %v9690_v48, %v9690_v48  ;;  %v9799_v1 = vsel %vm9773_vm2, %v9690_v48, 0.0  ;;  %v9858_v7 = vmul.f32 %v9690_v48, %v9690_v48  ;;  %v8189_v61 = vpop.f32.mrf.mxu2 }
 0x56b   : > { %v9800_v38 = vadd.f32 %v9799_v1, %v9798_v49  ;;  %v8500_v49 = vpop.f32.mrf.mxu3  ;;  %v9182_v56 = vpop.f32.mrf.mxu0 }
 0x56c   : > { %9754 = vst.msk [vmem:[%s15519_s8 + $0x34] sm:$0xf] %vm707_vm5, %v9722_v63  ;;  %v9902_v34 = vsel %vm9773_vm2, %v9858_v7, 0.0 }
 0x56d   : > { %v9903_v36 = vadd.f32 %v9902_v34, %v9901_v50  ;;  %v9596_v33 = vpop.f32.mrf.mxu1  ;;  %v9232_v34 = vadd.f32 %v15693_v57, %v8550_v58 }
 0x56e   : > { %v9655_v45 = vadd.f32 %v9596_v33, %v9229_v4  ;;  %v8551_v33 = vadd.f32 %v8498_v16, %v8237_v47 }
 0x570   : > { %v9691_v39 = vadd.f32 %v15510_v15, %v9655_v45  ;;  %9635 = vmatmul.bf16.gmra.mxu1 %v9487_v46 }
 0x572   : > { %v9723_v24 = vpack.c.bf16 %v9691_v39, %v9691_v39  ;;  %v9801_v41 = vsel %vm9773_vm2, %v9691_v39, 0.0  ;;  %v9859_v19 = vmul.f32 %v9691_v39, %v9691_v39  ;;  %v8191_v4 = vpop.f32.mrf.mxu2 }
 0x573   : > { %v9802_v2 = vadd.f32 %v9801_v41, %v9800_v38  ;;  %v8503_v63 = vpop.f32.mrf.mxu3  ;;  %v9185_v40 = vpop.f32.mrf.mxu0  ;;  %v8238_v41 = vadd.f32 %v8186_v10, %v15411_v52  ;;  %v8239_v52 = vadd.f32 %v8189_v61, %v15426_v8  ;;  %v8240_v61 = vadd.f32 %v8191_v4, %v15432_v26 }
 0x574   : > { %9755 = vst.msk [vmem:[%s15519_s8 + $0x38] sm:$0xf] %vm707_vm5, %v9723_v24  ;;  %v9904_v17 = vsel %vm9773_vm2, %v9859_v19, 0.0  ;;  %v9233_v19 = vadd.f32 %v9180_v54, %v8551_v33 }
 0x575   : > { %v9905_v11 = vadd.f32 %v9904_v17, %v9903_v36  ;;  %v9598_v22 = vpop.f32.mrf.mxu1 }
 0x576   : > { %v9656_v42 = vadd.f32 %v9598_v22, %v9230_v35 }
 0x578   : > { %v9692_v14 = vadd.f32 %v15510_v15, %v9656_v42 }
 0x57a   : > { %v9724_v50 = vpack.c.bf16 %v9692_v14, %v9692_v14  ;;  %v9803_v43 = vsel %vm9773_vm2, %v9692_v14, 0.0  ;;  %v9860_v6 = vmul.f32 %v9692_v14, %v9692_v14  ;;  %v8194_v35 = vpop.f32.mrf.mxu2 }
 0x57b   : > { %v9804_v59 = vadd.f32 %v9803_v43, %v9802_v2  ;;  %v8505_v60 = vpop.f32.mrf.mxu3  ;;  %v9187_v17 = vpop.f32.mrf.mxu0  ;;  %v8241_v4 = vadd.f32 %v8194_v35, %v15443_v32 }
 0x57c   : > { %9756 = vst.msk [vmem:[%s15519_s8 + $0x3c] sm:$0xf] %vm707_vm5, %v9724_v50  ;;  %v9906_v27 = vsel %vm9773_vm2, %v9860_v6, 0.0 }
 0x57d   : > { %v9907_v12 = vadd.f32 %v9906_v27, %v9905_v11  ;;  %v9601_v0 = vpop.f32.mrf.mxu1  ;;  %v8552_v11 = vadd.f32 %v8500_v49, %v8238_v41  ;;  %v8553_v49 = vadd.f32 %v8503_v63, %v8239_v52 }
 0x57e   : > { %v9657_v48 = vadd.f32 %v9601_v0, %v9231_v28 }
 0x57f   : > { %v9234_v10 = vadd.f32 %v9182_v56, %v8552_v11 }
 0x580   : > { %v9693_v20 = vadd.f32 %v15510_v15, %v9657_v48 }
 0x582   : > { %v9725_v1 = vpack.c.bf16 %v9693_v20, %v9693_v20  ;;  %v9805_v7 = vsel %vm9773_vm2, %v9693_v20, 0.0  ;;  %v9861_v38 = vmul.f32 %v9693_v20, %v9693_v20  ;;  %v9235_v20 = vadd.f32 %v9185_v40, %v8553_v49 }
 0x583   : > { %v9806_v5 = vadd.f32 %v9805_v7, %v9804_v59  ;;  %v8508_v43 = vpop.f32.mrf.mxu3  ;;  %v9190_v27 = vpop.f32.mrf.mxu0 }
 0x584   : > { %9757 = vst.msk [vmem:[%s15519_s8 + $0x40] sm:$0xf] %vm707_vm5, %v9725_v1  ;;  %v9908_v3 = vsel %vm9773_vm2, %v9861_v38, 0.0 }
 0x585   : > { %v9909_v25 = vadd.f32 %v9908_v3, %v9907_v12  ;;  %v9603_v46 = vpop.f32.mrf.mxu1  ;;  %v8196_v12 = vpop.f32.mrf.mxu2 }
 0x586   : > { %v9658_v36 = vadd.f32 %v9603_v46, %v9232_v34  ;;  %v8242_v32 = vadd.f32 %v8196_v12, %v15450_v37 }
 0x588   : > { %v9694_v45 = vadd.f32 %v15510_v15, %v9658_v36 }
 0x58a   : > { %v9726_v18 = vpack.c.bf16 %v9694_v45, %v9694_v45  ;;  %v9807_v39 = vsel %vm9773_vm2, %v9694_v45, 0.0  ;;  %v9862_v24 = vmul.f32 %v9694_v45, %v9694_v45 }
 0x58b   : > { %v9808_v51 = vadd.f32 %v9807_v39, %v9806_v5  ;;  %v8510_v38 = vpop.f32.mrf.mxu3  ;;  %v8554_v5 = vadd.f32 %v8505_v60, %v8240_v61  ;;  %v9192_v3 = vpop.f32.mrf.mxu0 }
 0x58c   : > { %9758 = vst.msk [vmem:[%s15519_s8 + $0x44] sm:$0xf] %vm707_vm5, %v9726_v18  ;;  %v9910_v57 = vsel %vm9773_vm2, %v9862_v24, 0.0  ;;  %v8555_v24 = vadd.f32 %v8508_v43, %v8241_v4 }
 0x58d   : > { %v9911_v2 = vadd.f32 %v9910_v57, %v9909_v25  ;;  %v9606_v23 = vpop.f32.mrf.mxu1  ;;  %v8199_v36 = vpop.f32.mrf.mxu2  ;;  %v9236_v33 = vadd.f32 %v9187_v17, %v8554_v5 }
 0x58e   : > { %v9659_v16 = vadd.f32 %v9606_v23, %v9233_v19  ;;  %v8243_v43 = vadd.f32 %v8199_v36, %v15464_v13 }
 0x590   : > { %v9695_v22 = vadd.f32 %v15510_v15, %v9659_v16  ;;  %v9237_v16 = vadd.f32 %v9190_v27, %v8555_v24 }
 0x592   : > { %v9727_v42 = vpack.c.bf16 %v9695_v22, %v9695_v22  ;;  %v9809_v53 = vsel %vm9773_vm2, %v9695_v22, 0.0  ;;  %v9863_v14 = vmul.f32 %v9695_v22, %v9695_v22 }
 0x593   : > { %v9810_v50 = vadd.f32 %v9809_v53, %v9808_v51  ;;  %v8513_v51 = vpop.f32.mrf.mxu3  ;;  %v9195_v23 = vpop.f32.mrf.mxu0  ;;  %v8556_v53 = vadd.f32 %v8510_v38, %v8242_v32 }
 0x594   : > { %9759 = vst.msk [vmem:[%s15519_s8 + $0x48] sm:$0xf] %vm707_vm5, %v9727_v42  ;;  %v9912_v54 = vsel %vm9773_vm2, %v9863_v14, 0.0 }
 0x595   : > { %v9913_v6 = vadd.f32 %v9912_v54, %v9911_v2  ;;  %v9608_v59 = vpop.f32.mrf.mxu1  ;;  %v8201_v35 = vpop.f32.mrf.mxu2 }
 0x596   : > { %v9660_v9 = vadd.f32 %v9608_v59, %v9234_v10  ;;  %v9238_v59 = vadd.f32 %v9192_v3, %v8556_v53  ;;  %v8244_v13 = vadd.f32 %v8201_v35, %v15475_v31 }
 0x598   : > { %v9696_v28 = vadd.f32 %v15510_v15, %v9660_v9 }
 0x59a   : > { %v9728_v0 = vpack.c.bf16 %v9696_v28, %v9696_v28  ;;  %v9811_v48 = vsel %vm9773_vm2, %v9696_v28, 0.0  ;;  %v9864_v58 = vmul.f32 %v9696_v28, %v9696_v28 }
 0x59b   : > { %v9812_v8 = vadd.f32 %v9811_v48, %v9810_v50  ;;  %v8515_v10 = vpop.f32.mrf.mxu3  ;;  %v9197_v27 = vpop.f32.mrf.mxu0 }
 0x59c   : > { %9760 = vst.msk [vmem:[%s15519_s8 + $0x4c] sm:$0xf] %vm707_vm5, %v9728_v0  ;;  %v9914_v56 = vsel %vm9773_vm2, %v9864_v58, 0.0  ;;  %v8557_v0 = vadd.f32 %v8513_v51, %v8243_v43 }
 0x59d   : > { %v9915_v1 = vadd.f32 %v9914_v56, %v9913_v6  ;;  %v9611_v7 = vpop.f32.mrf.mxu1  ;;  %v8204_v12 = vpop.f32.mrf.mxu2 }
 0x59e   : > { %v9661_v63 = vadd.f32 %v9611_v7, %v9235_v20  ;;  %v8245_v4 = vadd.f32 %v8204_v12, %v15480_v30 }
 0x5a0   : > { %v9697_v47 = vadd.f32 %v15510_v15, %v9661_v63 }
 0x5a2   : > { %v9729_v34 = vpack.c.bf16 %v9697_v47, %v9697_v47  ;;  %v9813_v25 = vsel %vm9773_vm2, %v9697_v47, 0.0  ;;  %v9865_v46 = vmul.f32 %v9697_v47, %v9697_v47  ;;  %v8558_v47 = vadd.f32 %v8515_v10, %v8244_v13 }
 0x5a3   : > { %v9814_v26 = vadd.f32 %v9813_v25, %v9812_v8  ;;  %v8518_v7 = vpop.f32.mrf.mxu3  ;;  %v9200_v3 = vpop.f32.mrf.mxu0 }
 0x5a4   : > { %9761 = vst.msk [vmem:[%s15519_s8 + $0x50] sm:$0xf] %vm707_vm5, %v9729_v34  ;;  %v9916_v40 = vsel %vm9773_vm2, %v9865_v46, 0.0 }
 0x5a5   : > { %v9917_v45 = vadd.f32 %v9916_v40, %v9915_v1  ;;  %v9613_v18 = vpop.f32.mrf.mxu1  ;;  %v9239_v1 = vadd.f32 %v9195_v23, %v8557_v0  ;;  %v8206_v25 = vpop.f32.mrf.mxu2 }
 0x5a6   : > { %v9662_v39 = vadd.f32 %v9613_v18, %v9236_v33  ;;  %v9240_v33 = vadd.f32 %v9197_v27, %v8558_v47  ;;  %v8246_v23 = vadd.f32 %v8206_v25, %v15485_v21 }
 0x5a8   : > { %v9698_v60 = vadd.f32 %v15510_v15, %v9662_v39 }
 0x5aa   : > { %v9730_v41 = vpack.c.bf16 %v9698_v60, %v9698_v60  ;;  %v9815_v57 = vsel %vm9773_vm2, %v9698_v60, 0.0  ;;  %v9866_v19 = vmul.f32 %v9698_v60, %v9698_v60  ;;  %v8559_v60 = vadd.f32 %v8518_v7, %v8245_v4 }
 0x5ab   : > { %v9816_v2 = vadd.f32 %v9815_v57, %v9814_v26  ;;  %v8520_v24 = vpop.f32.mrf.mxu3 }
 0x5ac   : > { %9762 = vst.msk [vmem:[%s15519_s8 + $0x54] sm:$0xf] %vm707_vm5, %v9730_v41  ;;  %v9918_v17 = vsel %vm9773_vm2, %v9866_v19, 0.0  ;;  %v9202_v41 = vpop.f32.mrf.mxu0 }
 0x5ad   : > { %v9919_v11 = vadd.f32 %v9918_v17, %v9917_v45  ;;  %v9616_v22 = vpop.f32.mrf.mxu1  ;;  %v8209_v32 = vpop.f32.mrf.mxu2 }
 0x5ae   : > { %v9663_v42 = vadd.f32 %v9616_v22, %v9237_v16  ;;  %v9241_v16 = vadd.f32 %v9200_v3, %v8559_v60  ;;  %v8247_v21 = vadd.f32 %v8209_v32, %v15489_v44 }
 0x5b0   : > { %v9699_v14 = vadd.f32 %v15510_v15, %v9663_v42  ;;  %v8560_v42 = vadd.f32 %v8520_v24, %v8246_v23 }
 0x5b2   : > { %v9731_v50 = vpack.c.bf16 %v9699_v14, %v9699_v14  ;;  %v9817_v52 = vsel %vm9773_vm2, %v9699_v14, 0.0  ;;  %v9867_v54 = vmul.f32 %v9699_v14, %v9699_v14 }
 0x5b3   : > { %v9818_v37 = vadd.f32 %v9817_v52, %v9816_v2  ;;  %v8523_v14 = vpop.f32.mrf.mxu3 }
 0x5b4   : > { %9763 = vst.msk [vmem:[%s15519_s8 + $0x58] sm:$0xf] %vm707_vm5, %v9731_v50  ;;  %v9920_v6 = vsel %vm9773_vm2, %v9867_v54, 0.0 }
 0x5b5   : > { %v9921_v9 = vadd.f32 %v9920_v6, %v9919_v11  ;;  %v9618_v49 = vpop.f32.mrf.mxu1  ;;  %v9242_v6 = vadd.f32 %v9202_v41, %v8560_v42 }
 0x5b6   : > { %v9664_v28 = vadd.f32 %v9618_v49, %v9238_v59  ;;  %v8211_v59 = vpop.f32.mrf.mxu2 }
 0x5b7   : > { %v8248_v44 = vadd.f32 %v8211_v59, %v15494_v29 }
 0x5b8   : > { %v9700_v48 = vadd.f32 %v15510_v15, %v9664_v28  ;;  %v8561_v28 = vadd.f32 %v8523_v14, %v8247_v21 }
 0x5ba   : > { %v9732_v58 = vpack.c.bf16 %v9700_v48, %v9700_v48  ;;  %v9819_v8 = vsel %vm9773_vm2, %v9700_v48, 0.0  ;;  %v9868_v61 = vmul.f32 %v9700_v48, %v9700_v48 }
 0x5bb   : > { %v9820_v56 = vadd.f32 %v9819_v8, %v9818_v37  ;;  %v9205_v37 = vpop.f32.mrf.mxu0  ;;  %v8525_v8 = vpop.f32.mrf.mxu3 }
 0x5bc   : > { %9764 = vst.msk [vmem:[%s15519_s8 + $0x5c] sm:$0xf] %vm707_vm5, %v9732_v58  ;;  %v9922_v20 = vsel %vm9773_vm2, %v9868_v61, 0.0  ;;  %v9243_v13 = vadd.f32 %v9205_v37, %v8561_v28 }
 0x5bd   : > { %v9923_v63 = vadd.f32 %v9922_v20, %v9921_v9  ;;  %v9621_v38 = vpop.f32.mrf.mxu1 }
 0x5be   : > { %v9665_v5 = vadd.f32 %v9621_v38, %v9239_v1  ;;  %v8214_v38 = vpop.f32.mrf.mxu2 }
 0x5c0   : > { %v9701_v34 = vadd.f32 %v15510_v15, %v9665_v5  ;;  %v8562_v5 = vadd.f32 %v8525_v8, %v8248_v44 }
 0x5c2   : > { %v9733_v46 = vpack.c.bf16 %v9701_v34, %v9701_v34  ;;  %v9821_v36 = vsel %vm9773_vm2, %v9701_v34, 0.0  ;;  %v9869_v26 = vmul.f32 %v9701_v34, %v9701_v34 }
 0x5c3   : > { %v9822_v31 = vadd.f32 %v9821_v36, %v9820_v56  ;;  %v8249_v36 = vadd.f32 %v8214_v38, %v15498_v55 }
 0x5c4   : > { %9765 = vst.msk [vmem:[%s15519_s8 + $0x60] sm:$0xf] %vm707_vm5, %v9733_v46  ;;  %v9924_v40 = vsel %vm9773_vm2, %v9869_v26, 0.0  ;;  %v8528_v46 = vpop.f32.mrf.mxu3 }
 0x5c5   : > { %v9925_v45 = vadd.f32 %v9924_v40, %v9923_v63  ;;  %v9623_v18 = vpop.f32.mrf.mxu1  ;;  %v9207_v63 = vpop.f32.mrf.mxu0 }
 0x5c6   : > { %v9666_v39 = vadd.f32 %v9623_v18, %v9240_v33  ;;  %v8563_v18 = vadd.f32 %v8528_v46, %v8249_v36  ;;  %v8216_v24 = vpop.f32.mrf.mxu2 }
 0x5c8   : > { %v9702_v51 = vadd.f32 %v15510_v15, %v9666_v39 }
 0x5ca   : > { %v9734_v57 = vpack.c.bf16 %v9702_v51, %v9702_v51  ;;  %v9823_v19 = vsel %vm9773_vm2, %v9702_v51, 0.0  ;;  %v9870_v2 = vmul.f32 %v9702_v51, %v9702_v51 }
 0x5cb   : > { %v9824_v30 = vadd.f32 %v9823_v19, %v9822_v31  ;;  %v9244_v31 = vadd.f32 %v9207_v63, %v8562_v5  ;;  %v8250_v19 = vadd.f32 %v8216_v24, %v15503_v62 }
 0x5cc   : > { %9766 = vst.msk [vmem:[%s15519_s8 + $0x64] sm:$0xf] %vm707_vm5, %v9734_v57  ;;  %v9926_v17 = vsel %vm9773_vm2, %v9870_v2, 0.0  ;;  %v8530_v32 = vpop.f32.mrf.mxu3 }
 0x5cd   : > { %v9927_v35 = vadd.f32 %v9926_v17, %v9925_v45  ;;  %v9626_v11 = vpop.f32.mrf.mxu1  ;;  %v9210_v45 = vpop.f32.mrf.mxu0 }
 0x5ce   : > { %v9667_v22 = vadd.f32 %v9626_v11, %v9241_v16  ;;  %v9245_v55 = vadd.f32 %v9210_v45, %v8563_v18  ;;  %v8564_v16 = vadd.f32 %v8530_v32, %v8250_v19 }
 0x5d0   : > { %v9703_v53 = vadd.f32 %v15510_v15, %v9667_v22 }
 0x5d2   : > { %v9735_v50 = vpack.c.bf16 %v9703_v53, %v9703_v53  ;;  %v9825_v52 = vsel %vm9773_vm2, %v9703_v53, 0.0  ;;  %v9871_v54 = vmul.f32 %v9703_v53, %v9703_v53 }
 0x5d3   : > { %v9826_v10 = vadd.f32 %v9825_v52, %v9824_v30 }
 0x5d4   : > { %9767 = vst.msk [vmem:[%s15519_s8 + $0x68] sm:$0xf] %vm707_vm5, %v9735_v50  ;;  %v9928_v43 = vsel %vm9773_vm2, %v9871_v54, 0.0 }
 0x5d5   : > { %v9929_v9 = vadd.f32 %v9928_v43, %v9927_v35  ;;  %v9628_v49 = vpop.f32.mrf.mxu1  ;;  %v9212_v11 = vpop.f32.mrf.mxu0 }
 0x5d6   : > { %v9668_v27 = vadd.f32 %v9628_v49, %v9242_v6  ;;  %v9246_v50 = vadd.f32 %v9212_v11, %v8564_v16 }
 0x5d8   : > { %v9704_v12 = vadd.f32 %v15510_v15, %v9668_v27 }
 0x5da   : > { %v9736_v0 = vpack.c.bf16 %v9704_v12, %v9704_v12  ;;  %v9827_v48 = vsel %vm9773_vm2, %v9704_v12, 0.0  ;;  %v9872_v58 = vmul.f32 %v9704_v12, %v9704_v12 }
 0x5db   : > { %v9828_v61 = vadd.f32 %v9827_v48, %v9826_v10 }
 0x5dc   : > { %9768 = vst.msk [vmem:[%s15519_s8 + $0x6c] sm:$0xf] %vm707_vm5, %v9736_v0  ;;  %v9930_v56 = vsel %vm9773_vm2, %v9872_v58, 0.0 }
 0x5dd   : > { %v9931_v20 = vadd.f32 %v9930_v56, %v9929_v9  ;;  %v9631_v1 = vpop.f32.mrf.mxu1 }
 0x5de   : > { %v9669_v7 = vadd.f32 %v9631_v1, %v9243_v13 }
 0x5e0   : > { %v9705_v47 = vadd.f32 %v15510_v15, %v9669_v7 }
 0x5e2   : > { %v9737_v3 = vpack.c.bf16 %v9705_v47, %v9705_v47  ;;  %v9829_v34 = vsel %vm9773_vm2, %v9705_v47, 0.0  ;;  %v9873_v25 = vmul.f32 %v9705_v47, %v9705_v47 }
 0x5e3   : > { %v9830_v29 = vadd.f32 %v9829_v34, %v9828_v61 }
 0x5e4   : > { %9769 = vst.msk [vmem:[%s15519_s8 + $0x70] sm:$0xf] %vm707_vm5, %v9737_v3  ;;  %v9932_v26 = vsel %vm9773_vm2, %v9873_v25, 0.0 }
 0x5e5   : > { %v9933_v4 = vadd.f32 %v9932_v26, %v9931_v20  ;;  %v9633_v40 = vpop.f32.mrf.mxu1 }
 0x5e6   : > { %v9670_v33 = vadd.f32 %v9633_v40, %v9244_v31 }
 0x5e8   : > { %v9706_v39 = vadd.f32 %v15510_v15, %v9670_v33 }
 0x5ea   : > { %v9738_v60 = vpack.c.bf16 %v9706_v39, %v9706_v39  ;;  %v9831_v51 = vsel %vm9773_vm2, %v9706_v39, 0.0  ;;  %v9874_v41 = vmul.f32 %v9706_v39, %v9706_v39 }
 0x5eb   : > { %v9832_v57 = vadd.f32 %v9831_v51, %v9830_v29 }
 0x5ec   : > { %9770 = vst.msk [vmem:[%s15519_s8 + $0x74] sm:$0xf] %vm707_vm5, %v9738_v60  ;;  %v9934_v2 = vsel %vm9773_vm2, %v9874_v41, 0.0 }
 0x5ed   : > { %v9935_v30 = vadd.f32 %v9934_v2, %v9933_v4  ;;  %v9636_v23 = vpop.f32.mrf.mxu1 }
 0x5ee   : > { %v9671_v17 = vadd.f32 %v9636_v23, %v9245_v55 }
 0x5f0   : > { %v9707_v35 = vadd.f32 %v15510_v15, %v9671_v17 }
 0x5f2   : > { %v9739_v22 = vpack.c.bf16 %v9707_v35, %v9707_v35  ;;  %v9833_v42 = vsel %vm9773_vm2, %v9707_v35, 0.0  ;;  %v9875_v53 = vmul.f32 %v9707_v35, %v9707_v35 }
 0x5f3   : > { %v9834_v14 = vadd.f32 %v9833_v42, %v9832_v57 }
 0x5f4   : > { %9771 = vst.msk [vmem:[%s15519_s8 + $0x78] sm:$0xf] %vm707_vm5, %v9739_v22  ;;  %v9936_v62 = vsel %vm9773_vm2, %v9875_v53, 0.0 }
 0x5f5   : > { %v9937_v52 = vadd.f32 %v9936_v62, %v9935_v30  ;;  %v9638_v54 = vpop.f32.mrf.mxu1 }
 0x5f6   : > { %v9672_v10 = vadd.f32 %v9638_v54, %v9246_v50 }
 0x5f8   : > { %v9708_v37 = vadd.f32 %v15510_v15, %v9672_v10 }
 0x5fa   : > { %v9740_v21 = vpack.c.bf16 %v9708_v37, %v9708_v37  ;;  %v9835_v43 = vsel %vm9773_vm2, %v9708_v37, 0.0  ;;  %v9876_v6 = vmul.f32 %v9708_v37, %v9708_v37 }
 0x5fb   : > { %v9836_v59 = vadd.f32 %v9835_v43, %v9834_v14 }
 0x5fc   : > { %9772 = vst.msk [vmem:[%s15519_s8 + $0x7c] sm:$0xf] %vm707_vm5, %v9740_v21  ;;  %v9938_v9 = vsel %vm9773_vm2, %v9876_v6, 0.0 }
 0x5fd   : > { %v9837_v49 = vrot.slane %v9836_v59, 4  ;;  %v9939_v27 = vadd.f32 %v9938_v9, %v9937_v52 }
 0x5ff   : > { %v9838_v28 = vadd.f32 %v9837_v49, %v9836_v59  ;;  %v9940_v12 = vrot.slane %v9939_v27, 4 }
 0x601   : > { %v9839_v0 = vrot.slane %v9838_v28, 2  ;;  %v9941_v48 = vadd.f32 %v9940_v12, %v9939_v27 }
 0x603   : > { %v9840_v58 = vadd.f32 %v9839_v0, %v9838_v28  ;;  %v9942_v8 = vrot.slane %v9941_v48, 2 }
 0x605   : > { %v9841_v15 = vrot.slane %v9840_v58, 1  ;;  %v9943_v61 = vadd.f32 %v9942_v8, %v9941_v48 }
 0x607   : > { %v9842_v44 = vadd.f32 %v9841_v15, %v9840_v58  ;;  %v9944_v56 = vrot.slane %v9943_v61, 1 }
 0x609   : > { %9844 = vst.msk [vmem:[%s292_s10] sm:$0x1] %vm715_vm7, %v9842_v44  ;;  %v9945_v13 = vadd.f32 %v9944_v56, %v9943_v61 }
 0x60b   : > { %9946 = vst.msk [vmem:[%s295_s12] sm:$0x1] %vm715_vm7, %v9945_v13 }
 0x60c PF: > { %s18_s24 = sadd.s32 1, %s11687_s24  }
 0x60d   : > { %p15_p4 = scmp.ge.s32.totalorder %s18_s24, 4  }
 0x60f   :  { %17 = sbr.rel (!%p15_p4) target bundleno = 1 (0x1), region = 112 }

</bundles_post_ra>
